<compile_context>
chip_gen: v6e
topology: v6e:2x2x1
jax: 0.10.0
libtpu: 0.0.40
codegen_flags: <defaults>
</compile_context>

<pallas_src>
import jax
import jax.numpy as jnp
import numpy as np
from jax.experimental import pallas as pl
from jax.experimental.pallas import tpu as pltpu

LANE = 128  # TPU lane width; channels are zero-padded to a multiple of this.


def _round_up(v, m):
    return (v + m - 1) // m * m


# ---------------------------------------------------------------------------
# Kernel: one grid step = one block of TH output rows (all batch, all channels)
# ---------------------------------------------------------------------------
def _basic_block_zero_kernel(xw_ref, w1_ref, b1_ref, w2_ref, b2_ref, out_ref, hwin_ref):
    # xw_ref  : (N, TH+4, Wp, Cp) f32   row window of spatially padded x (2-row/1-col halo)
    # w*_ref  : (9, Cp, Cp)       bf16  per-tap HWIO weights, BN scale folded (resident)
    # b*_ref  : (1, Cp)           f32   folded BN bias
    # out_ref : (N, TH, W, Cp)    f32
    # hwin_ref: (N, TH+2, Wp, Cp) bf16  intermediate h with its own 1-row/1-col halo
    N, TH, W, Cp = out_ref.shape
    TH2 = TH + 2
    i = pl.program_id(0)
    nt = pl.num_programs(0)

    # ---- stage 1: h = relu( crossmul( bn1(conv1(x)) ) ) on TH+2 rows ---------
    M1 = N * TH2 * W
    acc1 = None
    for tap in range(9):
        ky, kx = divmod(tap, 3)
        lhs = (xw_ref[:, ky:ky + TH2, kx:kx + W, :]
               .astype(jnp.bfloat16).reshape(M1, Cp))
        p = jnp.dot(lhs, w1_ref[tap], preferred_element_type=jnp.float32)
        acc1 = p if acc1 is None else acc1 + p
    o1 = (acc1 + b1_ref[...]).reshape(N, TH2, W, Cp)

    # crossmul gated to batch element 0 only: out[0] *= out[1].detach()
    hwin_ref[0:1, :, 1:W + 1, :] = jnp.maximum(o1[0:1] * o1[1:2], 0.0).astype(hwin_ref.dtype)
    hwin_ref[1:, :, 1:W + 1, :] = jnp.maximum(o1[1:], 0.0).astype(hwin_ref.dtype)

    # Halo-only zeroing: left/right halo column every tile; top/bottom halo ROW
    # only at the image border tiles (h[-1] = h[H] = conv2's zero padding).
    zcol = jnp.zeros((N, TH2, 1, Cp), hwin_ref.dtype)
    hwin_ref[:, :, 0:1, :] = zcol
    hwin_ref[:, :, W + 1:W + 2, :] = zcol
    zrow = jnp.zeros((N, 1, hwin_ref.shape[2], Cp), hwin_ref.dtype)

    @pl.when(i == 0)
    def _():
        hwin_ref[:, 0:1, :, :] = zrow

    @pl.when(i == nt - 1)
    def _():
        hwin_ref[:, TH + 1:TH + 2, :, :] = zrow

    # ---- stage 2: out = relu( crossmul( bn2(conv2(h)) ) + x ) ----------------
    M2 = N * TH * W
    acc2 = None
    for tap in range(9):
        ky, kx = divmod(tap, 3)
        lhs = hwin_ref[:, ky:ky + TH, kx:kx + W, :].reshape(M2, Cp)
        p = jnp.dot(lhs, w2_ref[tap], preferred_element_type=jnp.float32)
        acc2 = p if acc2 is None else acc2 + p
    o2 = (acc2 + b2_ref[...]).reshape(N, TH, W, Cp)

    res = xw_ref[:, 2:TH + 2, 1:W + 1, :]          # exact f32 residual rows/cols
    out_ref[0:1] = jnp.maximum(o2[0:1] * o2[1:2] + res[0:1], 0.0).astype(out_ref.dtype)
    out_ref[1:] = jnp.maximum(o2[1:] + res[1:], 0.0).astype(out_ref.dtype)


# ---------------------------------------------------------------------------
# Wrapper (parameter folding / layout glue in plain JAX)
# ---------------------------------------------------------------------------
def basic_block_zero_forward(x_nchw, params, *, eps=1e-5, row_tile=8):
    N, C, H, W = x_nchw.shape
    if N < 2:
        raise ValueError("BasicBlockZero's `out[0] *= out[1]` requires batch >= 2")
    Cp = _round_up(C, LANE)                 # lane-dense channel count
    TH = row_tile if (H % row_tile == 0) else H
    nt = H // TH
    Wp = _round_up(W + 2, 16)               # padded width = multiple of bf16 sublane tile

    # NCHW -> NHWC, zero-pad channels to lane width and spatial dims with the conv halo.
    x = jnp.transpose(x_nchw, (0, 2, 3, 1)).astype(jnp.float32)
    xp = jnp.pad(x, ((0, 0), (2, 2), (1, Wp - W - 1), (0, Cp - C)))     # (N, H+4, Wp, Cp)
    # Overlapping row windows (2-row halo each side) so the grid gets a plain BlockSpec
    # that the Pallas pipeline can prefetch/double-buffer.
    xw = jnp.stack([xp[:, t * TH: t * TH + TH + 4] for t in range(nt)])  # (nt,N,TH+4,Wp,Cp)

    def fold_bn(g, b, m, v):
        s = g / jnp.sqrt(v + eps)
        return s, b - m * s

    s1, b1 = fold_bn(params["bn1_gamma"], params["bn1_beta"],
                     params["bn1_mean"], params["bn1_var"])
    s2, b2 = fold_bn(params["bn2_gamma"], params["bn2_beta"],
                     params["bn2_mean"], params["bn2_var"])

    def prep_w(w_torch, scale):
        # torch (Cout, Cin, 3, 3) -> HWIO (3,3,Cin,Cout), fold BN scale into Cout,
        # zero-pad channels to Cp, per-tap layout (9, Cp, Cp), cast bf16.
        w = jnp.transpose(w_torch, (2, 3, 1, 0)) * scale
        cin, cout = w.shape[2], w.shape[3]
        w = jnp.pad(w, ((0, 0), (0, 0), (0, Cp - cin), (0, Cp - cout)))
        return w.reshape(9, Cp, Cp).astype(jnp.bfloat16)

    w1 = prep_w(params["conv1_w"], s1)
    w2 = prep_w(params["conv2_w"], s2)
    b1p = jnp.pad(b1, (0, Cp - C)).reshape(1, Cp).astype(jnp.float32)
    b2p = jnp.pad(b2, (0, Cp - C)).reshape(1, Cp).astype(jnp.float32)

    flops = 2 * 9 * Cp * Cp * (nt * N * (TH + 2) * W + N * H * W)
    bytes_accessed = (nt * N * (TH + 4) * Wp * Cp * 4      # x windows in
                      + N * H * W * Cp * 4                 # out
                      + 2 * 9 * Cp * Cp * 2 + 2 * Cp * 4)  # weights + biases

    y_padded = pl.pallas_call(
        _basic_block_zero_kernel,
        out_shape=jax.ShapeDtypeStruct((N, H, W, Cp), jnp.float32),
        grid=(nt,),
        in_specs=[
            pl.BlockSpec((None, N, TH + 4, Wp, Cp), lambda i: (i, 0, 0, 0, 0)),
            pl.BlockSpec((9, Cp, Cp), lambda i: (0, 0, 0)),   # resident across grid steps
            pl.BlockSpec((1, Cp), lambda i: (0, 0)),
            pl.BlockSpec((9, Cp, Cp), lambda i: (0, 0, 0)),
            pl.BlockSpec((1, Cp), lambda i: (0, 0)),
        ],
        out_specs=pl.BlockSpec((N, TH, W, Cp), lambda i: (0, i, 0, 0)),
        scratch_shapes=[pltpu.VMEM((N, TH + 2, Wp, Cp), jnp.bfloat16)],   # h window
        compiler_params=pltpu.CompilerParams(dimension_semantics=("parallel",)),
        cost_estimate=pl.CostEstimate(flops=int(flops), transcendentals=0,
                                      bytes_accessed=int(bytes_accessed)),
    )(xw, w1, b1p, w2, b2p)

    # Drop the zero channel padding and go back to NCHW.
    return jnp.transpose(y_padded[..., :C], (0, 3, 1, 2))


# ---------------------------------------------------------------------------
# Pure-JAX reference (PyTorch BasicBlockZero semantics, inference-form BN).
# If mxu_dtype is given, the BN-scale-folded conv operands are quantized to that
# dtype, matching the kernel's bf16 MXU inputs (f32 accumulation in both).
# ---------------------------------------------------------------------------
def reference_forward(x_nchw, params, *, eps=1e-5, mxu_dtype=None):
    x = jnp.transpose(x_nchw, (0, 2, 3, 1)).astype(jnp.float32)

    def conv_bn(z, w_torch, g, b, m, v):
        s = g / jnp.sqrt(v + eps)
        bias = b - m * s
        w = jnp.transpose(w_torch, (2, 3, 1, 0)) * s          # HWIO, scale folded
        if mxu_dtype is not None:
            z = z.astype(mxu_dtype).astype(jnp.float32)
            w = w.astype(mxu_dtype).astype(jnp.float32)
        o = jax.lax.conv_general_dilated(
            z, w, (1, 1), "SAME", dimension_numbers=("NHWC", "HWIO", "NHWC"))
        return o + bias

    def crossmul(z):                                          # out[0] *= out[1].detach()
        return z.at[0].set(z[0] * z[1])

    h = jnp.maximum(crossmul(conv_bn(x, params["conv1_w"], params["bn1_gamma"],
                                     params["bn1_beta"], params["bn1_mean"],
                                     params["bn1_var"])), 0.0)
    o = jnp.maximum(crossmul(conv_bn(h, params["conv2_w"], params["bn2_gamma"],
                                     params["bn2_beta"], params["bn2_mean"],
                                     params["bn2_var"])) + x, 0.0)
    return jnp.transpose(o, (0, 3, 1, 2))


# ---------------------------------------------------------------------------
# Deterministic parameter init (shapes from BasicBlockZero.__init__)
# ---------------------------------------------------------------------------
def init_params(key, inplanes, planes):
    ks = jax.random.split(key, 12)
    p = {}
    p["conv1_w"] = 0.1 * jax.random.normal(ks[0], (planes, inplanes, 3, 3), jnp.float32)
    p["conv2_w"] = 0.1 * jax.random.normal(ks[1], (planes, planes, 3, 3), jnp.float32)
    for i, name in enumerate(("bn1", "bn2")):
        base = 2 + 5 * i
        p[f"{name}_gamma"] = 1.0 + 0.1 * jax.random.normal(ks[base + 0], (planes,), jnp.float32)
        p[f"{name}_beta"] = 0.1 * jax.random.normal(ks[base + 1], (planes,), jnp.float32)
        p[f"{name}_mean"] = 0.1 * jax.random.normal(ks[base + 2], (planes,), jnp.float32)
        p[f"{name}_var"] = 0.5 + jnp.abs(jax.random.normal(ks[base + 3], (planes,), jnp.float32))
    return p


if __name__ == "__main__":
    key = jax.random.PRNGKey(0)
    kx, kp = jax.random.split(key)
    N, C, H, W = 2, 4, 16, 16          # N >= 2 required by `out[0] *= out[1]`
    x = jax.random.normal(kx, (N, C, H, W), jnp.float32)
    params = init_params(kp, C, C)     # inplanes == planes, stride=1, downsample=None

    y = basic_block_zero_forward(x, params)   # row_tile=8 -> 2-tile "parallel" grid
    jax.block_until_ready(y)

    # Tight check: reference with the same bf16 MXU-operand quantization as the kernel.
    y_ref_q = reference_forward(x, params, mxu_dtype=jnp.bfloat16)
    np.testing.assert_allclose(np.asarray(y), np.asarray(y_ref_q), rtol=5e-3, atol=5e-3)

    # Sanity check against the pure-f32 PyTorch-semantics reference (bf16 envelope).
    y_ref = reference_forward(x, params)
    np.testing.assert_allclose(np.asarray(y), np.asarray(y_ref), rtol=1e-1, atol=1e-1)

    print("KERNEL_OK")
</pallas_src>

<mosaic_0001>
module attributes {stable_mosaic.version = 11 : i64} {
  func.func @_basic_block_zero_kernel(%arg0: i32, %arg1: memref<1x2x12x32x128xf32, #tpu.memory_space<vmem>>, %arg2: memref<9x128x128xbf16, #tpu.memory_space<vmem>>, %arg3: memref<1x128xf32, #tpu.memory_space<vmem>>, %arg4: memref<9x128x128xbf16, #tpu.memory_space<vmem>>, %arg5: memref<1x128xf32, #tpu.memory_space<vmem>>, %arg6: memref<2x8x16x128xf32, #tpu.memory_space<vmem>>, %arg7: memref<2x10x32x128xbf16, #tpu.memory_space<vmem>>) attributes {dimension_semantics = [#tpu.dimension_semantics<parallel>], iteration_bounds = array<i64: 2>, scalar_prefetch = 0 : i64, scratch_operands = 1 : i64, tpu.core_type = #tpu.core_type<tc>, window_params = [{transform_indices = @transform_0, window_bounds = array<i64: 1, 2, 12, 32, 128>}, {pipeline_mode = #tpu.pipeline_mode<synchronous>, transform_indices = @transform_1, window_bounds = array<i64: 9, 128, 128>}, {pipeline_mode = #tpu.pipeline_mode<synchronous>, transform_indices = @transform_2, window_bounds = array<i64: 1, 128>}, {pipeline_mode = #tpu.pipeline_mode<synchronous>, transform_indices = @transform_3, window_bounds = array<i64: 9, 128, 128>}, {pipeline_mode = #tpu.pipeline_mode<synchronous>, transform_indices = @transform_4, window_bounds = array<i64: 1, 128>}, {transform_indices = @transform_5, window_bounds = array<i64: 2, 8, 16, 128>}]} {
    %c0 = arith.constant 0 : index
    %c0_0 = arith.constant 0 : index
    %c0_1 = arith.constant 0 : index
    %c0_2 = arith.constant 0 : index
    %c0_3 = arith.constant 0 : index
    %0 = vector.load %arg1[%c0, %c0_0, %c0_1, %c0_2, %c0_3] : memref<1x2x12x32x128xf32, #tpu.memory_space<vmem>>, vector<1x2x10x16x128xf32>
    %1 = vector.shape_cast %0 : vector<1x2x10x16x128xf32> to vector<2x10x16x128xf32>
    %2 = arith.truncf %1 : vector<2x10x16x128xf32> to vector<2x10x16x128xbf16>
    %3 = vector.shape_cast %2 : vector<2x10x16x128xbf16> to vector<320x128xbf16>
    %c0_4 = arith.constant 0 : index
    %c0_5 = arith.constant 0 : index
    %c0_6 = arith.constant 0 : index
    %4 = vector.load %arg2[%c0_4, %c0_5, %c0_6] : memref<9x128x128xbf16, #tpu.memory_space<vmem>>, vector<1x128x128xbf16>
    %5 = vector.shape_cast %4 : vector<1x128x128xbf16> to vector<128x128xbf16>
    %cst = arith.constant dense<0.000000e+00> : vector<320x128xf32>
    %6 = tpu.matmul %3, %5, %cst {dimension_numbers = #tpu.dot_dimension_numbers<[1], [0], [0], [1], [0, 0, 1, 1], [], []>} : vector<320x128xbf16>, vector<128x128xbf16>, vector<320x128xf32> -> vector<320x128xf32>
    %c0_7 = arith.constant 0 : index
    %c0_8 = arith.constant 0 : index
    %c0_9 = arith.constant 0 : index
    %c1 = arith.constant 1 : index
    %c0_10 = arith.constant 0 : index
    %7 = vector.load %arg1[%c0_7, %c0_8, %c0_9, %c1, %c0_10] : memref<1x2x12x32x128xf32, #tpu.memory_space<vmem>>, vector<1x2x10x16x128xf32>
    %8 = vector.shape_cast %7 : vector<1x2x10x16x128xf32> to vector<2x10x16x128xf32>
    %9 = arith.truncf %8 : vector<2x10x16x128xf32> to vector<2x10x16x128xbf16>
    %10 = vector.shape_cast %9 : vector<2x10x16x128xbf16> to vector<320x128xbf16>
    %c1_11 = arith.constant 1 : index
    %c0_12 = arith.constant 0 : index
    %c0_13 = arith.constant 0 : index
    %11 = vector.load %arg2[%c1_11, %c0_12, %c0_13] : memref<9x128x128xbf16, #tpu.memory_space<vmem>>, vector<1x128x128xbf16>
    %12 = vector.shape_cast %11 : vector<1x128x128xbf16> to vector<128x128xbf16>
    %cst_14 = arith.constant dense<0.000000e+00> : vector<320x128xf32>
    %13 = tpu.matmul %10, %12, %cst_14 {dimension_numbers = #tpu.dot_dimension_numbers<[1], [0], [0], [1], [0, 0, 1, 1], [], []>} : vector<320x128xbf16>, vector<128x128xbf16>, vector<320x128xf32> -> vector<320x128xf32>
    %14 = arith.addf %6, %13 : vector<320x128xf32>
    %c0_15 = arith.constant 0 : index
    %c0_16 = arith.constant 0 : index
    %c0_17 = arith.constant 0 : index
    %c2 = arith.constant 2 : index
    %c0_18 = arith.constant 0 : index
    %15 = vector.load %arg1[%c0_15, %c0_16, %c0_17, %c2, %c0_18] : memref<1x2x12x32x128xf32, #tpu.memory_space<vmem>>, vector<1x2x10x16x128xf32>
    %16 = vector.shape_cast %15 : vector<1x2x10x16x128xf32> to vector<2x10x16x128xf32>
    %17 = arith.truncf %16 : vector<2x10x16x128xf32> to vector<2x10x16x128xbf16>
    %18 = vector.shape_cast %17 : vector<2x10x16x128xbf16> to vector<320x128xbf16>
    %c2_19 = arith.constant 2 : index
    %c0_20 = arith.constant 0 : index
    %c0_21 = arith.constant 0 : index
    %19 = vector.load %arg2[%c2_19, %c0_20, %c0_21] : memref<9x128x128xbf16, #tpu.memory_space<vmem>>, vector<1x128x128xbf16>
    %20 = vector.shape_cast %19 : vector<1x128x128xbf16> to vector<128x128xbf16>
    %cst_22 = arith.constant dense<0.000000e+00> : vector<320x128xf32>
    %21 = tpu.matmul %18, %20, %cst_22 {dimension_numbers = #tpu.dot_dimension_numbers<[1], [0], [0], [1], [0, 0, 1, 1], [], []>} : vector<320x128xbf16>, vector<128x128xbf16>, vector<320x128xf32> -> vector<320x128xf32>
    %22 = arith.addf %14, %21 : vector<320x128xf32>
    %c0_23 = arith.constant 0 : index
    %c0_24 = arith.constant 0 : index
    %c1_25 = arith.constant 1 : index
    %c0_26 = arith.constant 0 : index
    %c0_27 = arith.constant 0 : index
    %23 = vector.load %arg1[%c0_23, %c0_24, %c1_25, %c0_26, %c0_27] : memref<1x2x12x32x128xf32, #tpu.memory_space<vmem>>, vector<1x2x10x16x128xf32>
    %24 = vector.shape_cast %23 : vector<1x2x10x16x128xf32> to vector<2x10x16x128xf32>
    %25 = arith.truncf %24 : vector<2x10x16x128xf32> to vector<2x10x16x128xbf16>
    %26 = vector.shape_cast %25 : vector<2x10x16x128xbf16> to vector<320x128xbf16>
    %c3 = arith.constant 3 : index
    %c0_28 = arith.constant 0 : index
    %c0_29 = arith.constant 0 : index
    %27 = vector.load %arg2[%c3, %c0_28, %c0_29] : memref<9x128x128xbf16, #tpu.memory_space<vmem>>, vector<1x128x128xbf16>
    %28 = vector.shape_cast %27 : vector<1x128x128xbf16> to vector<128x128xbf16>
    %cst_30 = arith.constant dense<0.000000e+00> : vector<320x128xf32>
    %29 = tpu.matmul %26, %28, %cst_30 {dimension_numbers = #tpu.dot_dimension_numbers<[1], [0], [0], [1], [0, 0, 1, 1], [], []>} : vector<320x128xbf16>, vector<128x128xbf16>, vector<320x128xf32> -> vector<320x128xf32>
    %30 = arith.addf %22, %29 : vector<320x128xf32>
    %c0_31 = arith.constant 0 : index
    %c0_32 = arith.constant 0 : index
    %c1_33 = arith.constant 1 : index
    %c1_34 = arith.constant 1 : index
    %c0_35 = arith.constant 0 : index
    %31 = vector.load %arg1[%c0_31, %c0_32, %c1_33, %c1_34, %c0_35] : memref<1x2x12x32x128xf32, #tpu.memory_space<vmem>>, vector<1x2x10x16x128xf32>
    %32 = vector.shape_cast %31 : vector<1x2x10x16x128xf32> to vector<2x10x16x128xf32>
    %33 = arith.truncf %32 : vector<2x10x16x128xf32> to vector<2x10x16x128xbf16>
    %34 = vector.shape_cast %33 : vector<2x10x16x128xbf16> to vector<320x128xbf16>
    %c4 = arith.constant 4 : index
    %c0_36 = arith.constant 0 : index
    %c0_37 = arith.constant 0 : index
    %35 = vector.load %arg2[%c4, %c0_36, %c0_37] : memref<9x128x128xbf16, #tpu.memory_space<vmem>>, vector<1x128x128xbf16>
    %36 = vector.shape_cast %35 : vector<1x128x128xbf16> to vector<128x128xbf16>
    %cst_38 = arith.constant dense<0.000000e+00> : vector<320x128xf32>
    %37 = tpu.matmul %34, %36, %cst_38 {dimension_numbers = #tpu.dot_dimension_numbers<[1], [0], [0], [1], [0, 0, 1, 1], [], []>} : vector<320x128xbf16>, vector<128x128xbf16>, vector<320x128xf32> -> vector<320x128xf32>
    %38 = arith.addf %30, %37 : vector<320x128xf32>
    %c0_39 = arith.constant 0 : index
    %c0_40 = arith.constant 0 : index
    %c1_41 = arith.constant 1 : index
    %c2_42 = arith.constant 2 : index
    %c0_43 = arith.constant 0 : index
    %39 = vector.load %arg1[%c0_39, %c0_40, %c1_41, %c2_42, %c0_43] : memref<1x2x12x32x128xf32, #tpu.memory_space<vmem>>, vector<1x2x10x16x128xf32>
    %40 = vector.shape_cast %39 : vector<1x2x10x16x128xf32> to vector<2x10x16x128xf32>
    %41 = arith.truncf %40 : vector<2x10x16x128xf32> to vector<2x10x16x128xbf16>
    %42 = vector.shape_cast %41 : vector<2x10x16x128xbf16> to vector<320x128xbf16>
    %c5 = arith.constant 5 : index
    %c0_44 = arith.constant 0 : index
    %c0_45 = arith.constant 0 : index
    %43 = vector.load %arg2[%c5, %c0_44, %c0_45] : memref<9x128x128xbf16, #tpu.memory_space<vmem>>, vector<1x128x128xbf16>
    %44 = vector.shape_cast %43 : vector<1x128x128xbf16> to vector<128x128xbf16>
    %cst_46 = arith.constant dense<0.000000e+00> : vector<320x128xf32>
    %45 = tpu.matmul %42, %44, %cst_46 {dimension_numbers = #tpu.dot_dimension_numbers<[1], [0], [0], [1], [0, 0, 1, 1], [], []>} : vector<320x128xbf16>, vector<128x128xbf16>, vector<320x128xf32> -> vector<320x128xf32>
    %46 = arith.addf %38, %45 : vector<320x128xf32>
    %c0_47 = arith.constant 0 : index
    %c0_48 = arith.constant 0 : index
    %c2_49 = arith.constant 2 : index
    %c0_50 = arith.constant 0 : index
    %c0_51 = arith.constant 0 : index
    %47 = vector.load %arg1[%c0_47, %c0_48, %c2_49, %c0_50, %c0_51] : memref<1x2x12x32x128xf32, #tpu.memory_space<vmem>>, vector<1x2x10x16x128xf32>
    %48 = vector.shape_cast %47 : vector<1x2x10x16x128xf32> to vector<2x10x16x128xf32>
    %49 = arith.truncf %48 : vector<2x10x16x128xf32> to vector<2x10x16x128xbf16>
    %50 = vector.shape_cast %49 : vector<2x10x16x128xbf16> to vector<320x128xbf16>
    %c6 = arith.constant 6 : index
    %c0_52 = arith.constant 0 : index
    %c0_53 = arith.constant 0 : index
    %51 = vector.load %arg2[%c6, %c0_52, %c0_53] : memref<9x128x128xbf16, #tpu.memory_space<vmem>>, vector<1x128x128xbf16>
    %52 = vector.shape_cast %51 : vector<1x128x128xbf16> to vector<128x128xbf16>
    %cst_54 = arith.constant dense<0.000000e+00> : vector<320x128xf32>
    %53 = tpu.matmul %50, %52, %cst_54 {dimension_numbers = #tpu.dot_dimension_numbers<[1], [0], [0], [1], [0, 0, 1, 1], [], []>} : vector<320x128xbf16>, vector<128x128xbf16>, vector<320x128xf32> -> vector<320x128xf32>
    %54 = arith.addf %46, %53 : vector<320x128xf32>
    %c0_55 = arith.constant 0 : index
    %c0_56 = arith.constant 0 : index
    %c2_57 = arith.constant 2 : index
    %c1_58 = arith.constant 1 : index
    %c0_59 = arith.constant 0 : index
    %55 = vector.load %arg1[%c0_55, %c0_56, %c2_57, %c1_58, %c0_59] : memref<1x2x12x32x128xf32, #tpu.memory_space<vmem>>, vector<1x2x10x16x128xf32>
    %56 = vector.shape_cast %55 : vector<1x2x10x16x128xf32> to vector<2x10x16x128xf32>
    %57 = arith.truncf %56 : vector<2x10x16x128xf32> to vector<2x10x16x128xbf16>
    %58 = vector.shape_cast %57 : vector<2x10x16x128xbf16> to vector<320x128xbf16>
    %c7 = arith.constant 7 : index
    %c0_60 = arith.constant 0 : index
    %c0_61 = arith.constant 0 : index
    %59 = vector.load %arg2[%c7, %c0_60, %c0_61] : memref<9x128x128xbf16, #tpu.memory_space<vmem>>, vector<1x128x128xbf16>
    %60 = vector.shape_cast %59 : vector<1x128x128xbf16> to vector<128x128xbf16>
    %cst_62 = arith.constant dense<0.000000e+00> : vector<320x128xf32>
    %61 = tpu.matmul %58, %60, %cst_62 {dimension_numbers = #tpu.dot_dimension_numbers<[1], [0], [0], [1], [0, 0, 1, 1], [], []>} : vector<320x128xbf16>, vector<128x128xbf16>, vector<320x128xf32> -> vector<320x128xf32>
    %62 = arith.addf %54, %61 : vector<320x128xf32>
    %c0_63 = arith.constant 0 : index
    %c0_64 = arith.constant 0 : index
    %c2_65 = arith.constant 2 : index
    %c2_66 = arith.constant 2 : index
    %c0_67 = arith.constant 0 : index
    %63 = vector.load %arg1[%c0_63, %c0_64, %c2_65, %c2_66, %c0_67] : memref<1x2x12x32x128xf32, #tpu.memory_space<vmem>>, vector<1x2x10x16x128xf32>
    %64 = vector.shape_cast %63 : vector<1x2x10x16x128xf32> to vector<2x10x16x128xf32>
    %65 = arith.truncf %64 : vector<2x10x16x128xf32> to vector<2x10x16x128xbf16>
    %66 = vector.shape_cast %65 : vector<2x10x16x128xbf16> to vector<320x128xbf16>
    %c8 = arith.constant 8 : index
    %c0_68 = arith.constant 0 : index
    %c0_69 = arith.constant 0 : index
    %67 = vector.load %arg2[%c8, %c0_68, %c0_69] : memref<9x128x128xbf16, #tpu.memory_space<vmem>>, vector<1x128x128xbf16>
    %68 = vector.shape_cast %67 : vector<1x128x128xbf16> to vector<128x128xbf16>
    %cst_70 = arith.constant dense<0.000000e+00> : vector<320x128xf32>
    %69 = tpu.matmul %66, %68, %cst_70 {dimension_numbers = #tpu.dot_dimension_numbers<[1], [0], [0], [1], [0, 0, 1, 1], [], []>} : vector<320x128xbf16>, vector<128x128xbf16>, vector<320x128xf32> -> vector<320x128xf32>
    %70 = arith.addf %62, %69 : vector<320x128xf32>
    %c0_71 = arith.constant 0 : index
    %c0_72 = arith.constant 0 : index
    %71 = vector.load %arg3[%c0_71, %c0_72] : memref<1x128xf32, #tpu.memory_space<vmem>>, vector<1x128xf32>
    %72 = vector.broadcast %71 : vector<1x128xf32> to vector<320x128xf32>
    %73 = arith.addf %70, %72 : vector<320x128xf32>
    %74 = vector.shape_cast %73 : vector<320x128xf32> to vector<2x10x16x128xf32>
    %75 = vector.extract_strided_slice %74 {offsets = [0, 0, 0, 0], sizes = [1, 10, 16, 128], strides = [1, 1, 1, 1]} : vector<2x10x16x128xf32> to vector<1x10x16x128xf32>
    %76 = vector.extract_strided_slice %74 {offsets = [1, 0, 0, 0], sizes = [1, 10, 16, 128], strides = [1, 1, 1, 1]} : vector<2x10x16x128xf32> to vector<1x10x16x128xf32>
    %77 = arith.mulf %75, %76 : vector<1x10x16x128xf32>
    %cst_73 = arith.constant 0.000000e+00 : f32
    %78 = vector.broadcast %cst_73 : f32 to vector<1x10x16x128xf32>
    %79 = arith.maximumf %77, %78 : vector<1x10x16x128xf32>
    %80 = arith.truncf %79 : vector<1x10x16x128xf32> to vector<1x10x16x128xbf16>
    %c0_74 = arith.constant 0 : index
    %c0_75 = arith.constant 0 : index
    %c1_76 = arith.constant 1 : index
    %c0_77 = arith.constant 0 : index
    %81 = vector.load %arg7[%c0_74, %c0_75, %c1_76, %c0_77] : memref<2x10x32x128xbf16, #tpu.memory_space<vmem>>, vector<1x10x16x128xbf16>
    tpu.vector_store %arg7[%c0_74, %c0_75, %c1_76, %c0_77], %80 {strides = array<i32>} : memref<2x10x32x128xbf16, #tpu.memory_space<vmem>>, vector<1x10x16x128xbf16>,
    %82 = vector.extract_strided_slice %74 {offsets = [1, 0, 0, 0], sizes = [1, 10, 16, 128], strides = [1, 1, 1, 1]} : vector<2x10x16x128xf32> to vector<1x10x16x128xf32>
    %cst_78 = arith.constant 0.000000e+00 : f32
    %83 = vector.broadcast %cst_78 : f32 to vector<1x10x16x128xf32>
    %84 = arith.maximumf %82, %83 : vector<1x10x16x128xf32>
    %85 = arith.truncf %84 : vector<1x10x16x128xf32> to vector<1x10x16x128xbf16>
    %c1_79 = arith.constant 1 : index
    %c0_80 = arith.constant 0 : index
    %c1_81 = arith.constant 1 : index
    %c0_82 = arith.constant 0 : index
    %86 = vector.load %arg7[%c1_79, %c0_80, %c1_81, %c0_82] : memref<2x10x32x128xbf16, #tpu.memory_space<vmem>>, vector<1x10x16x128xbf16>
    tpu.vector_store %arg7[%c1_79, %c0_80, %c1_81, %c0_82], %85 {strides = array<i32>} : memref<2x10x32x128xbf16, #tpu.memory_space<vmem>>, vector<1x10x16x128xbf16>,
    %cst_83 = arith.constant 0.000000e+00 : bf16
    %87 = vector.broadcast %cst_83 : bf16 to vector<2x10x1x128xbf16>
    %c0_84 = arith.constant 0 : index
    %c0_85 = arith.constant 0 : index
    %c0_86 = arith.constant 0 : index
    %c0_87 = arith.constant 0 : index
    %88 = vector.load %arg7[%c0_84, %c0_85, %c0_86, %c0_87] : memref<2x10x32x128xbf16, #tpu.memory_space<vmem>>, vector<2x10x1x128xbf16>
    tpu.vector_store %arg7[%c0_84, %c0_85, %c0_86, %c0_87], %87 {strides = array<i32>} : memref<2x10x32x128xbf16, #tpu.memory_space<vmem>>, vector<2x10x1x128xbf16>,
    %c0_88 = arith.constant 0 : index
    %c0_89 = arith.constant 0 : index
    %c17 = arith.constant 17 : index
    %c0_90 = arith.constant 0 : index
    %89 = vector.load %arg7[%c0_88, %c0_89, %c17, %c0_90] : memref<2x10x32x128xbf16, #tpu.memory_space<vmem>>, vector<2x10x1x128xbf16>
    tpu.vector_store %arg7[%c0_88, %c0_89, %c17, %c0_90], %87 {strides = array<i32>} : memref<2x10x32x128xbf16, #tpu.memory_space<vmem>>, vector<2x10x1x128xbf16>,
    %cst_91 = arith.constant 0.000000e+00 : bf16
    %90 = vector.broadcast %cst_91 : bf16 to vector<2x1x32x128xbf16>
    %c0_i32 = arith.constant 0 : i32
    %91 = arith.cmpi eq, %arg0, %c0_i32 : i32
    %92 = arith.extui %91 : i1 to i32
    %c0_i32_92 = arith.constant 0 : i32
    %93 = arith.cmpi ne, %92, %c0_i32_92 : i32
    scf.if %93 {
      %c0_183 = arith.constant 0 : index
      %c0_184 = arith.constant 0 : index
      %c0_185 = arith.constant 0 : index
      %c0_186 = arith.constant 0 : index
      %170 = vector.load %arg7[%c0_183, %c0_184, %c0_185, %c0_186] : memref<2x10x32x128xbf16, #tpu.memory_space<vmem>>, vector<2x1x32x128xbf16>
      tpu.vector_store %arg7[%c0_183, %c0_184, %c0_185, %c0_186], %90 {strides = array<i32>} : memref<2x10x32x128xbf16, #tpu.memory_space<vmem>>, vector<2x1x32x128xbf16>,
    } else {
    }
    %c1_i32 = arith.constant 1 : i32
    %94 = arith.cmpi eq, %arg0, %c1_i32 : i32
    %95 = arith.extui %94 : i1 to i32
    %c0_i32_93 = arith.constant 0 : i32
    %96 = arith.cmpi ne, %95, %c0_i32_93 : i32
    scf.if %96 {
      %c0_183 = arith.constant 0 : index
      %c9 = arith.constant 9 : index
      %c0_184 = arith.constant 0 : index
      %c0_185 = arith.constant 0 : index
      %170 = vector.load %arg7[%c0_183, %c9, %c0_184, %c0_185] : memref<2x10x32x128xbf16, #tpu.memory_space<vmem>>, vector<2x1x32x128xbf16>
      tpu.vector_store %arg7[%c0_183, %c9, %c0_184, %c0_185], %90 {strides = array<i32>} : memref<2x10x32x128xbf16, #tpu.memory_space<vmem>>, vector<2x1x32x128xbf16>,
    } else {
    }
    %c0_94 = arith.constant 0 : index
    %c0_95 = arith.constant 0 : index
    %c0_96 = arith.constant 0 : index
    %c0_97 = arith.constant 0 : index
    %97 = vector.load %arg7[%c0_94, %c0_95, %c0_96, %c0_97] : memref<2x10x32x128xbf16, #tpu.memory_space<vmem>>, vector<2x8x16x128xbf16>
    %98 = vector.shape_cast %97 : vector<2x8x16x128xbf16> to vector<256x128xbf16>
    %c0_98 = arith.constant 0 : index
    %c0_99 = arith.constant 0 : index
    %c0_100 = arith.constant 0 : index
    %99 = vector.load %arg4[%c0_98, %c0_99, %c0_100] : memref<9x128x128xbf16, #tpu.memory_space<vmem>>, vector<1x128x128xbf16>
    %100 = vector.shape_cast %99 : vector<1x128x128xbf16> to vector<128x128xbf16>
    %cst_101 = arith.constant dense<0.000000e+00> : vector<256x128xf32>
    %101 = tpu.matmul %98, %100, %cst_101 {dimension_numbers = #tpu.dot_dimension_numbers<[1], [0], [0], [1], [0, 0, 1, 1], [], []>} : vector<256x128xbf16>, vector<128x128xbf16>, vector<256x128xf32> -> vector<256x128xf32>
    %c0_102 = arith.constant 0 : index
    %c0_103 = arith.constant 0 : index
    %c1_104 = arith.constant 1 : index
    %c0_105 = arith.constant 0 : index
    %102 = vector.load %arg7[%c0_102, %c0_103, %c1_104, %c0_105] : memref<2x10x32x128xbf16, #tpu.memory_space<vmem>>, vector<2x8x16x128xbf16>
    %103 = vector.shape_cast %102 : vector<2x8x16x128xbf16> to vector<256x128xbf16>
    %c1_106 = arith.constant 1 : index
    %c0_107 = arith.constant 0 : index
    %c0_108 = arith.constant 0 : index
    %104 = vector.load %arg4[%c1_106, %c0_107, %c0_108] : memref<9x128x128xbf16, #tpu.memory_space<vmem>>, vector<1x128x128xbf16>
    %105 = vector.shape_cast %104 : vector<1x128x128xbf16> to vector<128x128xbf16>
    %cst_109 = arith.constant dense<0.000000e+00> : vector<256x128xf32>
    %106 = tpu.matmul %103, %105, %cst_109 {dimension_numbers = #tpu.dot_dimension_numbers<[1], [0], [0], [1], [0, 0, 1, 1], [], []>} : vector<256x128xbf16>, vector<128x128xbf16>, vector<256x128xf32> -> vector<256x128xf32>
    %107 = arith.addf %101, %106 : vector<256x128xf32>
    %c0_110 = arith.constant 0 : index
    %c0_111 = arith.constant 0 : index
    %c2_112 = arith.constant 2 : index
    %c0_113 = arith.constant 0 : index
    %108 = vector.load %arg7[%c0_110, %c0_111, %c2_112, %c0_113] : memref<2x10x32x128xbf16, #tpu.memory_space<vmem>>, vector<2x8x16x128xbf16>
    %109 = vector.shape_cast %108 : vector<2x8x16x128xbf16> to vector<256x128xbf16>
    %c2_114 = arith.constant 2 : index
    %c0_115 = arith.constant 0 : index
    %c0_116 = arith.constant 0 : index
    %110 = vector.load %arg4[%c2_114, %c0_115, %c0_116] : memref<9x128x128xbf16, #tpu.memory_space<vmem>>, vector<1x128x128xbf16>
    %111 = vector.shape_cast %110 : vector<1x128x128xbf16> to vector<128x128xbf16>
    %cst_117 = arith.constant dense<0.000000e+00> : vector<256x128xf32>
    %112 = tpu.matmul %109, %111, %cst_117 {dimension_numbers = #tpu.dot_dimension_numbers<[1], [0], [0], [1], [0, 0, 1, 1], [], []>} : vector<256x128xbf16>, vector<128x128xbf16>, vector<256x128xf32> -> vector<256x128xf32>
    %113 = arith.addf %107, %112 : vector<256x128xf32>
    %c0_118 = arith.constant 0 : index
    %c1_119 = arith.constant 1 : index
    %c0_120 = arith.constant 0 : index
    %c0_121 = arith.constant 0 : index
    %114 = vector.load %arg7[%c0_118, %c1_119, %c0_120, %c0_121] : memref<2x10x32x128xbf16, #tpu.memory_space<vmem>>, vector<2x8x16x128xbf16>
    %115 = vector.shape_cast %114 : vector<2x8x16x128xbf16> to vector<256x128xbf16>
    %c3_122 = arith.constant 3 : index
    %c0_123 = arith.constant 0 : index
    %c0_124 = arith.constant 0 : index
    %116 = vector.load %arg4[%c3_122, %c0_123, %c0_124] : memref<9x128x128xbf16, #tpu.memory_space<vmem>>, vector<1x128x128xbf16>
    %117 = vector.shape_cast %116 : vector<1x128x128xbf16> to vector<128x128xbf16>
    %cst_125 = arith.constant dense<0.000000e+00> : vector<256x128xf32>
    %118 = tpu.matmul %115, %117, %cst_125 {dimension_numbers = #tpu.dot_dimension_numbers<[1], [0], [0], [1], [0, 0, 1, 1], [], []>} : vector<256x128xbf16>, vector<128x128xbf16>, vector<256x128xf32> -> vector<256x128xf32>
    %119 = arith.addf %113, %118 : vector<256x128xf32>
    %c0_126 = arith.constant 0 : index
    %c1_127 = arith.constant 1 : index
    %c1_128 = arith.constant 1 : index
    %c0_129 = arith.constant 0 : index
    %120 = vector.load %arg7[%c0_126, %c1_127, %c1_128, %c0_129] : memref<2x10x32x128xbf16, #tpu.memory_space<vmem>>, vector<2x8x16x128xbf16>
    %121 = vector.shape_cast %120 : vector<2x8x16x128xbf16> to vector<256x128xbf16>
    %c4_130 = arith.constant 4 : index
    %c0_131 = arith.constant 0 : index
    %c0_132 = arith.constant 0 : index
    %122 = vector.load %arg4[%c4_130, %c0_131, %c0_132] : memref<9x128x128xbf16, #tpu.memory_space<vmem>>, vector<1x128x128xbf16>
    %123 = vector.shape_cast %122 : vector<1x128x128xbf16> to vector<128x128xbf16>
    %cst_133 = arith.constant dense<0.000000e+00> : vector<256x128xf32>
    %124 = tpu.matmul %121, %123, %cst_133 {dimension_numbers = #tpu.dot_dimension_numbers<[1], [0], [0], [1], [0, 0, 1, 1], [], []>} : vector<256x128xbf16>, vector<128x128xbf16>, vector<256x128xf32> -> vector<256x128xf32>
    %125 = arith.addf %119, %124 : vector<256x128xf32>
    %c0_134 = arith.constant 0 : index
    %c1_135 = arith.constant 1 : index
    %c2_136 = arith.constant 2 : index
    %c0_137 = arith.constant 0 : index
    %126 = vector.load %arg7[%c0_134, %c1_135, %c2_136, %c0_137] : memref<2x10x32x128xbf16, #tpu.memory_space<vmem>>, vector<2x8x16x128xbf16>
    %127 = vector.shape_cast %126 : vector<2x8x16x128xbf16> to vector<256x128xbf16>
    %c5_138 = arith.constant 5 : index
    %c0_139 = arith.constant 0 : index
    %c0_140 = arith.constant 0 : index
    %128 = vector.load %arg4[%c5_138, %c0_139, %c0_140] : memref<9x128x128xbf16, #tpu.memory_space<vmem>>, vector<1x128x128xbf16>
    %129 = vector.shape_cast %128 : vector<1x128x128xbf16> to vector<128x128xbf16>
    %cst_141 = arith.constant dense<0.000000e+00> : vector<256x128xf32>
    %130 = tpu.matmul %127, %129, %cst_141 {dimension_numbers = #tpu.dot_dimension_numbers<[1], [0], [0], [1], [0, 0, 1, 1], [], []>} : vector<256x128xbf16>, vector<128x128xbf16>, vector<256x128xf32> -> vector<256x128xf32>
    %131 = arith.addf %125, %130 : vector<256x128xf32>
    %c0_142 = arith.constant 0 : index
    %c2_143 = arith.constant 2 : index
    %c0_144 = arith.constant 0 : index
    %c0_145 = arith.constant 0 : index
    %132 = vector.load %arg7[%c0_142, %c2_143, %c0_144, %c0_145] : memref<2x10x32x128xbf16, #tpu.memory_space<vmem>>, vector<2x8x16x128xbf16>
    %133 = vector.shape_cast %132 : vector<2x8x16x128xbf16> to vector<256x128xbf16>
    %c6_146 = arith.constant 6 : index
    %c0_147 = arith.constant 0 : index
    %c0_148 = arith.constant 0 : index
    %134 = vector.load %arg4[%c6_146, %c0_147, %c0_148] : memref<9x128x128xbf16, #tpu.memory_space<vmem>>, vector<1x128x128xbf16>
    %135 = vector.shape_cast %134 : vector<1x128x128xbf16> to vector<128x128xbf16>
    %cst_149 = arith.constant dense<0.000000e+00> : vector<256x128xf32>
    %136 = tpu.matmul %133, %135, %cst_149 {dimension_numbers = #tpu.dot_dimension_numbers<[1], [0], [0], [1], [0, 0, 1, 1], [], []>} : vector<256x128xbf16>, vector<128x128xbf16>, vector<256x128xf32> -> vector<256x128xf32>
    %137 = arith.addf %131, %136 : vector<256x128xf32>
    %c0_150 = arith.constant 0 : index
    %c2_151 = arith.constant 2 : index
    %c1_152 = arith.constant 1 : index
    %c0_153 = arith.constant 0 : index
    %138 = vector.load %arg7[%c0_150, %c2_151, %c1_152, %c0_153] : memref<2x10x32x128xbf16, #tpu.memory_space<vmem>>, vector<2x8x16x128xbf16>
    %139 = vector.shape_cast %138 : vector<2x8x16x128xbf16> to vector<256x128xbf16>
    %c7_154 = arith.constant 7 : index
    %c0_155 = arith.constant 0 : index
    %c0_156 = arith.constant 0 : index
    %140 = vector.load %arg4[%c7_154, %c0_155, %c0_156] : memref<9x128x128xbf16, #tpu.memory_space<vmem>>, vector<1x128x128xbf16>
    %141 = vector.shape_cast %140 : vector<1x128x128xbf16> to vector<128x128xbf16>
    %cst_157 = arith.constant dense<0.000000e+00> : vector<256x128xf32>
    %142 = tpu.matmul %139, %141, %cst_157 {dimension_numbers = #tpu.dot_dimension_numbers<[1], [0], [0], [1], [0, 0, 1, 1], [], []>} : vector<256x128xbf16>, vector<128x128xbf16>, vector<256x128xf32> -> vector<256x128xf32>
    %143 = arith.addf %137, %142 : vector<256x128xf32>
    %c0_158 = arith.constant 0 : index
    %c2_159 = arith.constant 2 : index
    %c2_160 = arith.constant 2 : index
    %c0_161 = arith.constant 0 : index
    %144 = vector.load %arg7[%c0_158, %c2_159, %c2_160, %c0_161] : memref<2x10x32x128xbf16, #tpu.memory_space<vmem>>, vector<2x8x16x128xbf16>
    %145 = vector.shape_cast %144 : vector<2x8x16x128xbf16> to vector<256x128xbf16>
    %c8_162 = arith.constant 8 : index
    %c0_163 = arith.constant 0 : index
    %c0_164 = arith.constant 0 : index
    %146 = vector.load %arg4[%c8_162, %c0_163, %c0_164] : memref<9x128x128xbf16, #tpu.memory_space<vmem>>, vector<1x128x128xbf16>
    %147 = vector.shape_cast %146 : vector<1x128x128xbf16> to vector<128x128xbf16>
    %cst_165 = arith.constant dense<0.000000e+00> : vector<256x128xf32>
    %148 = tpu.matmul %145, %147, %cst_165 {dimension_numbers = #tpu.dot_dimension_numbers<[1], [0], [0], [1], [0, 0, 1, 1], [], []>} : vector<256x128xbf16>, vector<128x128xbf16>, vector<256x128xf32> -> vector<256x128xf32>
    %149 = arith.addf %143, %148 : vector<256x128xf32>
    %c0_166 = arith.constant 0 : index
    %c0_167 = arith.constant 0 : index
    %150 = vector.load %arg5[%c0_166, %c0_167] : memref<1x128xf32, #tpu.memory_space<vmem>>, vector<1x128xf32>
    %151 = vector.broadcast %150 : vector<1x128xf32> to vector<256x128xf32>
    %152 = arith.addf %149, %151 : vector<256x128xf32>
    %153 = vector.shape_cast %152 : vector<256x128xf32> to vector<2x8x16x128xf32>
    %c0_168 = arith.constant 0 : index
    %c0_169 = arith.constant 0 : index
    %c2_170 = arith.constant 2 : index
    %c1_171 = arith.constant 1 : index
    %c0_172 = arith.constant 0 : index
    %154 = vector.load %arg1[%c0_168, %c0_169, %c2_170, %c1_171, %c0_172] : memref<1x2x12x32x128xf32, #tpu.memory_space<vmem>>, vector<1x2x8x16x128xf32>
    %155 = vector.shape_cast %154 : vector<1x2x8x16x128xf32> to vector<2x8x16x128xf32>
    %156 = vector.extract_strided_slice %153 {offsets = [0, 0, 0, 0], sizes = [1, 8, 16, 128], strides = [1, 1, 1, 1]} : vector<2x8x16x128xf32> to vector<1x8x16x128xf32>
    %157 = vector.extract_strided_slice %153 {offsets = [1, 0, 0, 0], sizes = [1, 8, 16, 128], strides = [1, 1, 1, 1]} : vector<2x8x16x128xf32> to vector<1x8x16x128xf32>
    %158 = arith.mulf %156, %157 : vector<1x8x16x128xf32>
    %159 = vector.extract_strided_slice %155 {offsets = [0, 0, 0, 0], sizes = [1, 8, 16, 128], strides = [1, 1, 1, 1]} : vector<2x8x16x128xf32> to vector<1x8x16x128xf32>
    %160 = arith.addf %158, %159 : vector<1x8x16x128xf32>
    %cst_173 = arith.constant 0.000000e+00 : f32
    %161 = vector.broadcast %cst_173 : f32 to vector<1x8x16x128xf32>
    %162 = arith.maximumf %160, %161 : vector<1x8x16x128xf32>
    %c0_174 = arith.constant 0 : index
    %c0_175 = arith.constant 0 : index
    %c0_176 = arith.constant 0 : index
    %c0_177 = arith.constant 0 : index
    %163 = vector.load %arg6[%c0_174, %c0_175, %c0_176, %c0_177] : memref<2x8x16x128xf32, #tpu.memory_space<vmem>>, vector<1x8x16x128xf32>
    tpu.vector_store %arg6[%c0_174, %c0_175, %c0_176, %c0_177], %162 {strides = array<i32>} : memref<2x8x16x128xf32, #tpu.memory_space<vmem>>, vector<1x8x16x128xf32>,
    %164 = vector.extract_strided_slice %153 {offsets = [1, 0, 0, 0], sizes = [1, 8, 16, 128], strides = [1, 1, 1, 1]} : vector<2x8x16x128xf32> to vector<1x8x16x128xf32>
    %165 = vector.extract_strided_slice %155 {offsets = [1, 0, 0, 0], sizes = [1, 8, 16, 128], strides = [1, 1, 1, 1]} : vector<2x8x16x128xf32> to vector<1x8x16x128xf32>
    %166 = arith.addf %164, %165 : vector<1x8x16x128xf32>
    %cst_178 = arith.constant 0.000000e+00 : f32
    %167 = vector.broadcast %cst_178 : f32 to vector<1x8x16x128xf32>
    %168 = arith.maximumf %166, %167 : vector<1x8x16x128xf32>
    %c1_179 = arith.constant 1 : index
    %c0_180 = arith.constant 0 : index
    %c0_181 = arith.constant 0 : index
    %c0_182 = arith.constant 0 : index
    %169 = vector.load %arg6[%c1_179, %c0_180, %c0_181, %c0_182] : memref<2x8x16x128xf32, #tpu.memory_space<vmem>>, vector<1x8x16x128xf32>
    tpu.vector_store %arg6[%c1_179, %c0_180, %c0_181, %c0_182], %168 {strides = array<i32>} : memref<2x8x16x128xf32, #tpu.memory_space<vmem>>, vector<1x8x16x128xf32>,
    return
  }
  func.func @transform_0(%arg0: i32) -> (i32, i32, i32, i32, i32) {
    %c0_i32 = arith.constant 0 : i32
    %c0_i32_0 = arith.constant 0 : i32
    %c0_i32_1 = arith.constant 0 : i32
    %c0_i32_2 = arith.constant 0 : i32
    %c0_i32_3 = arith.constant 0 : i32
    return %arg0, %c0_i32, %c0_i32_0, %c0_i32_1, %c0_i32_2 : i32, i32, i32, i32, i32
  }
  func.func @transform_1(%arg0: i32) -> (i32, i32, i32) {
    %c0_i32 = arith.constant 0 : i32
    %c0_i32_0 = arith.constant 0 : i32
    %c0_i32_1 = arith.constant 0 : i32
    %c0_i32_2 = arith.constant 0 : i32
    return %c0_i32, %c0_i32_0, %c0_i32_1 : i32, i32, i32
  }
  func.func @transform_2(%arg0: i32) -> (i32, i32) {
    %c0_i32 = arith.constant 0 : i32
    %c0_i32_0 = arith.constant 0 : i32
    %c0_i32_1 = arith.constant 0 : i32
    return %c0_i32, %c0_i32_0 : i32, i32
  }
  func.func @transform_3(%arg0: i32) -> (i32, i32, i32) {
    %c0_i32 = arith.constant 0 : i32
    %c0_i32_0 = arith.constant 0 : i32
    %c0_i32_1 = arith.constant 0 : i32
    %c0_i32_2 = arith.constant 0 : i32
    return %c0_i32, %c0_i32_0, %c0_i32_1 : i32, i32, i32
  }
  func.func @transform_4(%arg0: i32) -> (i32, i32) {
    %c0_i32 = arith.constant 0 : i32
    %c0_i32_0 = arith.constant 0 : i32
    %c0_i32_1 = arith.constant 0 : i32
    return %c0_i32, %c0_i32_0 : i32, i32
  }
  func.func @transform_5(%arg0: i32) -> (i32, i32, i32, i32) {
    %c0_i32 = arith.constant 0 : i32
    %c0_i32_0 = arith.constant 0 : i32
    %c0_i32_1 = arith.constant 0 : i32
    %c0_i32_2 = arith.constant 0 : i32
    return %c0_i32, %arg0, %c0_i32_0, %c0_i32_1 : i32, i32, i32, i32
  }
}

</mosaic_0001>

<bundles_post_ra>
// kernel: tpu_custom_call.1
= control target key start
LH: loop header
LB: loop body
LE: loop exit
PB: predicated region body
PF: predicated region fallthrough
CT: control target
= control target key end

     0   :  { %10 = vsyncpa [#allocation4], 0  ;;  %s16209_s0 = inlined_call_operand.hbm [shape: f32[2,2,12,32,128], index: 0, kind: input, shape index: {}]   ;;  %s16210_s1 = inlined_call_operand.hbm [shape: bf16[9,128,128], index: 1, kind: input, shape index: {}]   ;;  %s16211_s2 = inlined_call_operand.vmem [shape: f32[1,128], index: 2, kind: input, shape index: {}]   ;;  %s16212_s3 = inlined_call_operand.hbm [shape: bf16[9,128,128], index: 3, kind: input, shape index: {}]   ;;  %s16213_s4 = inlined_call_operand.vmem [shape: f32[1,128], index: 4, kind: input, shape index: {}]   ;;  %s16214_s5 = inlined_call_operand.hbm [shape: f32[2,16,16,128], index: 5, kind: output, shape index: {}]  }
   0x1   :  { %12 = vsyncpa [#allocation4 + $0x1], 0 }
   0x2   :  { %13 = vsyncpa [#allocation7], 0 }
   0x3   :  { %14 = vsyncpa [#allocation5], 0 }
   0x4   :  { %16 = vsyncpa [#allocation5 + $0x1], 0  ;;  %s12067_s18 = smov 0   ;;  %s12069_s19 = smov 0  }
   0x5   :  { %s12071_s20 = smov 0   ;;  %s12073_s21 = smov 0  }
   0x6 LB: > { %s12088_s22 = sadd.s32 4294967295, %s12019_s21   ;;  %s9462_s23 = sadd.s32 4294967294, %s12019_s21   ;;  %s12019_s21 = sphi %s12073_s21, %s16553_s21   ;;  %s12015_s20 = sphi %s12071_s20, %s16552_s20   ;;  %s12011_s19 = sphi %s12069_s19, %s16551_s19   ;;  %s12007_s18 = sphi %s12067_s18, %s16550_s18  }
   0x7   : > { %p42_p0 = scmp.ne.s32.totalorder %s12011_s19, %s12007_s18  ;;  %p16215_p1 = scmp.eq.s32.totalorder %s12088_s22, 0 }
   0x8   : > { %p156_p3 = scmp.eq.s32.totalorder %s9462_s23, 1  ;;  %p9463_p5 = scmp.ge.s32.totalorder %s12019_s21, 1 }
   0x9   : > { %p12097_p4 = por %p16215_p1, %p42_p0  ;;  %p163_p7 = scmp.lt.s32.totalorder %s12019_s21, 3 }
   0xa   : > { %p12102_p6 = por %p156_p3, %p42_p0  ;;  %s12021_s27 = smov [#allocation6]  }
   0xb   : > { %s16260_s24 = scalar_select %p12097_p4, 1, 0 }
   0xc   : > { %s16261_s25 = scalar_select %p12102_p6, 1, 0 }
   0xd   : > { %p12108_p9 = pnand %p9463_p5, %p163_p7  ;;  %s175_s28 = sshll.u32 %s12021_s27, 4  ;;  %s176_s28 = int_to_ptr.vmem [resolvable:$true] %s175_s28 }
   0xe   : > { %s12022_s30 = smov [#allocation8]   ;;  %s11908_s7 = scalar_lea.vmem %s176_s28, 9216 }
   0xf   : > { %s16262_s26 = scalar_select %p12108_p9, 1, 0 }
  0x10   : > { %p11629_p10 = pneg %p12108_p9  ;;  %s191_s6 = sshll.u32 %s12022_s30, 4  ;;  %s192_s6 = int_to_ptr.vmem [resolvable:$true] %s191_s6 }
  0x11   : > { %p11909_p0 = scmp.ne.s32.totalorder %s176_s28, %s11908_s7  ;;  %p11916_p7 = scmp.lt.s32.totalorder %s176_s28, %s176_s28 }
  0x12   : > { %p12117_p12 = pnand %p11629_p10, %p16215_p1  ;;  %p11917_p11 = scmp.lt.s32.totalorder %s11908_s7, %s11908_s7 }
  0x14   : > { %p11899_p13 = pneg %p12117_p12  ;;  %p11918_p8 = por %p11917_p11, %p11916_p7 }
  0x16   : > { %p11911_p3 = pnand %p11909_p0, %p11899_p13 }
  0x18   : > { %p11912_p5 = pneg %p11911_p3 }
  0x1a   : > { %p11919_p10 = pnand %p11918_p8, %p11912_p5 }
  0x1c   : > { %11922 = shalt.err (!%p11919_p10)
}
  0x1d   : > { %s12023_s8 = smov 64   ;;  %s12024_s9 = smov 4  }
  0x1e   : > { %11632 = dma.hbm_to_vmem [thread:$0]  (!%p12117_p12), %s16210_s1, 9216, %s176_s28, [#allocation7], %s12023_s8, %s12023_s8, %s12024_s9  }
  0x1f   : > { %s11934_s12 = scalar_lea.vmem %s192_s6, 9216  ;;  %p11942_p2 = scmp.lt.s32.totalorder %s192_s6, %s192_s6 }
  0x20   : > { %p11935_p1 = scmp.ne.s32.totalorder %s192_s6, %s11934_s12  ;;  %p11943_p6 = scmp.lt.s32.totalorder %s11934_s12, %s11934_s12 }
  0x22   : > { %p11937_p0 = pnand %p11935_p1, %p11899_p13  ;;  %p11944_p11 = por %p11943_p6, %p11942_p2 }
  0x24   : > { %p11938_p3 = pneg %p11937_p0 }
  0x26   : > { %p11945_p8 = pnand %p11944_p11, %p11938_p3 }
  0x28   : > { %11948 = shalt.err (!%p11945_p8)
}
  0x29   : > { %11635 = dma.hbm_to_vmem [thread:$0]  (!%p12117_p12), %s16212_s3, 9216, %s192_s6, [#allocation7], %s12023_s8, %s12023_s8, %s12024_s9  }
  0x2a   : > { %s12140_s15 = sadd.s32 1, %s12019_s21   ;;  %s29_s16 = sadd.s32 1, %s12015_s20 }
  0x2b   : > { %s26_s17 = ssub.s32 %s12019_s21, %s12140_s15  ;;  %p36_p1 = scmp.ne.s32.totalorder %s12015_s20, %s12011_s19 }
  0x2c   : > { %p27_p2 = scmp.eq.s32.totalorder %s26_s17, 0  ;;  %p37_p6 = scmp.eq.s32.totalorder %s12019_s21, 0 }
  0x2d   : > { %p16264_p13 = scmp.eq.s32.totalorder %s12088_s22, 1  ;;  %p11646_p7 = scmp.lt.s32.totalorder %s12019_s21, 2 }
  0x2e   : > { %s12156_s27 = scalar_select %p27_p2, %s12015_s20, %s29_s16  }
  0x2f   : > { %p12150_p5 = por %p16264_p13, %p36_p1  ;;  %p38_p10 = por %p37_p6, %p36_p1 }
  0x30   : > { %s208_s28 = sand.u32 1, %s12015_s20   ;;  %s11609_s30 = smul.u32 12288, %s12019_s21 }
  0x31   : > { %s16265_s23 = scalar_select %p12150_p5, 1, 0 }
  0x32   : > { %s11608_s29 = smul.u32 768, %s208_s28  ;;  %p12160_p12 = pnand %p11646_p7, %p38_p10 }
  0x33   : > { %s12167_s9 = scalar_lea.hbm %s16209_s0, %s11609_s30  ;;  %s12171_s12 = scalar_lea.sflag [#allocation4], %s208_s28 }
  0x34   : > { %s212_s10 = scalar_lea.vmem [#allocation3], %s11608_s29  ;;  %s11949_s13 = scalar_lea.hbm %s12167_s9, 12288 }
  0x35   : > { %s219_s11 = sshll.u32 %s212_s10, 4  ;;  %p11950_p0 = scmp.ne.s32.totalorder %s12167_s9, %s11949_s13  ;;  %s12169_s11 = int_to_ptr.vmem [resolvable:$true] %s219_s11 }
  0x36   : > { %p11951_p3 = pneg %p12160_p12  ;;  %s11954_s17 = scalar_lea.hbm %s16209_s0, 24576 }
  0x37   : > { %p11955_p1 = scmp.lt.s32.totalorder %s12167_s9, %s16209_s0  ;;  %p11956_p2 = scmp.lt.s32.totalorder %s11954_s17, %s11949_s13 }
  0x38   : > { %p11952_p11 = pnand %p11951_p3, %p11950_p0 }
  0x39   : > { %p11957_p6 = por %p11956_p2, %p11955_p1 }
  0x3a   : > { %p11953_p8 = pneg %p11952_p11 }
  0x3c   : > { %p11958_p13 = pnand %p11957_p6, %p11953_p8 }
  0x3e   : > { %11961 = shalt.err (!%p11958_p13)
}
  0x3f   : > { %s11962_s28 = scalar_lea.vmem %s12169_s11, 12288  ;;  %s12025_s29 = smov [#allocation3]  }
  0x40   : > { %p11963_p7 = scmp.ne.s32.totalorder %s12169_s11, %s11962_s28  ;;  %s11967_s8 = sshll.u32 %s12025_s29, 4  ;;  %s11968_s8 = int_to_ptr.vmem [resolvable:$false] %s11967_s8 }
  0x41   : > { %s11969_s10 = scalar_lea.vmem %s11968_s8, 24576  ;;  %p11970_p11 = scmp.lt.s32.totalorder %s12169_s11, %s11968_s8 }
  0x42   : > { %p11965_p10 = pnand %p11963_p7, %p11951_p3  ;;  %p11971_p5 = scmp.lt.s32.totalorder %s11969_s10, %s11962_s28 }
  0x44   : > { %p11966_p0 = pneg %p11965_p10  ;;  %p11972_p4 = por %p11971_p5, %p11970_p11 }
  0x46   : > { %p11973_p9 = pnand %p11972_p4, %p11966_p0 }
  0x48   : > { %11976 = shalt.err (!%p11973_p9)
}
  0x49   : > { %s12026_s13 = smov 128   ;;  %s12027_s14 = smov 8  }
  0x4a   : > { %11639 = dma.hbm_to_vmem [thread:$0]  (!%p12160_p12), %s12167_s9, 12288, %s12169_s11, %s12171_s12, %s12026_s13, %s12026_s13, %s12027_s14  }
  0x4b   : > { %p16267_p3 = scmp.ne.s32.totalorder %s16262_s26, 0 }
  0x4d   : > { %231 = sbr.rel (%p16267_p3) target bundleno = 1398 (0x576), region = 40 }
  0x52   : > { %s12195_s16 = sand.u32 1, %s12011_s19   ;;  %p16268_p4 = scmp.ne.s32.totalorder %s16260_s24, 0 }
  0x53   : > { %s11610_s17 = smul.u32 768, %s12195_s16  ;;  %s234_s30 = scalar_lea.sflag [#allocation4], %s12195_s16 }
  0x55   : > { %s12199_s7 = scalar_lea.vmem [#allocation3], %s11610_s17 }
  0x56   : > { %11994 = dma.done.wait (%p16268_p4), %s234_s30, 12288  }
  0x57   : > { %11996 = vsyncadd (%p16268_p4), %s234_s30, 4294955008  ;;  %p16269_p9 = scmp.eq.s32.totalorder %s12088_s22, 0 }
  0x59   : > { %11998 = dma.done.wait (%p16269_p9), [#allocation7], 18432   ;;  %p16270_p5 = pmov %p16269_p9 }
  0x5a   : > { %s9471_s26 = sshll.u32 %s12195_s16, 8  ;;  %v11697_v0 = vld [vmem:[#allocation6 + $0x78] sm:$0xff]   ;;  %v11699_v2 = vld [vmem:[#allocation6 + $0x70] sm:$0xff]   ;;  %v11701_v4 = vld [vmem:[#allocation6 + $0x68] sm:$0xff]   ;;  %vm3767_vm0 = vcmask 1043456   ;;  %vm3774_vm3 = vcmask 1040384  }
  0x5b   : > { %12000 = vsyncadd (%p16270_p5), [#allocation7], 4294948864  ;;  %v11698_v1 = vld [vmem:[#allocation6 + $0x38] sm:$0xff]   ;;  %10656 = vmatprep.subr.bf16.mxu0 %v11697_v0  ;;  %v11700_v3 = vld [vmem:[#allocation6 + $0x30] sm:$0xff]   ;;  %vm3768_vm1 = vsmask.f32 7938 }
  0x5c   : > { %10712 = vmatprep.subr.bf16.mxu1 %v11698_v1  ;;  %10657 = vmatpush3.bf16.msra.mxu0 %v11697_v0  ;;  %v11702_v5 = vld [vmem:[#allocation6 + $0x28] sm:$0xff]   ;;  %v11703_v6 = vld [vmem:[#allocation6 + $0x60] sm:$0xff]   ;;  %v11705_v8 = vld [vmem:[#allocation6 + $0x58] sm:$0xff]   ;;  %vm3564_vm2 = vsmask.f32 256  ;;  %s13748_s12 = scalar_lea.vmem [#allocation9], %s9471_s26 }
  0x5d   : > { %10713 = vmatpush3.bf16.msra.mxu1 %v11698_v1  ;;  %10658 = vmatprep.subr.bf16.mxu0 %v11699_v2  ;;  %v11704_v7 = vld [vmem:[#allocation6 + $0x20] sm:$0xff]   ;;  %v11706_v9 = vld [vmem:[#allocation6 + $0x18] sm:$0xff]   ;;  %v11707_v10 = vld [vmem:[#allocation6 + $0x50] sm:$0xff]   ;;  %vm3565_vm4 = vsmask.f32 4368  ;;  %p16320_p12 = scmp.ne.s32.totalorder %s12088_s22, 0 }
  0x5e   : > { %10714 = vmatprep.subr.bf16.mxu1 %v11700_v3  ;;  %v350_v11 = vld [vmem:[%s12199_s7 + $0x1] sm:$0xff]  ;;  %v351_v12 = vld [vmem:[%s12199_s7 + $0x9] sm:$0xff]  ;;  %v11713_v26 = vld [vmem:[#allocation6 + $0xb8] sm:$0xff]  }
  0x5f   : > { %v274_v13 = vld [vmem:[%s12199_s7] sm:$0xff]  ;;  %v11708_v14 = vld [vmem:[#allocation6 + $0x10] sm:$0xff]   ;;  %v390_v15 = vpack.c.bf16 %v351_v12, %v350_v11  ;;  %v275_v16 = vld [vmem:[%s12199_s7 + $0x8] sm:$0xff] }
  0x60   : > { %10659 = vmatpush3.bf16.msra.mxu0 %v11699_v2  ;;  %v314_v17 = vpack.c.bf16 %v275_v16, %v274_v13  ;;  %v11709_v18 = vld [vmem:[#allocation6 + $0x48] sm:$0xff]   ;;  %v11711_v20 = vld [vmem:[#allocation6 + $0x40] sm:$0xff]   ;;  %v11714_v35 = vld [vmem:[#allocation6 + $0xb0] sm:$0xff]  }
  0x61   : > { %10715 = vmatpush3.bf16.msra.mxu1 %v11700_v3  ;;  %10660 = vmatprep.subr.bf16.mxu0 %v11701_v4  ;;  %v11710_v19 = vld [vmem:[#allocation6 + $0x8] sm:$0xff]   ;;  %v11712_v21 = vld [vmem:[#allocation6] sm:$0xff]   ;;  %v11719_v51 = vld [vmem:[#allocation6 + $0xf8] sm:$0xff]  }
  0x62   : > { %10716 = vmatprep.subr.bf16.mxu1 %v11702_v5  ;;  %10672 = vmatprep.mubr.bf16.mxu0 %v390_v15  ;;  %v352_v22 = vld [vmem:[%s12199_s7 + $0x21] sm:$0xff]  ;;  %v353_v23 = vld [vmem:[%s12199_s7 + $0x29] sm:$0xff]  ;;  %v11717_v60 = vld [vmem:[#allocation6 + $0x98] sm:$0xff]  }
  0x63   : > { %10728 = vmatprep.mubr.bf16.mxu1 %v314_v17  ;;  %v276_v24 = vld [vmem:[%s12199_s7 + $0x20] sm:$0xff]  ;;  %v277_v25 = vld [vmem:[%s12199_s7 + $0x28] sm:$0xff]  ;;  %v12222_v31 = vpack.c.bf16 %v353_v23, %v352_v22  ;;  %v11720_v56 = vld [vmem:[#allocation6 + $0xf0] sm:$0xff]  }
  0x64   : > { %10661 = vmatpush3.bf16.msra.mxu0 %v11701_v4  ;;  %v354_v27 = vld [vmem:[%s12199_s7 + $0x41] sm:$0xff]  ;;  %v355_v28 = vld [vmem:[%s12199_s7 + $0x49] sm:$0xff]  ;;  %v12224_v32 = vpack.c.bf16 %v277_v25, %v276_v24  ;;  %v11724_v17 = vld [vmem:[#allocation6 + $0xd8] sm:$0xff]  }
  0x65   : > { %10717 = vmatpush3.bf16.msra.mxu1 %v11702_v5  ;;  %10662 = vmatprep.subr.bf16.mxu0 %v11703_v6  ;;  %v278_v29 = vld [vmem:[%s12199_s7 + $0x40] sm:$0xff]  ;;  %v279_v30 = vld [vmem:[%s12199_s7 + $0x48] sm:$0xff]  ;;  %v12226_v33 = vpack.c.bf16 %v355_v28, %v354_v27  ;;  %v11718_v3 = vld [vmem:[#allocation6 + $0x90] sm:$0xff]  }
  0x66   : > { %10718 = vmatprep.subr.bf16.mxu1 %v11704_v7  ;;  %v12228_v34 = vpack.c.bf16 %v279_v30, %v278_v29  ;;  %v356_v36 = vld [vmem:[%s12199_s7 + $0x61] sm:$0xff]  ;;  %v357_v37 = vld [vmem:[%s12199_s7 + $0x69] sm:$0xff]  ;;  %v12302_v28 = vld [vmem:[#allocation6 + $0x138] sm:$0xff]  }
  0x67   : > { %v280_v38 = vld [vmem:[%s12199_s7 + $0x60] sm:$0xff]  ;;  %v281_v39 = vld [vmem:[%s12199_s7 + $0x68] sm:$0xff]  ;;  %v12242_v45 = vpack.c.bf16 %v357_v37, %v356_v36  ;;  %v11726_v24 = vld [vmem:[#allocation6 + $0xd0] sm:$0xff]  }
  0x68   : > { %10663 = vmatpush3.bf16.msra.mxu0 %v11703_v6  ;;  %v358_v40 = vld [vmem:[%s12199_s7 + $0x81] sm:$0xff]  ;;  %v359_v41 = vld [vmem:[%s12199_s7 + $0x89] sm:$0xff]  ;;  %v12244_v46 = vpack.c.bf16 %v281_v39, %v280_v38  ;;  %vm13349_vm5 = vmand %vm3767_vm0, %vm3768_vm1 }
  0x69   : > { %10719 = vmatpush3.bf16.msra.mxu1 %v11704_v7  ;;  %10664 = vmatprep.subr.bf16.mxu0 %v11705_v8  ;;  %v11715_v42 = vld [vmem:[#allocation6 + $0xa8] sm:$0xff]   ;;  %v282_v43 = vld [vmem:[%s12199_s7 + $0x80] sm:$0xff]  ;;  %v12246_v47 = vpack.c.bf16 %v359_v41, %v358_v40  ;;  %vm13367_vm6 = vmand %vm3774_vm3, %vm3564_vm2 }
  0x6a   : > { %10720 = vmatprep.subr.bf16.mxu1 %v11706_v9  ;;  %v283_v44 = vld [vmem:[%s12199_s7 + $0x88] sm:$0xff]  ;;  %v11716_v49 = vld [vmem:[#allocation6 + $0xa0] sm:$0xff]   ;;  %vm13378_vm7 = vmor %vm3564_vm2, %vm3565_vm4 }
  0x6b   : > { %v12248_v48 = vpack.c.bf16 %v283_v44, %v282_v43  ;;  %v360_v50 = vld [vmem:[%s12199_s7 + $0xa1] sm:$0xff]  ;;  %v361_v52 = vld [vmem:[%s12199_s7 + $0xa9] sm:$0xff]  ;;  %vm13407_vm8 = vmand %vm3774_vm3, %vm3768_vm1 }
  0x6c   : > { %10665 = vmatpush3.bf16.msra.mxu0 %v11705_v8  ;;  %v284_v53 = vld [vmem:[%s12199_s7 + $0xa0] sm:$0xff]  ;;  %v285_v54 = vld [vmem:[%s12199_s7 + $0xa8] sm:$0xff]  ;;  %v12262_v61 = vpack.c.bf16 %v361_v52, %v360_v50 }
  0x6d   : > { %10721 = vmatpush3.bf16.msra.mxu1 %v11706_v9  ;;  %10666 = vmatprep.subr.bf16.mxu0 %v11707_v10  ;;  %v362_v55 = vld [vmem:[%s12199_s7 + $0xc1] sm:$0xff]  ;;  %v363_v57 = vld [vmem:[%s12199_s7 + $0xc9] sm:$0xff]  ;;  %v12264_v62 = vpack.c.bf16 %v285_v54, %v284_v53 }
  0x6e   : > { %10722 = vmatprep.subr.bf16.mxu1 %v11708_v14  ;;  %v286_v58 = vld [vmem:[%s12199_s7 + $0xc0] sm:$0xff]  ;;  %v287_v59 = vld [vmem:[%s12199_s7 + $0xc8] sm:$0xff]  ;;  %v12266_v63 = vpack.c.bf16 %v363_v57, %v362_v55 }
  0x6f   : > { %v12268_v0 = vpack.c.bf16 %v287_v59, %v286_v58  ;;  %v364_v1 = vld [vmem:[%s12199_s7 + $0xe1] sm:$0xff]  ;;  %v365_v2 = vld [vmem:[%s12199_s7 + $0xe9] sm:$0xff]  ;;  %v12334_v59 = vld [vmem:[#allocation6 + $0x178] sm:$0xff]  }
  0x70   : > { %10667 = vmatpush3.bf16.msra.mxu0 %v11707_v10  ;;  %v11721_v4 = vld [vmem:[#allocation6 + $0xe8] sm:$0xff]   ;;  %v288_v5 = vld [vmem:[%s12199_s7 + $0xe0] sm:$0xff]  ;;  %v12282_v13 = vpack.c.bf16 %v365_v2, %v364_v1 }
  0x71   : > { %10723 = vmatpush3.bf16.msra.mxu1 %v11708_v14  ;;  %10668 = vmatprep.subr.bf16.mxu0 %v11709_v18  ;;  %v289_v6 = vld [vmem:[%s12199_s7 + $0xe8] sm:$0xff]  ;;  %v290_v9 = vld [vmem:[%s12199_s7 + $0x100] sm:$0xff] }
  0x72   : > { %10724 = vmatprep.subr.bf16.mxu1 %v11710_v19  ;;  %v366_v7 = vld [vmem:[%s12199_s7 + $0x101] sm:$0xff]  ;;  %v367_v8 = vld [vmem:[%s12199_s7 + $0x109] sm:$0xff]  ;;  %v12284_v14 = vpack.c.bf16 %v289_v6, %v288_v5 }
  0x73   : > { %v11723_v10 = vld [vmem:[#allocation6 + $0xe0] sm:$0xff]   ;;  %v291_v11 = vld [vmem:[%s12199_s7 + $0x108] sm:$0xff]  ;;  %v12286_v15 = vpack.c.bf16 %v367_v8, %v366_v7 }
  0x74   : > { %10669 = vmatpush3.bf16.msra.mxu0 %v11709_v18  ;;  %v11722_v12 = vld [vmem:[#allocation6 + $0x88] sm:$0xff]   ;;  %v12288_v16 = vpack.c.bf16 %v291_v11, %v290_v9  ;;  %v296_v40 = vld [vmem:[%s12199_s7 + $0x1a0] sm:$0xff] }
  0x75   : > { %10725 = vmatpush3.bf16.msra.mxu1 %v11710_v19  ;;  %10670 = vmatprep.subr.bf16.mxu0 %v11711_v20  ;;  %v368_v18 = vld [vmem:[%s12199_s7 + $0x121] sm:$0xff]  ;;  %v371_v25 = vld [vmem:[%s12199_s7 + $0x189] sm:$0xff] }
  0x76   : > { %10726 = vmatprep.subr.bf16.mxu1 %v11712_v21  ;;  %v11725_v19 = vld [vmem:[#allocation6 + $0x80] sm:$0xff]   ;;  %v293_v22 = vld [vmem:[%s12199_s7 + $0x128] sm:$0xff] }
  0x77   : > { %v370_v23 = vld [vmem:[%s12199_s7 + $0x181] sm:$0xff]  ;;  %v373_v39 = vld [vmem:[%s12199_s7 + $0x1a9] sm:$0xff] }
  0x78   : > { %10671 = vmatpush3.bf16.msra.mxu0 %v11711_v20  ;;  %v369_v20 = vld [vmem:[%s12199_s7 + $0x129] sm:$0xff]  ;;  %v372_v38 = vld [vmem:[%s12199_s7 + $0x1a1] sm:$0xff] }
  0x79   : > { %10727 = vmatpush3.bf16.msra.mxu1 %v11712_v21  ;;  %10768 = vmatprep.subr.bf16.mxu0 %v11713_v26  ;;  %v292_v21 = vld [vmem:[%s12199_s7 + $0x120] sm:$0xff]  ;;  %v295_v27 = vld [vmem:[%s12199_s7 + $0x188] sm:$0xff]  ;;  %v12304_v29 = vpack.c.bf16 %v369_v20, %v368_v18 }
  0x7a   : > { %10824 = vmatprep.subr.bf16.mxu1 %v11719_v51  ;;  %v12306_v30 = vpack.c.bf16 %v293_v22, %v292_v21  ;;  %v11727_v37 = vld [vmem:[#allocation6 + $0xc8] sm:$0xff]   ;;  %v11728_v41 = vld [vmem:[#allocation6 + $0xc0] sm:$0xff]  }
  0x7b   : > { %10673 = vmatmul.mubr.bf16.vlgmr.msra.gmra.mxu0 %v12222_v31  ;;  %v374_v43 = vld [vmem:[%s12199_s7 + $0x1c1] sm:$0xff]  ;;  %v375_v44 = vld [vmem:[%s12199_s7 + $0x1c9] sm:$0xff] }
  0x7c   : > { %10729 = vmatmul.mubr.bf16.vlgmr.msra.gmra.mxu1 %v12224_v32  ;;  %10769 = vmatpush3.bf16.msra.mxu0 %v11713_v26  ;;  %v294_v26 = vld [vmem:[%s12199_s7 + $0x180] sm:$0xff]  ;;  %v299_v50 = vld [vmem:[%s12199_s7 + $0x1c8] sm:$0xff]  ;;  %v12323_v53 = vpack.c.bf16 %v375_v44, %v374_v43 }
  0x7d   : > { %10676 = vmatprep.mubr.bf16.mxu0 %v12226_v33  ;;  %10732 = vmatprep.mubr.bf16.mxu1 %v12228_v34  ;;  %v324_v36 = vpack.c.bf16 %v295_v27, %v294_v26  ;;  %v376_v55 = vld [vmem:[%s12199_s7 + $0x1e1] sm:$0xff]  ;;  %v379_v1 = vld [vmem:[%s12199_s7 + $0x209] sm:$0xff] }
  0x7e   : > { %10770 = vmatprep.subr.bf16.mxu0 %v11714_v35  ;;  %10825 = vmatpush3.bf16.msra.mxu1 %v11719_v51  ;;  %v12319_v51 = vpack.c.bf16 %v373_v39, %v372_v38  ;;  %v300_v57 = vld [vmem:[%s12199_s7 + $0x1e0] sm:$0xff]  ;;  %v301_v58 = vld [vmem:[%s12199_s7 + $0x1e8] sm:$0xff] }
  0x7f   : > { %10826 = vmatprep.subr.bf16.mxu1 %v11720_v56  ;;  %v302_v2 = vld [vmem:[%s12199_s7 + $0x200] sm:$0xff]  ;;  %v12344_v5 = vpack.c.bf16 %v301_v58, %v300_v57  ;;  %v381_v9 = vld [vmem:[%s12199_s7 + $0x229] sm:$0xff] }
  0x80   : > { %10771 = vmatpush3.bf16.msra.mxu0 %v11714_v35  ;;  %v400_v35 = vpack.c.bf16 %v371_v25, %v370_v23  ;;  %v380_v8 = vld [vmem:[%s12199_s7 + $0x221] sm:$0xff]  ;;  %v385_v25 = vld [vmem:[%s12199_s7 + $0x269] sm:$0xff] }
  0x81   : > { %10772 = vmatprep.subr.bf16.mxu0 %v11715_v42  ;;  %v305_v11 = vld [vmem:[%s12199_s7 + $0x228] sm:$0xff]  ;;  %v306_v18 = vld [vmem:[%s12199_s7 + $0x240] sm:$0xff]  ;;  %v12362_v20 = vpack.c.bf16 %v381_v9, %v380_v8 }
  0x82   : > { %10827 = vmatpush3.bf16.msra.mxu1 %v11720_v56  ;;  %v377_v56 = vld [vmem:[%s12199_s7 + $0x1e9] sm:$0xff]  ;;  %v308_v26 = vld [vmem:[%s12199_s7 + $0x260] sm:$0xff] }
  0x83   : > { %10677 = vmatmul.mubr.bf16.gmra.mxu0 %v12242_v45  ;;  %10828 = vmatprep.subr.bf16.mxu1 %v11721_v4  ;;  %v309_v27 = vld [vmem:[%s12199_s7 + $0x268] sm:$0xff] }
  0x84   : > { %10733 = vmatmul.mubr.bf16.gmra.mxu1 %v12244_v46  ;;  %10680 = vmatprep.mubr.bf16.mxu0 %v12246_v47  ;;  %v311_v38 = vld [vmem:[%s12199_s7 + $0x288] sm:$0xff] }
  0x85   : > { %10736 = vmatprep.mubr.bf16.mxu1 %v12248_v48  ;;  %10773 = vmatpush3.bf16.msra.mxu0 %v11715_v42  ;;  %v297_v42 = vld [vmem:[%s12199_s7 + $0x1a8] sm:$0xff] }
  0x86   : > { %10774 = vmatprep.subr.bf16.mxu0 %v11716_v49  ;;  %10829 = vmatpush3.bf16.msra.mxu1 %v11721_v4  ;;  %v12321_v52 = vpack.c.bf16 %v297_v42, %v296_v40  ;;  %v12342_v4 = vpack.c.bf16 %v377_v56, %v376_v55  ;;  %v12382_v40 = vpack.c.bf16 %v309_v27, %v308_v26  ;;  %v388_v43 = vld [vmem:[%s12199_s7 + $0x2a1] sm:$0xff]  ;;  %v389_v44 = vld [vmem:[%s12199_s7 + $0x2a9] sm:$0xff] }
  0x87   : > { %10830 = vmatprep.subr.bf16.mxu1 %v11723_v10  ;;  %v909_v55 = vld [vmem:[%s12199_s7 + $0x2] sm:$0xff]  ;;  %v910_v56 = vld [vmem:[%s12199_s7 + $0xa] sm:$0xff]  ;;  %v409_v57 = vpack.c.bf16 %v389_v44, %v388_v43 }
  0x88   : > { %v914_v8 = vld [vmem:[%s12199_s7 + $0x4a] sm:$0xff]  ;;  %v11732_v26 = vld [vmem:[#allocation6 + $0x120] sm:$0xff]  }
  0x89   : > { %10775 = vmatpush3.bf16.msra.mxu0 %v11716_v49  ;;  %v298_v49 = vld [vmem:[%s12199_s7 + $0x1c0] sm:$0xff]  ;;  %v920_v27 = vld [vmem:[%s12199_s7 + $0xaa] sm:$0xff] }
  0x8a   : > { %10776 = vmatprep.subr.bf16.mxu0 %v11717_v60  ;;  %10831 = vmatpush3.bf16.msra.mxu1 %v11723_v10  ;;  %v12325_v54 = vpack.c.bf16 %v299_v50, %v298_v49  ;;  %v304_v10 = vld [vmem:[%s12199_s7 + $0x220] sm:$0xff]  ;;  %v313_v50 = vld [vmem:[%s12199_s7 + $0x2a8] sm:$0xff]  ;;  %v11734_v43 = vld [vmem:[#allocation6 + $0x110] sm:$0xff]  }
  0x8b   : > { %10681 = vmatmul.mubr.bf16.gmra.mxu0 %v12262_v61  ;;  %10832 = vmatprep.subr.bf16.mxu1 %v11724_v17  ;;  %v12364_v21 = vpack.c.bf16 %v305_v11, %v304_v10  ;;  %v312_v49 = vld [vmem:[%s12199_s7 + $0x2a0] sm:$0xff]  ;;  %v11730_v11 = vld [vmem:[#allocation6 + $0x130] sm:$0xff]  }
  0x8c   : > { %10737 = vmatmul.mubr.bf16.gmra.mxu1 %v12264_v62  ;;  %10684 = vmatprep.mubr.bf16.mxu0 %v12266_v63  ;;  %v12397_v58 = vpack.c.bf16 %v313_v50, %v312_v49  ;;  %v923_v44 = vld [vmem:[%s12199_s7 + $0xe2] sm:$0xff]  ;;  %v924_v49 = vld [vmem:[%s12199_s7 + $0xea] sm:$0xff] }
  0x8d   : > { %10740 = vmatprep.mubr.bf16.mxu1 %v12268_v0  ;;  %10777 = vmatpush3.bf16.msra.mxu0 %v11717_v60  ;;  %v378_v60 = vld [vmem:[%s12199_s7 + $0x201] sm:$0xff] }
  0x8e   : > { %10778 = vmatprep.subr.bf16.mxu0 %v11718_v3  ;;  %10833 = vmatpush3.bf16.msra.mxu1 %v11724_v17  ;;  %v12346_v6 = vpack.c.bf16 %v379_v1, %v378_v60  ;;  %v383_v17 = vld [vmem:[%s12199_s7 + $0x249] sm:$0xff]  ;;  %v949_v60 = vpack.c.bf16 %v910_v56, %v909_v55 }
  0x8f   : > { %10834 = vmatprep.subr.bf16.mxu1 %v11726_v24  ;;  %v911_v1 = vld [vmem:[%s12199_s7 + $0x22] sm:$0xff]  ;;  %v926_v55 = vld [vmem:[%s12199_s7 + $0x10a] sm:$0xff] }
  0x90   : > { %v925_v50 = vld [vmem:[%s12199_s7 + $0x102] sm:$0xff] }
  0x91   : > { %10779 = vmatpush3.bf16.msra.mxu0 %v11718_v3  ;;  %v303_v3 = vld [vmem:[%s12199_s7 + $0x208] sm:$0xff] }
  0x92   : > { %10780 = vmatprep.subr.bf16.mxu0 %v11722_v12  ;;  %10835 = vmatpush3.bf16.msra.mxu1 %v11726_v24  ;;  %v12348_v7 = vpack.c.bf16 %v303_v3, %v302_v2  ;;  %v384_v24 = vld [vmem:[%s12199_s7 + $0x261] sm:$0xff]  ;;  %v912_v2 = vld [vmem:[%s12199_s7 + $0x2a] sm:$0xff] }
  0x93   : > { %10685 = vmatmul.mubr.bf16.gmra.mxu0 %v12282_v13  ;;  %10836 = vmatprep.subr.bf16.mxu1 %v11727_v37  ;;  %v407_v39 = vpack.c.bf16 %v385_v25, %v384_v24  ;;  %v913_v3 = vld [vmem:[%s12199_s7 + $0x42] sm:$0xff]  ;;  %v12405_v9 = vpack.c.bf16 %v912_v2, %v911_v1 }
  0x94   : > { %10741 = vmatmul.mubr.bf16.gmra.mxu1 %v12284_v14  ;;  %10688 = vmatprep.mubr.bf16.mxu0 %v12286_v15  ;;  %v12407_v10 = vpack.c.bf16 %v914_v8, %v913_v3  ;;  %v11731_v24 = vld [vmem:[#allocation6 + $0x128] sm:$0xff]   ;;  %v11744_v1 = vld [vmem:[#allocation6 + $0x140] sm:$0xff]  }
  0x95   : > { %10744 = vmatprep.mubr.bf16.mxu1 %v12288_v16  ;;  %10781 = vmatpush3.bf16.msra.mxu0 %v11722_v12  ;;  %v382_v12 = vld [vmem:[%s12199_s7 + $0x241] sm:$0xff]  ;;  %v928_v3 = vld [vmem:[%s12199_s7 + $0x12a] sm:$0xff] }
  0x96   : > { %10782 = vmatprep.subr.bf16.mxu0 %v11725_v19  ;;  %10837 = vmatpush3.bf16.msra.mxu1 %v11727_v37  ;;  %v12366_v22 = vpack.c.bf16 %v383_v17, %v382_v12  ;;  %v310_v37 = vld [vmem:[%s12199_s7 + $0x280] sm:$0xff]  ;;  %v11736_v12 = vld [vmem:[#allocation6 + $0x170] sm:$0xff]   ;;  %v11738_v56 = vld [vmem:[#allocation6 + $0x108] sm:$0xff]  }
  0x97   : > { %10838 = vmatprep.subr.bf16.mxu1 %v11728_v41  ;;  %v12386_v42 = vpack.c.bf16 %v311_v38, %v310_v37  ;;  %v915_v17 = vld [vmem:[%s12199_s7 + $0x62] sm:$0xff]  ;;  %v11733_v37 = vld [vmem:[#allocation6 + $0x118] sm:$0xff]  }
  0x98   : > { %v927_v2 = vld [vmem:[%s12199_s7 + $0x122] sm:$0xff] }
  0x99   : > { %10783 = vmatpush3.bf16.msra.mxu0 %v11725_v19  ;;  %v307_v19 = vld [vmem:[%s12199_s7 + $0x248] sm:$0xff]  ;;  %v9514_v8 = vld [vmem:[%s12199_s7 + $0x140] sm:$0xff] }
  0x9a   : > { %10880 = vmatprep.subr.bf16.mxu0 %v12302_v28  ;;  %10839 = vmatpush3.bf16.msra.mxu1 %v11728_v41  ;;  %v12368_v23 = vpack.c.bf16 %v307_v19, %v306_v18  ;;  %v916_v18 = vld [vmem:[%s12199_s7 + $0x6a] sm:$0xff] }
  0x9b   : > { %10689 = vmatmul.mubr.bf16.gmra.mxu0 %v12304_v29  ;;  %10936 = vmatprep.subr.bf16.mxu1 %v12334_v59  ;;  %v918_v19 = vld [vmem:[%s12199_s7 + $0x8a] sm:$0xff]  ;;  %v12419_v25 = vpack.c.bf16 %v916_v18, %v915_v17  ;;  %v12457_v18 = vld [vmem:[#allocation6 + $0x1b8] sm:$0xff]  }
  0x9c   : > { %10745 = vmatmul.mubr.bf16.gmra.mxu1 %v12306_v30  ;;  %10692 = vmatprep.mubr.bf16.mxu0 %v400_v35  ;;  %v386_v35 = vld [vmem:[%s12199_s7 + $0x281] sm:$0xff]  ;;  %v930_v17 = vld [vmem:[%s12199_s7 + $0x18a] sm:$0xff] }
  0x9d   : > { %10748 = vmatprep.mubr.bf16.mxu1 %v324_v36  ;;  %v387_v36 = vld [vmem:[%s12199_s7 + $0x289] sm:$0xff] }
  0x9e   : > { %v12384_v41 = vpack.c.bf16 %v387_v36, %v386_v35  ;;  %v921_v35 = vld [vmem:[%s12199_s7 + $0xc2] sm:$0xff]  ;;  %v922_v36 = vld [vmem:[%s12199_s7 + $0xca] sm:$0xff] }
  0xa3   : > { %10693 = vmatmul.mubr.bf16.gmra.mxu0 %v12319_v51 }
  0xa4   : > { %10749 = vmatmul.mubr.bf16.gmra.mxu1 %v12321_v52  ;;  %10696 = vmatprep.mubr.bf16.mxu0 %v12323_v53 }
  0xa5   : > { %10752 = vmatprep.mubr.bf16.mxu1 %v12325_v54 }
  0xab   : > { %10697 = vmatmul.mubr.bf16.gmra.mxu0 %v12342_v4 }
  0xac   : > { %10753 = vmatmul.mubr.bf16.gmra.mxu1 %v12344_v5  ;;  %10700 = vmatprep.mubr.bf16.mxu0 %v12346_v6 }
  0xad   : > { %10756 = vmatprep.mubr.bf16.mxu1 %v12348_v7 }
  0xb3   : > { %10701 = vmatmul.mubr.bf16.gmra.mxu0 %v12362_v20 }
  0xb4   : > { %10757 = vmatmul.mubr.bf16.gmra.mxu1 %v12364_v21  ;;  %10704 = vmatprep.mubr.bf16.mxu0 %v12366_v22 }
  0xb5   : > { %10760 = vmatprep.mubr.bf16.mxu1 %v12368_v23 }
  0xbb   : > { %10705 = vmatmul.mubr.bf16.gmra.mxu0 %v407_v39  ;;  %v12433_v39 = vpack.c.bf16 %v922_v36, %v921_v35  ;;  %v935_v35 = vld [vmem:[%s12199_s7 + $0x1e2] sm:$0xff]  ;;  %v936_v36 = vld [vmem:[%s12199_s7 + $0x1ea] sm:$0xff] }
  0xbc   : > { %10761 = vmatmul.mubr.bf16.gmra.mxu1 %v12382_v40  ;;  %10708 = vmatprep.mubr.bf16.mxu0 %v12384_v41 }
  0xbd   : > { %10764 = vmatprep.mubr.bf16.mxu1 %v12386_v42 }
  0xc3   : > { %10709 = vmatmul.mubr.bf16.gmra.mxu0 %v409_v57  ;;  %v12443_v57 = vpack.c.bf16 %v924_v49, %v923_v44  ;;  %v942_v44 = vld [vmem:[%s12199_s7 + $0x24a] sm:$0xff] }
  0xc4   : > { %10765 = vmatmul.mubr.bf16.gmra.mxu1 %v12397_v58  ;;  %10784 = vmatprep.mubr.bf16.mxu0 %v949_v60  ;;  %v12445_v60 = vpack.c.bf16 %v926_v55, %v925_v50  ;;  %v944_v55 = vld [vmem:[%s12199_s7 + $0x26a] sm:$0xff] }
  0xc5   : > { %10840 = vmatprep.mubr.bf16.mxu1 %v12224_v32  ;;  %v917_v32 = vld [vmem:[%s12199_s7 + $0x82] sm:$0xff] }
  0xcb   : > { %10785 = vmatmul.mubr.bf16.vlgmr.msra.gmra.mxu0 %v12405_v9 }
  0xcc   : > { %10881 = vmatpush3.bf16.msra.mxu0 %v12302_v28  ;;  %10841 = vmatmul.mubr.bf16.vlgmr.msra.gmra.mxu1 %v12228_v34  ;;  %v11737_v28 = vld [vmem:[#allocation6 + $0x168] sm:$0xff]   ;;  %v12421_v34 = vpack.c.bf16 %v918_v19, %v917_v32  ;;  %v12459_v32 = vpack.c.bf16 %v928_v3, %v927_v2  ;;  %v9534_v2 = vld [vmem:[%s12199_s7 + $0x2c0] sm:$0xff] }
  0xcd   : > { %10788 = vmatprep.mubr.bf16.mxu0 %v12407_v10  ;;  %10844 = vmatprep.mubr.bf16.mxu1 %v12244_v46  ;;  %v11739_v46 = vld [vmem:[#allocation6 + $0x160] sm:$0xff]   ;;  %v9535_v3 = vld [vmem:[%s12199_s7 + $0x2c8] sm:$0xff] }
  0xce   : > { %10882 = vmatprep.subr.bf16.mxu0 %v11730_v11  ;;  %10937 = vmatpush3.bf16.msra.mxu1 %v12334_v59  ;;  %v919_v59 = vld [vmem:[%s12199_s7 + $0xa2] sm:$0xff] }
  0xcf   : > { %10938 = vmatprep.subr.bf16.mxu1 %v11736_v12  ;;  %v12431_v38 = vpack.c.bf16 %v920_v27, %v919_v59 }
  0xd0   : > { %10883 = vmatpush3.bf16.msra.mxu0 %v11730_v11  ;;  %v9515_v11 = vld [vmem:[%s12199_s7 + $0x148] sm:$0xff] }
  0xd1   : > { %10884 = vmatprep.subr.bf16.mxu0 %v11731_v24  ;;  %v1317_v19 = vpack.c.bf16 %v9515_v11, %v9514_v8  ;;  %v11746_v11 = vld [vmem:[#allocation6 + $0x1b0] sm:$0xff]  }
  0xd2   : > { %10939 = vmatpush3.bf16.msra.mxu1 %v11736_v12  ;;  %v929_v12 = vld [vmem:[%s12199_s7 + $0x182] sm:$0xff] }
  0xd3   : > { %10789 = vmatmul.mubr.bf16.gmra.mxu0 %v12419_v25  ;;  %10940 = vmatprep.subr.bf16.mxu1 %v11737_v28 }
  0xd4   : > { %10845 = vmatmul.mubr.bf16.gmra.mxu1 %v12248_v48  ;;  %10792 = vmatprep.mubr.bf16.mxu0 %v12421_v34  ;;  %v11740_v48 = vld [vmem:[#allocation6 + $0x158] sm:$0xff]  }
  0xd5   : > { %10848 = vmatprep.mubr.bf16.mxu1 %v12264_v62  ;;  %10885 = vmatpush3.bf16.msra.mxu0 %v11731_v24  ;;  %v11742_v62 = vld [vmem:[#allocation6 + $0x150] sm:$0xff]   ;;  %v959_v24 = vpack.c.bf16 %v930_v17, %v929_v12  ;;  %v12546_v17 = vld [vmem:[#allocation6 + $0x238] sm:$0xff]  }
  0xd6   : > { %10886 = vmatprep.subr.bf16.mxu0 %v11732_v26  ;;  %10941 = vmatpush3.bf16.msra.mxu1 %v11737_v28  ;;  %v932_v28 = vld [vmem:[%s12199_s7 + $0x1aa] sm:$0xff] }
  0xd7   : > { %10942 = vmatprep.subr.bf16.mxu1 %v11739_v46  ;;  %v9611_v12 = vld [vmem:[%s12199_s7 + $0x14a] sm:$0xff] }
  0xd9   : > { %10887 = vmatpush3.bf16.msra.mxu0 %v11732_v26  ;;  %v933_v26 = vld [vmem:[%s12199_s7 + $0x1c2] sm:$0xff] }
  0xda   : > { %10888 = vmatprep.subr.bf16.mxu0 %v11733_v37  ;;  %10943 = vmatpush3.bf16.msra.mxu1 %v11739_v46  ;;  %v934_v46 = vld [vmem:[%s12199_s7 + $0x1ca] sm:$0xff] }
  0xdb   : > { %10793 = vmatmul.mubr.bf16.gmra.mxu0 %v12431_v38  ;;  %10944 = vmatprep.subr.bf16.mxu1 %v11740_v48  ;;  %v12473_v27 = vpack.c.bf16 %v934_v46, %v933_v26 }
  0xdc   : > { %10849 = vmatmul.mubr.bf16.gmra.mxu1 %v12268_v0  ;;  %10796 = vmatprep.mubr.bf16.mxu0 %v12433_v39  ;;  %v11743_v0 = vld [vmem:[#allocation6 + $0x148] sm:$0xff]  }
  0xdd   : > { %10852 = vmatprep.mubr.bf16.mxu1 %v12284_v14  ;;  %10889 = vmatpush3.bf16.msra.mxu0 %v11733_v37  ;;  %v11741_v14 = vld [vmem:[#allocation6 + $0x100] sm:$0xff]   ;;  %v938_v37 = vld [vmem:[%s12199_s7 + $0x20a] sm:$0xff] }
  0xde   : > { %10890 = vmatprep.subr.bf16.mxu0 %v11734_v43  ;;  %10945 = vmatpush3.bf16.msra.mxu1 %v11740_v48  ;;  %v12483_v48 = vpack.c.bf16 %v936_v36, %v935_v35 }
  0xdf   : > { %10946 = vmatprep.subr.bf16.mxu1 %v11742_v62 }
  0xe1   : > { %10891 = vmatpush3.bf16.msra.mxu0 %v11734_v43 }
  0xe2   : > { %10892 = vmatprep.subr.bf16.mxu0 %v11738_v56  ;;  %10947 = vmatpush3.bf16.msra.mxu1 %v11742_v62  ;;  %v940_v62 = vld [vmem:[%s12199_s7 + $0x22a] sm:$0xff] }
  0xe3   : > { %10797 = vmatmul.mubr.bf16.gmra.mxu0 %v12443_v57  ;;  %10948 = vmatprep.subr.bf16.mxu1 %v11743_v0 }
  0xe4   : > { %10853 = vmatmul.mubr.bf16.gmra.mxu1 %v12288_v16  ;;  %10800 = vmatprep.mubr.bf16.mxu0 %v12445_v60  ;;  %v12461_v16 = vld [vmem:[#allocation6 + $0x1f8] sm:$0xff]  }
  0xe5   : > { %10856 = vmatprep.mubr.bf16.mxu1 %v12306_v30  ;;  %10893 = vmatpush3.bf16.msra.mxu0 %v11738_v56  ;;  %v931_v30 = vld [vmem:[%s12199_s7 + $0x1a2] sm:$0xff]  ;;  %v946_v56 = vld [vmem:[%s12199_s7 + $0x28a] sm:$0xff] }
  0xe6   : > { %10894 = vmatprep.subr.bf16.mxu0 %v11741_v14  ;;  %10949 = vmatpush3.bf16.msra.mxu1 %v11743_v0  ;;  %v12471_v59 = vpack.c.bf16 %v932_v28, %v931_v30 }
  0xe7   : > { %10950 = vmatprep.subr.bf16.mxu1 %v11744_v1 }
  0xe9   : > { %10895 = vmatpush3.bf16.msra.mxu0 %v11741_v14 }
  0xea   : > { %10951 = vmatpush3.bf16.msra.mxu1 %v11744_v1  ;;  %10992 = vmatprep.subr.bf16.mxu0 %v12457_v18  ;;  %v948_v1 = vld [vmem:[%s12199_s7 + $0x2aa] sm:$0xff] }
  0xeb   : > { %10801 = vmatmul.mubr.bf16.gmra.mxu0 %v12459_v32  ;;  %11048 = vmatprep.subr.bf16.mxu1 %v12461_v16 }
  0xec   : > { %10857 = vmatmul.mubr.bf16.gmra.mxu1 %v1317_v19  ;;  %10804 = vmatprep.mubr.bf16.mxu0 %v959_v24 }
  0xed   : > { %10860 = vmatprep.mubr.bf16.mxu1 %v12321_v52  ;;  %v937_v52 = vld [vmem:[%s12199_s7 + $0x202] sm:$0xff] }
  0xee   : > { %v12485_v43 = vpack.c.bf16 %v938_v37, %v937_v52 }
  0xf3   : > { %10805 = vmatmul.mubr.bf16.gmra.mxu0 %v12471_v59 }
  0xf4   : > { %10861 = vmatmul.mubr.bf16.gmra.mxu1 %v12325_v54  ;;  %10808 = vmatprep.mubr.bf16.mxu0 %v12473_v27  ;;  %v939_v54 = vld [vmem:[%s12199_s7 + $0x222] sm:$0xff] }
  0xf5   : > { %10864 = vmatprep.mubr.bf16.mxu1 %v12344_v5  ;;  %v941_v5 = vld [vmem:[%s12199_s7 + $0x242] sm:$0xff]  ;;  %v12495_v49 = vpack.c.bf16 %v940_v62, %v939_v54 }
  0xf6   : > { %v12497_v50 = vpack.c.bf16 %v942_v44, %v941_v5 }
  0xfb   : > { %10809 = vmatmul.mubr.bf16.gmra.mxu0 %v12483_v48 }
  0xfc   : > { %10865 = vmatmul.mubr.bf16.gmra.mxu1 %v12348_v7  ;;  %10812 = vmatprep.mubr.bf16.mxu0 %v12485_v43  ;;  %v943_v7 = vld [vmem:[%s12199_s7 + $0x262] sm:$0xff] }
  0xfd   : > { %10868 = vmatprep.mubr.bf16.mxu1 %v12364_v21  ;;  %v945_v21 = vld [vmem:[%s12199_s7 + $0x282] sm:$0xff]  ;;  %v12507_v0 = vpack.c.bf16 %v944_v55, %v943_v7 }
  0xfe   : > { %v12509_v14 = vpack.c.bf16 %v946_v56, %v945_v21 }
 0x103   : > { %10813 = vmatmul.mubr.bf16.gmra.mxu0 %v12495_v49 }
 0x104   : > { %10869 = vmatmul.mubr.bf16.gmra.mxu1 %v12368_v23  ;;  %10816 = vmatprep.mubr.bf16.mxu0 %v12497_v50  ;;  %v947_v23 = vld [vmem:[%s12199_s7 + $0x2a2] sm:$0xff] }
 0x105   : > { %10872 = vmatprep.mubr.bf16.mxu1 %v12382_v40  ;;  %v12519_v8 = vpack.c.bf16 %v948_v1, %v947_v23  ;;  %v1327_v40 = vpack.c.bf16 %v9535_v3, %v9534_v2  ;;  %v9576_v23 = vld [vmem:[%s12199_s7 + $0x261] sm:$0xff]  ;;  %v9577_v1 = vld [vmem:[%s12199_s7 + $0x269] sm:$0xff] }
 0x10b   : > { %10817 = vmatmul.mubr.bf16.gmra.mxu0 %v12507_v0 }
 0x10c   : > { %10873 = vmatmul.mubr.bf16.gmra.mxu1 %v12386_v42  ;;  %10820 = vmatprep.mubr.bf16.mxu0 %v12509_v14  ;;  %v11752_v42 = vld [vmem:[#allocation6 + $0x1f0] sm:$0xff]  }
 0x10d   : > { %10876 = vmatprep.mubr.bf16.mxu1 %v12397_v58  ;;  %v11747_v58 = vld [vmem:[#allocation6 + $0x1a8] sm:$0xff]  }
 0x113   : > { %10821 = vmatmul.mubr.bf16.gmra.mxu0 %v12519_v8 }
 0x114   : > { %10877 = vmatmul.mubr.bf16.gmra.mxu1 %v1327_v40  ;;  %10896 = vmatprep.mubr.bf16.mxu0 %v12222_v31  ;;  %v11753_v31 = vld [vmem:[#allocation6 + $0x1e8] sm:$0xff]  }
 0x115   : > { %10952 = vmatprep.mubr.bf16.mxu1 %v12405_v9  ;;  %v11748_v9 = vld [vmem:[#allocation6 + $0x1a0] sm:$0xff]  }
 0x11b   : > { %10897 = vmatmul.mubr.bf16.vlgmr.msra.gmra.mxu0 %v12226_v33  ;;  %v11755_v33 = vld [vmem:[#allocation6 + $0x1e0] sm:$0xff]  }
 0x11c   : > { %10993 = vmatpush3.bf16.msra.mxu0 %v12457_v18  ;;  %10953 = vmatmul.mubr.bf16.vlgmr.msra.gmra.mxu1 %v12407_v10  ;;  %v11756_v10 = vld [vmem:[#allocation6 + $0x1d8] sm:$0xff]  }
 0x11d   : > { %10900 = vmatprep.mubr.bf16.mxu0 %v12242_v45  ;;  %10956 = vmatprep.mubr.bf16.mxu1 %v12419_v25  ;;  %v11749_v45 = vld [vmem:[#allocation6 + $0x198] sm:$0xff]   ;;  %v11750_v25 = vld [vmem:[#allocation6 + $0x190] sm:$0xff]  }
 0x11e   : > { %10994 = vmatprep.subr.bf16.mxu0 %v11746_v11  ;;  %11049 = vmatpush3.bf16.msra.mxu1 %v12461_v16 }
 0x11f   : > { %11050 = vmatprep.subr.bf16.mxu1 %v11752_v42 }
 0x120   : > { %10995 = vmatpush3.bf16.msra.mxu0 %v11746_v11 }
 0x121   : > { %10996 = vmatprep.subr.bf16.mxu0 %v11747_v58 }
 0x122   : > { %11051 = vmatpush3.bf16.msra.mxu1 %v11752_v42 }
 0x123   : > { %10901 = vmatmul.mubr.bf16.gmra.mxu0 %v12246_v47  ;;  %11052 = vmatprep.subr.bf16.mxu1 %v11753_v31  ;;  %v11758_v47 = vld [vmem:[#allocation6 + $0x1d0] sm:$0xff]  }
 0x124   : > { %10957 = vmatmul.mubr.bf16.gmra.mxu1 %v12421_v34  ;;  %10904 = vmatprep.mubr.bf16.mxu0 %v12262_v61  ;;  %v11754_v61 = vld [vmem:[#allocation6 + $0x188] sm:$0xff]  }
 0x125   : > { %10960 = vmatprep.mubr.bf16.mxu1 %v12431_v38  ;;  %10997 = vmatpush3.bf16.msra.mxu0 %v11747_v58  ;;  %v11759_v34 = vld [vmem:[#allocation6 + $0x1c8] sm:$0xff]  }
 0x126   : > { %10998 = vmatprep.subr.bf16.mxu0 %v11748_v9  ;;  %11053 = vmatpush3.bf16.msra.mxu1 %v11753_v31  ;;  %v9562_v38 = vld [vmem:[%s12199_s7 + $0x141] sm:$0xff] }
 0x127   : > { %11054 = vmatprep.subr.bf16.mxu1 %v11755_v33 }
 0x129   : > { %10999 = vmatpush3.bf16.msra.mxu0 %v11748_v9 }
 0x12a   : > { %11000 = vmatprep.subr.bf16.mxu0 %v11749_v45  ;;  %11055 = vmatpush3.bf16.msra.mxu1 %v11755_v33 }
 0x12b   : > { %10905 = vmatmul.mubr.bf16.gmra.mxu0 %v12266_v63  ;;  %11056 = vmatprep.subr.bf16.mxu1 %v11756_v10  ;;  %v11757_v63 = vld [vmem:[#allocation6 + $0x180] sm:$0xff]  }
 0x12c   : > { %10961 = vmatmul.mubr.bf16.gmra.mxu1 %v12433_v39  ;;  %10908 = vmatprep.mubr.bf16.mxu0 %v12282_v13  ;;  %v11760_v13 = vld [vmem:[#allocation6 + $0x1c0] sm:$0xff]   ;;  %v9563_v39 = vld [vmem:[%s12199_s7 + $0x149] sm:$0xff] }
 0x12d   : > { %10964 = vmatprep.mubr.bf16.mxu1 %v12443_v57  ;;  %11001 = vmatpush3.bf16.msra.mxu0 %v11749_v45  ;;  %v9610_v57 = vld [vmem:[%s12199_s7 + $0x142] sm:$0xff]  ;;  %v12548_v18 = vpack.c.bf16 %v9563_v39, %v9562_v38 }
 0x12e   : > { %11002 = vmatprep.subr.bf16.mxu0 %v11750_v25  ;;  %11057 = vmatpush3.bf16.msra.mxu1 %v11756_v10  ;;  %v9580_v45 = vld [vmem:[%s12199_s7 + $0x2a1] sm:$0xff]  ;;  %v9581_v10 = vld [vmem:[%s12199_s7 + $0x2a9] sm:$0xff] }
 0x12f   : > { %11058 = vmatprep.subr.bf16.mxu1 %v11758_v47 }
 0x131   : > { %11003 = vmatpush3.bf16.msra.mxu0 %v11750_v25 }
 0x132   : > { %11004 = vmatprep.subr.bf16.mxu0 %v11754_v61  ;;  %11059 = vmatpush3.bf16.msra.mxu1 %v11758_v47 }
 0x133   : > { %10909 = vmatmul.mubr.bf16.gmra.mxu0 %v12286_v15  ;;  %11060 = vmatprep.subr.bf16.mxu1 %v11759_v34  ;;  %v2033_v15 = vpack.c.bf16 %v9611_v12, %v9610_v57  ;;  %v9582_v57 = vld [vmem:[%s12199_s7 + $0x2c1] sm:$0xff]  ;;  %v9583_v12 = vld [vmem:[%s12199_s7 + $0x2c9] sm:$0xff] }
 0x134   : > { %10965 = vmatmul.mubr.bf16.gmra.mxu1 %v12445_v60  ;;  %10912 = vmatprep.mubr.bf16.mxu0 %v12304_v29 }
 0x135   : > { %10968 = vmatprep.mubr.bf16.mxu1 %v12459_v32  ;;  %11005 = vmatpush3.bf16.msra.mxu0 %v11754_v61 }
 0x136   : > { %11006 = vmatprep.subr.bf16.mxu0 %v11757_v63  ;;  %11061 = vmatpush3.bf16.msra.mxu1 %v11759_v34  ;;  %v12600_v34 = vpack.c.bf16 %v9581_v10, %v9580_v45 }
 0x137   : > { %11062 = vmatprep.subr.bf16.mxu1 %v11760_v13 }
 0x139   : > { %11007 = vmatpush3.bf16.msra.mxu0 %v11757_v63 }
 0x13a   : > { %11063 = vmatpush3.bf16.msra.mxu1 %v11760_v13  ;;  %11104 = vmatprep.subr.bf16.mxu0 %v12546_v17 }
 0x13b   : > { %v10674_v29 = vpop.f32.mrf.mxu0  ;;  %10913 = vmatmul.mubr.bf16.gmra.mxu0 %v12548_v18 }
 0x13c   : > { %v10730_v60 = vpop.f32.mrf.mxu1  ;;  %10969 = vmatmul.mubr.bf16.gmra.mxu1 %v2033_v15  ;;  %10916 = vmatprep.mubr.bf16.mxu0 %v12319_v51  ;;  %v9630_v15 = vld [vmem:[%s12199_s7 + $0x2c2] sm:$0xff] }
 0x13d   : > { %v12553_v32 = vadd.f32 %v10730_v60, %v10674_v29  ;;  %v509_v16 = vpop.f32.mrf.mxu0  ;;  %10972 = vmatprep.mubr.bf16.mxu1 %v12471_v59 }
 0x13e   : > { %v750_v19 = vpop.f32.mrf.mxu1 }
 0x13f   : > { %v12556_v24 = vadd.f32 %v750_v19, %v509_v16  ;;  %v10675_v30 = vpop.f32.mrf.mxu0  ;;  %v9631_v16 = vld [vmem:[%s12199_s7 + $0x2ca] sm:$0xff]  ;;  %v9640_v19 = vld [vmem:[%s12199_s7 + $0x40] sm:$0xff] }
 0x140   : > { %v10731_v28 = vpop.f32.mrf.mxu1 }
 0x141   : > { %v12558_v26 = vadd.f32 %v10731_v28, %v10675_v30  ;;  %v512_v46 = vpop.f32.mrf.mxu0  ;;  %v9641_v30 = vld [vmem:[%s12199_s7 + $0x48] sm:$0xff] }
 0x142   : > { %v753_v35 = vpop.f32.mrf.mxu1 }
 0x143   : > { %v12560_v36 = vadd.f32 %v753_v35, %v512_v46  ;;  %v10678_v52 = vpop.f32.mrf.mxu0  ;;  %10917 = vmatmul.mubr.bf16.gmra.mxu0 %v12323_v53  ;;  %v9688_v46 = vld [vmem:[%s12199_s7 + $0x41] sm:$0xff]  ;;  %v9689_v35 = vld [vmem:[%s12199_s7 + $0x49] sm:$0xff] }
 0x144   : > { %v10734_v51 = vpop.f32.mrf.mxu1  ;;  %10973 = vmatmul.mubr.bf16.gmra.mxu1 %v12473_v27  ;;  %10920 = vmatprep.mubr.bf16.mxu0 %v12342_v4 }
 0x145   : > { %v12565_v59 = vadd.f32 %v10734_v51, %v10678_v52  ;;  %v525_v37 = vpop.f32.mrf.mxu0  ;;  %10976 = vmatprep.mubr.bf16.mxu1 %v12483_v48  ;;  %v12622_v52 = vpack.c.bf16 %v9583_v12, %v9582_v57  ;;  %v11762_v12 = vld [vmem:[#allocation6 + $0x230] sm:$0xff]  }
 0x146   : > { %v766_v54 = vpop.f32.mrf.mxu1 }
 0x147   : > { %v12568_v62 = vadd.f32 %v766_v54, %v525_v37  ;;  %v10679_v5 = vpop.f32.mrf.mxu0  ;;  %v2043_v37 = vpack.c.bf16 %v9631_v16, %v9630_v15  ;;  %v2383_v54 = vpack.c.bf16 %v9641_v30, %v9640_v19  ;;  %v9646_v16 = vld [vmem:[%s12199_s7 + $0xa0] sm:$0xff]  ;;  %v9647_v30 = vld [vmem:[%s12199_s7 + $0xa8] sm:$0xff] }
 0x148   : > { %v10735_v44 = vpop.f32.mrf.mxu1 }
 0x149   : > { %v12570_v7 = vadd.f32 %v10735_v44, %v10679_v5  ;;  %v528_v53 = vpop.f32.mrf.mxu0  ;;  %v2741_v44 = vpack.c.bf16 %v9689_v35, %v9688_v46  ;;  %v9695_v46 = vld [vmem:[%s12199_s7 + $0xa9] sm:$0xff] }
 0x14a   : > { %v769_v55 = vpop.f32.mrf.mxu1 }
 0x14b   : > { %v12572_v21 = vadd.f32 %v769_v55, %v528_v53  ;;  %v10682_v27 = vpop.f32.mrf.mxu0  ;;  %10921 = vmatmul.mubr.bf16.gmra.mxu0 %v12346_v6  ;;  %v12584_v6 = vpack.c.bf16 %v9577_v1, %v9576_v23  ;;  %v9643_v23 = vld [vmem:[%s12199_s7 + $0x68] sm:$0xff] }
 0x14c   : > { %v10738_v4 = vpop.f32.mrf.mxu1  ;;  %10977 = vmatmul.mubr.bf16.gmra.mxu1 %v12485_v43  ;;  %10924 = vmatprep.mubr.bf16.mxu0 %v12362_v20 }
 0x14d   : > { %v12577_v48 = vadd.f32 %v10738_v4, %v10682_v27  ;;  %v541_v56 = vpop.f32.mrf.mxu0  ;;  %10980 = vmatprep.mubr.bf16.mxu1 %v12495_v49 }
 0x14e   : > { %v782_v2 = vpop.f32.mrf.mxu1 }
 0x14f   : > { %v12582_v3 = vadd.f32 %v782_v2, %v541_v56  ;;  %v10683_v40 = vpop.f32.mrf.mxu0  ;;  %v9642_v56 = vld [vmem:[%s12199_s7 + $0x60] sm:$0xff] }
 0x150   : > { %v10739_v11 = vpop.f32.mrf.mxu1 }
 0x151   : > { %v12586_v42 = vadd.f32 %v10739_v11, %v10683_v40  ;;  %v544_v43 = vpop.f32.mrf.mxu0  ;;  %v9690_v40 = vld [vmem:[%s12199_s7 + $0x61] sm:$0xff]  ;;  %v9691_v11 = vld [vmem:[%s12199_s7 + $0x69] sm:$0xff] }
 0x152   : > { %v785_v20 = vpop.f32.mrf.mxu1 }
 0x153   : > { %v12588_v58 = vadd.f32 %v785_v20, %v544_v43  ;;  %v10686_v31 = vpop.f32.mrf.mxu0  ;;  %10925 = vmatmul.mubr.bf16.gmra.mxu0 %v12366_v22  ;;  %v9644_v43 = vld [vmem:[%s12199_s7 + $0x80] sm:$0xff] }
 0x154   : > { %v10742_v49 = vpop.f32.mrf.mxu1  ;;  %10981 = vmatmul.mubr.bf16.gmra.mxu1 %v12497_v50  ;;  %10928 = vmatprep.mubr.bf16.mxu0 %v12584_v6 }
 0x155   : > { %v12593_v9 = vadd.f32 %v10742_v49, %v10686_v31  ;;  %v557_v33 = vpop.f32.mrf.mxu0  ;;  %10984 = vmatprep.mubr.bf16.mxu1 %v12507_v0  ;;  %v9645_v31 = vld [vmem:[%s12199_s7 + $0x88] sm:$0xff] }
 0x156   : > { %v798_v25 = vpop.f32.mrf.mxu1  ;;  %v9692_v49 = vld [vmem:[%s12199_s7 + $0x81] sm:$0xff] }
 0x157   : > { %v12598_v47 = vadd.f32 %v798_v25, %v557_v33  ;;  %v10687_v61 = vpop.f32.mrf.mxu0  ;;  %v9693_v33 = vld [vmem:[%s12199_s7 + $0x89] sm:$0xff]  ;;  %v2384_v25 = vpack.c.bf16 %v9643_v23, %v9642_v56 }
 0x158   : > { %v10743_v22 = vpop.f32.mrf.mxu1 }
 0x159   : > { %v12602_v50 = vadd.f32 %v10743_v22, %v10687_v61  ;;  %v560_v63 = vpop.f32.mrf.mxu0  ;;  %v2742_v22 = vpack.c.bf16 %v9691_v11, %v9690_v40 }
 0x15a   : > { %v801_v13 = vpop.f32.mrf.mxu1 }
 0x15b   : > { %v12604_v0 = vadd.f32 %v801_v13, %v560_v63  ;;  %v10690_v38 = vpop.f32.mrf.mxu0  ;;  %10929 = vmatmul.mubr.bf16.gmra.mxu0 %v12384_v41 }
 0x15c   : > { %v10746_v39 = vpop.f32.mrf.mxu1  ;;  %10985 = vmatmul.mubr.bf16.gmra.mxu1 %v12509_v14  ;;  %10932 = vmatprep.mubr.bf16.mxu0 %v12600_v34 }
 0x15d   : > { %v12612_v29 = vadd.f32 %v10746_v39, %v10690_v38  ;;  %v573_v60 = vpop.f32.mrf.mxu0  ;;  %10988 = vmatprep.mubr.bf16.mxu1 %v12519_v8  ;;  %v2385_v38 = vpack.c.bf16 %v9645_v31, %v9644_v43  ;;  %v2743_v39 = vpack.c.bf16 %v9693_v33, %v9692_v49  ;;  %v11764_v31 = vld [vmem:[#allocation6 + $0x220] sm:$0xff]  }
 0x15e   : > { %v814_v28 = vpop.f32.mrf.mxu1 }
 0x15f   : > { %v12620_v41 = vadd.f32 %v814_v28, %v573_v60  ;;  %v10691_v14 = vpop.f32.mrf.mxu0  ;;  %v9694_v28 = vld [vmem:[%s12199_s7 + $0xa1] sm:$0xff] }
 0x160   : > { %v10747_v51 = vpop.f32.mrf.mxu1  ;;  %v2744_v23 = vpack.c.bf16 %v9695_v46, %v9694_v28 }
 0x161   : > { %v12624_v5 = vadd.f32 %v10747_v51, %v10691_v14  ;;  %v576_v8 = vpop.f32.mrf.mxu0  ;;  %v9648_v51 = vld [vmem:[%s12199_s7 + $0xc0] sm:$0xff] }
 0x162   : > { %v817_v53 = vpop.f32.mrf.mxu1 }
 0x163   : > { %v12626_v55 = vadd.f32 %v817_v53, %v576_v8  ;;  %v10694_v27 = vpop.f32.mrf.mxu0  ;;  %10933 = vmatmul.mubr.bf16.gmra.mxu0 %v12622_v52  ;;  %v9697_v53 = vld [vmem:[%s12199_s7 + $0xc9] sm:$0xff] }
 0x164   : > { %v10750_v4 = vpop.f32.mrf.mxu1  ;;  %10989 = vmatmul.mubr.bf16.gmra.mxu1 %v2043_v37  ;;  %11008 = vmatprep.mubr.bf16.mxu0 %v2383_v54  ;;  %v9649_v37 = vld [vmem:[%s12199_s7 + $0xc8] sm:$0xff] }
 0x165   : > { %v12631_v1 = vadd.f32 %v10750_v4, %v10694_v27  ;;  %v589_v2 = vpop.f32.mrf.mxu0  ;;  %11064 = vmatprep.mubr.bf16.mxu1 %v2741_v44  ;;  %v11763_v54 = vld [vmem:[#allocation6 + $0x228] sm:$0xff]  }
 0x166   : > { %v830_v20 = vpop.f32.mrf.mxu1  ;;  %v9696_v44 = vld [vmem:[%s12199_s7 + $0xc1] sm:$0xff] }
 0x167   : > { %v12639_v45 = vadd.f32 %v830_v20, %v589_v2  ;;  %v10695_v10 = vpop.f32.mrf.mxu0  ;;  %v2387_v2 = vpack.c.bf16 %v9649_v37, %v9648_v51  ;;  %v2745_v43 = vpack.c.bf16 %v9697_v53, %v9696_v44 }
 0x168   : > { %v10751_v61 = vpop.f32.mrf.mxu1 }
 0x169   : > { %v12641_v63 = vadd.f32 %v10751_v61, %v10695_v10  ;;  %v592_v13 = vpop.f32.mrf.mxu0  ;;  %v9651_v61 = vld [vmem:[%s12199_s7 + $0xe8] sm:$0xff] }
 0x16a   : > { %v833_v57 = vpop.f32.mrf.mxu1 }
 0x16b   : > { %v12643_v15 = vadd.f32 %v833_v57, %v592_v13  ;;  %v10698_v60 = vpop.f32.mrf.mxu0  ;;  %11009 = vmatmul.mubr.bf16.vlgmr.msra.gmra.mxu0 %v2384_v25  ;;  %v9650_v25 = vld [vmem:[%s12199_s7 + $0xe0] sm:$0xff] }
 0x16c   : > { %v10754_v19 = vpop.f32.mrf.mxu1  ;;  %11105 = vmatpush3.bf16.msra.mxu0 %v12546_v17  ;;  %11065 = vmatmul.mubr.bf16.vlgmr.msra.gmra.mxu1 %v2742_v22  ;;  %v2386_v17 = vpack.c.bf16 %v9647_v30, %v9646_v16  ;;  %v9698_v22 = vld [vmem:[%s12199_s7 + $0xe1] sm:$0xff]  ;;  %v11765_v30 = vld [vmem:[#allocation6 + $0x218] sm:$0xff]  }
 0x16d   : > { %v12650_v35 = vadd.f32 %v10754_v19, %v10698_v60  ;;  %v605_v14 = vpop.f32.mrf.mxu0  ;;  %11012 = vmatprep.mubr.bf16.mxu0 %v2385_v38  ;;  %11068 = vmatprep.mubr.bf16.mxu1 %v2743_v39  ;;  %v9699_v39 = vld [vmem:[%s12199_s7 + $0xe9] sm:$0xff]  ;;  %v9652_v57 = vld [vmem:[%s12199_s7 + $0x100] sm:$0xff] }
 0x16e   : > { %v846_v8 = vpop.f32.mrf.mxu1  ;;  %11106 = vmatprep.subr.bf16.mxu0 %v11762_v12  ;;  %v9700_v16 = vld [vmem:[%s12199_s7 + $0x101] sm:$0xff]  ;;  %v9701_v19 = vld [vmem:[%s12199_s7 + $0x109] sm:$0xff]  ;;  %v2746_v37 = vpack.c.bf16 %v9699_v39, %v9698_v22 }
 0x16f   : > { %v12656_v27 = vadd.f32 %v846_v8, %v605_v14  ;;  %v10699_v4 = vpop.f32.mrf.mxu0  ;;  %v2388_v14 = vpack.c.bf16 %v9651_v61, %v9650_v25  ;;  %v2747_v53 = vpack.c.bf16 %v9701_v19, %v9700_v16  ;;  %v9656_v25 = vld [vmem:[%s12199_s7 + $0x140] sm:$0xff]  ;;  %v9657_v61 = vld [vmem:[%s12199_s7 + $0x148] sm:$0xff] }
 0x170   : > { %v10755_v56 = vpop.f32.mrf.mxu1  ;;  %11107 = vmatpush3.bf16.msra.mxu0 %v11762_v12  ;;  %v9653_v12 = vld [vmem:[%s12199_s7 + $0x108] sm:$0xff]  ;;  %v2391_v19 = vpack.c.bf16 %v9657_v61, %v9656_v25 }
 0x171   : > { %v12658_v40 = vadd.f32 %v10755_v56, %v10699_v4  ;;  %v608_v11 = vpop.f32.mrf.mxu0  ;;  %11108 = vmatprep.subr.bf16.mxu0 %v11763_v54  ;;  %v2389_v8 = vpack.c.bf16 %v9653_v12, %v9652_v57  ;;  %v9709_v25 = vld [vmem:[%s12199_s7 + $0x1c9] sm:$0xff] }
 0x172   : > { %v849_v20 = vpop.f32.mrf.mxu1 }
 0x173   : > { %v12660_v49 = vadd.f32 %v849_v20, %v608_v11  ;;  %v10702_v33 = vpop.f32.mrf.mxu0  ;;  %11013 = vmatmul.mubr.bf16.gmra.mxu0 %v2386_v17  ;;  %v11766_v17 = vld [vmem:[#allocation6 + $0x210] sm:$0xff]   ;;  %v9654_v11 = vld [vmem:[%s12199_s7 + $0x120] sm:$0xff] }
 0x174   : > { %v10758_v10 = vpop.f32.mrf.mxu1  ;;  %11069 = vmatmul.mubr.bf16.gmra.mxu1 %v2744_v23  ;;  %11016 = vmatprep.mubr.bf16.mxu0 %v2387_v2  ;;  %v9702_v20 = vld [vmem:[%s12199_s7 + $0x121] sm:$0xff] }
 0x175   : > { %v12665_v13 = vadd.f32 %v10758_v10, %v10702_v33  ;;  %v621_v38 = vpop.f32.mrf.mxu0  ;;  %11072 = vmatprep.mubr.bf16.mxu1 %v2745_v43  ;;  %11109 = vmatpush3.bf16.msra.mxu0 %v11763_v54  ;;  %v9655_v43 = vld [vmem:[%s12199_s7 + $0x128] sm:$0xff] }
 0x176   : > { %v862_v60 = vpop.f32.mrf.mxu1  ;;  %11110 = vmatprep.subr.bf16.mxu0 %v11764_v31  ;;  %v2390_v12 = vpack.c.bf16 %v9655_v43, %v9654_v11  ;;  %v9707_v11 = vld [vmem:[%s12199_s7 + $0x169] sm:$0xff]  ;;  %v9660_v43 = vld [vmem:[%s12199_s7 + $0x1c0] sm:$0xff] }
 0x177   : > { %v12672_v28 = vadd.f32 %v862_v60, %v621_v38  ;;  %v10703_v46 = vpop.f32.mrf.mxu0  ;;  %v11767_v38 = vld [vmem:[#allocation6 + $0x208] sm:$0xff]  }
 0x178   : > { %v10759_v51 = vpop.f32.mrf.mxu1 }
 0x179   : > { %v12674_v44 = vadd.f32 %v10759_v51, %v10703_v46  ;;  %v624_v54 = vpop.f32.mrf.mxu0  ;;  %11111 = vmatpush3.bf16.msra.mxu0 %v11764_v31  ;;  %v9703_v31 = vld [vmem:[%s12199_s7 + $0x129] sm:$0xff] }
 0x17a   : > { %v865_v4 = vpop.f32.mrf.mxu1  ;;  %11112 = vmatprep.subr.bf16.mxu0 %v11765_v30  ;;  %v2748_v16 = vpack.c.bf16 %v9703_v31, %v9702_v20  ;;  %v9661_v20 = vld [vmem:[%s12199_s7 + $0x1c8] sm:$0xff] }
 0x17b   : > { %v12676_v56 = vadd.f32 %v865_v4, %v624_v54  ;;  %v10706_v23 = vpop.f32.mrf.mxu0  ;;  %11017 = vmatmul.mubr.bf16.gmra.mxu0 %v2388_v14  ;;  %v9659_v4 = vld [vmem:[%s12199_s7 + $0x168] sm:$0xff] }
 0x17c   : > { %v10762_v2 = vpop.f32.mrf.mxu1  ;;  %11073 = vmatmul.mubr.bf16.gmra.mxu1 %v2746_v37  ;;  %11020 = vmatprep.mubr.bf16.mxu0 %v2389_v8  ;;  %v9708_v31 = vld [vmem:[%s12199_s7 + $0x1c1] sm:$0xff] }
 0x17d   : > { %v12681_v33 = vadd.f32 %v10762_v2, %v10706_v23  ;;  %v637_v10 = vpop.f32.mrf.mxu0  ;;  %11076 = vmatprep.mubr.bf16.mxu1 %v2747_v53  ;;  %11113 = vmatpush3.bf16.msra.mxu0 %v11765_v30  ;;  %v11768_v30 = vld [vmem:[#allocation6 + $0x200] sm:$0xff]  }
 0x17e   : > { %v878_v22 = vpop.f32.mrf.mxu1  ;;  %11114 = vmatprep.subr.bf16.mxu0 %v11766_v17  ;;  %v9658_v53 = vld [vmem:[%s12199_s7 + $0x160] sm:$0xff] }
 0x17f   : > { %v12686_v39 = vadd.f32 %v878_v22, %v637_v10  ;;  %v10707_v57 = vpop.f32.mrf.mxu0  ;;  %v9706_v23 = vld [vmem:[%s12199_s7 + $0x161] sm:$0xff] }
 0x180   : > { %v10763_v60 = vpop.f32.mrf.mxu1 }
 0x181   : > { %v12688_v46 = vadd.f32 %v10763_v60, %v10707_v57  ;;  %v640_v14 = vpop.f32.mrf.mxu0  ;;  %11115 = vmatpush3.bf16.msra.mxu0 %v11766_v17  ;;  %v2392_v57 = vpack.c.bf16 %v9659_v4, %v9658_v53  ;;  %v2750_v60 = vpack.c.bf16 %v9707_v11, %v9706_v23  ;;  %v9662_v4 = vld [vmem:[%s12199_s7 + $0x1e0] sm:$0xff]  ;;  %v9663_v23 = vld [vmem:[%s12199_s7 + $0x1e8] sm:$0xff] }
 0x182   : > { %v881_v51 = vpop.f32.mrf.mxu1  ;;  %11116 = vmatprep.subr.bf16.mxu0 %v11767_v38 }
 0x183   : > { %v12690_v37 = vadd.f32 %v881_v51, %v640_v14  ;;  %v10710_v8 = vpop.f32.mrf.mxu0  ;;  %11021 = vmatmul.mubr.bf16.gmra.mxu0 %v2390_v12  ;;  %v2751_v14 = vpack.c.bf16 %v9709_v25, %v9708_v31 }
 0x184   : > { %v10766_v54 = vpop.f32.mrf.mxu1  ;;  %11077 = vmatmul.mubr.bf16.gmra.mxu1 %v2748_v16  ;;  %11024 = vmatprep.mubr.bf16.mxu0 %v2391_v19  ;;  %v2393_v16 = vpack.c.bf16 %v9661_v20, %v9660_v43  ;;  %v9711_v43 = vld [vmem:[%s12199_s7 + $0x1e9] sm:$0xff] }
 0x185   : > { %v12695_v2 = vadd.f32 %v10766_v54, %v10710_v8  ;;  %v653_v17 = vpop.f32.mrf.mxu0  ;;  %11080 = vmatprep.mubr.bf16.mxu1 %v12548_v18  ;;  %11117 = vmatpush3.bf16.msra.mxu0 %v11767_v38  ;;  %v9665_v20 = vld [vmem:[%s12199_s7 + $0x208] sm:$0xff] }
 0x186   : > { %v894_v10 = vpop.f32.mrf.mxu1  ;;  %11118 = vmatprep.subr.bf16.mxu0 %v11768_v30 }
 0x187   : > { %v12703_v61 = vadd.f32 %v894_v10, %v653_v17  ;;  %v10711_v22 = vpop.f32.mrf.mxu0  ;;  %v9710_v17 = vld [vmem:[%s12199_s7 + $0x1e1] sm:$0xff] }
 0x188   : > { %v10767_v12 = vpop.f32.mrf.mxu1 }
 0x189   : > { %v12705_v19 = vadd.f32 %v10767_v12, %v10711_v22  ;;  %v656_v18 = vpop.f32.mrf.mxu0  ;;  %11119 = vmatpush3.bf16.msra.mxu0 %v11768_v30  ;;  %v9664_v30 = vld [vmem:[%s12199_s7 + $0x200] sm:$0xff]  ;;  %v2394_v12 = vpack.c.bf16 %v9663_v23, %v9662_v4 }
 0x18a   : > { %v897_v38 = vpop.f32.mrf.mxu1  ;;  %v9712_v22 = vld [vmem:[%s12199_s7 + $0x201] sm:$0xff] }
 0x18b   : > { %v12707_v51 = vadd.f32 %v897_v38, %v656_v18  ;;  %v10786_v8 = vpop.f32.mrf.mxu0  ;;  %11025 = vmatmul.mubr.bf16.gmra.mxu0 %v2392_v57  ;;  %v9713_v57 = vld [vmem:[%s12199_s7 + $0x209] sm:$0xff]  ;;  %v2395_v38 = vpack.c.bf16 %v9665_v20, %v9664_v30  ;;  %v9714_v30 = vld [vmem:[%s12199_s7 + $0x221] sm:$0xff] }
 0x18c   : > { %v1229_v54 = vadd.f32 %v10786_v8, %v12553_v32  ;;  %v10842_v53 = vpop.f32.mrf.mxu1  ;;  %11081 = vmatmul.mubr.bf16.gmra.mxu1 %v2750_v60  ;;  %11028 = vmatprep.mubr.bf16.mxu0 %v2393_v16  ;;  %v9715_v20 = vld [vmem:[%s12199_s7 + $0x229] sm:$0xff] }
 0x18d   : > { %16271 = vst [vmem:[#allocation15_spill] sm:$0xff] %v12707_v51  ;;  %v1068_v11 = vpop.f32.mrf.mxu0  ;;  %11084 = vmatprep.mubr.bf16.mxu1 %v2751_v14  ;;  %v2752_v14 = vpack.c.bf16 %v9711_v43, %v9710_v17  ;;  %v2753_v51 = vpack.c.bf16 %v9713_v57, %v9712_v22  ;;  %v9667_v43 = vld [vmem:[%s12199_s7 + $0x228] sm:$0xff] }
 0x18e   : > { %v1227_v10 = vadd.f32 %v1068_v11, %v12556_v24  ;;  %v12717_v31 = vadd.f32 %v10842_v53, %v1229_v54  ;;  %v1427_v25 = vpop.f32.mrf.mxu1  ;;  %v9666_v11 = vld [vmem:[%s12199_s7 + $0x220] sm:$0xff] }
 0x18f   : > { %v10787_v32 = vpop.f32.mrf.mxu0 }
 0x190   : > { %v1230_v60 = vadd.f32 %v10787_v32, %v12558_v26  ;;  %v12722_v16 = vadd.f32 %v1427_v25, %v1227_v10  ;;  %v10843_v18 = vpop.f32.mrf.mxu1  ;;  %v9668_v10 = vld [vmem:[%s12199_s7 + $0x240] sm:$0xff]  ;;  %v9669_v25 = vld [vmem:[%s12199_s7 + $0x248] sm:$0xff] }
 0x191   : > { %v1071_v8 = vpop.f32.mrf.mxu0  ;;  %v9716_v32 = vld [vmem:[%s12199_s7 + $0x241] sm:$0xff] }
 0x192   : > { %v1228_v24 = vadd.f32 %v1071_v8, %v12560_v36  ;;  %v12725_v54 = vadd.f32 %v10843_v18, %v1230_v60  ;;  %v1430_v53 = vpop.f32.mrf.mxu1  ;;  %v2396_v18 = vpack.c.bf16 %v9667_v43, %v9666_v11 }
 0x193   : > { %v10790_v4 = vpop.f32.mrf.mxu0  ;;  %11029 = vmatmul.mubr.bf16.gmra.mxu0 %v2394_v12  ;;  %v9717_v12 = vld [vmem:[%s12199_s7 + $0x249] sm:$0xff] }
 0x194   : > { %v1233_v26 = vadd.f32 %v10790_v4, %v12565_v59  ;;  %v12728_v23 = vadd.f32 %v1430_v53, %v1228_v24  ;;  %v10846_v17 = vpop.f32.mrf.mxu1  ;;  %11085 = vmatmul.mubr.bf16.gmra.mxu1 %v2752_v14  ;;  %11032 = vmatprep.mubr.bf16.mxu0 %v2395_v38  ;;  %v2397_v24 = vpack.c.bf16 %v9669_v25, %v9668_v10  ;;  %v9672_v25 = vld [vmem:[%s12199_s7 + $0x280] sm:$0xff] }
 0x195   : > { %v1084_v36 = vpop.f32.mrf.mxu0  ;;  %11088 = vmatprep.mubr.bf16.mxu1 %v2753_v51  ;;  %v2754_v51 = vpack.c.bf16 %v9715_v20, %v9714_v30  ;;  %v2755_v4 = vpack.c.bf16 %v9717_v12, %v9716_v32  ;;  %v9670_v30 = vld [vmem:[%s12199_s7 + $0x260] sm:$0xff]  ;;  %v9671_v20 = vld [vmem:[%s12199_s7 + $0x268] sm:$0xff] }
 0x196   : > { %v1231_v22 = vadd.f32 %v1084_v36, %v12568_v62  ;;  %v12737_v57 = vadd.f32 %v10846_v17, %v1233_v26  ;;  %v1443_v59 = vpop.f32.mrf.mxu1  ;;  %v9720_v12 = vld [vmem:[%s12199_s7 + $0x281] sm:$0xff] }
 0x197   : > { %v10791_v60 = vpop.f32.mrf.mxu0 }
 0x198   : > { %v1234_v14 = vadd.f32 %v10791_v60, %v12570_v7  ;;  %v12742_v38 = vadd.f32 %v1443_v59, %v1231_v22  ;;  %v10847_v8 = vpop.f32.mrf.mxu1  ;;  %v9721_v60 = vld [vmem:[%s12199_s7 + $0x289] sm:$0xff] }
 0x199   : > { %v1087_v53 = vpop.f32.mrf.mxu0 }
 0x19a   : > { %v1232_v62 = vadd.f32 %v1087_v53, %v12572_v21  ;;  %v12745_v26 = vadd.f32 %v10847_v8, %v1234_v14  ;;  %v1446_v17 = vpop.f32.mrf.mxu1  ;;  %v9673_v21 = vld [vmem:[%s12199_s7 + $0x288] sm:$0xff] }
 0x19b   : > { %v10794_v36 = vpop.f32.mrf.mxu0  ;;  %11033 = vmatmul.mubr.bf16.gmra.mxu0 %v2396_v18 }
 0x19c   : > { %v1237_v7 = vadd.f32 %v10794_v36, %v12577_v48  ;;  %v12748_v11 = vadd.f32 %v1446_v17, %v1232_v62  ;;  %v10850_v43 = vpop.f32.mrf.mxu1  ;;  %11089 = vmatmul.mubr.bf16.gmra.mxu1 %v2754_v51  ;;  %11036 = vmatprep.mubr.bf16.mxu0 %v2397_v24  ;;  %v2398_v48 = vpack.c.bf16 %v9671_v20, %v9670_v30  ;;  %v9674_v30 = vld [vmem:[%s12199_s7 + $0x2a0] sm:$0xff]  ;;  %v9675_v20 = vld [vmem:[%s12199_s7 + $0x2a8] sm:$0xff] }
 0x19d   : > { %v1100_v10 = vpop.f32.mrf.mxu0  ;;  %11092 = vmatprep.mubr.bf16.mxu1 %v2755_v4  ;;  %v2399_v24 = vpack.c.bf16 %v9673_v21, %v9672_v25  ;;  %v2757_v4 = vpack.c.bf16 %v9721_v60, %v9720_v12  ;;  %v9676_v25 = vld [vmem:[%s12199_s7 + $0x2c0] sm:$0xff]  ;;  %v9677_v21 = vld [vmem:[%s12199_s7 + $0x2c8] sm:$0xff]  ;;  %v2400_v60 = vpack.c.bf16 %v9675_v20, %v9674_v30 }
 0x19e   : > { %v1235_v22 = vadd.f32 %v1100_v10, %v12582_v3  ;;  %v12755_v59 = vadd.f32 %v10850_v43, %v1237_v7  ;;  %v1459_v32 = vpop.f32.mrf.mxu1  ;;  %v9736_v30 = vld [vmem:[%s12199_s7 + $0x42] sm:$0xff]  ;;  %v9737_v20 = vld [vmem:[%s12199_s7 + $0x4a] sm:$0xff] }
 0x19f   : > { %v10795_v18 = vpop.f32.mrf.mxu0 }
 0x1a0   : > { %v1238_v14 = vadd.f32 %v10795_v18, %v12586_v42  ;;  %v12760_v8 = vadd.f32 %v1459_v32, %v1235_v22  ;;  %v10851_v51 = vpop.f32.mrf.mxu1 }
 0x1a1   : > { %v1103_v53 = vpop.f32.mrf.mxu0 }
 0x1a2   : > { %v1236_v3 = vadd.f32 %v1103_v53, %v12588_v58  ;;  %v12763_v62 = vadd.f32 %v10851_v51, %v1238_v14  ;;  %v1462_v17 = vpop.f32.mrf.mxu1 }
 0x1a3   : > { %v10798_v36 = vpop.f32.mrf.mxu0  ;;  %11037 = vmatmul.mubr.bf16.gmra.mxu0 %v2398_v48  ;;  %v2401_v48 = vpack.c.bf16 %v9677_v21, %v9676_v25 }
 0x1a4   : > { %v1241_v7 = vadd.f32 %v10798_v36, %v12593_v9  ;;  %v12766_v42 = vadd.f32 %v1462_v17, %v1236_v3  ;;  %v10854_v43 = vpop.f32.mrf.mxu1  ;;  %11093 = vmatmul.mubr.bf16.gmra.mxu1 %v12584_v6  ;;  %11040 = vmatprep.mubr.bf16.mxu0 %v2399_v24  ;;  %v9678_v17 = vld [vmem:[%s12199_s7 + $0x2e0] sm:$0xff]  ;;  %v9679_v36 = vld [vmem:[%s12199_s7 + $0x2e8] sm:$0xff] }
 0x1a5   : > { %v1116_v10 = vpop.f32.mrf.mxu0  ;;  %11096 = vmatprep.mubr.bf16.mxu1 %v2757_v4 }
 0x1a6   : > { %v1239_v58 = vadd.f32 %v1116_v10, %v12598_v47  ;;  %v12774_v22 = vadd.f32 %v10854_v43, %v1241_v7  ;;  %v1475_v32 = vpop.f32.mrf.mxu1  ;;  %v9726_v7 = vld [vmem:[%s12199_s7 + $0x2e1] sm:$0xff] }
 0x1a7   : > { %v10799_v12 = vpop.f32.mrf.mxu0 }
 0x1a8   : > { %v1242_v9 = vadd.f32 %v10799_v12, %v12602_v50  ;;  %v12777_v18 = vadd.f32 %v1475_v32, %v1239_v58  ;;  %v10855_v6 = vpop.f32.mrf.mxu1  ;;  %v2402_v58 = vpack.c.bf16 %v9679_v36, %v9678_v17  ;;  %v9740_v17 = vld [vmem:[%s12199_s7 + $0x82] sm:$0xff]  ;;  %v9741_v36 = vld [vmem:[%s12199_s7 + $0x8a] sm:$0xff] }
 0x1a9   : > { %v1119_v14 = vpop.f32.mrf.mxu0 }
 0x1aa   : > { %v1240_v51 = vadd.f32 %v1119_v14, %v12604_v0  ;;  %v12780_v47 = vadd.f32 %v10855_v6, %v1242_v9  ;;  %v1478_v24 = vpop.f32.mrf.mxu1  ;;  %v9727_v0 = vld [vmem:[%s12199_s7 + $0x2e9] sm:$0xff] }
 0x1ab   : > { %v10802_v53 = vpop.f32.mrf.mxu0  ;;  %11041 = vmatmul.mubr.bf16.gmra.mxu0 %v2400_v60  ;;  %v2760_v60 = vpack.c.bf16 %v9727_v0, %v9726_v7 }
 0x1ac   : > { %v1245_v4 = vadd.f32 %v10802_v53, %v12612_v29  ;;  %v12783_v50 = vadd.f32 %v1478_v24, %v1240_v51  ;;  %v10858_v3 = vpop.f32.mrf.mxu1  ;;  %11097 = vmatmul.mubr.bf16.gmra.mxu1 %v12600_v34  ;;  %11044 = vmatprep.mubr.bf16.mxu0 %v2401_v48  ;;  %v9738_v53 = vld [vmem:[%s12199_s7 + $0x62] sm:$0xff] }
 0x1ad   : > { %v1132_v43 = vpop.f32.mrf.mxu0  ;;  %11100 = vmatprep.mubr.bf16.mxu1 %v12622_v52  ;;  %v3099_v52 = vpack.c.bf16 %v9737_v20, %v9736_v30 }
 0x1ae   : > { %v1243_v10 = vadd.f32 %v1132_v43, %v12620_v41  ;;  %v12794_v25 = vadd.f32 %v10858_v3, %v1245_v4  ;;  %v1491_v29 = vpop.f32.mrf.mxu1  ;;  %v9739_v4 = vld [vmem:[%s12199_s7 + $0x6a] sm:$0xff] }
 0x1af   : > { %v10803_v21 = vpop.f32.mrf.mxu0  ;;  %v3100_v30 = vpack.c.bf16 %v9739_v4, %v9738_v53 }
 0x1b0   : > { %v1246_v32 = vadd.f32 %v10803_v21, %v12624_v5  ;;  %v12797_v34 = vadd.f32 %v1491_v29, %v1243_v10  ;;  %v10859_v12 = vpop.f32.mrf.mxu1  ;;  %v3101_v29 = vpack.c.bf16 %v9741_v36, %v9740_v17 }
 0x1b1   : > { %v1135_v9 = vpop.f32.mrf.mxu0 }
 0x1b2   : > { %v1244_v6 = vadd.f32 %v1135_v9, %v12626_v55  ;;  %v12800_v41 = vadd.f32 %v10859_v12, %v1246_v32  ;;  %v1494_v48 = vpop.f32.mrf.mxu1 }
 0x1b3   : > { %v10806_v14 = vpop.f32.mrf.mxu0  ;;  %11045 = vmatmul.mubr.bf16.gmra.mxu0 %v2402_v58 }
 0x1b4   : > { %v1249_v51 = vadd.f32 %v10806_v14, %v12631_v1  ;;  %v12803_v5 = vadd.f32 %v1494_v48, %v1244_v6  ;;  %v10862_v24 = vpop.f32.mrf.mxu1  ;;  %11101 = vmatmul.mubr.bf16.gmra.mxu1 %v2760_v60  ;;  %11120 = vmatprep.mubr.bf16.mxu0 %v3099_v52  ;;  %v9743_v6 = vld [vmem:[%s12199_s7 + $0xaa] sm:$0xff]  ;;  %v9744_v14 = vld [vmem:[%s12199_s7 + $0xc2] sm:$0xff] }
 0x1b5   : > { %v1148_v3 = vpop.f32.mrf.mxu0 }
 0x1b6   : > { %v1247_v7 = vadd.f32 %v1148_v3, %v12639_v45  ;;  %v12810_v55 = vadd.f32 %v10862_v24, %v1249_v51  ;;  %v1507_v43 = vpop.f32.mrf.mxu1  ;;  %v9745_v51 = vld [vmem:[%s12199_s7 + $0xca] sm:$0xff] }
 0x1b7   : > { %v10807_v0 = vpop.f32.mrf.mxu0 }
 0x1b8   : > { %v1250_v1 = vadd.f32 %v10807_v0, %v12641_v63  ;;  %v12813_v20 = vadd.f32 %v1507_v43, %v1247_v7  ;;  %v10863_v10 = vpop.f32.mrf.mxu1  ;;  %v9742_v63 = vld [vmem:[%s12199_s7 + $0xa2] sm:$0xff]  ;;  %v3103_v7 = vpack.c.bf16 %v9745_v51, %v9744_v14 }
 0x1b9   : > { %v1151_v21 = vpop.f32.mrf.mxu0  ;;  %v3102_v3 = vpack.c.bf16 %v9743_v6, %v9742_v63 }
 0x1ba   : > { %v1248_v58 = vadd.f32 %v1151_v21, %v12643_v15  ;;  %v12816_v32 = vadd.f32 %v10863_v10, %v1250_v1  ;;  %v1510_v45 = vpop.f32.mrf.mxu1 }
 0x1bb   : > { %v10810_v12 = vpop.f32.mrf.mxu0  ;;  %11121 = vmatmul.mubr.bf16.vlgmr.msra.gmra.mxu0 %v3100_v30 }
 0x1bc   : > { %v1253_v60 = vadd.f32 %v10810_v12, %v12650_v35  ;;  %v12819_v52 = vadd.f32 %v1510_v45, %v1248_v58  ;;  %v10866_v9 = vpop.f32.mrf.mxu1  ;;  %11124 = vmatprep.mubr.bf16.mxu0 %v3101_v29  ;;  %v9747_v58 = vld [vmem:[%s12199_s7 + $0xea] sm:$0xff]  ;;  %v9748_v12 = vld [vmem:[%s12199_s7 + $0x102] sm:$0xff] }
 0x1bd   : > { %v1164_v48 = vpop.f32.mrf.mxu0 }
 0x1be   : > { %v1251_v24 = vadd.f32 %v1164_v48, %v12656_v27  ;;  %v12826_v53 = vadd.f32 %v10866_v9, %v1253_v60  ;;  %v1523_v15 = vpop.f32.mrf.mxu1  ;;  %v9749_v60 = vld [vmem:[%s12199_s7 + $0x10a] sm:$0xff] }
 0x1bf   : > { %v10811_v4 = vpop.f32.mrf.mxu0 }
 0x1c0   : > { %v1254_v35 = vadd.f32 %v10811_v4, %v12658_v40  ;;  %v12829_v17 = vadd.f32 %v1523_v15, %v1251_v24  ;;  %v10867_v36 = vpop.f32.mrf.mxu1  ;;  %v9746_v40 = vld [vmem:[%s12199_s7 + $0xe2] sm:$0xff]  ;;  %v3105_v24 = vpack.c.bf16 %v9749_v60, %v9748_v12 }
 0x1c1   : > { %v1167_v43 = vpop.f32.mrf.mxu0  ;;  %v3104_v48 = vpack.c.bf16 %v9747_v58, %v9746_v40 }
 0x1c2   : > { %v1252_v0 = vadd.f32 %v1167_v43, %v12660_v49  ;;  %v12832_v30 = vadd.f32 %v10867_v36, %v1254_v35  ;;  %v1526_v27 = vpop.f32.mrf.mxu1 }
 0x1c3   : > { %v10814_v1 = vpop.f32.mrf.mxu0  ;;  %11125 = vmatmul.mubr.bf16.gmra.mxu0 %v3102_v3 }
 0x1c4   : > { %v1257_v10 = vadd.f32 %v10814_v1, %v12665_v13  ;;  %v12835_v29 = vadd.f32 %v1526_v27, %v1252_v0  ;;  %v10870_v21 = vpop.f32.mrf.mxu1  ;;  %11128 = vmatprep.mubr.bf16.mxu0 %v3103_v7  ;;  %v9751_v0 = vld [vmem:[%s12199_s7 + $0x12a] sm:$0xff]  ;;  %v9752_v1 = vld [vmem:[%s12199_s7 + $0x142] sm:$0xff] }
 0x1c5   : > { %v1180_v45 = vpop.f32.mrf.mxu0 }
 0x1c6   : > { %v1255_v9 = vadd.f32 %v1180_v45, %v12672_v28  ;;  %v12842_v63 = vadd.f32 %v10870_v21, %v1257_v10  ;;  %v1539_v49 = vpop.f32.mrf.mxu1  ;;  %v9753_v10 = vld [vmem:[%s12199_s7 + $0x14a] sm:$0xff] }
 0x1c7   : > { %v10815_v6 = vpop.f32.mrf.mxu0 }
 0x1c8   : > { %v1258_v13 = vadd.f32 %v10815_v6, %v12674_v44  ;;  %v12845_v14 = vadd.f32 %v1539_v49, %v1255_v9  ;;  %v10871_v51 = vpop.f32.mrf.mxu1  ;;  %v9750_v44 = vld [vmem:[%s12199_s7 + $0x122] sm:$0xff]  ;;  %v3107_v9 = vpack.c.bf16 %v9753_v10, %v9752_v1 }
 0x1c9   : > { %v1183_v15 = vpop.f32.mrf.mxu0  ;;  %v3106_v45 = vpack.c.bf16 %v9751_v0, %v9750_v44 }
 0x1ca   : > { %v1256_v4 = vadd.f32 %v1183_v15, %v12676_v56  ;;  %v12848_v3 = vadd.f32 %v10871_v51, %v1258_v13  ;;  %v1542_v28 = vpop.f32.mrf.mxu1 }
 0x1cb   : > { %v10818_v35 = vpop.f32.mrf.mxu0  ;;  %11129 = vmatmul.mubr.bf16.gmra.mxu0 %v3104_v48 }
 0x1cc   : > { %v1261_v36 = vadd.f32 %v10818_v35, %v12681_v33  ;;  %v12851_v7 = vadd.f32 %v1542_v28, %v1256_v4  ;;  %v10874_v43 = vpop.f32.mrf.mxu1  ;;  %11132 = vmatprep.mubr.bf16.mxu0 %v3105_v24  ;;  %v9755_v4 = vld [vmem:[%s12199_s7 + $0x16a] sm:$0xff]  ;;  %v9756_v35 = vld [vmem:[%s12199_s7 + $0x1c2] sm:$0xff] }
 0x1cd   : > { %v1196_v27 = vpop.f32.mrf.mxu0 }
 0x1ce   : > { %v1259_v21 = vadd.f32 %v1196_v27, %v12686_v39  ;;  %v12858_v40 = vadd.f32 %v10874_v43, %v1261_v36  ;;  %v1555_v56 = vpop.f32.mrf.mxu1  ;;  %v9757_v36 = vld [vmem:[%s12199_s7 + $0x1ca] sm:$0xff] }
 0x1cf   : > { %v10819_v58 = vpop.f32.mrf.mxu0 }
 0x1d0   : > { %v1262_v33 = vadd.f32 %v10819_v58, %v12688_v46  ;;  %v12861_v12 = vadd.f32 %v1555_v56, %v1259_v21  ;;  %v10875_v60 = vpop.f32.mrf.mxu1  ;;  %v9754_v46 = vld [vmem:[%s12199_s7 + $0x162] sm:$0xff]  ;;  %v3109_v21 = vpack.c.bf16 %v9757_v36, %v9756_v35 }
 0x1d1   : > { %v1199_v49 = vpop.f32.mrf.mxu0  ;;  %v3108_v27 = vpack.c.bf16 %v9755_v4, %v9754_v46  ;;  %v16272_v58 = vld [vmem:[#allocation15_spill] sm:$0xff] }
 0x1d2   : > { %v1260_v6 = vadd.f32 %v1199_v49, %v12690_v37  ;;  %v12864_v48 = vadd.f32 %v10875_v60, %v1262_v33  ;;  %v1558_v39 = vpop.f32.mrf.mxu1 }
 0x1d3   : > { %v10822_v13 = vpop.f32.mrf.mxu0  ;;  %11133 = vmatmul.mubr.bf16.gmra.mxu0 %v3106_v45 }
 0x1d4   : > { %v1265_v51 = vadd.f32 %v10822_v13, %v12695_v2  ;;  %v12867_v24 = vadd.f32 %v1558_v39, %v1260_v6  ;;  %v10878_v15 = vpop.f32.mrf.mxu1  ;;  %11136 = vmatprep.mubr.bf16.mxu0 %v3107_v9  ;;  %v9759_v39 = vld [vmem:[%s12199_s7 + $0x1ea] sm:$0xff] }
 0x1d5   : > { %v1212_v28 = vpop.f32.mrf.mxu0 }
 0x1d6   : > { %v1263_v43 = vadd.f32 %v1212_v28, %v12703_v61  ;;  %v12874_v44 = vadd.f32 %v10878_v15, %v1265_v51  ;;  %v1571_v37 = vpop.f32.mrf.mxu1  ;;  %v9760_v51 = vld [vmem:[%s12199_s7 + $0x202] sm:$0xff]  ;;  %v9761_v15 = vld [vmem:[%s12199_s7 + $0x20a] sm:$0xff] }
 0x1d7   : > { %v10823_v0 = vpop.f32.mrf.mxu0 }
 0x1d8   : > { %v1266_v2 = vadd.f32 %v10823_v0, %v12705_v19  ;;  %v12877_v1 = vadd.f32 %v1571_v37, %v1263_v43  ;;  %v10879_v10 = vpop.f32.mrf.mxu1  ;;  %v9758_v19 = vld [vmem:[%s12199_s7 + $0x1e2] sm:$0xff]  ;;  %v3111_v0 = vpack.c.bf16 %v9761_v15, %v9760_v51 }
 0x1d9   : > { %v1215_v56 = vpop.f32.mrf.mxu0  ;;  %v3110_v36 = vpack.c.bf16 %v9759_v39, %v9758_v19 }
 0x1da   : > { %v1264_v45 = vadd.f32 %v1215_v56, %v16272_v58  ;;  %v12880_v33 = vadd.f32 %v10879_v10, %v1266_v2  ;;  %v1574_v61 = vpop.f32.mrf.mxu1 }
 0x1db   : > { %v10898_v60 = vpop.f32.mrf.mxu0  ;;  %11137 = vmatmul.mubr.bf16.gmra.mxu0 %v3108_v27 }
 0x1dc   : > { %v12882_v9 = vadd.f32 %v1574_v61, %v1264_v45  ;;  %v1946_v49 = vadd.f32 %v10898_v60, %v12717_v31  ;;  %v10954_v6 = vpop.f32.mrf.mxu1  ;;  %11140 = vmatprep.mubr.bf16.mxu0 %v3109_v21  ;;  %v9763_v61 = vld [vmem:[%s12199_s7 + $0x22a] sm:$0xff] }
 0x1dd   : > { %v1785_v13 = vpop.f32.mrf.mxu0 }
 0x1de   : > { %v1944_v46 = vadd.f32 %v1785_v13, %v12722_v16  ;;  %v12890_v4 = vadd.f32 %v10954_v6, %v1946_v49  ;;  %v2143_v28 = vpop.f32.mrf.mxu1  ;;  %v9764_v49 = vld [vmem:[%s12199_s7 + $0x242] sm:$0xff]  ;;  %v9765_v6 = vld [vmem:[%s12199_s7 + $0x24a] sm:$0xff] }
 0x1df   : > { %v10899_v35 = vpop.f32.mrf.mxu0 }
 0x1e0   : > { %v1947_v43 = vadd.f32 %v10899_v35, %v12725_v54  ;;  %v12893_v37 = vadd.f32 %v2143_v28, %v1944_v46  ;;  %v10955_v31 = vpop.f32.mrf.mxu1  ;;  %v9762_v54 = vld [vmem:[%s12199_s7 + $0x222] sm:$0xff]  ;;  %v3113_v28 = vpack.c.bf16 %v9765_v6, %v9764_v49 }
 0x1e1   : > { %v1788_v27 = vpop.f32.mrf.mxu0  ;;  %v3112_v51 = vpack.c.bf16 %v9763_v61, %v9762_v54 }
 0x1e2   : > { %v1945_v2 = vadd.f32 %v1788_v27, %v12728_v23  ;;  %v12896_v10 = vadd.f32 %v10955_v31, %v1947_v43  ;;  %v2146_v16 = vpop.f32.mrf.mxu1 }
 0x1e3   : > { %v10902_v21 = vpop.f32.mrf.mxu0  ;;  %11141 = vmatmul.mubr.bf16.gmra.mxu0 %v3110_v36 }
 0x1e4   : > { %v1950_v56 = vadd.f32 %v10902_v21, %v12737_v57  ;;  %v12899_v58 = vadd.f32 %v2146_v16, %v1945_v2  ;;  %v10958_v45 = vpop.f32.mrf.mxu1  ;;  %11144 = vmatprep.mubr.bf16.mxu0 %v3111_v0  ;;  %v9767_v16 = vld [vmem:[%s12199_s7 + $0x26a] sm:$0xff] }
 0x1e5   : > { %v1801_v60 = vpop.f32.mrf.mxu0 }
 0x1e6   : > { %v1948_v19 = vadd.f32 %v1801_v60, %v12742_v38  ;;  %v12906_v39 = vadd.f32 %v10958_v45, %v1950_v56  ;;  %v2159_v23 = vpop.f32.mrf.mxu1  ;;  %v9768_v56 = vld [vmem:[%s12199_s7 + $0x282] sm:$0xff]  ;;  %v9769_v45 = vld [vmem:[%s12199_s7 + $0x28a] sm:$0xff] }
 0x1e7   : > { %v10903_v13 = vpop.f32.mrf.mxu0 }
 0x1e8   : > { %v1951_v57 = vadd.f32 %v10903_v13, %v12745_v26  ;;  %v12909_v15 = vadd.f32 %v2159_v23, %v1948_v19  ;;  %v10959_v46 = vpop.f32.mrf.mxu1  ;;  %v9766_v26 = vld [vmem:[%s12199_s7 + $0x262] sm:$0xff]  ;;  %v3115_v23 = vpack.c.bf16 %v9769_v45, %v9768_v56 }
 0x1e9   : > { %v1804_v35 = vpop.f32.mrf.mxu0  ;;  %v3114_v49 = vpack.c.bf16 %v9767_v16, %v9766_v26 }
 0x1ea   : > { %v1949_v36 = vadd.f32 %v1804_v35, %v12748_v11  ;;  %v12912_v43 = vadd.f32 %v10959_v46, %v1951_v57  ;;  %v2162_v38 = vpop.f32.mrf.mxu1 }
 0x1eb   : > { %v10906_v31 = vpop.f32.mrf.mxu0  ;;  %11145 = vmatmul.mubr.bf16.gmra.mxu0 %v3112_v51 }
 0x1ec   : > { %v1954_v0 = vadd.f32 %v10906_v31, %v12755_v59  ;;  %v12915_v27 = vadd.f32 %v2162_v38, %v1949_v36  ;;  %v10962_v2 = vpop.f32.mrf.mxu1  ;;  %11148 = vmatprep.mubr.bf16.mxu0 %v3113_v28  ;;  %v9771_v38 = vld [vmem:[%s12199_s7 + $0x2aa] sm:$0xff] }
 0x1ed   : > { %v1817_v21 = vpop.f32.mrf.mxu0 }
 0x1ee   : > { %v1952_v54 = vadd.f32 %v1817_v21, %v12760_v8  ;;  %v12922_v61 = vadd.f32 %v10962_v2, %v1954_v0  ;;  %v2175_v11 = vpop.f32.mrf.mxu1  ;;  %v9772_v0 = vld [vmem:[%s12199_s7 + $0x2c2] sm:$0xff]  ;;  %v9773_v2 = vld [vmem:[%s12199_s7 + $0x2ca] sm:$0xff] }
 0x1ef   : > { %v10907_v60 = vpop.f32.mrf.mxu0 }
 0x1f0   : > { %v1955_v59 = vadd.f32 %v10907_v60, %v12763_v62  ;;  %v12925_v6 = vadd.f32 %v2175_v11, %v1952_v54  ;;  %v10963_v19 = vpop.f32.mrf.mxu1  ;;  %v9770_v62 = vld [vmem:[%s12199_s7 + $0x2a2] sm:$0xff]  ;;  %v3117_v11 = vpack.c.bf16 %v9773_v2, %v9772_v0 }
 0x1f1   : > { %v1820_v13 = vpop.f32.mrf.mxu0  ;;  %v3116_v56 = vpack.c.bf16 %v9771_v38, %v9770_v62 }
 0x1f2   : > { %v1953_v51 = vadd.f32 %v1820_v13, %v12766_v42  ;;  %v12928_v57 = vadd.f32 %v10963_v19, %v1955_v59  ;;  %v2178_v8 = vpop.f32.mrf.mxu1 }
 0x1f3   : > { %v10910_v46 = vpop.f32.mrf.mxu0  ;;  %11149 = vmatmul.mubr.bf16.gmra.mxu0 %v3114_v49 }
 0x1f4   : > { %v1958_v28 = vadd.f32 %v10910_v46, %v12774_v22  ;;  %v12931_v35 = vadd.f32 %v2178_v8, %v1953_v51  ;;  %v10966_v36 = vpop.f32.mrf.mxu1  ;;  %11152 = vmatprep.mubr.bf16.mxu0 %v3115_v23  ;;  %v9774_v8 = vld [vmem:[%s12199_s7 + $0x2e2] sm:$0xff] }
 0x1f5   : > { %v1833_v31 = vpop.f32.mrf.mxu0 }
 0x1f6   : > { %v1956_v26 = vadd.f32 %v1833_v31, %v12777_v18  ;;  %v12938_v16 = vadd.f32 %v10966_v36, %v1958_v28  ;;  %v2191_v42 = vpop.f32.mrf.mxu1 }
 0x1f7   : > { %v10911_v21 = vpop.f32.mrf.mxu0 }
 0x1f8   : > { %v1959_v22 = vadd.f32 %v10911_v21, %v12780_v47  ;;  %v12941_v45 = vadd.f32 %v2191_v42, %v1956_v26  ;;  %v10967_v54 = vpop.f32.mrf.mxu1  ;;  %v9775_v47 = vld [vmem:[%s12199_s7 + $0x2ea] sm:$0xff] }
 0x1f9   : > { %v1836_v60 = vpop.f32.mrf.mxu0  ;;  %v3118_v38 = vpack.c.bf16 %v9775_v47, %v9774_v8 }
 0x1fa   : > { %v1957_v49 = vadd.f32 %v1836_v60, %v12783_v50  ;;  %v12944_v59 = vadd.f32 %v10967_v54, %v1959_v22  ;;  %v2194_v19 = vpop.f32.mrf.mxu1 }
 0x1fb   : > { %v10914_v18 = vpop.f32.mrf.mxu0  ;;  %11153 = vmatmul.mubr.bf16.gmra.mxu0 %v3116_v56 }
 0x1fc   : > { %v1962_v23 = vadd.f32 %v10914_v18, %v12794_v25  ;;  %v12947_v13 = vadd.f32 %v2194_v19, %v1957_v49  ;;  %v10970_v51 = vpop.f32.mrf.mxu1  ;;  %11156 = vmatprep.mubr.bf16.mxu0 %v3117_v11 }
 0x1fd   : > { %v1849_v46 = vpop.f32.mrf.mxu0 }
 0x1fe   : > { %v1960_v28 = vadd.f32 %v1849_v46, %v12797_v34  ;;  %v12952_v36 = vadd.f32 %v10970_v51, %v1962_v23  ;;  %v2207_v62 = vpop.f32.mrf.mxu1 }
 0x1ff   : > { %v10915_v50 = vpop.f32.mrf.mxu0 }
 0x200   : > { %v1963_v31 = vadd.f32 %v10915_v50, %v12800_v41  ;;  %v12955_v0 = vadd.f32 %v2207_v62, %v1960_v28  ;;  %v10971_v2 = vpop.f32.mrf.mxu1 }
 0x201   : > { %v1852_v25 = vpop.f32.mrf.mxu0 }
 0x202   : > { %v1961_v26 = vadd.f32 %v1852_v25, %v12803_v5  ;;  %v12958_v42 = vadd.f32 %v10971_v2, %v1963_v31  ;;  %v2210_v21 = vpop.f32.mrf.mxu1 }
 0x203   : > { %v10918_v56 = vpop.f32.mrf.mxu0  ;;  %11157 = vmatmul.mubr.bf16.gmra.mxu0 %v3118_v38 }
 0x204   : > { %v1966_v34 = vadd.f32 %v10918_v56, %v12810_v55  ;;  %v12961_v22 = vadd.f32 %v2210_v21, %v1961_v26  ;;  %v10974_v54 = vpop.f32.mrf.mxu1 }
 0x205   : > { %v1865_v11 = vpop.f32.mrf.mxu0 }
 0x206   : > { %v1964_v60 = vadd.f32 %v1865_v11, %v12813_v20  ;;  %v12964_v41 = vadd.f32 %v10974_v54, %v1966_v34  ;;  %v2223_v49 = vpop.f32.mrf.mxu1 }
 0x207   : > { %v10919_v19 = vpop.f32.mrf.mxu0 }
 0x208   : > { %v1967_v18 = vadd.f32 %v10919_v19, %v12816_v32  ;;  %v12967_v5 = vadd.f32 %v2223_v49, %v1964_v60  ;;  %v10975_v23 = vpop.f32.mrf.mxu1 }
 0x209   : > { %v1868_v51 = vpop.f32.mrf.mxu0 }
 0x20a   : > { %v1965_v8 = vadd.f32 %v1868_v51, %v12819_v52  ;;  %v12970_v47 = vadd.f32 %v10975_v23, %v1967_v18  ;;  %v2226_v55 = vpop.f32.mrf.mxu1 }
 0x20b   : > { %v10922_v46 = vpop.f32.mrf.mxu0 }
 0x20c   : > { %v1970_v28 = vadd.f32 %v10922_v46, %v12826_v53  ;;  %v12973_v62 = vadd.f32 %v2226_v55, %v1965_v8  ;;  %v10978_v20 = vpop.f32.mrf.mxu1 }
 0x20d   : > { %v1881_v50 = vpop.f32.mrf.mxu0 }
 0x20e   : > { %v1968_v38 = vadd.f32 %v1881_v50, %v12829_v17  ;;  %v12976_v31 = vadd.f32 %v10978_v20, %v1970_v28  ;;  %v2239_v32 = vpop.f32.mrf.mxu1 }
 0x20f   : > { %v10923_v2 = vpop.f32.mrf.mxu0 }
 0x210   : > { %v1971_v25 = vadd.f32 %v10923_v2, %v12832_v30  ;;  %v12979_v26 = vadd.f32 %v2239_v32, %v1968_v38  ;;  %v10979_v52 = vpop.f32.mrf.mxu1 }
 0x211   : > { %v1884_v21 = vpop.f32.mrf.mxu0 }
 0x212   : > { %v1969_v56 = vadd.f32 %v1884_v21, %v12835_v29  ;;  %v12982_v34 = vadd.f32 %v10979_v52, %v1971_v25  ;;  %v2242_v53 = vpop.f32.mrf.mxu1 }
 0x213   : > { %v10926_v54 = vpop.f32.mrf.mxu0 }
 0x214   : > { %v1974_v11 = vadd.f32 %v10926_v54, %v12842_v63  ;;  %v12985_v60 = vadd.f32 %v2242_v53, %v1969_v56  ;;  %v10982_v17 = vpop.f32.mrf.mxu1 }
 0x215   : > { %v1897_v49 = vpop.f32.mrf.mxu0 }
 0x216   : > { %v1972_v19 = vadd.f32 %v1897_v49, %v12845_v14  ;;  %v12988_v18 = vadd.f32 %v10982_v17, %v1974_v11  ;;  %v2255_v30 = vpop.f32.mrf.mxu1 }
 0x217   : > { %v10927_v23 = vpop.f32.mrf.mxu0 }
 0x218   : > { %v1975_v51 = vadd.f32 %v10927_v23, %v12848_v3  ;;  %v12991_v8 = vadd.f32 %v2255_v30, %v1972_v19  ;;  %v10983_v29 = vpop.f32.mrf.mxu1 }
 0x219   : > { %v1900_v55 = vpop.f32.mrf.mxu0 }
 0x21a   : > { %v1973_v46 = vadd.f32 %v1900_v55, %v12851_v7  ;;  %v12994_v28 = vadd.f32 %v10983_v29, %v1975_v51  ;;  %v2258_v63 = vpop.f32.mrf.mxu1 }
 0x21b   : > { %v10930_v20 = vpop.f32.mrf.mxu0 }
 0x21c   : > { %v1978_v50 = vadd.f32 %v10930_v20, %v12858_v40  ;;  %v12997_v38 = vadd.f32 %v2258_v63, %v1973_v46  ;;  %v10986_v14 = vpop.f32.mrf.mxu1 }
 0x21d   : > { %v1913_v32 = vpop.f32.mrf.mxu0 }
 0x21e   : > { %v1976_v2 = vadd.f32 %v1913_v32, %v12861_v12  ;;  %v13000_v25 = vadd.f32 %v10986_v14, %v1978_v50  ;;  %v2271_v3 = vpop.f32.mrf.mxu1 }
 0x21f   : > { %v10931_v52 = vpop.f32.mrf.mxu0 }
 0x220   : > { %v1979_v21 = vadd.f32 %v10931_v52, %v12864_v48  ;;  %v13003_v56 = vadd.f32 %v2271_v3, %v1976_v2  ;;  %v10987_v7 = vpop.f32.mrf.mxu1 }
 0x221   : > { %v1916_v53 = vpop.f32.mrf.mxu0 }
 0x222   : > { %v1977_v54 = vadd.f32 %v1916_v53, %v12867_v24  ;;  %v13006_v11 = vadd.f32 %v10987_v7, %v1979_v21  ;;  %v2274_v40 = vpop.f32.mrf.mxu1 }
 0x223   : > { %v10934_v17 = vpop.f32.mrf.mxu0 }
 0x224   : > { %v1982_v49 = vadd.f32 %v10934_v17, %v12874_v44  ;;  %v13009_v19 = vadd.f32 %v2274_v40, %v1977_v54  ;;  %v10990_v12 = vpop.f32.mrf.mxu1 }
 0x225   : > { %v1929_v30 = vpop.f32.mrf.mxu0 }
 0x226   : > { %v1980_v23 = vadd.f32 %v1929_v30, %v12877_v1  ;;  %v13012_v51 = vadd.f32 %v10990_v12, %v1982_v49  ;;  %v2287_v48 = vpop.f32.mrf.mxu1 }
 0x227   : > { %v10935_v29 = vpop.f32.mrf.mxu0 }
 0x228   : > { %v1983_v55 = vadd.f32 %v10935_v29, %v12880_v33  ;;  %v13015_v46 = vadd.f32 %v2287_v48, %v1980_v23  ;;  %v10991_v24 = vpop.f32.mrf.mxu1 }
 0x229   : > { %v1932_v63 = vpop.f32.mrf.mxu0 }
 0x22a   : > { %v1981_v20 = vadd.f32 %v1932_v63, %v12882_v9  ;;  %v13018_v50 = vadd.f32 %v10991_v24, %v1983_v55  ;;  %v2290_v44 = vpop.f32.mrf.mxu1 }
 0x22b   : > { %v11010_v14 = vpop.f32.mrf.mxu0 }
 0x22c   : > { %v13020_v32 = vadd.f32 %v2290_v44, %v1981_v20  ;;  %v13023_v1 = vadd.f32 %v11010_v14, %v12890_v4  ;;  %v13025_v2 = vpop.f32.mrf.mxu1 }
 0x22d   : > { %v2502_v3 = vpop.f32.mrf.mxu0 }
 0x22e   : > { %v13028_v33 = vadd.f32 %v2502_v3, %v12893_v37  ;;  %v13030_v52 = vpop.f32.mrf.mxu1 }
 0x22f   : > { %v11011_v21 = vpop.f32.mrf.mxu0 }
 0x230   : > { %v13033_v9 = vadd.f32 %v11011_v21, %v12896_v10  ;;  %v13035_v7 = vpop.f32.mrf.mxu1 }
 0x231   : > { %v2505_v53 = vpop.f32.mrf.mxu0 }
 0x232   : > { %v13038_v54 = vadd.f32 %v2505_v53, %v12899_v58  ;;  %v13040_v4 = vpop.f32.mrf.mxu1 }
 0x233   : > { %v11014_v40 = vpop.f32.mrf.mxu0 }
 0x234   : > { %v13043_v17 = vadd.f32 %v11014_v40, %v12906_v39  ;;  %v13045_v37 = vpop.f32.mrf.mxu1 }
 0x235   : > { %v2518_v49 = vpop.f32.mrf.mxu0 }
 0x236   : > { %v13048_v12 = vadd.f32 %v2518_v49, %v12909_v15  ;;  %v13050_v10 = vpop.f32.mrf.mxu1 }
 0x237   : > { %v11015_v30 = vpop.f32.mrf.mxu0 }
 0x238   : > { %v13053_v23 = vadd.f32 %v11015_v30, %v12912_v43  ;;  %v13055_v58 = vpop.f32.mrf.mxu1 }
 0x239   : > { %v2521_v48 = vpop.f32.mrf.mxu0 }
 0x23a   : > { %v13058_v29 = vadd.f32 %v2521_v48, %v12915_v27  ;;  %v13060_v39 = vpop.f32.mrf.mxu1 }
 0x23b   : > { %v11018_v55 = vpop.f32.mrf.mxu0 }
 0x23c   : > { %v2671_v24 = vadd.f32 %v11018_v55, %v12922_v61  ;;  %v11074_v63 = vpop.f32.mrf.mxu1 }
 0x23d   : > { %v2534_v15 = vpop.f32.mrf.mxu0 }
 0x23e   : > { %v2669_v20 = vadd.f32 %v2534_v15, %v12925_v6  ;;  %v13064_v44 = vadd.f32 %v11074_v63, %v2671_v24  ;;  %v2892_v14 = vpop.f32.mrf.mxu1 }
 0x23f   : > { %v11019_v43 = vpop.f32.mrf.mxu0 }
 0x240   : > { %v2672_v3 = vadd.f32 %v11019_v43, %v12928_v57  ;;  %v13067_v21 = vadd.f32 %v2892_v14, %v2669_v20  ;;  %v11075_v53 = vpop.f32.mrf.mxu1 }
 0x241   : > { %v2537_v27 = vpop.f32.mrf.mxu0 }
 0x242   : > { %v2670_v40 = vadd.f32 %v2537_v27, %v12931_v35  ;;  %v13070_v49 = vadd.f32 %v11075_v53, %v2672_v3  ;;  %v2895_v30 = vpop.f32.mrf.mxu1 }
 0x243   : > { %v11022_v61 = vpop.f32.mrf.mxu0 }
 0x244   : > { %v2675_v48 = vadd.f32 %v11022_v61, %v12938_v16  ;;  %v13073_v55 = vadd.f32 %v2895_v30, %v2670_v40  ;;  %v11078_v6 = vpop.f32.mrf.mxu1 }
 0x245   : > { %v2550_v24 = vpop.f32.mrf.mxu0 }
 0x246   : > { %v2673_v63 = vadd.f32 %v2550_v24, %v12941_v45  ;;  %v13076_v15 = vadd.f32 %v11078_v6, %v2675_v48  ;;  %v2908_v57 = vpop.f32.mrf.mxu1 }
 0x247   : > { %v11023_v20 = vpop.f32.mrf.mxu0 }
 0x248   : > { %v2676_v14 = vadd.f32 %v11023_v20, %v12944_v59  ;;  %v13079_v43 = vadd.f32 %v2908_v57, %v2673_v63  ;;  %v11079_v35 = vpop.f32.mrf.mxu1 }
 0x249   : > { %v2553_v3 = vpop.f32.mrf.mxu0 }
 0x24a   : > { %v2674_v53 = vadd.f32 %v2553_v3, %v12947_v13  ;;  %v13082_v27 = vadd.f32 %v11079_v35, %v2676_v14  ;;  %v2911_v16 = vpop.f32.mrf.mxu1 }
 0x24b   : > { %v11026_v40 = vpop.f32.mrf.mxu0 }
 0x24c   : > { %v2679_v30 = vadd.f32 %v11026_v40, %v12952_v36  ;;  %v13085_v61 = vadd.f32 %v2911_v16, %v2674_v53  ;;  %v11082_v45 = vpop.f32.mrf.mxu1 }
 0x24d   : > { %v2566_v48 = vpop.f32.mrf.mxu0 }
 0x24e   : > { %v2677_v6 = vadd.f32 %v2566_v48, %v12955_v0  ;;  %v13088_v24 = vadd.f32 %v11082_v45, %v2679_v30  ;;  %v2924_v59 = vpop.f32.mrf.mxu1 }
 0x24f   : > { %v11027_v63 = vpop.f32.mrf.mxu0 }
 0x250   : > { %v2680_v57 = vadd.f32 %v11027_v63, %v12958_v42  ;;  %v13091_v20 = vadd.f32 %v2924_v59, %v2677_v6  ;;  %v11083_v13 = vpop.f32.mrf.mxu1 }
 0x251   : > { %v2569_v14 = vpop.f32.mrf.mxu0 }
 0x252   : > { %16273 = vst [vmem:[#allocation15_spill] sm:$0xff] %v13091_v20  ;;  %v2678_v35 = vadd.f32 %v2569_v14, %v12961_v22  ;;  %v13094_v3 = vadd.f32 %v11083_v13, %v2680_v57  ;;  %v2927_v36 = vpop.f32.mrf.mxu1 }
 0x253   : > { %v11030_v53 = vpop.f32.mrf.mxu0 }
 0x254   : > { %16274 = vst [vmem:[#allocation16_spill] sm:$0xff] %v13094_v3  ;;  %v13097_v16 = vadd.f32 %v11030_v53, %v12964_v41  ;;  %v13099_v0 = vadd.f32 %v2927_v36, %v2678_v35  ;;  %v13107_v48 = vpop.f32.mrf.mxu1 }
 0x255   : > { %v2582_v40 = vpop.f32.mrf.mxu0 }
 0x256   : > { %16275 = vst [vmem:[#allocation17_spill] sm:$0xff] %v13099_v0  ;;  %v13102_v30 = vadd.f32 %v2582_v40, %v12967_v5  ;;  %v13115_v63 = vpop.f32.mrf.mxu1 }
 0x257   : > { %v11031_v42 = vpop.f32.mrf.mxu0 }
 0x258   : > { %v13105_v45 = vadd.f32 %v11031_v42, %v12970_v47  ;;  %v13123_v14 = vpop.f32.mrf.mxu1 }
 0x259   : > { %v2585_v22 = vpop.f32.mrf.mxu0 }
 0x25a   : > { %v13110_v6 = vadd.f32 %v2585_v22, %v12973_v62  ;;  %v13131_v53 = vpop.f32.mrf.mxu1 }
 0x25b   : > { %v11034_v59 = vpop.f32.mrf.mxu0 }
 0x25c   : > { %v13113_v41 = vadd.f32 %v11034_v59, %v12976_v31  ;;  %v13139_v22 = vpop.f32.mrf.mxu1 }
 0x25d   : > { %v2598_v57 = vpop.f32.mrf.mxu0 }
 0x25e   : > { %v13118_v5 = vadd.f32 %v2598_v57, %v12979_v26 }
 0x25f   : > { %v11035_v13 = vpop.f32.mrf.mxu0 }
 0x260   : > { %v13121_v47 = vadd.f32 %v11035_v13, %v12982_v34  ;;  %v13147_v13 = vpop.f32.mrf.mxu1 }
 0x261   : > { %v2601_v35 = vpop.f32.mrf.mxu0 }
 0x262   : > { %v13126_v62 = vadd.f32 %v2601_v35, %v12985_v60 }
 0x263   : > { %v11038_v36 = vpop.f32.mrf.mxu0 }
 0x264   : > { %16276 = vst [vmem:[#allocation18_spill] sm:$0xff] %v13126_v62  ;;  %v13129_v31 = vadd.f32 %v11038_v36, %v12988_v18 }
 0x265   : > { %v2614_v40 = vpop.f32.mrf.mxu0 }
 0x266   : > { %16277 = vst [vmem:[#allocation19_spill] sm:$0xff] %v13129_v31  ;;  %v13134_v26 = vadd.f32 %v2614_v40, %v12991_v8  ;;  %v13155_v40 = vpop.f32.mrf.mxu1 }
 0x267   : > { %v11039_v42 = vpop.f32.mrf.mxu0  ;;  %16284 = vst [vmem:[#allocation26_spill] sm:$0xff] %v13155_v40 }
 0x268   : > { %16278 = vst [vmem:[#allocation20_spill] sm:$0xff] %v13134_v26  ;;  %v13137_v34 = vadd.f32 %v11039_v42, %v12994_v28 }
 0x269   : > { %v2617_v59 = vpop.f32.mrf.mxu0 }
 0x26a   : > { %16279 = vst [vmem:[#allocation21_spill] sm:$0xff] %v13137_v34  ;;  %v13142_v60 = vadd.f32 %v2617_v59, %v12997_v38 }
 0x26b   : > { %v11042_v57 = vpop.f32.mrf.mxu0 }
 0x26c   : > { %16280 = vst [vmem:[#allocation22_spill] sm:$0xff] %v13142_v60  ;;  %v13145_v18 = vadd.f32 %v11042_v57, %v13000_v25  ;;  %v2959_v57 = vpop.f32.mrf.mxu1 }
 0x26d   : > { %v2630_v35 = vpop.f32.mrf.mxu0 }
 0x26e   : > { %16281 = vst [vmem:[#allocation23_spill] sm:$0xff] %v13145_v18  ;;  %v13150_v8 = vadd.f32 %v2630_v35, %v13003_v56 }
 0x26f   : > { %v11043_v36 = vpop.f32.mrf.mxu0 }
 0x270   : > { %16282 = vst [vmem:[#allocation24_spill] sm:$0xff] %v13150_v8  ;;  %v13153_v28 = vadd.f32 %v11043_v36, %v13006_v11  ;;  %v11094_v11 = vpop.f32.mrf.mxu1 }
 0x271   : > { %v2633_v42 = vpop.f32.mrf.mxu0 }
 0x272   : > { %16283 = vst [vmem:[#allocation25_spill] sm:$0xff] %v13153_v28  ;;  %v13158_v38 = vadd.f32 %v2633_v42, %v13009_v19  ;;  %v2972_v42 = vpop.f32.mrf.mxu1 }
 0x273   : > { %v11046_v59 = vpop.f32.mrf.mxu0 }
 0x274   : > { %16285 = vst [vmem:[#allocation27_spill] sm:$0xff] %v13158_v38  ;;  %v13161_v25 = vadd.f32 %v11046_v59, %v13012_v51  ;;  %v11095_v51 = vpop.f32.mrf.mxu1 }
 0x275   : > { %v2646_v0 = vpop.f32.mrf.mxu0 }
 0x276   : > { %16286 = vst [vmem:[#allocation28_spill] sm:$0xff] %v13161_v25  ;;  %v13164_v3 = vadd.f32 %v2646_v0, %v13015_v46  ;;  %v2975_v18 = vpop.f32.mrf.mxu1 }
 0x277   : > { %v11047_v56 = vpop.f32.mrf.mxu0 }
 0x278   : > { %16287 = vst [vmem:[#allocation29_spill] sm:$0xff] %v13164_v3  ;;  %v13167_v35 = vadd.f32 %v11047_v56, %v13018_v50  ;;  %v11098_v0 = vpop.f32.mrf.mxu1 }
 0x279   : > { %v2649_v36 = vpop.f32.mrf.mxu0 }
 0x27a   : > { %16288 = vst [vmem:[#allocation30_spill] sm:$0xff] %v13167_v35  ;;  %v13170_v28 = vadd.f32 %v2649_v36, %v13020_v32  ;;  %v2988_v56 = vpop.f32.mrf.mxu1 }
 0x27b   : > { %v11122_v19 = vpop.f32.mrf.mxu0 }
 0x27c   : > { %16289 = vst [vmem:[#allocation31_spill] sm:$0xff] %v13170_v28  ;;  %v11099_v26 = vpop.f32.mrf.mxu1 }
 0x27d   : > { %v3218_v38 = vpop.f32.mrf.mxu0 }
 0x27f   : > { %v11123_v8 = vpop.f32.mrf.mxu0 }
 0x281   : > { %v3221_v59 = vpop.f32.mrf.mxu0 }
 0x283   : > { %v11126_v25 = vpop.f32.mrf.mxu0 }
 0x285   : > { %v3234_v60 = vpop.f32.mrf.mxu0 }
 0x287   : > { %v11127_v46 = vpop.f32.mrf.mxu0 }
 0x289   : > { %v3237_v3 = vpop.f32.mrf.mxu0 }
 0x28b   : > { %v11130_v34 = vpop.f32.mrf.mxu0 }
 0x28c   : > { %v13173_v50 = vadd.f32 %v11130_v34, %v13064_v44  ;;  %v2991_v44 = vpop.f32.mrf.mxu1 }
 0x28d   : > { %v3250_v35 = vpop.f32.mrf.mxu0 }
 0x28e   : > { %16290 = vst [vmem:[#allocation32_spill] sm:$0xff] %v13173_v50  ;;  %v13176_v32 = vadd.f32 %v3250_v35, %v13067_v21 }
 0x28f   : > { %v11131_v36 = vpop.f32.mrf.mxu0 }
 0x290   : > { %v13179_v28 = vadd.f32 %v11131_v36, %v13070_v49  ;;  %v11102_v49 = vpop.f32.mrf.mxu1 }
 0x291   : > { %v3253_v31 = vpop.f32.mrf.mxu0 }
 0x292   : > { %16291 = vst [vmem:[#allocation33_spill] sm:$0xff] %v13179_v28  ;;  %v13182_v20 = vadd.f32 %v3253_v31, %v13073_v55  ;;  %v3021_v28 = vadd.f32 %v13025_v2, %v13023_v1  ;;  %v3019_v55 = vadd.f32 %v13030_v52, %v13028_v33  ;;  %v3023_v31 = vadd.f32 %v13050_v10, %v13048_v12  ;;  %v16292_v10 = vld [vmem:[#allocation26_spill] sm:$0xff] }
 0x293   : > { %v11134_v62 = vpop.f32.mrf.mxu0  ;;  %v3026_v1 = vadd.f32 %v13055_v58, %v13053_v23  ;;  %v3024_v2 = vadd.f32 %v13060_v39, %v13058_v29  ;;  %v3041_v33 = vadd.f32 %v13107_v48, %v13097_v16  ;;  %v13231_v12 = vadd.f32 %v13147_v13, %v13118_v5  ;;  %v16293_v58 = vld [vmem:[#allocation18_spill] sm:$0xff]  ;;  %v16294_v39 = vld [vmem:[#allocation15_spill] sm:$0xff]  ;;  %v16297_v48 = vld [vmem:[#allocation21_spill] sm:$0xff] }
 0x294   : > { %v13185_v40 = vadd.f32 %v11134_v62, %v13076_v15  ;;  %v3022_v62 = vadd.f32 %v13035_v7, %v13033_v9  ;;  %v3039_v9 = vadd.f32 %v13115_v63, %v13102_v30  ;;  %v3042_v7 = vadd.f32 %v13123_v14, %v13105_v45  ;;  %v16296_v30 = vld [vmem:[#allocation20_spill] sm:$0xff] }
 0x295   : > { %v3266_v34 = vpop.f32.mrf.mxu0  ;;  %v13235_v23 = vadd.f32 %v16292_v10, %v13121_v47  ;;  %v13238_v29 = vadd.f32 %v2959_v57, %v16293_v58  ;;  %v13245_v45 = vadd.f32 %v2972_v42, %v16296_v30  ;;  %v16299_v47 = vld [vmem:[#allocation23_spill] sm:$0xff]  ;;  %v16300_v13 = vld [vmem:[#allocation16_spill] sm:$0xff] }
 0x296   : > { %v13188_v50 = vadd.f32 %v3266_v34, %v13079_v43  ;;  %v3020_v43 = vadd.f32 %v13040_v4, %v13038_v54  ;;  %v13223_v54 = vadd.f32 %v13131_v53, %v13110_v6  ;;  %v13227_v4 = vadd.f32 %v13139_v22, %v13113_v41  ;;  %v16298_v41 = vld [vmem:[#allocation22_spill] sm:$0xff]  ;;  %v13262_v42 = vld [vmem:[%s16211_s2] ss:$0 sm:$0xff]  ;;  %v16305_v30 = vld [vmem:[#allocation28_spill] sm:$0xff] }
 0x297   : > { %v11135_v21 = vpop.f32.mrf.mxu0  ;;  %v13248_v6 = vadd.f32 %v11095_v51, %v16297_v48  ;;  %v13251_v63 = vadd.f32 %v2975_v18, %v16298_v41  ;;  %v13254_v14 = vadd.f32 %v11098_v0, %v16299_v47  ;;  %v3379_v53 = vadd.f32 %v11122_v19, %v3021_v28  ;;  %v16308_v48 = vld [vmem:[#allocation32_spill] sm:$0xff] }
 0x298   : > { %v13191_v35 = vadd.f32 %v11135_v21, %v13082_v27  ;;  %v3025_v27 = vadd.f32 %v13045_v37, %v13043_v17  ;;  %v3004_v17 = vpop.f32.mrf.mxu1  ;;  %v3377_v22 = vadd.f32 %v3218_v38, %v3019_v55  ;;  %v3380_v51 = vadd.f32 %v11123_v8, %v3022_v62  ;;  %v16302_v38 = vld [vmem:[#allocation17_spill] sm:$0xff] }
 0x299   : > { %v3269_v36 = vpop.f32.mrf.mxu0  ;;  %v3378_v21 = vadd.f32 %v3221_v59, %v3020_v43  ;;  %v3381_v18 = vadd.f32 %v3234_v60, %v3023_v31  ;;  %v3384_v0 = vadd.f32 %v11127_v46, %v3026_v1  ;;  %v3382_v28 = vadd.f32 %v3237_v3, %v3024_v2  ;;  %v16303_v55 = vld [vmem:[#allocation25_spill] sm:$0xff] }
 0x29a   : > { %v13198_v15 = vadd.f32 %v3269_v36, %v13085_v61  ;;  %v3383_v36 = vadd.f32 %v11126_v25, %v3025_v27  ;;  %v13271_v58 = vadd.f32 %v11099_v26, %v16303_v55  ;;  %v13277_v8 = vadd.f32 %v11102_v49, %v16305_v30  ;;  %v16306_v25 = vld [vmem:[#allocation29_spill] sm:$0xff] }
 0x29b   : > { %v11138_v34 = vpop.f32.mrf.mxu0  ;;  %v13280_v60 = vadd.f32 %v3004_v17, %v16306_v25  ;;  %v3426_v3 = vadd.f32 %v13262_v42, %v3379_v53  ;;  %v3424_v46 = vadd.f32 %v13262_v42, %v3377_v22  ;;  %v3427_v26 = vadd.f32 %v13262_v42, %v3380_v51  ;;  %v16309_v47 = vld [vmem:[#allocation33_spill] sm:$0xff] }
 0x29c   : > { %v13215_v52 = vadd.f32 %v11138_v34, %v13088_v24  ;;  %v16295_v24 = vld [vmem:[#allocation19_spill] sm:$0xff]  ;;  %v13292_v49 = vadd.f32 %v13262_v42, %v3383_v36  ;;  %v13295_v27 = vadd.f32 %v13262_v42, %v3381_v18  ;;  %v13298_v1 = vadd.f32 %v13262_v42, %v3384_v0 }
 0x29d   : > { %v3282_v37 = vpop.f32.mrf.mxu0  ;;  %v13242_v16 = vadd.f32 %v11094_v11, %v16295_v24  ;;  %v11103_v11 = vpop.f32.mrf.mxu1  ;;  %v13301_v2 = vadd.f32 %v13262_v42, %v3382_v28  ;;  %v13306_v41 = vadd.f32 %v13262_v42, %v16308_v48  ;;  %v13314_v53 = vadd.f32 %v13262_v42, %v16309_v47 }
 0x29e   : > { %v3393_v61 = vadd.f32 %v3282_v37, %v16294_v39  ;;  %v16301_v37 = vld [vmem:[#allocation24_spill] sm:$0xff]  ;;  %v16304_v39 = vld [vmem:[#allocation27_spill] sm:$0xff]  ;;  %v13318_v22 = vadd.f32 %v13262_v42, %v13182_v20  ;;  %v13323_v36 = vadd.f32 %v13262_v42, %v13185_v40  ;;  %v13331_v18 = vadd.f32 %v13262_v42, %v13191_v35 }
 0x29f   : > { %v11139_v5 = vpop.f32.mrf.mxu0  ;;  %v13265_v10 = vadd.f32 %v2988_v56, %v16301_v37  ;;  %v13274_v24 = vadd.f32 %v2991_v44, %v16304_v39  ;;  %v16307_v56 = vld [vmem:[#allocation30_spill] sm:$0xff]  ;;  %v13289_v44 = vadd.f32 %v13262_v42, %v3378_v21  ;;  %v13335_v20 = vadd.f32 %v13262_v42, %v13198_v15 }
 0x2a0   : > { %v13257_v57 = vadd.f32 %v11139_v5, %v16300_v13  ;;  %v13283_v62 = vadd.f32 %v11103_v11, %v16307_v56  ;;  %v13310_v5 = vadd.f32 %v13262_v42, %v13176_v32  ;;  %v13327_v32 = vadd.f32 %v13262_v42, %v13188_v50 }
 0x2a1   : > { %v3285_v34 = vpop.f32.mrf.mxu0  ;;  %v13339_v28 = vadd.f32 %v13262_v42, %v13215_v52  ;;  %v13342_v50 = vadd.f32 %v13262_v42, %v3393_v61 }
 0x2a2   : > { %v13268_v19 = vadd.f32 %v3285_v34, %v16302_v38 }
 0x2a3   : > { %v11142_v59 = vpop.f32.mrf.mxu0 }
 0x2a4   : > { %v3399_v43 = vadd.f32 %v11142_v59, %v3041_v33 }
 0x2a5   : > { %v3298_v31 = vpop.f32.mrf.mxu0 }
 0x2a6   : > { %v3446_v33 = vadd.f32 %v13262_v42, %v3399_v43  ;;  %v3397_v17 = vadd.f32 %v3298_v31, %v3039_v9 }
 0x2a7   : > { %v11143_v13 = vpop.f32.mrf.mxu0 }
 0x2a8   : > { %v3466_v11 = vmul.f32 %v3446_v33, %v3426_v3  ;;  %v3844_v51 = vmax.f32 %v3446_v33, 0.0  ;;  %v3444_v9 = vadd.f32 %v13262_v42, %v3397_v17  ;;  %v3400_v21 = vadd.f32 %v11143_v13, %v3042_v7 }
 0x2a9   : > { %v3301_v34 = vpop.f32.mrf.mxu0 }
 0x2aa   : > { %v3486_v37 = vmax.f32 %v3466_v11, 0.0  ;;  %v10168_v7 = vpack.c.bf16 %v3844_v51, %v3844_v51  ;;  %v3464_v0 = vmul.f32 %v3444_v9, %v3424_v46  ;;  %v3842_v40 = vmax.f32 %v3444_v9, 0.0 }
 0x2ab   : > { %v3447_v35 = vadd.f32 %v13262_v42, %v3400_v21  ;;  %v3398_v15 = vadd.f32 %v3301_v34, %v13223_v54  ;;  %v11146_v46 = vpop.f32.mrf.mxu0  ;;  %v4130_v54 = vld [vmem:[#allocation2 + $0xb0] sm:$0xf] }
 0x2ac   : > { %v10148_v38 = vpack.c.bf16 %v3486_v37, %v3486_v37  ;;  %v3940_v55 = vshrl.u32 %v10168_v7, 16  ;;  %v3943_v39 = vshll.u32 %v10168_v7, 16  ;;  %v3484_v30 = vmax.f32 %v3464_v0, 0.0  ;;  %v3779_v21 = vld [vmem:[#allocation2 + $0x10] sm:$0xf] }
 0x2ad   : > { %v10166_v25 = vpack.c.bf16 %v3842_v40, %v3842_v40  ;;  %v3467_v59 = vmul.f32 %v3447_v35, %v3427_v26  ;;  %v3845_v56 = vmax.f32 %v3447_v35, 0.0  ;;  %v3445_v3 = vadd.f32 %v13262_v42, %v3398_v15  ;;  %v3314_v40 = vpop.f32.mrf.mxu0 }
 0x2ae   : > { %v3585_v52 = vshrl.u32 %v10148_v38, 16  ;;  %v3588_v43 = vshll.u32 %v10148_v38, 16  ;;  %v3942_v31 = vrot.slane %v3940_v55, 7  ;;  %v10146_v61 = vpack.c.bf16 %v3484_v30, %v3484_v30  ;;  %v4123_v30 = vld [vmem:[#allocation2 + $0xa0] sm:$0xf] }
 0x2af   : > { %v3923_v17 = vshrl.u32 %v10166_v25, 16  ;;  %v3926_v48 = vshll.u32 %v10166_v25, 16  ;;  %v3487_v47 = vmax.f32 %v3467_v59, 0.0  ;;  %v10169_v13 = vpack.c.bf16 %v3845_v56, %v3845_v56  ;;  %v3770_v25 = vld [vmem:[#allocation2] sm:$0xf] }
 0x2b0   : > { %v3587_v26 = vrot.slane %v3585_v52, 7  ;;  %v3945_v11 = vor.u32 %v3943_v39, %v3942_v31  ;;  %v3946_v51 = vrot.slane %v3942_v31, 4  ;;  %v3568_v9 = vshrl.u32 %v10146_v61, 16 }
 0x2b1   : > { %v3571_v34 = vshll.u32 %v10146_v61, 16  ;;  %v13353_v37 = vrot.slane %v3923_v17, 7  ;;  %v10149_v7 = vpack.c.bf16 %v3487_v47, %v3487_v47  ;;  %v3948_v0 = vshrl.u32 %v10169_v13, 16 }
 0x2b2   : > { %v3590_v35 = vor.u32 %v3588_v43, %v3587_v26  ;;  %v3591_v15 = vrot.slane %v3587_v26, 4  ;;  %v4131_v38 = vsel %vm13349_vm5, %v3945_v11, %v4130_v54  ;;  %v13357_v55 = vrot.slane %v3568_v9, 7  ;;  %v4134_v11 = vld [vmem:[#allocation2 + $0xb8] sm:$0x1] }
 0x2b3   : > { %4132 = vst [vmem:[#allocation2 + $0xb0] sm:$0xf] %v4131_v38  ;;  %v3928_v39 = vor.u32 %v3926_v48, %v13353_v37  ;;  %v3929_v59 = vrot.slane %v13353_v37, 4  ;;  %v3593_v56 = vshrl.u32 %v10149_v7, 16  ;;  %v3596_v52 = vshll.u32 %v10149_v7, 16 }
 0x2b4   : > { %v3780_v31 = vsel %vm13349_vm5, %v3590_v35, %v3779_v21  ;;  %v3573_v43 = vor.u32 %v3571_v34, %v13357_v55  ;;  %v3950_v17 = vrot.slane %v3948_v0, 7  ;;  %v3951_v26 = vshll.u32 %v10169_v13, 16  ;;  %v11147_v21 = vpop.f32.mrf.mxu0  ;;  %v3783_v0 = vld [vmem:[#allocation2 + $0x18] sm:$0x1] }
 0x2b5   : > { %3781 = vst [vmem:[#allocation2 + $0x10] sm:$0xf] %v3780_v31  ;;  %v4124_v48 = vsel %vm13349_vm5, %v3928_v39, %v4123_v30  ;;  %v3595_v47 = vrot.slane %v3593_v56, 7  ;;  %v3465_v9 = vmul.f32 %v3445_v3, %v13289_v44  ;;  %v3843_v38 = vmax.f32 %v3445_v3, 0.0 }
 0x2b6   : > { %v3771_v34 = vsel %vm13349_vm5, %v3573_v43, %v3770_v25  ;;  %4125 = vst [vmem:[#allocation2 + $0xa0] sm:$0xf] %v4124_v48  ;;  %v3955_v35 = vrot.slane %v3950_v17, 4  ;;  %v3403_v30 = vadd.f32 %v11146_v46, %v13227_v4  ;;  %v3953_v44 = vor.u32 %v3951_v26, %v3950_v17 }
 0x2b7   : > { %3772 = vst [vmem:[#allocation2] sm:$0xf] %v3771_v34  ;;  %v3598_v13 = vor.u32 %v3596_v52, %v3595_v47  ;;  %v3600_v39 = vrot.slane %v3595_v47, 4  ;;  %v3485_v56 = vmax.f32 %v3465_v9, 0.0  ;;  %v10167_v31 = vpack.c.bf16 %v3843_v38, %v3843_v38  ;;  %v13393_v52 = vpop.f32.mrf.mxu0 }
 0x2b8   : > { %v4135_v25 = vsel %vm13367_vm6, %v3955_v35, %v4134_v11  ;;  %v3450_v43 = vadd.f32 %v13262_v42, %v3403_v30  ;;  %v3401_v48 = vadd.f32 %v3314_v40, %v13231_v12  ;;  %v3954_v4 = vsel %vm13378_vm7, %v3946_v51, %v3953_v44  ;;  %v4127_v35 = vld [vmem:[#allocation2 + $0xa8] sm:$0x1] }
 0x2b9   : > { %v3599_v61 = vsel %vm13378_vm7, %v3591_v15, %v3598_v13  ;;  %v3784_v3 = vsel %vm13367_vm6, %v3600_v39, %v3783_v0  ;;  %4136 = vst [vmem:[#allocation2 + $0xb8] sm:$0x1] %v4135_v25  ;;  %v10147_v46 = vpack.c.bf16 %v3485_v56, %v3485_v56  ;;  %4133 = vst [vmem:[#allocation2 + $0xb4] sm:$0xf] %v3954_v4  ;;  %v3931_v47 = vshrl.u32 %v10167_v31, 16  ;;  %v13403_v25 = vpop.f32.mrf.mxu0 }
 0x2ba   : > { %v4226_v17 = vld [vmem:[#allocation2 + $0xb0] sm:$0x1]  ;;  %3782 = vst [vmem:[#allocation2 + $0x14] sm:$0xf] %v3599_v61  ;;  %3785 = vst [vmem:[#allocation2 + $0x18] sm:$0x1] %v3784_v3  ;;  %v3470_v12 = vmul.f32 %v3450_v43, %v13292_v49  ;;  %v3448_v51 = vadd.f32 %v13262_v42, %v3401_v48  ;;  %v3404_v30 = vadd.f32 %v11147_v21, %v13235_v23 }
 0x2bb   : > { %v3934_v26 = vshll.u32 %v10167_v31, 16  ;;  %v3848_v40 = vmax.f32 %v3450_v43, 0.0  ;;  %v4227_v15 = vsel %vm13367_vm6, 0, %v4226_v17  ;;  %v3576_v11 = vshrl.u32 %v10147_v46, 16  ;;  %v3776_v21 = vld [vmem:[#allocation2 + $0x8] sm:$0x1] }
 0x2bc   : > { %v3579_v9 = vshll.u32 %v10147_v46, 16  ;;  %v4196_v34 = vld [vmem:[#allocation2 + $0x10] sm:$0x1]  ;;  %4228 = vst [vmem:[#allocation2 + $0xb0] sm:$0x1] %v4227_v15  ;;  %v3933_v0 = vrot.slane %v3931_v47, 7  ;;  %v3468_v44 = vmul.f32 %v3448_v51, %v13295_v27 }
 0x2bd   : > { %v3490_v38 = vmax.f32 %v3470_v12, 0.0  ;;  %v10172_v61 = vpack.c.bf16 %v3848_v40, %v3848_v40  ;;  %v4197_v13 = vsel %vm13367_vm6, 0, %v4196_v34  ;;  %v4223_v49 = vld [vmem:[#allocation2 + $0xa0] sm:$0x1]  ;;  %v3578_v39 = vrot.slane %v3576_v11, 7 }
 0x2be   : > { %v3846_v56 = vmax.f32 %v3448_v51, 0.0  ;;  %4198 = vst [vmem:[#allocation2 + $0x10] sm:$0x1] %v4197_v13  ;;  %v4193_v43 = vld [vmem:[#allocation2] sm:$0x1]  ;;  %v4224_v23 = vsel %vm13367_vm6, 0, %v4223_v49  ;;  %v3936_v48 = vor.u32 %v3934_v26, %v3933_v0 }
 0x2bf   : > { %v3938_v3 = vrot.slane %v3933_v0, 4  ;;  %v10152_v4 = vpack.c.bf16 %v3490_v38, %v3490_v38  ;;  %v4194_v27 = vsel %vm13367_vm6, 0, %v4193_v43  ;;  %4225 = vst [vmem:[#allocation2 + $0xa0] sm:$0x1] %v4224_v23  ;;  %v3581_v46 = vor.u32 %v3579_v9, %v3578_v39  ;;  %v3330_v38 = vpop.f32.mrf.mxu0  ;;  %v4144_v23 = vld [vmem:[#allocation2 + $0xd0] sm:$0xf] }
 0x2c0   : > { %v3583_v17 = vrot.slane %v3578_v39, 4  ;;  %v3974_v47 = vshrl.u32 %v10172_v61, 16  ;;  %4195 = vst [vmem:[#allocation2] sm:$0x1] %v4194_v27  ;;  %v4287_v12 = vld [vmem:[#allocation2 + $0xb8] sm:$0x1]  ;;  %v3937_v40 = vsel %vm13378_vm7, %v3929_v59, %v3936_v48  ;;  %v3451_v48 = vadd.f32 %v13262_v42, %v3404_v30 }
 0x2c1   : > { %v4128_v15 = vsel %vm13367_vm6, %v3938_v3, %v4127_v35  ;;  %v3619_v26 = vshrl.u32 %v10152_v4, 16  ;;  %v3622_v11 = vshll.u32 %v10152_v4, 16  ;;  %v4257_v51 = vld [vmem:[#allocation2 + $0x18] sm:$0x1]  ;;  %v4288_v34 = vsel %vm13407_vm8, 0, %v4287_v12 }
 0x2c2   : > { %v16318_v9 = vrot.slane %v13357_v55, 4  ;;  %v3777_v37 = vsel %vm13367_vm6, %v3583_v17, %v3776_v21  ;;  %4126 = vst [vmem:[#allocation2 + $0xa4] sm:$0xf] %v3937_v40  ;;  %4129 = vst [vmem:[#allocation2 + $0xa8] sm:$0x1] %v4128_v15  ;;  %v13429_v59 = vrot.slane %v3974_v47, 7  ;;  %v10170_v21 = vpack.c.bf16 %v3846_v56, %v3846_v56  ;;  %v11151_v40 = vpop.f32.mrf.mxu0 }
 0x2c3   : > { %v4258_v35 = vsel %vm13407_vm8, 0, %v4257_v51  ;;  %4289 = vst [vmem:[#allocation2 + $0xb8] sm:$0x1] %v4288_v34  ;;  %3778 = vst [vmem:[#allocation2 + $0x8] sm:$0x1] %v3777_v37  ;;  %v13433_v13 = vrot.slane %v3619_v26, 7  ;;  %v3402_v3 = vadd.f32 %v13393_v52, %v13238_v29  ;;  %v3471_v47 = vmul.f32 %v3451_v48, %v13298_v1 }
 0x2c4   : > { %v3582_v0 = vsel %vm13378_vm7, %v16318_v9, %v3581_v46  ;;  %v3977_v55 = vshll.u32 %v10172_v61, 16  ;;  %v3488_v49 = vmax.f32 %v3468_v44, 0.0  ;;  %4259 = vst [vmem:[#allocation2 + $0x18] sm:$0x1] %v4258_v35  ;;  %v3793_v39 = vld [vmem:[#allocation2 + $0x30] sm:$0xf]  ;;  %v3405_v37 = vadd.f32 %v3330_v38, %v13245_v45 }
 0x2c5   : > { %3773 = vst [vmem:[#allocation2 + $0x4] sm:$0xf] %v3582_v0  ;;  %v3980_v43 = vrot.slane %v13429_v59, 4  ;;  %v3624_v4 = vor.u32 %v3622_v11, %v13433_v13  ;;  %v3625_v27 = vrot.slane %v13433_v13, 4  ;;  %v3957_v61 = vshrl.u32 %v10170_v21, 16 }
 0x2c6   : > { %v3979_v46 = vor.u32 %v3977_v55, %v13429_v59  ;;  %v10150_v17 = vpack.c.bf16 %v3488_v49, %v3488_v49  ;;  %v3960_v44 = vshll.u32 %v10170_v21, 16  ;;  %v3849_v12 = vmax.f32 %v3451_v48, 0.0  ;;  %v4137_v9 = vld [vmem:[#allocation2 + $0xc0] sm:$0xf] }
 0x2c7   : > { %v3794_v56 = vsel %vm13349_vm5, %v3624_v4, %v3793_v39  ;;  %v13447_v15 = vrot.slane %v3957_v61, 7  ;;  %v3491_v26 = vmax.f32 %v3471_v47, 0.0  ;;  %v3449_v51 = vadd.f32 %v13262_v42, %v3402_v3  ;;  %v3786_v39 = vld [vmem:[#allocation2 + $0x20] sm:$0xf] }
 0x2c8   : > { %v4145_v30 = vsel %vm13349_vm5, %v3979_v46, %v4144_v23  ;;  %v3602_v29 = vshrl.u32 %v10150_v17, 16  ;;  %v3605_v52 = vshll.u32 %v10150_v17, 16  ;;  %3795 = vst [vmem:[#allocation2 + $0x30] sm:$0xf] %v3794_v56  ;;  %v10173_v11 = vpack.c.bf16 %v3849_v12, %v3849_v12  ;;  %v4148_v56 = vld [vmem:[#allocation2 + $0xd8] sm:$0x1] }
 0x2c9   : > { %4146 = vst [vmem:[#allocation2 + $0xd0] sm:$0xf] %v4145_v30  ;;  %v4284_v34 = vld [vmem:[#allocation2 + $0xa8] sm:$0x1]  ;;  %v3407_v0 = vadd.f32 %v13403_v25, %v13242_v16  ;;  %v3408_v35 = vadd.f32 %v11151_v40, %v13248_v6  ;;  %v3962_v23 = vor.u32 %v3960_v44, %v13447_v15  ;;  %v3963_v21 = vrot.slane %v13447_v15, 4 }
 0x2ca   : > { %v13450_v1 = vrot.slane %v3602_v29, 7  ;;  %v4254_v55 = vld [vmem:[#allocation2 + $0x8] sm:$0x1]  ;;  %v4285_v49 = vsel %vm13407_vm8, 0, %v4284_v34  ;;  %v10153_v48 = vpack.c.bf16 %v3491_v26, %v3491_v26  ;;  %v3982_v25 = vshrl.u32 %v10173_v11, 16 }
 0x2cb   : > { %v4255_v3 = vsel %vm13407_vm8, 0, %v4254_v55  ;;  %4286 = vst [vmem:[#allocation2 + $0xa8] sm:$0x1] %v4285_v49  ;;  %v4138_v6 = vsel %vm13349_vm5, %v3962_v23, %v4137_v9  ;;  %v3985_v46 = vshll.u32 %v10173_v11, 16  ;;  %v3469_v44 = vmul.f32 %v3449_v51, %v13301_v2  ;;  %v3797_v40 = vld [vmem:[#allocation2 + $0x38] sm:$0x1] }
 0x2cc   : > { %v3607_v16 = vor.u32 %v3605_v52, %v13450_v1  ;;  %v3608_v45 = vrot.slane %v13450_v1, 4  ;;  %4256 = vst [vmem:[#allocation2 + $0x8] sm:$0x1] %v4255_v3  ;;  %v3627_v38 = vshrl.u32 %v10153_v48, 16  ;;  %v3630_v4 = vshll.u32 %v10153_v48, 16 }
 0x2cd   : > { %4139 = vst [vmem:[#allocation2 + $0xc0] sm:$0xf] %v4138_v6  ;;  %v3984_v61 = vrot.slane %v3982_v25, 7  ;;  %v3847_v47 = vmax.f32 %v3449_v51, 0.0  ;;  %v3454_v30 = vadd.f32 %v13262_v42, %v3407_v0  ;;  %v13471_v29 = vadd.f32 %v13262_v42, %v3405_v37 }
 0x2ce   : > { %v3787_v17 = vsel %vm13349_vm5, %v3607_v16, %v3786_v39  ;;  %v3629_v12 = vrot.slane %v3627_v38, 7  ;;  %v13474_v52 = vadd.f32 %v13262_v42, %v3408_v35  ;;  %v3489_v55 = vmax.f32 %v3469_v44, 0.0 }
 0x2cf   : > { %3788 = vst [vmem:[#allocation2 + $0x20] sm:$0xf] %v3787_v17  ;;  %v4202_v26 = vld [vmem:[#allocation2 + $0x30] sm:$0x1]  ;;  %v3987_v34 = vor.u32 %v3985_v46, %v3984_v61  ;;  %v3989_v9 = vrot.slane %v3984_v61, 4  ;;  %v10171_v49 = vpack.c.bf16 %v3847_v47, %v3847_v47  ;;  %v3474_v59 = vmul.f32 %v3454_v30, %v13306_v41 }
 0x2d0   : > { %v4232_v11 = vld [vmem:[#allocation2 + $0xd0] sm:$0x1]  ;;  %v4203_v2 = vsel %vm13367_vm6, 0, %v4202_v26  ;;  %v3632_v39 = vor.u32 %v3630_v4, %v3629_v12  ;;  %v3634_v0 = vrot.slane %v3629_v12, 4  ;;  %v10151_v23 = vpack.c.bf16 %v3489_v55, %v3489_v55  ;;  %v4141_v17 = vld [vmem:[#allocation2 + $0xc8] sm:$0x1]  ;;  %v3333_v26 = vpop.f32.mrf.mxu0 }
 0x2d1   : > { %v4233_v51 = vsel %vm13367_vm6, 0, %v4232_v11  ;;  %4204 = vst [vmem:[#allocation2 + $0x30] sm:$0x1] %v4203_v2  ;;  %v3988_v37 = vsel %vm13378_vm7, %v3980_v43, %v3987_v34  ;;  %v4149_v35 = vsel %vm13367_vm6, %v3989_v9, %v4148_v56  ;;  %v3965_v48 = vshrl.u32 %v10171_v49, 16  ;;  %v3790_v11 = vld [vmem:[#allocation2 + $0x28] sm:$0x1] }
 0x2d2   : > { %4234 = vst [vmem:[#allocation2 + $0xd0] sm:$0x1] %v4233_v51  ;;  %v3633_v3 = vsel %vm13378_vm7, %v3625_v27, %v3632_v39  ;;  %v3798_v16 = vsel %vm13367_vm6, %v3634_v0, %v3797_v40  ;;  %4147 = vst [vmem:[#allocation2 + $0xd4] sm:$0xf] %v3988_v37  ;;  %v3968_v25 = vshll.u32 %v10171_v49, 16  ;;  %v3610_v43 = vshrl.u32 %v10151_v23, 16 }
 0x2d3   : > { %4150 = vst [vmem:[#allocation2 + $0xd8] sm:$0x1] %v4149_v35  ;;  %3796 = vst [vmem:[#allocation2 + $0x34] sm:$0xf] %v3633_v3  ;;  %v3613_v6 = vshll.u32 %v10151_v23, 16  ;;  %v3967_v38 = vrot.slane %v3965_v48, 7  ;;  %v3472_v27 = vmul.f32 %v13471_v29, %v13310_v5  ;;  %v3475_v44 = vmul.f32 %v13474_v52, %v13314_v53  ;;  %v11154_v3 = vpop.f32.mrf.mxu0 }
 0x2d4   : > { %3799 = vst [vmem:[#allocation2 + $0x38] sm:$0x1] %v3798_v16  ;;  %v3852_v4 = vmax.f32 %v3454_v30, 0.0  ;;  %v4229_v46 = vld [vmem:[#allocation2 + $0xc0] sm:$0x1]  ;;  %v3494_v13 = vmax.f32 %v3474_v59, 0.0 }
 0x2d5   : > { %v3850_v61 = vmax.f32 %v13471_v29, 0.0  ;;  %v4230_v41 = vsel %vm13367_vm6, 0, %v4229_v46  ;;  %v3612_v12 = vrot.slane %v3610_v43, 7  ;;  %v3970_v40 = vor.u32 %v3968_v25, %v3967_v38  ;;  %v3807_v23 = vld [vmem:[#allocation2 + $0x50] sm:$0xf] }
 0x2d6   : > { %v4199_v47 = vld [vmem:[#allocation2 + $0x20] sm:$0x1]  ;;  %v3972_v56 = vrot.slane %v3967_v38, 4  ;;  %4231 = vst [vmem:[#allocation2 + $0xc0] sm:$0x1] %v4230_v41  ;;  %v10156_v34 = vpack.c.bf16 %v3494_v13, %v3494_v13  ;;  %v10176_v5 = vpack.c.bf16 %v3852_v4, %v3852_v4  ;;  %v3492_v9 = vmax.f32 %v3472_v27, 0.0 }
 0x2d7   : > { %v4200_v30 = vsel %vm13367_vm6, 0, %v4199_v47  ;;  %v3615_v29 = vor.u32 %v3613_v6, %v3612_v12  ;;  %v3617_v55 = vrot.slane %v3612_v12, 4  ;;  %v3971_v53 = vsel %vm13378_vm7, %v3963_v21, %v3970_v40  ;;  %v4158_v6 = vld [vmem:[#allocation2 + $0xf0] sm:$0xf]  ;;  %v3346_v40 = vpop.f32.mrf.mxu0 }
 0x2d8   : > { %4201 = vst [vmem:[#allocation2 + $0x20] sm:$0x1] %v4200_v30  ;;  %v4142_v49 = vsel %vm13367_vm6, %v3972_v56, %v4141_v17  ;;  %4140 = vst [vmem:[#allocation2 + $0xc4] sm:$0xf] %v3971_v53  ;;  %v3653_v2 = vshrl.u32 %v10156_v34, 16  ;;  %v3656_v51 = vshll.u32 %v10156_v34, 16  ;;  %v10154_v21 = vpack.c.bf16 %v3492_v9, %v3492_v9 }
 0x2d9   : > { %4143 = vst [vmem:[#allocation2 + $0xc8] sm:$0x1] %v4142_v49  ;;  %v4008_v39 = vshrl.u32 %v10176_v5, 16  ;;  %v4011_v0 = vshll.u32 %v10176_v5, 16  ;;  %v3616_v35 = vsel %vm13378_vm7, %v3608_v45, %v3615_v29  ;;  %v3791_v15 = vsel %vm13367_vm6, %v3617_v55, %v3790_v11  ;;  %v3800_v11 = vld [vmem:[#allocation2 + $0x40] sm:$0xf] }
 0x2da   : > { %v4293_v37 = vld [vmem:[#allocation2 + $0xd8] sm:$0x1]  ;;  %v10174_v48 = vpack.c.bf16 %v3850_v61, %v3850_v61  ;;  %3789 = vst [vmem:[#allocation2 + $0x24] sm:$0xf] %v3616_v35  ;;  %3792 = vst [vmem:[#allocation2 + $0x28] sm:$0x1] %v3791_v15  ;;  %v3406_v9 = vadd.f32 %v3333_v26, %v13251_v63  ;;  %v3411_v15 = vadd.f32 %v11154_v3, %v13254_v14 }
 0x2db   : > { %v4263_v16 = vld [vmem:[#allocation2 + $0x38] sm:$0x1]  ;;  %v4294_v25 = vsel %vm13407_vm8, 0, %v4293_v37  ;;  %v13516_v59 = vrot.slane %v3653_v2, 7  ;;  %v13518_v43 = vrot.slane %v4008_v39, 7  ;;  %v3495_v1 = vmax.f32 %v3475_v44, 0.0 }
 0x2dc   : > { %v4264_v45 = vsel %vm13407_vm8, 0, %v4263_v16  ;;  %4295 = vst [vmem:[#allocation2 + $0xd8] sm:$0x1] %v4294_v25  ;;  %v3636_v38 = vshrl.u32 %v10154_v21, 16  ;;  %v3639_v4 = vshll.u32 %v10154_v21, 16  ;;  %v3991_v46 = vshrl.u32 %v10174_v48, 16 }
 0x2dd   : > { %4265 = vst [vmem:[#allocation2 + $0x38] sm:$0x1] %v4264_v45  ;;  %v3658_v17 = vor.u32 %v3656_v51, %v13516_v59  ;;  %v3659_v13 = vrot.slane %v13516_v59, 4  ;;  %v4013_v27 = vor.u32 %v4011_v0, %v13518_v43  ;;  %v4014_v61 = vrot.slane %v13518_v43, 4  ;;  %v4151_v34 = vld [vmem:[#allocation2 + $0xe0] sm:$0xf] }
 0x2de   : > { %v13526_v47 = vrot.slane %v3636_v38, 7  ;;  %v13528_v44 = vrot.slane %v3991_v46, 7  ;;  %v3994_v41 = vshll.u32 %v10174_v48, 16  ;;  %v10157_v12 = vpack.c.bf16 %v3495_v1, %v3495_v1  ;;  %v3811_v59 = vld [vmem:[#allocation2 + $0x58] sm:$0x1] }
 0x2df   : > { %v3808_v56 = vsel %vm13349_vm5, %v3658_v17, %v3807_v23  ;;  %v4159_v30 = vsel %vm13349_vm5, %v4013_v27, %v4158_v6  ;;  %v3853_v5 = vmax.f32 %v13474_v52, 0.0  ;;  %v3453_v35 = vadd.f32 %v13262_v42, %v3406_v9  ;;  %v11155_v23 = vpop.f32.mrf.mxu0  ;;  %v4162_v17 = vld [vmem:[#allocation2 + $0xf8] sm:$0x1] }
 0x2e0   : > { %v4290_v29 = vld [vmem:[#allocation2 + $0xc8] sm:$0x1]  ;;  %3809 = vst [vmem:[#allocation2 + $0x50] sm:$0xf] %v3808_v56  ;;  %4160 = vst [vmem:[#allocation2 + $0xf0] sm:$0xf] %v4159_v30  ;;  %v3641_v55 = vor.u32 %v3639_v4, %v13526_v47  ;;  %v3996_v49 = vor.u32 %v3994_v41, %v13528_v44  ;;  %v3458_v6 = vadd.f32 %v13262_v42, %v3411_v15 }
 0x2e1   : > { %v3642_v53 = vrot.slane %v13526_v47, 4  ;;  %v3997_v2 = vrot.slane %v13528_v44, 4  ;;  %v4291_v51 = vsel %vm13407_vm8, 0, %v4290_v29  ;;  %v3661_v39 = vshrl.u32 %v10157_v12, 16  ;;  %v4260_v52 = vld [vmem:[#allocation2 + $0x28] sm:$0x1] }
 0x2e2   : > { %v3664_v0 = vshll.u32 %v10157_v12, 16  ;;  %v10177_v37 = vpack.c.bf16 %v3853_v5, %v3853_v5  ;;  %4292 = vst [vmem:[#allocation2 + $0xc8] sm:$0x1] %v4291_v51  ;;  %v3801_v63 = vsel %vm13349_vm5, %v3641_v55, %v3800_v11  ;;  %v4152_v26 = vsel %vm13349_vm5, %v3996_v49, %v4151_v34  ;;  %v13561_v5 = vpop.f32.mrf.mxu0 }
 0x2e3   : > { %v4261_v21 = vsel %vm13407_vm8, 0, %v4260_v52  ;;  %3802 = vst [vmem:[#allocation2 + $0x40] sm:$0xf] %v3801_v63  ;;  %4153 = vst [vmem:[#allocation2 + $0xe0] sm:$0xf] %v4152_v26  ;;  %v3663_v48 = vrot.slane %v3661_v39, 7  ;;  %v3473_v1 = vmul.f32 %v3453_v35, %v13318_v22  ;;  %v3409_v38 = vadd.f32 %v3346_v40, %v13265_v10 }
 0x2e4   : > { %v4016_v16 = vshrl.u32 %v10177_v37, 16  ;;  %v4019_v25 = vshll.u32 %v10177_v37, 16  ;;  %4262 = vst [vmem:[#allocation2 + $0x28] sm:$0x1] %v4261_v21  ;;  %v3851_v45 = vmax.f32 %v3453_v35, 0.0  ;;  %v13554_v46 = vadd.f32 %v11155_v23, %v13271_v58  ;;  %v11158_v23 = vpop.f32.mrf.mxu0 }
 0x2e5   : > { %v3666_v4 = vor.u32 %v3664_v0, %v3663_v48  ;;  %v3668_v14 = vrot.slane %v3663_v48, 4  ;;  %v3493_v27 = vmax.f32 %v3473_v1, 0.0  ;;  %v3478_v12 = vmul.f32 %v3458_v6, %v13323_v36  ;;  %v4155_v48 = vld [vmem:[#allocation2 + $0xe8] sm:$0x1] }
 0x2e6   : > { %v4018_v3 = vrot.slane %v4016_v16, 7  ;;  %v10175_v41 = vpack.c.bf16 %v3851_v45, %v3851_v45  ;;  %v3856_v56 = vmax.f32 %v3458_v6, 0.0  ;;  %v3456_v26 = vadd.f32 %v13262_v42, %v3409_v38  ;;  %v3804_v1 = vld [vmem:[#allocation2 + $0x48] sm:$0x1] }
 0x2e7   : > { %v4208_v30 = vld [vmem:[#allocation2 + $0x50] sm:$0x1]  ;;  %v3667_v22 = vsel %vm13378_vm7, %v3659_v13, %v3666_v4  ;;  %v3812_v10 = vsel %vm13367_vm6, %v3668_v14, %v3811_v59  ;;  %v10155_v36 = vpack.c.bf16 %v3493_v27, %v3493_v27  ;;  %v3498_v51 = vmax.f32 %v3478_v12, 0.0 }
 0x2e8   : > { %v4238_v11 = vld [vmem:[#allocation2 + $0xf0] sm:$0x1]  ;;  %v4021_v40 = vor.u32 %v4019_v25, %v4018_v3  ;;  %v4023_v34 = vrot.slane %v4018_v3, 4  ;;  %v4209_v58 = vsel %vm13367_vm6, 0, %v4208_v30  ;;  %3810 = vst [vmem:[#allocation2 + $0x54] sm:$0xf] %v3667_v22  ;;  %v10180_v63 = vpack.c.bf16 %v3856_v56, %v3856_v56  ;;  %v3362_v22 = vpop.f32.mrf.mxu0 }
 0x2e9   : > { %v4239_v9 = vsel %vm13367_vm6, 0, %v4238_v11  ;;  %3813 = vst [vmem:[#allocation2 + $0x58] sm:$0x1] %v3812_v10  ;;  %v3999_v29 = vshrl.u32 %v10175_v41, 16  ;;  %4210 = vst [vmem:[#allocation2 + $0x50] sm:$0x1] %v4209_v58  ;;  %v10160_v15 = vpack.c.bf16 %v3498_v51, %v3498_v51  ;;  %v3476_v59 = vmul.f32 %v3456_v26, %v13327_v32 }
 0x2ea   : > { %4240 = vst [vmem:[#allocation2 + $0xf0] sm:$0x1] %v4239_v9  ;;  %v4022_v13 = vsel %vm13378_vm7, %v4014_v61, %v4021_v40  ;;  %v4163_v55 = vsel %vm13367_vm6, %v4023_v34, %v4162_v17  ;;  %v4002_v49 = vshll.u32 %v10175_v41, 16  ;;  %v4205_v39 = vld [vmem:[#allocation2 + $0x40] sm:$0x1]  ;;  %v3644_v37 = vshrl.u32 %v10155_v36, 16 }
 0x2eb   : > { %v4235_v0 = vld [vmem:[#allocation2 + $0xe0] sm:$0x1]  ;;  %4161 = vst [vmem:[#allocation2 + $0xf4] sm:$0xf] %v4022_v13  ;;  %4164 = vst [vmem:[#allocation2 + $0xf8] sm:$0x1] %v4163_v55 }
 0x2ec   : > { %v3647_v52 = vshll.u32 %v10155_v36, 16  ;;  %v4206_v43 = vsel %vm13367_vm6, 0, %v4205_v39  ;;  %v4236_v61 = vsel %vm13367_vm6, 0, %v4235_v0  ;;  %v4001_v35 = vrot.slane %v3999_v29, 7  ;;  %v4172_v30 = vld [vmem:[#allocation2 + $0x110] sm:$0xf] }
 0x2ed   : > { %4207 = vst [vmem:[#allocation2 + $0x40] sm:$0x1] %v4206_v43  ;;  %4237 = vst [vmem:[#allocation2 + $0xe0] sm:$0x1] %v4236_v61  ;;  %v3646_v21 = vrot.slane %v3644_v37, 7  ;;  %v4042_v16 = vshrl.u32 %v10180_v63, 16  ;;  %v3410_v37 = vadd.f32 %v13561_v5, %v13274_v24 }
 0x2ee   : > { %v4045_v25 = vshll.u32 %v10180_v63, 16  ;;  %v4004_v45 = vor.u32 %v4002_v49, %v4001_v35  ;;  %v4006_v6 = vrot.slane %v4001_v35, 4  ;;  %v3687_v38 = vshrl.u32 %v10160_v15, 16 }
 0x2ef   : > { %v3690_v4 = vshll.u32 %v10160_v15, 16  ;;  %v3649_v14 = vor.u32 %v3647_v52, %v3646_v21  ;;  %v3651_v3 = vrot.slane %v3646_v21, 4  ;;  %v13579_v17 = vrot.slane %v4042_v16, 7  ;;  %v11159_v52 = vpop.f32.mrf.mxu0 }
 0x2f0   : > { %v3496_v27 = vmax.f32 %v3476_v59, 0.0  ;;  %v4269_v41 = vld [vmem:[#allocation2 + $0x58] sm:$0x1]  ;;  %v4005_v12 = vsel %vm13378_vm7, %v3997_v2, %v4004_v45  ;;  %v4156_v56 = vsel %vm13367_vm6, %v4006_v6, %v4155_v48  ;;  %v13587_v32 = vrot.slane %v3687_v38, 7  ;;  %v3821_v2 = vld [vmem:[#allocation2 + $0x70] sm:$0xf] }
 0x2f1   : > { %v3854_v11 = vmax.f32 %v3456_v26, 0.0  ;;  %v4270_v10 = vsel %vm13407_vm8, 0, %v4269_v41  ;;  %v3650_v40 = vsel %vm13378_vm7, %v3642_v53, %v3649_v14  ;;  %v3805_v44 = vsel %vm13367_vm6, %v3651_v3, %v3804_v1  ;;  %4154 = vst [vmem:[#allocation2 + $0xe4] sm:$0xf] %v4005_v12  ;;  %4157 = vst [vmem:[#allocation2 + $0xe8] sm:$0x1] %v4156_v56 }
 0x2f2   : > { %v4047_v34 = vor.u32 %v4045_v25, %v13579_v17  ;;  %4271 = vst [vmem:[#allocation2 + $0x58] sm:$0x1] %v4270_v10  ;;  %v4299_v58 = vld [vmem:[#allocation2 + $0xf8] sm:$0x1]  ;;  %3803 = vst [vmem:[#allocation2 + $0x44] sm:$0xf] %v3650_v40  ;;  %v3692_v9 = vor.u32 %v3690_v4, %v13587_v32  ;;  %v10158_v29 = vpack.c.bf16 %v3496_v27, %v3496_v27 }
 0x2f3   : > { %3806 = vst [vmem:[#allocation2 + $0x48] sm:$0x1] %v3805_v44  ;;  %v3693_v36 = vrot.slane %v13587_v32, 4  ;;  %v4048_v47 = vrot.slane %v13579_v17, 4  ;;  %v4300_v53 = vsel %vm13407_vm8, 0, %v4299_v58  ;;  %v10178_v55 = vpack.c.bf16 %v3854_v11, %v3854_v11 }
 0x2f4   : > { %v4173_v13 = vsel %vm13349_vm5, %v4047_v34, %v4172_v30  ;;  %v3459_v49 = vadd.f32 %v13262_v42, %v13554_v46  ;;  %4301 = vst [vmem:[#allocation2 + $0xf8] sm:$0x1] %v4300_v53  ;;  %v3822_v51 = vsel %vm13349_vm5, %v3692_v9, %v3821_v2  ;;  %v3670_v39 = vshrl.u32 %v10158_v29, 16  ;;  %v3814_v48 = vld [vmem:[#allocation2 + $0x60] sm:$0xf] }
 0x2f5   : > { %4174 = vst [vmem:[#allocation2 + $0x110] sm:$0xf] %v4173_v13  ;;  %v3673_v0 = vshll.u32 %v10158_v29, 16  ;;  %3823 = vst [vmem:[#allocation2 + $0x70] sm:$0xf] %v3822_v51  ;;  %v4025_v63 = vshrl.u32 %v10178_v55, 16  ;;  %v3457_v46 = vadd.f32 %v13262_v42, %v3410_v37  ;;  %v3415_v15 = vadd.f32 %v11158_v23, %v13277_v8 }
 0x2f6   : > { %v4028_v26 = vshll.u32 %v10178_v55, 16  ;;  %v3479_v43 = vmul.f32 %v3459_v49, %v13331_v18  ;;  %v3857_v61 = vmax.f32 %v3459_v49, 0.0  ;;  %v13612_v35 = vrot.slane %v3670_v39, 7  ;;  %v4165_v45 = vld [vmem:[#allocation2 + $0x100] sm:$0xf] }
 0x2f7   : > { %v3413_v21 = vadd.f32 %v3362_v22, %v13280_v60  ;;  %v13617_v16 = vrot.slane %v4025_v63, 7  ;;  %v13620_v5 = vadd.f32 %v11159_v52, %v13283_v62  ;;  %v3477_v6 = vmul.f32 %v3457_v46, %v13335_v20  ;;  %v4176_v9 = vld [vmem:[#allocation2 + $0x118] sm:$0x1] }
 0x2f8   : > { %v3499_v25 = vmax.f32 %v3479_v43, 0.0  ;;  %v10181_v24 = vpack.c.bf16 %v3857_v61, %v3857_v61  ;;  %v4296_v59 = vld [vmem:[#allocation2 + $0xe8] sm:$0x1]  ;;  %v3675_v18 = vor.u32 %v3673_v0, %v13612_v35  ;;  %v3676_v1 = vrot.slane %v13612_v35, 4  ;;  %v3825_v13 = vld [vmem:[#allocation2 + $0x78] sm:$0x1] }
 0x2f9   : > { %v3855_v38 = vmax.f32 %v3457_v46, 0.0  ;;  %v4297_v60 = vsel %vm13407_vm8, 0, %v4296_v59  ;;  %v4030_v23 = vor.u32 %v4028_v26, %v13617_v16  ;;  %v4031_v4 = vrot.slane %v13617_v16, 4  ;;  %v16319_v16 = vld [vmem:[#allocation31_spill] sm:$0xff] }
 0x2fa   : > { %v4266_v8 = vld [vmem:[#allocation2 + $0x48] sm:$0x1]  ;;  %v10161_v14 = vpack.c.bf16 %v3499_v25, %v3499_v25  ;;  %4298 = vst [vmem:[#allocation2 + $0xe8] sm:$0x1] %v4297_v60  ;;  %v3815_v3 = vsel %vm13349_vm5, %v3675_v18, %v3814_v48  ;;  %v4050_v27 = vshrl.u32 %v10181_v24, 16  ;;  %v4053_v41 = vshll.u32 %v10181_v24, 16  ;;  %v3007_v18 = vpop.f32.mrf.mxu1 }
 0x2fb   : > { %v4267_v62 = vsel %vm13407_vm8, 0, %v4266_v8  ;;  %3816 = vst [vmem:[#allocation2 + $0x60] sm:$0xf] %v3815_v3  ;;  %v4166_v12 = vsel %vm13349_vm5, %v4030_v23, %v4165_v45  ;;  %v3497_v11 = vmax.f32 %v3477_v6, 0.0  ;;  %v10179_v44 = vpack.c.bf16 %v3855_v38, %v3855_v38  ;;  %v3818_v25 = vld [vmem:[#allocation2 + $0x68] sm:$0x1] }
 0x2fc   : > { %4268 = vst [vmem:[#allocation2 + $0x48] sm:$0x1] %v4267_v62  ;;  %v4244_v20 = vld [vmem:[#allocation2 + $0x110] sm:$0x1]  ;;  %v3695_v56 = vshrl.u32 %v10161_v14, 16  ;;  %v3698_v30 = vshll.u32 %v10161_v14, 16  ;;  %v3462_v2 = vadd.f32 %v13262_v42, %v3415_v15  ;;  %v13641_v53 = vadd.f32 %v13262_v42, %v3413_v21 }
 0x2fd   : > { %v4214_v22 = vld [vmem:[#allocation2 + $0x70] sm:$0x1]  ;;  %v4245_v10 = vsel %vm13367_vm6, 0, %v4244_v20  ;;  %4167 = vst [vmem:[#allocation2 + $0x100] sm:$0xf] %v4166_v12  ;;  %v4052_v40 = vrot.slane %v4050_v27, 7  ;;  %v10159_v29 = vpack.c.bf16 %v3497_v11, %v3497_v11 }
 0x2fe   : > { %v4215_v34 = vsel %vm13367_vm6, 0, %v4214_v22  ;;  %4246 = vst [vmem:[#allocation2 + $0x110] sm:$0x1] %v4245_v10  ;;  %v3697_v58 = vrot.slane %v3695_v56, 7  ;;  %v4033_v51 = vshrl.u32 %v10179_v44, 16  ;;  %v4036_v39 = vshll.u32 %v10179_v44, 16  ;;  %v3365_v56 = vpop.f32.mrf.mxu0 }
 0x2ff   : > { %4216 = vst [vmem:[#allocation2 + $0x70] sm:$0x1] %v4215_v34  ;;  %v4055_v55 = vor.u32 %v4053_v41, %v4052_v40  ;;  %v4057_v49 = vrot.slane %v4052_v40, 4  ;;  %v3678_v52 = vshrl.u32 %v10159_v29, 16  ;;  %v3681_v63 = vshll.u32 %v10159_v29, 16 }
 0x300   : > { %v3700_v0 = vor.u32 %v3698_v30, %v3697_v58  ;;  %v3702_v37 = vrot.slane %v3697_v58, 4  ;;  %v4035_v42 = vrot.slane %v4033_v51, 7  ;;  %v3482_v61 = vmul.f32 %v3462_v2, %v13339_v28  ;;  %v4169_v21 = vld [vmem:[#allocation2 + $0x108] sm:$0x1]  ;;  %v11769_v35 = vld [vmem:[%s16211_s2] ss:$0 sm:$0xff] }
 0x301   : > { %v4056_v26 = vsel %vm13378_vm7, %v4048_v47, %v4055_v55  ;;  %v4177_v43 = vsel %vm13367_vm6, %v4057_v49, %v4176_v9  ;;  %v3680_v17 = vrot.slane %v3678_v52, 7  ;;  %v3860_v48 = vmax.f32 %v3462_v2, 0.0  ;;  %v4186_v2 = vld [vmem:[#allocation2 + $0x130] sm:$0xf]  ;;  %v3828_v52 = vld [vmem:[#allocation2 + $0x80] sm:$0xf] }
 0x302   : > { %v3701_v46 = vsel %vm13378_vm7, %v3693_v36, %v3700_v0  ;;  %v3826_v15 = vsel %vm13367_vm6, %v3702_v37, %v3825_v13  ;;  %4175 = vst [vmem:[#allocation2 + $0x114] sm:$0xf] %v4056_v26  ;;  %4178 = vst [vmem:[#allocation2 + $0x118] sm:$0x1] %v4177_v43  ;;  %v4211_v47 = vld [vmem:[#allocation2 + $0x60] sm:$0x1]  ;;  %v4038_v24 = vor.u32 %v4036_v39, %v4035_v42 }
 0x303   : > { %3824 = vst [vmem:[#allocation2 + $0x74] sm:$0xf] %v3701_v46  ;;  %3827 = vst [vmem:[#allocation2 + $0x78] sm:$0x1] %v3826_v15  ;;  %v4040_v59 = vrot.slane %v4035_v42, 4  ;;  %v3502_v28 = vmax.f32 %v3482_v61, 0.0  ;;  %v3480_v32 = vmul.f32 %v13641_v53, %v13342_v50  ;;  %v3683_v6 = vor.u32 %v3681_v63, %v3680_v17 }
 0x304   : > { %v4212_v36 = vsel %vm13367_vm6, 0, %v4211_v47  ;;  %v4241_v45 = vld [vmem:[#allocation2 + $0x100] sm:$0x1]  ;;  %v3685_v38 = vrot.slane %v3680_v17, 4  ;;  %v10184_v8 = vpack.c.bf16 %v3860_v48, %v3860_v48  ;;  %v4039_v23 = vsel %vm13378_vm7, %v4031_v4, %v4038_v24 }
 0x305   : > { %4213 = vst [vmem:[#allocation2 + $0x60] sm:$0x1] %v4212_v36  ;;  %v4242_v60 = vsel %vm13367_vm6, 0, %v4241_v45  ;;  %v4170_v50 = vsel %vm13367_vm6, %v4040_v59, %v4169_v21  ;;  %v10164_v14 = vpack.c.bf16 %v3502_v28, %v3502_v28  ;;  %v3684_v62 = vsel %vm13378_vm7, %v3676_v1, %v3683_v6  ;;  %4168 = vst [vmem:[#allocation2 + $0x104] sm:$0xf] %v4039_v23 }
 0x306   : > { %4243 = vst [vmem:[#allocation2 + $0x100] sm:$0x1] %v4242_v60  ;;  %v3819_v3 = vsel %vm13367_vm6, %v3685_v38, %v3818_v25  ;;  %4171 = vst [vmem:[#allocation2 + $0x108] sm:$0x1] %v4170_v50  ;;  %v4076_v27 = vshrl.u32 %v10184_v8, 16  ;;  %v3056_v41 = vadd.f32 %v3007_v18, %v16319_v16  ;;  %v3500_v20 = vmax.f32 %v3480_v32, 0.0 }
 0x307   : > { %3817 = vst [vmem:[#allocation2 + $0x64] sm:$0xf] %v3684_v62  ;;  %3820 = vst [vmem:[#allocation2 + $0x68] sm:$0x1] %v3819_v3  ;;  %v3721_v4 = vshrl.u32 %v10164_v14, 16  ;;  %v3858_v12 = vmax.f32 %v13641_v53, 0.0  ;;  %v3443_v1 = vadd.f32 %v11769_v35, %v13257_v57  ;;  %v3463_v22 = vadd.f32 %v11769_v35, %v13620_v5 }
 0x308   : > { %v13680_v30 = vrot.slane %v4076_v27, 7  ;;  %v4079_v11 = vshll.u32 %v10184_v8, 16  ;;  %v3724_v44 = vshll.u32 %v10164_v14, 16  ;;  %v10162_v34 = vpack.c.bf16 %v3500_v20, %v3500_v20  ;;  %v3835_v53 = vld [vmem:[#allocation2 + $0x90] sm:$0xf] }
 0x309   : > { %v4305_v10 = vld [vmem:[#allocation2 + $0x118] sm:$0x1]  ;;  %v13683_v40 = vrot.slane %v3721_v4, 7  ;;  %v10182_v58 = vpack.c.bf16 %v3858_v12, %v3858_v12  ;;  %v3483_v57 = vmul.f32 %v3463_v22, %v3443_v1  ;;  %v3414_v55 = vadd.f32 %v3365_v56, %v3056_v41  ;;  %v4179_v24 = vld [vmem:[#allocation2 + $0x120] sm:$0xf] }
 0x30a   : > { %v4275_v9 = vld [vmem:[#allocation2 + $0x78] sm:$0x1]  ;;  %v4306_v29 = vsel %vm13407_vm8, 0, %v4305_v10  ;;  %v4081_v13 = vor.u32 %v4079_v11, %v13680_v30  ;;  %v3704_v51 = vshrl.u32 %v10162_v34, 16  ;;  %v3441_v39 = vadd.f32 %v11769_v35, %v13268_v19 }
 0x30b   : > { %v4276_v49 = vsel %vm13407_vm8, 0, %v4275_v9  ;;  %4307 = vst [vmem:[#allocation2 + $0x118] sm:$0x1] %v4306_v29  ;;  %v3726_v5 = vor.u32 %v3724_v44, %v13683_v40  ;;  %v3707_v37 = vshll.u32 %v10162_v34, 16  ;;  %v4059_v63 = vshrl.u32 %v10182_v58, 16 }
 0x30c   : > { %4277 = vst [vmem:[#allocation2 + $0x78] sm:$0x1] %v4276_v49  ;;  %v4187_v0 = vsel %vm13349_vm5, %v4081_v13, %v4186_v2  ;;  %v13696_v42 = vrot.slane %v3704_v51, 7  ;;  %v3503_v61 = vmax.f32 %v3483_v57, 0.0  ;;  %v3861_v46 = vmax.f32 %v3463_v22, 0.0 }
 0x30d   : > { %v4302_v26 = vld [vmem:[#allocation2 + $0x108] sm:$0x1]  ;;  %v3836_v43 = vsel %vm13349_vm5, %v3726_v5, %v3835_v53  ;;  %4188 = vst [vmem:[#allocation2 + $0x130] sm:$0xf] %v4187_v0  ;;  %v13700_v17 = vrot.slane %v4059_v63, 7  ;;  %v4062_v21 = vshll.u32 %v10182_v58, 16  ;;  %v3461_v48 = vadd.f32 %v11769_v35, %v3414_v55 }
 0x30e   : > { %v4272_v15 = vld [vmem:[#allocation2 + $0x68] sm:$0x1]  ;;  %v4303_v19 = vsel %vm13407_vm8, 0, %v4302_v26  ;;  %3837 = vst [vmem:[#allocation2 + $0x90] sm:$0xf] %v3836_v43  ;;  %v3709_v25 = vor.u32 %v3707_v37, %v13696_v42  ;;  %v10165_v59 = vpack.c.bf16 %v3503_v61, %v3503_v61  ;;  %v10185_v32 = vpack.c.bf16 %v3861_v46, %v3861_v46 }
 0x30f   : > { %v4273_v47 = vsel %vm13407_vm8, 0, %v4272_v15  ;;  %4304 = vst [vmem:[#allocation2 + $0x108] sm:$0x1] %v4303_v19  ;;  %v4064_v28 = vor.u32 %v4062_v21, %v13700_v17  ;;  %v3481_v18 = vmul.f32 %v3461_v48, %v3441_v39  ;;  %v3859_v6 = vmax.f32 %v3461_v48, 0.0  ;;  %v3839_v8 = vld [vmem:[#allocation2 + $0x98] sm:$0x1] }
 0x310   : > { %4274 = vst [vmem:[#allocation2 + $0x68] sm:$0x1] %v4273_v47  ;;  %v3829_v36 = vsel %vm13349_vm5, %v3709_v25, %v3828_v52  ;;  %v3729_v45 = vshrl.u32 %v10165_v59, 16  ;;  %v4084_v60 = vshrl.u32 %v10185_v32, 16  ;;  %v4082_v50 = vrot.slane %v13680_v30, 4 }
 0x311   : > { %3830 = vst [vmem:[#allocation2 + $0x80] sm:$0xf] %v3829_v36  ;;  %v4180_v38 = vsel %vm13349_vm5, %v4064_v28, %v4179_v24  ;;  %v3501_v23 = vmax.f32 %v3481_v18, 0.0  ;;  %v3732_v62 = vshll.u32 %v10165_v59, 16  ;;  %v4190_v3 = vld [vmem:[#allocation2 + $0x138] sm:$0x1]  ;;  %v10183_v27 = vpack.c.bf16 %v3859_v6, %v3859_v6 }
 0x312   : > { %4181 = vst [vmem:[#allocation2 + $0x120] sm:$0xf] %v4180_v38  ;;  %v3731_v14 = vrot.slane %v3729_v45, 7  ;;  %v3727_v16 = vrot.slane %v13683_v40, 4  ;;  %v4086_v4 = vrot.slane %v4084_v60, 7  ;;  %v4087_v20 = vshll.u32 %v10185_v32, 16 }
 0x313   : > { %v10163_v12 = vpack.c.bf16 %v3501_v23, %v3501_v23  ;;  %v4067_v11 = vshrl.u32 %v10183_v27, 16  ;;  %v3832_v13 = vld [vmem:[#allocation2 + $0x88] sm:$0x1]  ;;  %v4070_v57 = vshll.u32 %v10183_v27, 16  ;;  %v3710_v49 = vrot.slane %v13696_v42, 4 }
 0x314   : > { %v4250_v41 = vld [vmem:[#allocation2 + $0x130] sm:$0x1]  ;;  %v3734_v35 = vor.u32 %v3732_v62, %v3731_v14  ;;  %v3736_v1 = vrot.slane %v3731_v14, 4  ;;  %v4089_v22 = vor.u32 %v4087_v20, %v4086_v4  ;;  %v4091_v10 = vrot.slane %v4086_v4, 4  ;;  %v4183_v55 = vld [vmem:[#allocation2 + $0x128] sm:$0x1] }
 0x315   : > { %v4220_v56 = vld [vmem:[#allocation2 + $0x90] sm:$0x1]  ;;  %v4251_v33 = vsel %vm13367_vm6, 0, %v4250_v41  ;;  %v3712_v44 = vshrl.u32 %v10163_v12, 16  ;;  %v3715_v34 = vshll.u32 %v10163_v12, 16  ;;  %v4069_v58 = vrot.slane %v4067_v11, 7 }
 0x316   : > { %v4221_v30 = vsel %vm13367_vm6, 0, %v4220_v56  ;;  %4252 = vst [vmem:[#allocation2 + $0x130] sm:$0x1] %v4251_v33  ;;  %v3735_v40 = vsel %vm13378_vm7, %v3727_v16, %v3734_v35  ;;  %v3840_v2 = vsel %vm13367_vm6, %v3736_v1, %v3839_v8  ;;  %v4090_v9 = vsel %vm13378_vm7, %v4082_v50, %v4089_v22 }
 0x317   : > { %4222 = vst [vmem:[#allocation2 + $0x90] sm:$0x1] %v4221_v30  ;;  %3838 = vst [vmem:[#allocation2 + $0x94] sm:$0xf] %v3735_v40  ;;  %v4191_v29 = vsel %vm13367_vm6, %v4091_v10, %v4190_v3  ;;  %v3714_v53 = vrot.slane %v3712_v44, 7  ;;  %v4065_v5 = vrot.slane %v13700_v17, 4  ;;  %v4072_v26 = vor.u32 %v4070_v57, %v4069_v58 }
 0x318   : > { %3841 = vst [vmem:[#allocation2 + $0x98] sm:$0x1] %v3840_v2  ;;  %v4217_v51 = vld [vmem:[#allocation2 + $0x80] sm:$0x1]  ;;  %4189 = vst [vmem:[#allocation2 + $0x134] sm:$0xf] %v4090_v9 }
 0x319   : > { %4192 = vst [vmem:[#allocation2 + $0x138] sm:$0x1] %v4191_v29  ;;  %v4074_v39 = vrot.slane %v4069_v58, 4  ;;  %v4218_v0 = vsel %vm13367_vm6, 0, %v4217_v51  ;;  %v4247_v37 = vld [vmem:[#allocation2 + $0x120] sm:$0x1]  ;;  %v3717_v52 = vor.u32 %v3715_v34, %v3714_v53  ;;  %v4073_v15 = vsel %vm13378_vm7, %v4065_v5, %v4072_v26 }
 0x31a   : > { %v3719_v63 = vrot.slane %v3714_v53, 4  ;;  %4219 = vst [vmem:[#allocation2 + $0x80] sm:$0x1] %v4218_v0  ;;  %v4248_v43 = vsel %vm13367_vm6, 0, %v4247_v37  ;;  %4182 = vst [vmem:[#allocation2 + $0x124] sm:$0xf] %v4073_v15 }
 0x31b   : > { %v4184_v42 = vsel %vm13367_vm6, %v4074_v39, %v4183_v55  ;;  %4249 = vst [vmem:[#allocation2 + $0x120] sm:$0x1] %v4248_v43  ;;  %v3718_v61 = vsel %vm13378_vm7, %v3710_v49, %v3717_v52 }
 0x31c   : > { %v3833_v46 = vsel %vm13367_vm6, %v3719_v63, %v3832_v13  ;;  %4185 = vst [vmem:[#allocation2 + $0x128] sm:$0x1] %v4184_v42  ;;  %3831 = vst [vmem:[#allocation2 + $0x84] sm:$0xf] %v3718_v61 }
 0x31d   : > { %3834 = vst [vmem:[#allocation2 + $0x88] sm:$0x1] %v3833_v46 }
 0x31f   : > { %v4281_v19 = vld [vmem:[#allocation2 + $0x98] sm:$0x1] }
 0x320   : > { %v4282_v17 = vsel %vm13407_vm8, 0, %v4281_v19  ;;  %v4311_v21 = vld [vmem:[#allocation2 + $0x138] sm:$0x1] }
 0x321   : > { %4283 = vst [vmem:[#allocation2 + $0x98] sm:$0x1] %v4282_v17  ;;  %v4312_v48 = vsel %vm13407_vm8, 0, %v4311_v21 }
 0x322   : > { %4313 = vst [vmem:[#allocation2 + $0x138] sm:$0x1] %v4312_v48  ;;  %4317 = sbr.rel (%p16320_p12) target bundleno = 811 (0x32b), region = 56 }
 0x323   : > { %v4308_v54 = vld [vmem:[#allocation2 + $0x128] sm:$0x1] }
 0x324   : > { %v4278_v47 = vld [vmem:[#allocation2 + $0x88] sm:$0x1]  ;;  %v4309_v7 = vsel %vm13407_vm8, 0, %v4308_v54 }
 0x325   : > { %v4279_v25 = vsel %vm13407_vm8, 0, %v4278_v47  ;;  %4310 = vst [vmem:[#allocation2 + $0x128] sm:$0x1] %v4309_v7 }
 0x326   : > { %4280 = vst [vmem:[#allocation2 + $0x88] sm:$0x1] %v4279_v25 }
 0x327   : > { %v12028_v24 = vmov 0  }
 0x328   : > { %4318 = vst [vmem:[#allocation2] sm:$0xf] %v12028_v24  ;;  %4319 = vst [vmem:[#allocation2 + $0x4] sm:$0xf] %v12028_v24 }
 0x329   : > { %4320 = vst [vmem:[#allocation2 + $0x8] sm:$0xf] %v12028_v24  ;;  %4322 = vst [vmem:[#allocation2 + $0xa0] sm:$0xf] %v12028_v24 }
 0x32a   : > { %4323 = vst [vmem:[#allocation2 + $0xa4] sm:$0xf] %v12028_v24  ;;  %4324 = vst [vmem:[#allocation2 + $0xa8] sm:$0xf] %v12028_v24 }
 0x32b PF: > { %p9826_p8 = scmp.ne.s32.totalorder %s12088_s22, 1 }
 0x32d   : > { %4329 = sbr.rel (%p9826_p8) target bundleno = 822 (0x336), region = 60 }
 0x332   : > { %v12029_v31 = vmov 0  }
 0x333   : > { %4331 = vst [vmem:[#allocation2 + $0x90] sm:$0xf] %v12029_v31  ;;  %4332 = vst [vmem:[#allocation2 + $0x94] sm:$0xf] %v12029_v31 }
 0x334   : > { %4333 = vst [vmem:[#allocation2 + $0x98] sm:$0xf] %v12029_v31  ;;  %4335 = vst [vmem:[#allocation2 + $0x130] sm:$0xf] %v12029_v31 }
 0x335   : > { %4336 = vst [vmem:[#allocation2 + $0x134] sm:$0xf] %v12029_v31  ;;  %4337 = vst [vmem:[#allocation2 + $0x138] sm:$0xf] %v12029_v31 }
 0x336 PF: > { %v11770_v59 = vld [vmem:[#allocation8 + $0x78] sm:$0xff]   ;;  %v11771_v28 = vld [vmem:[#allocation8 + $0x70] sm:$0xff]   ;;  %v11772_v32 = vld [vmem:[#allocation8 + $0x68] sm:$0xff]   ;;  %vm4403_vm9 = vsmask.f32 3328  ;;  %vm5433_vm12 = vcmask 1042432  }
 0x337   : > { %11160 = vmatprep.subr.bf16.mxu1 %v11770_v59  ;;  %v11773_v18 = vld [vmem:[#allocation8 + $0x60] sm:$0xff]   ;;  %v13757_v6 = vld [vmem:[#allocation2 + $0x8] sm:$0x1]  ;;  %vm4404_vm10 = vsmask.f32 7440  ;;  %v11774_v60 = vld [vmem:[#allocation8 + $0x58] sm:$0xff]  }
 0x338   : > { %11161 = vmatpush3.bf16.msra.mxu1 %v11770_v59  ;;  %v13753_v36 = vld [vmem:[#allocation2] sm:$0xf]  ;;  %v13755_v45 = vld [vmem:[#allocation2 + $0x4] sm:$0xf]  ;;  %v4426_v14 = vshll.u32 %v13757_v6, 16  ;;  %vm13772_vm11 = vmor %vm4403_vm9, %vm4404_vm10  ;;  %vm5434_vm13 = vcmask 1046532  }
 0x339   : > { %11162 = vmatprep.subr.bf16.mxu1 %v11771_v28  ;;  %v4407_v38 = vshrl.u32 %v13753_v36, 16  ;;  %v4410_v8 = vshll.u32 %v13753_v36, 16  ;;  %v4416_v23 = vshll.u32 %v13755_v45, 16  ;;  %v4420_v50 = vshrl.u32 %v13755_v45, 16  ;;  %v4341_v62 = vld [vmem:[#allocation2 + $0x10] sm:$0xf]  ;;  %vm14004_vm14 = vmor %vm5433_vm12, %vm5434_vm13 }
 0x33a   : > { %v13764_v16 = vld [vmem:[#allocation2 + $0x14] sm:$0xf]  ;;  %v13766_v41 = vld [vmem:[#allocation2 + $0x18] sm:$0x1]  ;;  %v4428_v12 = vrot.slane %v4426_v14, 5  ;;  %v4431_v56 = vshrl.u32 %v4341_v62, 16 }
 0x33b   : > { %v4409_v3 = vrot.slane %v4407_v38, 4  ;;  %v4412_v27 = vrot.slane %v4410_v8, 5  ;;  %v4418_v4 = vrot.slane %v4416_v23, 5  ;;  %v4422_v20 = vrot.slane %v4420_v50, 4  ;;  %v13777_v40 = vld [vmem:[#allocation2 + $0x20] sm:$0xf] }
 0x33c   : > { %11163 = vmatpush3.bf16.msra.mxu1 %v11771_v28  ;;  %v4434_v35 = vshll.u32 %v4341_v62, 16  ;;  %v4440_v1 = vshll.u32 %v13764_v16, 16  ;;  %v4444_v11 = vshrl.u32 %v13764_v16, 16  ;;  %v4433_v10 = vrot.slane %v4431_v56, 4  ;;  %v13779_v2 = vld [vmem:[#allocation2 + $0x24] sm:$0xf] }
 0x33d   : > { %11164 = vmatprep.subr.bf16.mxu1 %v11772_v32  ;;  %v4413_v33 = vor.u32 %v4412_v27, %v4409_v3  ;;  %v4423_v22 = vor.u32 %v4422_v20, %v4418_v4  ;;  %v4450_v44 = vshll.u32 %v13766_v41, 16  ;;  %v11775_v34 = vld [vmem:[#allocation8 + $0x50] sm:$0xff]   ;;  %v13781_v55 = vld [vmem:[#allocation2 + $0x28] sm:$0x1]  ;;  %v4455_v49 = vshrl.u32 %v13777_v40, 16  ;;  %v11783_v25 = vld [vmem:[#allocation8 + $0xb8] sm:$0xff]  }
 0x33e   : > { %v4436_v9 = vrot.slane %v4434_v35, 5  ;;  %v4442_v29 = vrot.slane %v4440_v1, 5  ;;  %v4446_v53 = vrot.slane %v4444_v11, 4  ;;  %v4458_v5 = vshll.u32 %v13777_v40, 16  ;;  %v13788_v52 = vld [vmem:[#allocation2 + $0x30] sm:$0xf]  ;;  %11256 = vmatprep.subr.bf16.mxu0 %v11783_v25 }
 0x33f   : > { %v4414_v58 = vrot.slane %v4413_v33, 4  ;;  %v4424_v13 = vrot.slane %v4423_v22, 4  ;;  %v4452_v57 = vrot.slane %v4450_v44, 5  ;;  %v4464_v37 = vshll.u32 %v13779_v2, 16  ;;  %v13790_v63 = vld [vmem:[#allocation2 + $0x34] sm:$0xf]  ;;  %11257 = vmatpush3.bf16.msra.mxu0 %v11783_v25 }
 0x340   : > { %11165 = vmatpush3.bf16.msra.mxu1 %v11772_v32  ;;  %v4437_v39 = vor.u32 %v4436_v9, %v4433_v10  ;;  %v4447_v0 = vor.u32 %v4446_v53, %v4442_v29  ;;  %v4457_v43 = vrot.slane %v4455_v49, 4  ;;  %v4460_v42 = vrot.slane %v4458_v5, 5  ;;  %v11776_v21 = vld [vmem:[#allocation8 + $0x48] sm:$0xff]   ;;  %v13801_v59 = vld [vmem:[#allocation2 + $0x38] sm:$0x1]  ;;  %v11777_v38 = vld [vmem:[#allocation8 + $0x40] sm:$0xff]  }
 0x341   : > { %11166 = vmatprep.subr.bf16.mxu1 %v11773_v18  ;;  %v4419_v51 = vsel %vm13772_vm11, %v4414_v58, %v4418_v4  ;;  %v4429_v26 = vsel %vm13772_vm11, %v4424_v13, %v4428_v12  ;;  %v4468_v61 = vshrl.u32 %v13779_v2, 16  ;;  %v4466_v17 = vrot.slane %v4464_v37, 5  ;;  %v13809_v14 = vld [vmem:[#allocation2 + $0x44] sm:$0xf]  ;;  %v13812_v20 = vld [vmem:[#allocation2 + $0x48] sm:$0x1] }
 0x342   : > { %v9827_v46 = vcombine.low %v4419_v51, %v4429_v26  ;;  %v4438_v15 = vrot.slane %v4437_v39, 4  ;;  %v4448_v19 = vrot.slane %v4447_v0, 4  ;;  %v4461_v48 = vor.u32 %v4460_v42, %v4457_v43  ;;  %v13814_v12 = vld [vmem:[#allocation2 + $0x50] sm:$0xf]  ;;  %v11786_v13 = vld [vmem:[#allocation8 + $0xa8] sm:$0xff]   ;;  %s9333_s8 = scalar_lea.sflag [#allocation5], %s12195_s16 }
 0x343   : > { %v4470_v54 = vrot.slane %v4468_v61, 4  ;;  %v4474_v47 = vshll.u32 %v13781_v55, 16  ;;  %v4479_v7 = vshrl.u32 %v13788_v52, 16  ;;  %v4482_v28 = vshll.u32 %v13788_v52, 16  ;;  %v11784_v11 = vld [vmem:[#allocation8 + $0xb0] sm:$0xff]  }
 0x344   : > { %11167 = vmatpush3.bf16.msra.mxu1 %v11773_v18  ;;  %11176 = vmatprep.mubr.bf16.mxu1 %v9827_v46  ;;  %v4443_v24 = vsel %vm13772_vm11, %v4438_v15, %v4442_v29  ;;  %v4453_v31 = vsel %vm13772_vm11, %v4448_v19, %v4452_v57  ;;  %v4488_v32 = vshll.u32 %v13790_v63, 16  ;;  %v13805_v18 = vld [vmem:[#allocation2 + $0x40] sm:$0xf]  ;;  %v4492_v4 = vshrl.u32 %v13790_v63, 16  ;;  %v11778_v57 = vld [vmem:[#allocation8 + $0x38] sm:$0xff]  }
 0x345   : > { %11168 = vmatprep.subr.bf16.mxu1 %v11774_v60  ;;  %v13807_v8 = vcombine.low %v4443_v24, %v4453_v31  ;;  %v4471_v23 = vor.u32 %v4470_v54, %v4466_v17  ;;  %v4476_v50 = vrot.slane %v4474_v47, 5  ;;  %v4481_v62 = vrot.slane %v4479_v7, 4  ;;  %11258 = vmatprep.subr.bf16.mxu0 %v11784_v11  ;;  %v13825_v0 = vld [vmem:[#allocation2 + $0x54] sm:$0xf]  ;;  %v13828_v42 = vld [vmem:[#allocation2 + $0x58] sm:$0x1] }
 0x346   : > { %v4484_v3 = vrot.slane %v4482_v28, 5  ;;  %v4490_v27 = vrot.slane %v4488_v32, 5  ;;  %v4498_v35 = vshll.u32 %v13801_v59, 16  ;;  %v4503_v1 = vshrl.u32 %v13805_v18, 16  ;;  %11259 = vmatpush3.bf16.msra.mxu0 %v11784_v11  ;;  %v11787_v24 = vld [vmem:[#allocation8 + $0xa0] sm:$0xff]  }
 0x347   : > { %v4472_v33 = vrot.slane %v4471_v23, 4  ;;  %v4494_v10 = vrot.slane %v4492_v4, 4  ;;  %v4506_v44 = vshll.u32 %v13805_v18, 16  ;;  %v4516_v53 = vshrl.u32 %v13809_v14, 16  ;;  %11260 = vmatprep.subr.bf16.mxu0 %v11786_v13 }
 0x348   : > { %11169 = vmatpush3.bf16.msra.mxu1 %v11774_v60  ;;  %v4462_v60 = vrot.slane %v4461_v48, 4  ;;  %v4485_v22 = vor.u32 %v4484_v3, %v4481_v62  ;;  %v4500_v9 = vrot.slane %v4498_v35, 5  ;;  %v4505_v29 = vrot.slane %v4503_v1, 4  ;;  %v13836_v48 = vld [vmem:[#allocation2 + $0x64] sm:$0xf]  ;;  %v11789_v1 = vld [vmem:[#allocation8 + $0x98] sm:$0xff]  }
 0x349   : > { %11170 = vmatprep.subr.bf16.mxu1 %v11775_v34  ;;  %v4477_v58 = vsel %vm13772_vm11, %v4472_v33, %v4476_v50  ;;  %v4495_v51 = vor.u32 %v4494_v10, %v4490_v27  ;;  %v4508_v39 = vrot.slane %v4506_v44, 5  ;;  %v4518_v26 = vrot.slane %v4516_v53, 4  ;;  %v11779_v50 = vld [vmem:[#allocation8 + $0x30] sm:$0xff]   ;;  %v13847_v33 = vld [vmem:[#allocation2 + $0x68] sm:$0x1] }
 0x34a   : > { %v4467_v56 = vsel %vm13772_vm11, %v4462_v60, %v4466_v17  ;;  %v4486_v5 = vrot.slane %v4485_v22, 4  ;;  %v4522_v43 = vshll.u32 %v13812_v20, 16  ;;  %v4527_v61 = vshrl.u32 %v13814_v12, 16  ;;  %11261 = vmatpush3.bf16.msra.mxu0 %v11786_v13  ;;  %v11780_v53 = vld [vmem:[#allocation8 + $0x28] sm:$0xff]  }
 0x34b   : > { %v9829_v49 = vcombine.low %v4467_v56, %v4477_v58  ;;  %v4496_v15 = vrot.slane %v4495_v51, 4  ;;  %v4509_v19 = vor.u32 %v4508_v39, %v4505_v29  ;;  %v4530_v17 = vshll.u32 %v13814_v12, 16  ;;  %11262 = vmatprep.subr.bf16.mxu0 %v11787_v24 }
 0x34c   : > { %11171 = vmatpush3.bf16.msra.mxu1 %v11775_v34  ;;  %v4512_v34 = vshll.u32 %v13809_v14, 16  ;;  %v4491_v46 = vsel %vm13772_vm11, %v4486_v5, %v4490_v27  ;;  %v4524_v47 = vrot.slane %v4522_v43, 5  ;;  %v4529_v7 = vrot.slane %v4527_v61, 4  ;;  %v13857_v5 = vld [vmem:[#allocation2 + $0x74] sm:$0xf] }
 0x34d   : > { %11172 = vmatprep.subr.bf16.mxu1 %v11776_v21  ;;  %v4536_v25 = vshll.u32 %v13825_v0, 16  ;;  %v4501_v31 = vsel %vm13772_vm11, %v4496_v15, %v4500_v9  ;;  %v4510_v28 = vrot.slane %v4509_v19, 4  ;;  %v4532_v32 = vrot.slane %v4530_v17, 5  ;;  %v13863_v43 = vld [vmem:[#allocation2 + $0xa0] sm:$0xf]  ;;  %v11790_v19 = vld [vmem:[#allocation8 + $0x90] sm:$0xff]  }
 0x34e   : > { %v4514_v37 = vrot.slane %v4512_v34, 5  ;;  %v4540_v60 = vshrl.u32 %v13825_v0, 16  ;;  %v13842_v23 = vcombine.low %v4491_v46, %v4501_v31  ;;  %v4546_v27 = vshll.u32 %v13828_v42, 16  ;;  %v13855_v34 = vld [vmem:[#allocation2 + $0x70] sm:$0xf]  ;;  %11263 = vmatpush3.bf16.msra.mxu0 %v11787_v24 }
 0x34f   : > { %v4538_v3 = vrot.slane %v4536_v25, 5  ;;  %v4533_v4 = vor.u32 %v4532_v32, %v4529_v7  ;;  %v4560_v44 = vshll.u32 %v13836_v48, 16  ;;  %v4564_v39 = vshrl.u32 %v13836_v48, 16  ;;  %v13869_v15 = vld [vmem:[#allocation2 + $0xa4] sm:$0xf]  ;;  %11264 = vmatprep.subr.bf16.mxu0 %v11789_v1 }
 0x350   : > { %11173 = vmatpush3.bf16.msra.mxu1 %v11776_v21  ;;  %v13834_v21 = vld [vmem:[#allocation2 + $0x60] sm:$0xf]  ;;  %v4519_v54 = vor.u32 %v4518_v26, %v4514_v37  ;;  %v4542_v56 = vrot.slane %v4540_v60, 4  ;;  %v4548_v22 = vrot.slane %v4546_v27, 5  ;;  %v13861_v26 = vld [vmem:[#allocation2 + $0x78] sm:$0x1] }
 0x351   : > { %11174 = vmatprep.subr.bf16.mxu1 %v11777_v38  ;;  %v4551_v35 = vshrl.u32 %v13834_v21, 16  ;;  %v4554_v10 = vshll.u32 %v13834_v21, 16  ;;  %v4534_v9 = vrot.slane %v4533_v4, 4  ;;  %v4562_v51 = vrot.slane %v4560_v44, 5  ;;  %v11781_v32 = vld [vmem:[#allocation8 + $0x20] sm:$0xff]  }
 0x352   : > { %v4520_v62 = vrot.slane %v4519_v54, 4  ;;  %v4543_v29 = vor.u32 %v4542_v56, %v4538_v3  ;;  %v4575_v61 = vshrl.u32 %v13855_v34, 16  ;;  %v4578_v46 = vshll.u32 %v13855_v34, 16  ;;  %11265 = vmatpush3.bf16.msra.mxu0 %v11789_v1 }
 0x353   : > { %v4553_v13 = vrot.slane %v4551_v35, 4  ;;  %v4566_v54 = vrot.slane %v4564_v39, 4  ;;  %v4584_v7 = vshll.u32 %v13857_v5, 16  ;;  %v4594_v56 = vshll.u32 %v13861_v26, 16  ;;  %11266 = vmatprep.subr.bf16.mxu0 %v11790_v19 }
 0x354   : > { %11175 = vmatpush3.bf16.msra.mxu1 %v11777_v38  ;;  %v4515_v38 = vsel %vm13772_vm11, %v4510_v28, %v4514_v37  ;;  %v4525_v11 = vsel %vm13772_vm11, %v4520_v62, %v4524_v47  ;;  %v4570_v37 = vshll.u32 %v13847_v33, 16  ;;  %v4577_v24 = vrot.slane %v4575_v61, 4  ;;  %v13893_v61 = vld [vmem:[#allocation2 + $0xb8] sm:$0x1] }
 0x355   : > { %11208 = vmatprep.subr.bf16.mxu1 %v11778_v57  ;;  %v9831_v58 = vcombine.low %v4515_v38, %v4525_v11  ;;  %v4580_v31 = vrot.slane %v4578_v46, 5  ;;  %v4588_v28 = vshrl.u32 %v13857_v5, 16  ;;  %v4586_v27 = vrot.slane %v4584_v7, 5  ;;  %v11792_v11 = vld [vmem:[#allocation8 + $0x88] sm:$0xff]   ;;  %16323 = vst [vmem:[#allocation26_spill] sm:$0xff] %v13893_v61  ;;  %v11782_v46 = vld [vmem:[#allocation8 + $0x18] sm:$0xff]  }
 0x356   : > { %v4572_v47 = vrot.slane %v4570_v37, 5  ;;  %v4599_v35 = vshrl.u32 %v13863_v43, 16  ;;  %v4602_v44 = vshll.u32 %v13863_v43, 16  ;;  %v4608_v1 = vshll.u32 %v13869_v15, 16  ;;  %v13888_v37 = vld [vmem:[#allocation2 + $0xb4] sm:$0xf]  ;;  %11267 = vmatpush3.bf16.msra.mxu0 %v11790_v19 }
 0x357   : > { %11177 = vmatmul.mubr.bf16.vlgmr.msra.gmra.mxu1 %v13807_v8  ;;  %v4556_v8 = vrot.slane %v4554_v10, 5  ;;  %v4581_v38 = vor.u32 %v4580_v31, %v4577_v24  ;;  %v4590_v4 = vrot.slane %v4588_v28, 4  ;;  %v13898_v7 = vld [vmem:[#allocation2 + $0xc0] sm:$0xf]  ;;  %11268 = vmatprep.subr.bf16.mxu0 %v11792_v11  ;;  %v11785_v19 = vld [vmem:[#allocation8 + $0x10] sm:$0xff]  }
 0x358   : > { %11209 = vmatpush3.bf16.msra.mxu1 %v11778_v57  ;;  %11180 = vmatprep.mubr.bf16.mxu1 %v9829_v49  ;;  %v4539_v57 = vsel %vm13772_vm11, %v4534_v9, %v4538_v3  ;;  %v4544_v49 = vrot.slane %v4543_v29, 4  ;;  %v4567_v3 = vor.u32 %v4566_v54, %v4562_v51  ;;  %v13886_v9 = vld [vmem:[#allocation2 + $0xb0] sm:$0xf]  ;;  %v4601_v39 = vrot.slane %v4599_v35, 4 }
 0x359   : > { %11210 = vmatprep.subr.bf16.mxu1 %v11779_v50  ;;  %v4557_v17 = vor.u32 %v4556_v8, %v4553_v13  ;;  %v4582_v29 = vrot.slane %v4581_v38, 4  ;;  %v4591_v13 = vor.u32 %v4590_v4, %v4586_v27  ;;  %v4596_v8 = vrot.slane %v4594_v56, 5  ;;  %v13908_v56 = vld [vmem:[#allocation8 + $0x138] sm:$0xff]  }
 0x35a   : > { %v4549_v25 = vsel %vm13772_vm11, %v4544_v49, %v4548_v22  ;;  %v4568_v10 = vrot.slane %v4567_v3, 4  ;;  %v4612_v49 = vshrl.u32 %v13869_v15, 16  ;;  %v4623_v31 = vshrl.u32 %v13886_v9, 16  ;;  %11269 = vmatpush3.bf16.msra.mxu0 %v11792_v11 }
 0x35b   : > { %v13875_v60 = vcombine.low %v4539_v57, %v4549_v25  ;;  %v4558_v62 = vrot.slane %v4557_v17, 4  ;;  %v4610_v57 = vrot.slane %v4608_v1, 5  ;;  %v4592_v17 = vrot.slane %v4591_v13, 4 }
 0x35c   : > { %11211 = vmatpush3.bf16.msra.mxu1 %v11779_v50  ;;  %v13878_v50 = vld [vmem:[#allocation2 + $0xa8] sm:$0x1]  ;;  %v4614_v24 = vrot.slane %v4612_v49, 4  ;;  %v4626_v28 = vshll.u32 %v13886_v9, 16  ;;  %v4632_v38 = vshll.u32 %v13888_v37, 16  ;;  %v4636_v4 = vshrl.u32 %v13888_v37, 16 }
 0x35d   : > { %11212 = vmatprep.subr.bf16.mxu1 %v11780_v53  ;;  %v4563_v22 = vsel %vm13772_vm11, %v4558_v62, %v4562_v51  ;;  %v4604_v51 = vrot.slane %v4602_v44, 5  ;;  %v4618_v54 = vshll.u32 %v13878_v50, 16  ;;  %v13902_v62 = vld [vmem:[#allocation2 + $0xc4] sm:$0xf]  ;;  %v4597_v3 = vsel %vm13772_vm11, %v4592_v17, %v4596_v8  ;;  %v13916_v17 = vld [vmem:[#allocation2 + $0xc8] sm:$0x1] }
 0x35e   : > { %v4625_v44 = vrot.slane %v4623_v31, 4  ;;  %v4628_v1 = vrot.slane %v4626_v28, 5  ;;  %v4638_v13 = vrot.slane %v4636_v4, 4  ;;  %16324 = vst [vmem:[#allocation18_spill] sm:$0xff] %v13916_v17  ;;  %v4660_v31 = vshrl.u32 %v13902_v62, 16 }
 0x35f   : > { %11181 = vmatmul.mubr.bf16.gmra.mxu1 %v13842_v23  ;;  %v4573_v23 = vsel %vm13772_vm11, %v4568_v10, %v4572_v47  ;;  %v11793_v47 = vld [vmem:[#allocation8 + $0x80] sm:$0xff]   ;;  %v4605_v25 = vor.u32 %v4604_v51, %v4601_v39  ;;  %v4615_v10 = vor.u32 %v4614_v24, %v4610_v57  ;;  %v4642_v39 = vshll.u32 %v13893_v61, 16  ;;  %v13924_v28 = vld [vmem:[#allocation2 + $0xd4] sm:$0xf]  ;;  %v5386_v61 = vld [vmem:[#allocation2 + $0x10] sm:$0xe] }
 0x360   : > { %11184 = vmatprep.mubr.bf16.mxu1 %v9831_v58  ;;  %11213 = vmatpush3.bf16.msra.mxu1 %v11780_v53  ;;  %v9833_v58 = vcombine.low %v4563_v22, %v4573_v23  ;;  %v4587_v53 = vsel %vm13772_vm11, %v4582_v29, %v4586_v27  ;;  %v4620_v27 = vrot.slane %v4618_v54, 5  ;;  %v4634_v29 = vrot.slane %v4632_v38, 5 }
 0x361   : > { %11214 = vmatprep.subr.bf16.mxu1 %v11781_v32  ;;  %v9834_v35 = vcombine.low %v4587_v53, %v4597_v3  ;;  %v4606_v22 = vrot.slane %v4605_v25, 4  ;;  %11270 = vmatprep.subr.bf16.mxu0 %v11793_v47  ;;  %v4616_v8 = vrot.slane %v4615_v10, 4  ;;  %v4647_v23 = vshrl.u32 %v13898_v7, 16  ;;  %v13919_v25 = vld [vmem:[#allocation2 + $0xd0] sm:$0xf] }
 0x362   : > { %v4650_v51 = vshll.u32 %v13898_v7, 16  ;;  %v4629_v49 = vor.u32 %v4628_v1, %v4625_v44  ;;  %v4639_v53 = vor.u32 %v4638_v13, %v4634_v29  ;;  %v4644_v11 = vrot.slane %v4642_v39, 5  ;;  %11271 = vmatpush3.bf16.msra.mxu0 %v11793_v47  ;;  %v13931_v13 = vld [vmem:[#allocation2 + $0xe0] sm:$0xf] }
 0x363   : > { %v4656_v54 = vshll.u32 %v13902_v62, 16  ;;  %11352 = vmatprep.subr.bf16.mxu0 %v13908_v56  ;;  %v4662_v44 = vrot.slane %v4660_v31, 4  ;;  %v4671_v1 = vshrl.u32 %v13919_v25, 16  ;;  %16326 = vst [vmem:[#allocation19_spill] sm:$0xff] %v13931_v13  ;;  %v11791_v39 = vld [vmem:[#allocation8] sm:$0xff]  }
 0x364   : > { %11215 = vmatpush3.bf16.msra.mxu1 %v11781_v32  ;;  %v4611_v32 = vsel %vm13772_vm11, %v4606_v22, %v4610_v57  ;;  %v4649_v57 = vrot.slane %v4647_v23, 4  ;;  %v4652_v24 = vrot.slane %v4650_v51, 5  ;;  %v4640_v38 = vrot.slane %v4639_v53, 4  ;;  %v13926_v22 = vld [vmem:[#allocation2 + $0xd8] sm:$0x1] }
 0x365   : > { %11216 = vmatprep.subr.bf16.mxu1 %v11782_v46  ;;  %v4658_v4 = vrot.slane %v4656_v54, 5  ;;  %16325 = vst [vmem:[#allocation15_spill] sm:$0xff] %v13926_v22  ;;  %v4680_v23 = vshll.u32 %v13924_v28, 16  ;;  %v13939_v51 = vld [vmem:[#allocation2 + $0xe4] sm:$0xf] }
 0x366   : > { %v4653_v10 = vor.u32 %v4652_v24, %v4649_v57  ;;  %16327 = vst [vmem:[#allocation20_spill] sm:$0xff] %v13939_v51  ;;  %v4673_v57 = vrot.slane %v4671_v1, 4  ;;  %v4698_v1 = vshll.u32 %v13931_v13, 16 }
 0x367   : > { %11185 = vmatmul.mubr.bf16.gmra.mxu1 %v13875_v60  ;;  %v4621_v60 = vsel %vm13772_vm11, %v4616_v8, %v4620_v27  ;;  %v4666_v27 = vshll.u32 %v13916_v17, 16  ;;  %v4674_v8 = vshll.u32 %v13919_v25, 16  ;;  %v4663_v54 = vor.u32 %v4662_v44, %v4658_v4 }
 0x368   : > { %11188 = vmatprep.mubr.bf16.mxu1 %v9833_v58  ;;  %11217 = vmatpush3.bf16.msra.mxu1 %v11782_v46  ;;  %v11788_v58 = vld [vmem:[#allocation8 + $0x8] sm:$0xff]   ;;  %v9835_v3 = vcombine.low %v4611_v32, %v4621_v60  ;;  %v4630_v46 = vrot.slane %v4629_v49, 4  ;;  %v4645_v32 = vsel %vm13772_vm11, %v4640_v38, %v4644_v11  ;;  %v4654_v53 = vrot.slane %v4653_v10, 4  ;;  %v13944_v11 = vld [vmem:[#allocation2 + $0xf0] sm:$0xf] }
 0x369   : > { %11218 = vmatprep.subr.bf16.mxu1 %v11785_v19  ;;  %v4668_v60 = vrot.slane %v4666_v27, 5  ;;  %v4676_v24 = vrot.slane %v4674_v8, 5  ;;  %v4682_v31 = vrot.slane %v4680_v23, 5  ;;  %16329 = vst [vmem:[#allocation22_spill] sm:$0xff] %v13944_v11  ;;  %v4664_v38 = vrot.slane %v4663_v54, 4 }
 0x36a   : > { %v4635_v47 = vsel %vm13772_vm11, %v4630_v46, %v4634_v29  ;;  %v4684_v29 = vshrl.u32 %v13924_v28, 16  ;;  %v13942_v46 = vld [vmem:[#allocation2 + $0xe8] sm:$0x1]  ;;  %v4695_v10 = vshrl.u32 %v13931_v13, 16  ;;  %v13960_v13 = vld [vmem:[#allocation2 + $0xf8] sm:$0x1] }
 0x36b   : > { %v9836_v49 = vcombine.low %v4635_v47, %v4645_v32  ;;  %16328 = vst [vmem:[#allocation21_spill] sm:$0xff] %v13942_v46  ;;  %v4690_v47 = vshll.u32 %v13926_v22, 16  ;;  %v4677_v44 = vor.u32 %v4676_v24, %v4673_v57  ;;  %v4704_v32 = vshll.u32 %v13939_v51, 16  ;;  %v13957_v24 = vld [vmem:[#allocation2 + $0xf4] sm:$0xf]  ;;  %16331 = vst [vmem:[#allocation16_spill] sm:$0xff] %v13960_v13 }
 0x36c   : > { %11219 = vmatpush3.bf16.msra.mxu1 %v11785_v19  ;;  %v4659_v19 = vsel %vm13772_vm11, %v4654_v53, %v4658_v4  ;;  %v4686_v27 = vrot.slane %v4684_v29, 4  ;;  %v4669_v8 = vsel %vm13772_vm11, %v4664_v38, %v4668_v60  ;;  %v4697_v23 = vrot.slane %v4695_v10, 4  ;;  %v13955_v53 = vld [vmem:[#allocation8 + $0xf8] sm:$0xff]   ;;  %16330 = vst [vmem:[#allocation23_spill] sm:$0xff] %v13957_v24 }
 0x36d   : > { %11220 = vmatprep.subr.bf16.mxu1 %v11788_v58  ;;  %v4708_v4 = vshrl.u32 %v13939_v51, 16  ;;  %v9837_v54 = vcombine.low %v4659_v19, %v4669_v8  ;;  %v4678_v22 = vrot.slane %v4677_v44, 4  ;;  %v4700_v57 = vrot.slane %v4698_v1, 5  ;;  %v13966_v44 = vld [vmem:[#allocation2 + $0x100] sm:$0xf] }
 0x36e   : > { %v4706_v29 = vrot.slane %v4704_v32, 5  ;;  %v4719_v60 = vshrl.u32 %v13944_v11, 16  ;;  %v4722_v19 = vshll.u32 %v13944_v11, 16  ;;  %16332 = vst [vmem:[#allocation24_spill] sm:$0xff] %v13966_v44 }
 0x36f   : > { %11189 = vmatmul.mubr.bf16.gmra.mxu1 %v9834_v35  ;;  %v4692_v35 = vrot.slane %v4690_v47, 5  ;;  %v4710_v17 = vrot.slane %v4708_v4, 4  ;;  %v4683_v38 = vsel %vm13772_vm11, %v4678_v22, %v4682_v31  ;;  %v4701_v10 = vor.u32 %v4700_v57, %v4697_v23  ;;  %v13975_v57 = vld [vmem:[#allocation2 + $0x108] sm:$0x1] }
 0x370   : > { %11192 = vmatprep.mubr.bf16.mxu1 %v9835_v3  ;;  %11221 = vmatpush3.bf16.msra.mxu1 %v11788_v58  ;;  %v4687_v3 = vor.u32 %v4686_v27, %v4682_v31  ;;  %v4714_v58 = vshll.u32 %v13942_v46, 16  ;;  %v13968_v27 = vld [vmem:[#allocation2 + $0x104] sm:$0xf]  ;;  %v4721_v8 = vrot.slane %v4719_v60, 4  ;;  %v4728_v4 = vshll.u32 %v13957_v24, 16  ;;  %16334 = vst [vmem:[#allocation25_spill] sm:$0xff] %v13975_v57 }
 0x371   : > { %11222 = vmatprep.subr.bf16.mxu1 %v11791_v39  ;;  %16333 = vst [vmem:[#allocation17_spill] sm:$0xff] %v13968_v27  ;;  %v4711_v1 = vor.u32 %v4710_v17, %v4706_v29  ;;  %v4702_v31 = vrot.slane %v4701_v10, 4  ;;  %v4724_v23 = vrot.slane %v4722_v19, 5  ;;  %v4738_v60 = vshll.u32 %v13960_v13, 16  ;;  %v13978_v46 = vld [vmem:[#allocation2 + $0x110] sm:$0xf] }
 0x372   : > { %v4688_v47 = vrot.slane %v4687_v3, 4  ;;  %v4716_v32 = vrot.slane %v4714_v58, 5  ;;  %v4732_v3 = vshrl.u32 %v13957_v24, 16  ;;  %v4730_v58 = vrot.slane %v4728_v4, 5  ;;  %16335 = vst [vmem:[#allocation27_spill] sm:$0xff] %v13978_v46 }
 0x373   : > { %v4712_v17 = vrot.slane %v4711_v1, 4  ;;  %v4707_v11 = vsel %vm13772_vm11, %v4702_v31, %v4706_v29  ;;  %v4725_v51 = vor.u32 %v4724_v23, %v4721_v8  ;;  %v13983_v10 = vld [vmem:[#allocation2 + $0x114] sm:$0xf]  ;;  %v4746_v19 = vshll.u32 %v13966_v44, 16  ;;  %v13991_v23 = vld [vmem:[#allocation2 + $0x118] sm:$0x1] }
 0x374   : > { %11223 = vmatpush3.bf16.msra.mxu1 %v11791_v39  ;;  %v4693_v22 = vsel %vm13772_vm11, %v4688_v47, %v4692_v35  ;;  %v4734_v35 = vrot.slane %v4732_v3, 4  ;;  %v4743_v47 = vshrl.u32 %v13966_v44, 16  ;;  %16336 = vst [vmem:[#allocation28_spill] sm:$0xff] %v13983_v10  ;;  %v4752_v1 = vshll.u32 %v13968_v27, 16 }
 0x375   : > { %11304 = vmatprep.subr.bf16.mxu1 %v13955_v53  ;;  %v9838_v39 = vcombine.low %v4683_v38, %v4693_v22  ;;  %v4740_v38 = vrot.slane %v4738_v60, 5  ;;  %v4726_v22 = vrot.slane %v4725_v51, 4  ;;  %v4748_v24 = vrot.slane %v4746_v19, 5 }
 0x376   : > { %v4745_v13 = vrot.slane %v4743_v47, 4  ;;  %v4754_v29 = vrot.slane %v4752_v1, 5  ;;  %v4756_v8 = vshrl.u32 %v13968_v27, 16  ;;  %v4762_v31 = vshll.u32 %v13975_v57, 16 }
 0x377   : > { %11193 = vmatmul.mubr.bf16.gmra.mxu1 %v9836_v49  ;;  %v4717_v49 = vsel %vm13772_vm11, %v4712_v17, %v4716_v32  ;;  %v4731_v32 = vsel %vm13772_vm11, %v4726_v22, %v4730_v58  ;;  %v4767_v17 = vshrl.u32 %v13978_v46, 16  ;;  %v4770_v60 = vshll.u32 %v13978_v46, 16 }
 0x378   : > { %11196 = vmatprep.mubr.bf16.mxu1 %v9837_v54  ;;  %v9839_v4 = vcombine.low %v4707_v11, %v4717_v49  ;;  %v4735_v54 = vor.u32 %v4734_v35, %v4730_v58  ;;  %v5385_v11 = vld [vmem:[#allocation2] sm:$0xe]  ;;  %v4749_v51 = vor.u32 %v4748_v24, %v4745_v13  ;;  %v4758_v35 = vrot.slane %v4756_v8, 4 }
 0x379   : > { %v4764_v47 = vrot.slane %v4762_v31, 5  ;;  %v4776_v49 = vshll.u32 %v13983_v10, 16  ;;  %v4769_v1 = vrot.slane %v4767_v17, 4  ;;  %v4772_v57 = vrot.slane %v4770_v60, 5 }
 0x37a   : > { %v4736_v3 = vrot.slane %v4735_v54, 4  ;;  %v4780_v44 = vshrl.u32 %v13983_v10, 16  ;;  %v4750_v22 = vrot.slane %v4749_v51, 4  ;;  %v4759_v54 = vor.u32 %v4758_v35, %v4754_v29 }
 0x37b   : > { %v4778_v27 = vrot.slane %v4776_v49, 5  ;;  %v4773_v46 = vor.u32 %v4772_v57, %v4769_v1  ;;  %v4786_v24 = vshll.u32 %v13991_v23, 16  ;;  %v9876_v17 = vrot.slane %v5386_v61, 9  ;;  %v5387_v49 = vld [vmem:[#allocation2 + $0x20] sm:$0xe] }
 0x37c   : > { %v4741_v19 = vsel %vm13772_vm11, %v4736_v3, %v4740_v38  ;;  %v4782_v13 = vrot.slane %v4780_v44, 4  ;;  %v9875_v38 = vrot.slane %v5385_v11, 9  ;;  %v4760_v31 = vrot.slane %v4759_v54, 4 }
 0x37d   : > { %v9840_v58 = vcombine.low %v4731_v32, %v4741_v19  ;;  %v5438_v32 = vrot.slane %v13755_v45, 5  ;;  %v5441_v3 = vrot.slane %v13757_v6, 5  ;;  %v4788_v44 = vrot.slane %v4786_v24, 5 }
 0x37e   : > { %v4783_v57 = vor.u32 %v4782_v13, %v4778_v27  ;;  %v4765_v60 = vsel %vm13772_vm11, %v4760_v31, %v4764_v47  ;;  %v5445_v11 = vrot.slane %v13764_v16, 5  ;;  %v5448_v1 = vrot.slane %v13766_v41, 5 }
 0x37f   : > { %11197 = vmatmul.mubr.bf16.gmra.mxu1 %v9838_v39  ;;  %v4755_v39 = vsel %vm13772_vm11, %v4750_v22, %v4754_v29  ;;  %v5439_v51 = vsel %vm14004_vm14, %v9875_v38, %v5438_v32  ;;  %v5440_v35 = vrot.slane %v5438_v32, 4  ;;  %v5388_v22 = vld [vmem:[#allocation2 + $0x30] sm:$0xe]  ;;  %v9851_v6 = vcombine.low %v13753_v36, %v13755_v45 }
 0x380   : > { %11200 = vmatprep.mubr.bf16.mxu1 %v9839_v4  ;;  %v4774_v4 = vrot.slane %v4773_v46, 4  ;;  %v9841_v29 = vcombine.low %v4755_v39, %v4765_v60  ;;  %v4784_v19 = vrot.slane %v4783_v57, 4  ;;  %v5446_v46 = vsel %vm14004_vm14, %v9876_v17, %v5445_v11  ;;  %v5389_v39 = vld [vmem:[#allocation2 + $0x40] sm:$0xe] }
 0x381   : > { %v5442_v61 = vsel %vm14004_vm14, %v5440_v35, %v5441_v3  ;;  %v5447_v47 = vrot.slane %v5445_v11, 4  ;;  %v9854_v13 = vcombine.low %v13788_v52, %v13790_v63  ;;  %v9877_v24 = vrot.slane %v5387_v49, 9 }
 0x382   : > { %v4779_v54 = vsel %vm13772_vm11, %v4774_v4, %v4778_v27  ;;  %v9891_v16 = vcombine.low %v5439_v51, %v5442_v61  ;;  %v4789_v41 = vsel %vm13772_vm11, %v4784_v19, %v4788_v44  ;;  %v5452_v45 = vrot.slane %v13779_v2, 5 }
 0x383   : > { %v5449_v36 = vsel %vm14004_vm14, %v5447_v47, %v5448_v1  ;;  %v5455_v38 = vrot.slane %v13781_v55, 5  ;;  %v9878_v31 = vrot.slane %v5388_v22, 9  ;;  %v5459_v32 = vrot.slane %v13790_v63, 5  ;;  %v5391_v1 = vld [vmem:[#allocation2 + $0x60] sm:$0xe] }
 0x384   : > { %11272 = vmatprep.mubr.bf16.mxu0 %v9891_v16  ;;  %v9892_v27 = vcombine.low %v5446_v46, %v5449_v36  ;;  %v5462_v3 = vrot.slane %v13801_v59, 5  ;;  %v5453_v4 = vsel %vm14004_vm14, %v9877_v24, %v5452_v45  ;;  %v5454_v57 = vrot.slane %v5452_v45, 4  ;;  %v5390_v59 = vld [vmem:[#allocation2 + $0x50] sm:$0xe] }
 0x385   : > { %v9855_v44 = vcombine.low %v13805_v18, %v13809_v14  ;;  %v9856_v55 = vcombine.low %v13814_v12, %v13825_v0  ;;  %v5460_v17 = vsel %vm14004_vm14, %v9878_v31, %v5459_v32  ;;  %v5461_v60 = vrot.slane %v5459_v32, 4  ;;  %v6263_v45 = vld [vmem:[#allocation2 + $0x30] sm:$0xf] }
 0x386   : > { %11273 = vmatmul.mubr.bf16.vlgmr.msra.gmra.mxu0 %v9892_v27  ;;  %v9879_v51 = vrot.slane %v5389_v39, 9  ;;  %v5466_v35 = vrot.slane %v13809_v14, 5  ;;  %v9842_v11 = vcombine.low %v4779_v54, %v4789_v41  ;;  %v5456_v49 = vsel %vm14004_vm14, %v5454_v57, %v5455_v38  ;;  %v11811_v54 = vld [vmem:[#allocation8 + $0x128] sm:$0xff]   ;;  %v5392_v38 = vld [vmem:[#allocation2 + $0x70] sm:$0xe] }
 0x387   : > { %11201 = vmatmul.mubr.bf16.gmra.mxu1 %v9840_v58  ;;  %v11807_v58 = vld [vmem:[#allocation8 + $0x130] sm:$0xff]   ;;  %11353 = vmatpush3.bf16.msra.mxu0 %v13908_v56  ;;  %v5473_v19 = vrot.slane %v13825_v0, 5  ;;  %v9893_v22 = vcombine.low %v5453_v4, %v5456_v49  ;;  %v5463_v61 = vsel %vm14004_vm14, %v5461_v60, %v5462_v3  ;;  %v9880_v24 = vrot.slane %v5390_v59, 9  ;;  %v5393_v60 = vld [vmem:[#allocation2 + $0xa0] sm:$0xe]  ;;  %v11824_v57 = vld [vmem:[#allocation8 + $0x108] sm:$0xff]  }
 0x388   : > { %11204 = vmatprep.mubr.bf16.mxu1 %v9841_v29  ;;  %v5469_v29 = vrot.slane %v13812_v20, 5  ;;  %v5467_v46 = vsel %vm14004_vm14, %v9879_v51, %v5466_v35  ;;  %v5468_v47 = vrot.slane %v5466_v35, 4  ;;  %11354 = vmatprep.subr.bf16.mxu0 %v11807_v58  ;;  %v9894_v16 = vcombine.low %v5460_v17, %v5463_v61  ;;  %v11890_v51 = vld [vmem:[#allocation2 + $0x10] sm:$0xf]  ;;  %v11891_v35 = vld [vmem:[#allocation2 + $0x14] sm:$0xf] }
 0x389   : > { %v5475_v41 = vrot.slane %v5473_v19, 4  ;;  %11276 = vmatprep.mubr.bf16.mxu0 %v9893_v22  ;;  %v5476_v56 = vrot.slane %v13828_v42, 5  ;;  %v5480_v27 = vrot.slane %v13836_v48, 5  ;;  %v9881_v31 = vrot.slane %v5391_v1, 9  ;;  %v11815_v42 = vld [vmem:[#allocation8 + $0x120] sm:$0xff]   ;;  %v11799_v49 = vld [vmem:[#allocation8 + $0xf0] sm:$0xff]  }
 0x38a   : > { %v5470_v20 = vsel %vm14004_vm14, %v5468_v47, %v5469_v29  ;;  %v5483_v32 = vrot.slane %v13847_v33, 5  ;;  %v5487_v3 = vrot.slane %v13857_v5, 5  ;;  %v5494_v33 = vrot.slane %v13869_v15, 5  ;;  %v5394_v22 = vld [vmem:[#allocation2 + $0xb0] sm:$0xe] }
 0x38b   : > { %v9895_v39 = vcombine.low %v5467_v46, %v5470_v20  ;;  %11355 = vmatpush3.bf16.msra.mxu0 %v11807_v58  ;;  %v5482_v4 = vrot.slane %v5480_v27, 4  ;;  %v5474_v58 = vsel %vm14004_vm14, %v9880_v24, %v5473_v19  ;;  %v9852_v59 = vcombine.low %v11890_v51, %v11891_v35  ;;  %v16339_v51 = vld [vmem:[#allocation26_spill] sm:$0xff] }
 0x38c   : > { %11356 = vmatprep.subr.bf16.mxu0 %v11811_v54  ;;  %v9882_v29 = vrot.slane %v5392_v38, 9  ;;  %v5490_v1 = vrot.slane %v13861_v26, 5  ;;  %v5481_v19 = vsel %vm14004_vm14, %v9881_v31, %v5480_v27  ;;  %v5489_v46 = vrot.slane %v5487_v3, 4  ;;  %v11802_v38 = vld [vmem:[#allocation8 + $0xe8] sm:$0xff]   ;;  %v6265_v0 = vld [vmem:[#allocation2 + $0x38] sm:$0x1] }
 0x38d   : > { %v5484_v61 = vsel %vm14004_vm14, %v5482_v4, %v5483_v32  ;;  %v9883_v47 = vrot.slane %v5393_v60, 9  ;;  %v5501_v24 = vrot.slane %v13888_v37, 5  ;;  %v5497_v20 = vrot.slane %v13878_v50, 5  ;;  %v11820_v32 = vld [vmem:[#allocation8 + $0x110] sm:$0xff]  }
 0x38e   : > { %11277 = vmatmul.mubr.bf16.gmra.mxu0 %v9894_v16  ;;  %v14088_v27 = vsel %vm14004_vm14, %v9882_v29, %v5487_v3  ;;  %v5508_v31 = vrot.slane %v13902_v62, 5  ;;  %v5491_v50 = vsel %vm14004_vm14, %v5489_v46, %v5490_v1  ;;  %v9884_v60 = vrot.slane %v5394_v22, 9  ;;  %v16344_v22 = vld [vmem:[#allocation18_spill] sm:$0xff]  ;;  %v16345_v29 = vld [vmem:[#allocation15_spill] sm:$0xff] }
 0x38f   : > { %11205 = vmatmul.mubr.bf16.gmra.mxu1 %v9842_v11  ;;  %v9853_v11 = vcombine.low %v13777_v40, %v13779_v2  ;;  %11280 = vmatprep.mubr.bf16.mxu0 %v9895_v39  ;;  %v5395_v40 = vld [vmem:[#allocation2 + $0xc0] sm:$0xe]  ;;  %v11819_v2 = vld [vmem:[#allocation8 + $0x118] sm:$0xff]   ;;  %v9897_v39 = vcombine.low %v5481_v19, %v5484_v61  ;;  %v14096_v4 = vsel %vm14004_vm14, %v9883_v47, %v5494_v33  ;;  %v5503_v3 = vrot.slane %v5501_v24, 4  ;;  %v14108_v47 = vld [vmem:[#allocation2 + $0xf0] sm:$0xe] }
 0x390   : > { %11224 = vmatprep.mubr.bf16.mxu1 %v9851_v6  ;;  %v5477_v6 = vsel %vm14004_vm14, %v5475_v41, %v5476_v56  ;;  %11357 = vmatpush3.bf16.msra.mxu0 %v11811_v54  ;;  %v5496_v41 = vrot.slane %v5494_v33, 4  ;;  %v5396_v56 = vld [vmem:[#allocation2 + $0xd0] sm:$0xe]  ;;  %v5504_v35 = vrot.slane %v16339_v51, 5  ;;  %v9885_v1 = vrot.slane %v5395_v40, 9  ;;  %v11806_v40 = vld [vmem:[#allocation8 + $0xe0] sm:$0xff]  }
 0x391   : > { %11358 = vmatprep.subr.bf16.mxu0 %v11815_v42  ;;  %v9896_v16 = vcombine.low %v5474_v58, %v5477_v6  ;;  %v5515_v58 = vrot.slane %v13924_v28, 5  ;;  %v5397_v6 = vld [vmem:[#allocation2 + $0xe0] sm:$0xe]  ;;  %v5511_v61 = vrot.slane %v16344_v22, 5  ;;  %v5510_v51 = vrot.slane %v5508_v31, 4  ;;  %v16346_v22 = vld [vmem:[#allocation21_spill] sm:$0xff] }
 0x392   : > { %v5498_v33 = vsel %vm14004_vm14, %v5496_v41, %v5497_v20  ;;  %v9886_v54 = vrot.slane %v5396_v56, 9  ;;  %v5518_v17 = vrot.slane %v16345_v29, 5  ;;  %v9887_v19 = vrot.slane %v5397_v6, 9  ;;  %v16348_v6 = vld [vmem:[#allocation24_spill] sm:$0xff] }
 0x393   : > { %v5517_v26 = vrot.slane %v5515_v58, 4  ;;  %v9898_v41 = vcombine.low %v14088_v27, %v5491_v50  ;;  %v14115_v20 = vsel %vm14004_vm14, %v9884_v60, %v5501_v24  ;;  %v5525_v56 = vrot.slane %v16346_v22, 5  ;;  %v14127_v50 = vld [vmem:[#allocation2 + $0x100] sm:$0xe]  ;;  %v6257_v24 = vld [vmem:[#allocation2 + $0x10] sm:$0xf] }
 0x394   : > { %11359 = vmatpush3.bf16.msra.mxu0 %v11815_v42  ;;  %v16340_v42 = vld [vmem:[#allocation20_spill] sm:$0xff]  ;;  %v9899_v29 = vcombine.low %v14096_v4, %v5498_v33  ;;  %v14134_v4 = vsel %vm14004_vm14, %v9885_v1, %v5508_v31  ;;  %v14138_v60 = vsel %vm14004_vm14, %v5510_v51, %v5511_v61  ;;  %v11825_v33 = vld [vmem:[#allocation8 + $0x100] sm:$0xff]   ;;  %v14145_v22 = vld [vmem:[#allocation2 + $0x14] sm:$0xf]  ;;  %v9889_v14 = vrot.slane %v14127_v50, 9 }
 0x395   : > { %11360 = vmatprep.subr.bf16.mxu0 %v11819_v2  ;;  %v5522_v46 = vrot.slane %v16340_v42, 5  ;;  %v14152_v52 = vsel %vm14004_vm14, %v5517_v26, %v5518_v17  ;;  %v6309_v17 = vshll.u32 %v6257_v24, 16  ;;  %v6319_v1 = vshrl.u32 %v14145_v22, 16  ;;  %v6260_v61 = vld [vmem:[#allocation2 + $0x20] sm:$0xf] }
 0x396   : > { %11281 = vmatmul.mubr.bf16.gmra.mxu0 %v9896_v16  ;;  %v6330_v27 = vshrl.u32 %v6260_v61, 16  ;;  %v14192_v51 = vld [vmem:[#allocation2 + $0x28] sm:$0x1] }
 0x397   : > { %11225 = vmatmul.mubr.bf16.vlgmr.msra.gmra.mxu1 %v9852_v59  ;;  %v16341_v59 = vld [vmem:[#allocation19_spill] sm:$0xff]  ;;  %11284 = vmatprep.mubr.bf16.mxu0 %v9897_v39  ;;  %v5524_v39 = vrot.slane %v5522_v46, 4  ;;  %v14156_v63 = vsel %vm14004_vm14, %v9887_v19, %v5522_v46  ;;  %v6315_v19 = vshll.u32 %v14145_v22, 16  ;;  %v11814_v46 = vld [vmem:[#allocation8 + $0xd0] sm:$0xff]  }
 0x398   : > { %11305 = vmatpush3.bf16.msra.mxu1 %v13955_v53  ;;  %11228 = vmatprep.mubr.bf16.mxu1 %v9853_v11  ;;  %v16342_v53 = vld [vmem:[#allocation23_spill] sm:$0xff]  ;;  %v16343_v11 = vld [vmem:[#allocation22_spill] sm:$0xff] }
 0x399   : > { %11306 = vmatprep.subr.bf16.mxu1 %v11799_v49  ;;  %11361 = vmatpush3.bf16.msra.mxu0 %v11819_v2  ;;  %v5529_v16 = vrot.slane %v16342_v53, 5  ;;  %v16347_v2 = vld [vmem:[#allocation17_spill] sm:$0xff]  ;;  %v14163_v18 = vsel %vm14004_vm14, %v5524_v39, %v5525_v56 }
 0x39a   : > { %11362 = vmatprep.subr.bf16.mxu0 %v11820_v32  ;;  %v16351_v39 = vld [vmem:[#allocation25_spill] sm:$0xff] }
 0x39c   : > { %11307 = vmatpush3.bf16.msra.mxu1 %v11799_v49  ;;  %v14121_v49 = vsel %vm14004_vm14, %v5503_v3, %v5504_v35  ;;  %v14142_v3 = vsel %vm14004_vm14, %v9886_v54, %v5515_v58  ;;  %v9888_v35 = vrot.slane %v14108_v47, 9  ;;  %v16350_v54 = vld [vmem:[#allocation16_spill] sm:$0xff]  ;;  %v11810_v58 = vld [vmem:[#allocation8 + $0xd8] sm:$0xff]   ;;  %v9901_v47 = vcombine.low %v14134_v4, %v14138_v60 }
 0x39d   : > { %11308 = vmatprep.subr.bf16.mxu1 %v11802_v38  ;;  %11363 = vmatpush3.bf16.msra.mxu0 %v11820_v32  ;;  %v5532_v31 = vrot.slane %v16350_v54, 5  ;;  %v14159_v32 = vld [vmem:[#allocation2 + $0x110] sm:$0xe]  ;;  %v9900_v26 = vcombine.low %v14115_v20, %v14121_v49  ;;  %v14178_v20 = vld [vmem:[#allocation2 + $0x24] sm:$0xf]  ;;  %v14180_v49 = vld [vmem:[#allocation8 + $0x1b8] sm:$0xff]  }
 0x39e   : > { %11364 = vmatprep.subr.bf16.mxu0 %v11824_v57  ;;  %11285 = vmatmul.mubr.bf16.gmra.mxu0 %v9898_v41  ;;  %v5536_v41 = vrot.slane %v16347_v2, 5  ;;  %16352 = vst [vmem:[#allocation29_spill] sm:$0xff] %v14178_v20  ;;  %v14186_v50 = vsel %vm14004_vm14, %v9888_v35, %v5529_v16  ;;  %v6311_v4 = vrot.slane %v6309_v17, 5  ;;  %v9890_v60 = vrot.slane %v14159_v32, 9  ;;  %v14201_v17 = vld [vmem:[#allocation2 + $0x34] sm:$0xf] }
 0x39f   : > { %11229 = vmatmul.mubr.bf16.gmra.mxu1 %v9854_v13  ;;  %v5531_v13 = vrot.slane %v5529_v16, 4  ;;  %11288 = vmatprep.mubr.bf16.mxu0 %v9899_v29  ;;  %v14189_v54 = vrot.slane %v6315_v19, 5  ;;  %v6333_v29 = vshll.u32 %v6260_v61, 16  ;;  %v6339_v56 = vshll.u32 %v14178_v20, 16  ;;  %v11818_v61 = vld [vmem:[#allocation8 + $0xc8] sm:$0xff]  }
 0x3a0   : > { %11232 = vmatprep.mubr.bf16.mxu1 %v9855_v44  ;;  %11309 = vmatpush3.bf16.msra.mxu1 %v11802_v38  ;;  %v6306_v44 = vshrl.u32 %v6257_v24, 16  ;;  %v14168_v38 = vld [vmem:[#allocation2 + $0x18] sm:$0x1]  ;;  %v6343_v16 = vshrl.u32 %v14178_v20, 16  ;;  %v5546_v35 = vrot.slane %v13991_v23, 5  ;;  %v6354_v19 = vshrl.u32 %v6263_v45, 16 }
 0x3a1   : > { %11310 = vmatprep.subr.bf16.mxu1 %v11806_v40  ;;  %11365 = vmatpush3.bf16.msra.mxu0 %v11824_v57  ;;  %v6321_v57 = vrot.slane %v6319_v1, 4  ;;  %v6325_v32 = vshll.u32 %v14168_v38, 16  ;;  %v16353_v1 = vcombine.low %v13834_v21, %v13836_v48  ;;  %v14206_v36 = vrot.slane %v6339_v56, 5  ;;  %v6266_v21 = vld [vmem:[#allocation2 + $0x40] sm:$0xf] }
 0x3a2   : > { %11366 = vmatprep.subr.bf16.mxu0 %v11825_v33  ;;  %v6308_v24 = vrot.slane %v6306_v44, 4  ;;  %v6332_v44 = vrot.slane %v6330_v27, 4  ;;  %v6345_v12 = vrot.slane %v6343_v16, 4  ;;  %v14210_v23 = vsel %vm14004_vm14, %v5531_v13, %v5532_v31  ;;  %v14214_v48 = vld [vmem:[#allocation2 + $0x44] sm:$0xf] }
 0x3a3   : > { %v6349_v27 = vshll.u32 %v14192_v51, 16  ;;  %v5538_v56 = vrot.slane %v5536_v41, 4 }
 0x3a4   : > { %11311 = vmatpush3.bf16.msra.mxu1 %v11806_v40  ;;  %v5543_v40 = vrot.slane %v13983_v10, 5  ;;  %v6312_v20 = vor.u32 %v6311_v4, %v6308_v24  ;;  %v6335_v10 = vrot.slane %v6333_v29, 5  ;;  %v6356_v24 = vrot.slane %v6354_v19, 4 }
 0x3a5   : > { %11312 = vmatprep.subr.bf16.mxu1 %v11810_v58  ;;  %11367 = vmatpush3.bf16.msra.mxu0 %v11825_v33  ;;  %v6357_v33 = vshll.u32 %v6263_v45, 16  ;;  %v6363_v4 = vshll.u32 %v14201_v17, 16  ;;  %v6367_v45 = vshrl.u32 %v14201_v17, 16 }
 0x3a6   : > { %11448 = vmatprep.subr.bf16.mxu0 %v14180_v49  ;;  %11289 = vmatmul.mubr.bf16.gmra.mxu0 %v9900_v26  ;;  %v6336_v29 = vor.u32 %v6335_v10, %v6332_v44  ;;  %v5545_v13 = vrot.slane %v5543_v40, 4  ;;  %v14223_v16 = vrot.slane %v6312_v20, 4  ;;  %v6346_v26 = vor.u32 %v6345_v12, %v14206_v36 }
 0x3a7   : > { %11233 = vmatmul.mubr.bf16.gmra.mxu1 %v9856_v55  ;;  %v6322_v55 = vor.u32 %v6321_v57, %v14189_v54  ;;  %11292 = vmatprep.mubr.bf16.mxu0 %v9901_v47  ;;  %v6359_v31 = vrot.slane %v6357_v33, 5  ;;  %v11823_v57 = vld [vmem:[#allocation8 + $0xc0] sm:$0xff]   ;;  %v14230_v10 = vrot.slane %v6349_v27, 5  ;;  %v6378_v47 = vshrl.u32 %v6266_v21, 16  ;;  %v14238_v33 = vld [vmem:[#allocation2 + $0x48] sm:$0x1] }
 0x3a8   : > { %11236 = vmatprep.mubr.bf16.mxu1 %v16353_v1  ;;  %11313 = vmatpush3.bf16.msra.mxu1 %v11810_v58  ;;  %v14219_v58 = vsel %vm14004_vm14, %v9889_v14, %v5536_v41  ;;  %v14225_v1 = vrot.slane %v6325_v32, 5  ;;  %v6373_v14 = vshll.u32 %v6265_v0, 16  ;;  %v6381_v44 = vshll.u32 %v6266_v21, 16  ;;  %v6269_v21 = vld [vmem:[#allocation2 + $0x50] sm:$0xf] }
 0x3a9   : > { %11314 = vmatprep.subr.bf16.mxu1 %v11814_v46  ;;  %v14228_v41 = vrot.slane %v6322_v55, 4  ;;  %v14234_v19 = vsel %vm14004_vm14, %v9890_v60, %v5543_v40  ;;  %v6360_v20 = vor.u32 %v6359_v31, %v6356_v24  ;;  %v6387_v32 = vshll.u32 %v14214_v48, 16 }
 0x3aa   : > { %v16354_v12 = vcombine.low %v13855_v34, %v13857_v5  ;;  %v16355_v0 = vrot.slane %v16351_v39, 5  ;;  %v14252_v60 = vsel %vm14004_vm14, %v5545_v13, %v5546_v35  ;;  %v14254_v40 = vrot.slane %v6363_v4, 5  ;;  %v14266_v35 = vld [vmem:[#allocation8 + $0x178] sm:$0xff]  }
 0x3ab   : > { %v6369_v27 = vrot.slane %v6367_v45, 4  ;;  %v14259_v34 = vrot.slane %v6346_v26, 4  ;;  %v14261_v5 = vrot.slane %v6373_v14, 5  ;;  %v6391_v39 = vshrl.u32 %v14214_v48, 16 }
 0x3ac   : > { %11315 = vmatpush3.bf16.msra.mxu1 %v11814_v46  ;;  %v14236_v46 = vrot.slane %v6336_v29, 4  ;;  %v14248_v55 = vsel %vm14004_vm14, %v5538_v56, %v16355_v0  ;;  %v16356_v29 = vcombine.low %v13863_v43, %v13869_v15  ;;  %v14264_v56 = vld [vmem:[#allocation2 + $0x54] sm:$0xf]  ;;  %v6402_v24 = vshrl.u32 %v6269_v21, 16 }
 0x3ad   : > { %11316 = vmatprep.subr.bf16.mxu1 %v11818_v61  ;;  %v6380_v13 = vrot.slane %v6378_v47, 4  ;;  %v6383_v31 = vrot.slane %v6381_v44, 5  ;;  %v14268_v4 = vrot.slane %v6387_v32, 5  ;;  %v6405_v45 = vshll.u32 %v6269_v21, 16  ;;  %v14281_v32 = vld [vmem:[#allocation2 + $0x58] sm:$0x1] }
 0x3ae   : > { %v16357_v43 = vcombine.low %v14142_v3, %v14152_v52  ;;  %v14273_v15 = vrot.slane %v6360_v20, 4  ;;  %v6404_v26 = vrot.slane %v6402_v24, 4  ;;  %v6411_v14 = vshll.u32 %v14264_v56, 16  ;;  %v6272_v20 = vld [vmem:[#allocation2 + $0x60] sm:$0xf] }
 0x3af   : > { %11237 = vmatmul.mubr.bf16.gmra.mxu1 %v16354_v12  ;;  %v16358_v12 = vcombine.low %v14156_v63, %v14163_v18  ;;  %v6370_v47 = vor.u32 %v6369_v27, %v14254_v40  ;;  %v6397_v44 = vshll.u32 %v14238_v33, 16  ;;  %v6407_v0 = vrot.slane %v6405_v45, 5 }
 0x3b0   : > { %11240 = vmatprep.mubr.bf16.mxu1 %v16356_v29  ;;  %11317 = vmatpush3.bf16.msra.mxu1 %v11818_v61  ;;  %v6393_v61 = vrot.slane %v6391_v39, 4  ;;  %v6415_v3 = vshrl.u32 %v14264_v56, 16  ;;  %v9904_v52 = vcombine.low %v14186_v50, %v14210_v23  ;;  %v9905_v21 = vcombine.low %v14219_v58, %v14248_v55  ;;  %v14292_v29 = vld [vmem:[#allocation2 + $0x64] sm:$0xf] }
 0x3b1   : > { %11318 = vmatprep.subr.bf16.mxu1 %v11823_v57  ;;  %11293 = vmatmul.mubr.bf16.gmra.mxu0 %v16357_v43  ;;  %v6384_v18 = vor.u32 %v6383_v31, %v6380_v13  ;;  %v6408_v39 = vor.u32 %v6407_v0, %v6404_v26  ;;  %v14294_v24 = vrot.slane %v6411_v14, 5  ;;  %v6421_v50 = vshll.u32 %v14281_v32, 16 }
 0x3b2   : > { %11296 = vmatprep.mubr.bf16.mxu0 %v16358_v12  ;;  %v6394_v27 = vor.u32 %v6393_v61, %v14268_v4  ;;  %v6417_v45 = vrot.slane %v6415_v3, 4  ;;  %v16359_v23 = vcombine.low %v13886_v9, %v13888_v37  ;;  %v6371_v58 = vrot.slane %v6370_v47, 4  ;;  %v14313_v37 = vld [vmem:[#allocation2 + $0x68] sm:$0x1]  ;;  %v14334_v47 = vld [vmem:[#allocation2 + $0x74] sm:$0xf] }
 0x3b3   : > { %v6426_v55 = vshrl.u32 %v6272_v20, 16  ;;  %v6429_v43 = vshll.u32 %v6272_v20, 16  ;;  %v16360_v13 = vcombine.low %v13898_v7, %v13902_v62  ;;  %v6318_v31 = vsel %vm13772_vm11, %v14223_v16, %v14189_v54 }
 0x3b4   : > { %11319 = vmatpush3.bf16.msra.mxu1 %v11823_v57  ;;  %v14300_v57 = vrot.slane %v6397_v44, 5  ;;  %v6328_v9 = vsel %vm13772_vm11, %v14228_v41, %v14225_v1  ;;  %v6435_v61 = vshll.u32 %v14292_v29, 16  ;;  %v6439_v26 = vshrl.u32 %v14292_v29, 16  ;;  %v6275_v1 = vld [vmem:[#allocation2 + $0x70] sm:$0xf] }
 0x3b5   : > { %11400 = vmatprep.subr.bf16.mxu1 %v14266_v35  ;;  %v6342_v7 = vsel %vm13772_vm11, %v14236_v46, %v14206_v36  ;;  %v6352_v62 = vsel %vm13772_vm11, %v14259_v34, %v14230_v10  ;;  %v14325_v54 = vrot.slane %v6384_v18, 4  ;;  %v14327_v16 = vrot.slane %v6394_v27, 4  ;;  %v6278_v34 = vld [vmem:[#allocation2 + $0x80] sm:$0xf]  ;;  %v14341_v27 = vld [vmem:[#allocation2 + $0x84] sm:$0xf] }
 0x3b6   : > { %v14329_v41 = vrot.slane %v6408_v39, 4  ;;  %v6418_v14 = vor.u32 %v6417_v45, %v14294_v24  ;;  %v14332_v12 = vrot.slane %v6421_v50, 5  ;;  %v6450_v36 = vshrl.u32 %v6275_v1, 16  ;;  %v14350_v45 = vld [vmem:[#allocation2 + $0x78] sm:$0x1] }
 0x3b7   : > { %11241 = vmatmul.mubr.bf16.gmra.mxu1 %v16359_v23  ;;  %v6428_v46 = vrot.slane %v6426_v55, 4  ;;  %v6431_v44 = vrot.slane %v6429_v43, 5  ;;  %v6453_v0 = vshll.u32 %v6275_v1, 16  ;;  %v6459_v10 = vshll.u32 %v14334_v47, 16 }
 0x3b8   : > { %11244 = vmatprep.mubr.bf16.mxu1 %v16360_v13  ;;  %v14337_v3 = vrot.slane %v6435_v61, 5  ;;  %v6441_v20 = vrot.slane %v6439_v26, 4  ;;  %v6463_v18 = vshrl.u32 %v14334_v47, 16  ;;  %v6376_v39 = vsel %vm13772_vm11, %v6371_v58, %v14261_v5 }
 0x3b9   : > { %11297 = vmatmul.mubr.bf16.gmra.mxu0 %v9904_v52  ;;  %v6445_v52 = vshll.u32 %v14313_v37, 16  ;;  %v6452_v50 = vrot.slane %v6450_v36, 4  ;;  %v6455_v23 = vrot.slane %v6453_v0, 5  ;;  %v14352_v55 = vrot.slane %v6418_v14, 4  ;;  %v14364_v0 = vld [vmem:[#allocation2 + $0x88] sm:$0x1] }
 0x3ba   : > { %11300 = vmatprep.mubr.bf16.mxu0 %v9905_v21  ;;  %v6366_v21 = vsel %vm13772_vm11, %v14273_v15, %v14254_v40  ;;  %v14354_v43 = vrot.slane %v6459_v10, 5  ;;  %v6474_v13 = vshrl.u32 %v6278_v34, 16  ;;  %v6477_v61 = vshll.u32 %v6278_v34, 16 }
 0x3bb   : > { %v16361_v26 = vcombine.low %v13919_v25, %v13924_v28  ;;  %v9939_v1 = vcombine.low %v6318_v31, %v6328_v9  ;;  %v6432_v40 = vor.u32 %v6431_v44, %v6428_v46  ;;  %v6465_v15 = vrot.slane %v6463_v18, 4 }
 0x3bc   : > { %v6483_v63 = vshll.u32 %v14341_v27, 16  ;;  %v16362_v5 = vcombine.low %v16341_v59, %v16340_v42  ;;  %v9940_v58 = vcombine.low %v6342_v7, %v6352_v62  ;;  %v9941_v14 = vcombine.low %v6366_v21, %v6376_v39  ;;  %v6281_v62 = vld [vmem:[#allocation2 + $0xb0] sm:$0xf] }
 0x3bd   : > { %v6442_v36 = vor.u32 %v6441_v20, %v14337_v3  ;;  %v6456_v10 = vor.u32 %v6455_v23, %v6452_v50  ;;  %v6469_v34 = vshll.u32 %v14350_v45, 16  ;;  %v6476_v25 = vrot.slane %v6474_v13, 4  ;;  %v14386_v20 = vld [vmem:[#allocation2 + $0xb4] sm:$0xf]  ;;  %v14397_v50 = vld [vmem:[#allocation2 + $0xc4] sm:$0xf] }
 0x3be   : > { %v6487_v28 = vshrl.u32 %v14341_v27, 16  ;;  %v16363_v31 = vcombine.low %v14234_v19, %v14252_v60  ;;  %v6390_v42 = vsel %vm13772_vm11, %v14325_v54, %v14268_v4  ;;  %v6400_v59 = vsel %vm13772_vm11, %v14327_v16, %v14300_v57  ;;  %v6284_v16 = vld [vmem:[#allocation2 + $0xc0] sm:$0xf]  ;;  %v11839_v23 = vld [vmem:[#allocation8 + $0x1b0] sm:$0xff]  }
 0x3bf   : > { %11245 = vmatmul.mubr.bf16.gmra.mxu1 %v16361_v26  ;;  %v6479_v9 = vrot.slane %v6477_v61, 5  ;;  %v14379_v7 = vrot.slane %v6483_v63, 5  ;;  %v14381_v46 = vrot.slane %v6432_v40, 4  ;;  %v14383_v44 = vrot.slane %v6445_v52, 5  ;;  %v14400_v26 = vld [vmem:[#allocation2 + $0xb8] sm:$0x1] }
 0x3c0   : > { %11248 = vmatprep.mubr.bf16.mxu1 %v16362_v5  ;;  %v6466_v19 = vor.u32 %v6465_v15, %v14354_v43  ;;  %v6489_v60 = vrot.slane %v6487_v28, 4  ;;  %v14388_v4 = vrot.slane %v6442_v36, 4  ;;  %v6493_v54 = vshll.u32 %v14364_v0, 16 }
 0x3c1   : > { %11301 = vmatmul.mubr.bf16.gmra.mxu0 %v16363_v31  ;;  %v6498_v18 = vshrl.u32 %v6281_v62, 16  ;;  %v6501_v57 = vshll.u32 %v6281_v62, 16  ;;  %v14391_v63 = vrot.slane %v6456_v10, 4  ;;  %v14393_v21 = vrot.slane %v6469_v34, 5  ;;  %v14506_v62 = vld [vmem:[#allocation2 + $0xf4] sm:$0xf] }
 0x3c2   : > { %11368 = vmatprep.mubr.bf16.mxu0 %v9939_v1  ;;  %v6507_v39 = vshll.u32 %v14386_v20, 16  ;;  %v6511_v52 = vshrl.u32 %v14386_v20, 16  ;;  %v6480_v13 = vor.u32 %v6479_v9, %v6476_v25  ;;  %v6490_v61 = vor.u32 %v6489_v60, %v14379_v7  ;;  %16371 = vst [vmem:[#allocation33_spill] sm:$0xff] %v14506_v62 }
 0x3c3   : > { %v6500_v1 = vrot.slane %v6498_v18, 4  ;;  %v6503_v40 = vrot.slane %v6501_v57, 5  ;;  %v16364_v15 = vcombine.low %v16343_v11, %v16342_v53  ;;  %v14405_v5 = vrot.slane %v6466_v19, 4  ;;  %v11826_v19 = vld [vmem:[#allocation2 + $0x10] sm:$0xff]   ;;  %v11843_v18 = vld [vmem:[#allocation8 + $0x1a8] sm:$0xff]  }
 0x3c4   : > { %v14407_v36 = vrot.slane %v6507_v39, 5  ;;  %v6513_v10 = vrot.slane %v6511_v52, 4  ;;  %v6522_v34 = vshrl.u32 %v6284_v16, 16  ;;  %v16365_v28 = vcombine.low %v16348_v6, %v16347_v2 }
 0x3c5   : > { %v14412_v25 = vrot.slane %v6493_v54, 5  ;;  %v6525_v31 = vshll.u32 %v6284_v16, 16  ;;  %v6531_v9 = vshll.u32 %v14397_v50, 16  ;;  %v6414_v53 = vsel %vm13772_vm11, %v14329_v41, %v14294_v24  ;;  %v14431_v24 = vld [vmem:[#allocation2 + $0xc8] sm:$0x1] }
 0x3c6   : > { %v6424_v11 = vsel %vm13772_vm11, %v14352_v55, %v14332_v12  ;;  %v6517_v2 = vshll.u32 %v14400_v26, 16  ;;  %v6535_v6 = vshrl.u32 %v14397_v50, 16  ;;  %v14426_v60 = vrot.slane %v6480_v13, 4 }
 0x3c7   : > { %11249 = vmatmul.mubr.bf16.gmra.mxu1 %v16364_v15  ;;  %v14428_v54 = vrot.slane %v6490_v61, 4  ;;  %v6504_v57 = vor.u32 %v6503_v40, %v6500_v1  ;;  %v6514_v16 = vor.u32 %v6513_v10, %v14407_v36  ;;  %v6524_v41 = vrot.slane %v6522_v34, 4  ;;  %v6287_v61 = vld [vmem:[#allocation2 + $0xd0] sm:$0xf]  ;;  %v14440_v1 = vld [vmem:[#allocation2 + $0xd4] sm:$0xf] }
 0x3c8   : > { %11252 = vmatprep.mubr.bf16.mxu1 %v16365_v28  ;;  %v6527_v12 = vrot.slane %v6525_v31, 5  ;;  %v14434_v55 = vrot.slane %v6531_v9, 5  ;;  %v6537_v39 = vrot.slane %v6535_v6, 4  ;;  %v9942_v52 = vcombine.low %v6390_v42, %v6400_v59  ;;  %v14452_v59 = vld [vmem:[#allocation2 + $0xd8] sm:$0x1]  ;;  %v16366_v28 = vld [vmem:[#allocation27_spill] sm:$0xff] }
 0x3c9   : > { %11369 = vmatmul.mubr.bf16.vlgmr.msra.gmra.mxu0 %v9940_v58  ;;  %v9943_v58 = vcombine.low %v6414_v53, %v6424_v11  ;;  %v6438_v13 = vsel %vm13772_vm11, %v14381_v46, %v14337_v3  ;;  %v14450_v42 = vrot.slane %v6517_v2, 5  ;;  %v6546_v40 = vshrl.u32 %v6287_v61, 16  ;;  %v6290_v3 = vld [vmem:[#allocation2 + $0xe0] sm:$0xf]  ;;  %v14464_v53 = vld [vmem:[#allocation2 + $0xe4] sm:$0xf] }
 0x3ca   : > { %11372 = vmatprep.mubr.bf16.mxu0 %v9941_v14  ;;  %11449 = vmatpush3.bf16.msra.mxu0 %v14180_v49  ;;  %v6448_v49 = vsel %vm13772_vm11, %v14388_v4, %v14383_v44  ;;  %v6462_v14 = vsel %vm13772_vm11, %v14391_v63, %v14354_v43  ;;  %v14454_v46 = vrot.slane %v6504_v57, 4  ;;  %v14456_v15 = vrot.slane %v6514_v16, 4  ;;  %v16367_v44 = vld [vmem:[#allocation28_spill] sm:$0xff]  ;;  %16369 = vst [vmem:[#allocation30_spill] sm:$0xff] %v14464_v53  ;;  %v11847_v2 = vld [vmem:[#allocation8 + $0x1a0] sm:$0xff]  }
 0x3cb   : > { %11450 = vmatprep.subr.bf16.mxu0 %v11839_v23  ;;  %v6541_v10 = vshll.u32 %v14431_v24, 16  ;;  %v6549_v34 = vshll.u32 %v6287_v61, 16  ;;  %v16368_v4 = vcombine.low %v16366_v28, %v16367_v44  ;;  %v6528_v31 = vor.u32 %v6527_v12, %v6524_v41  ;;  %v11827_v61 = vld [vmem:[#allocation2 + $0x20] sm:$0xff]   ;;  %v14477_v12 = vld [vmem:[#allocation2 + $0xe8] sm:$0x1]  ;;  %v11831_v44 = vld [vmem:[#allocation8 + $0x170] sm:$0xff]  }
 0x3cc   : > { %v6548_v43 = vrot.slane %v6546_v40, 4  ;;  %v6555_v63 = vshll.u32 %v14440_v1, 16  ;;  %v6559_v9 = vshrl.u32 %v14440_v1, 16  ;;  %v6538_v11 = vor.u32 %v6537_v39, %v14434_v55  ;;  %16370 = vst [vmem:[#allocation32_spill] sm:$0xff] %v14477_v12  ;;  %v11829_v40 = vld [vmem:[#allocation2 + $0x30] sm:$0xff]  }
 0x3cd   : > { %v6551_v6 = vrot.slane %v6549_v34, 5  ;;  %v6565_v57 = vshll.u32 %v14452_v59, 16  ;;  %v6570_v16 = vshrl.u32 %v6290_v3, 16  ;;  %v6486_v41 = vsel %vm13772_vm11, %v14426_v60, %v14379_v7 }
 0x3ce   : > { %11451 = vmatpush3.bf16.msra.mxu0 %v11839_v23  ;;  %v6472_v23 = vsel %vm13772_vm11, %v14405_v5, %v14393_v21  ;;  %v6573_v39 = vshll.u32 %v6290_v3, 16  ;;  %v6496_v34 = vsel %vm13772_vm11, %v14428_v54, %v14412_v25  ;;  %v14483_v28 = vrot.slane %v6541_v10, 5 }
 0x3cf   : > { %11253 = vmatmul.mubr.bf16.gmra.mxu1 %v16368_v4  ;;  %11452 = vmatprep.subr.bf16.mxu0 %v11843_v18  ;;  %v6552_v21 = vor.u32 %v6551_v6, %v6548_v43  ;;  %v6579_v5 = vshll.u32 %v14464_v53, 16  ;;  %v14486_v7 = vrot.slane %v6528_v31, 4  ;;  %v14488_v60 = vrot.slane %v6555_v63, 5  ;;  %v11851_v4 = vld [vmem:[#allocation8 + $0x198] sm:$0xff]  }
 0x3d0   : > { %11320 = vmatprep.mubr.bf16.mxu1 %v11826_v19  ;;  %v6561_v3 = vrot.slane %v6559_v9, 4  ;;  %v14491_v19 = vrot.slane %v6538_v11, 4  ;;  %v14493_v25 = vrot.slane %v6565_v57, 5  ;;  %v6572_v54 = vrot.slane %v6570_v16, 4  ;;  %v6293_v57 = vld [vmem:[#allocation2 + $0xf0] sm:$0xf] }
 0x3d1   : > { %11373 = vmatmul.mubr.bf16.gmra.mxu0 %v9942_v52  ;;  %v6583_v52 = vshrl.u32 %v14464_v53, 16  ;;  %v6575_v10 = vrot.slane %v6573_v39, 5  ;;  %v14495_v43 = vrot.slane %v6552_v21, 4  ;;  %v14497_v6 = vrot.slane %v6579_v5, 5  ;;  %v11852_v16 = vld [vmem:[#allocation8 + $0x190] sm:$0xff]   ;;  %v11834_v21 = vld [vmem:[#allocation8 + $0x168] sm:$0xff]  }
 0x3d2   : > { %11376 = vmatprep.mubr.bf16.mxu0 %v9943_v58  ;;  %11453 = vmatpush3.bf16.msra.mxu0 %v11843_v18  ;;  %v6589_v58 = vshll.u32 %v14477_v12, 16  ;;  %v9944_v31 = vcombine.low %v6438_v13, %v6448_v49  ;;  %v9945_v63 = vcombine.low %v6462_v14, %v6472_v23  ;;  %v14500_v9 = vcombine.low %v6486_v41, %v6496_v34  ;;  %v14514_v14 = vld [vmem:[#allocation2 + $0xf8] sm:$0x1]  ;;  %v6296_v41 = vld [vmem:[#allocation2 + $0x100] sm:$0xf] }
 0x3d3   : > { %11454 = vmatprep.subr.bf16.mxu0 %v11847_v2  ;;  %v6585_v18 = vrot.slane %v6583_v52, 4  ;;  %v6510_v11 = vsel %vm13772_vm11, %v14454_v46, %v14407_v36  ;;  %v6520_v39 = vsel %vm13772_vm11, %v14456_v15, %v14450_v42  ;;  %v6562_v13 = vor.u32 %v6561_v3, %v14488_v60  ;;  %v14519_v34 = vld [vmem:[#allocation2 + $0x104] sm:$0xf] }
 0x3d4   : > { %v6594_v23 = vshrl.u32 %v6293_v57, 16  ;;  %v6597_v36 = vshll.u32 %v6293_v57, 16  ;;  %v6603_v46 = vshll.u32 %v14506_v62, 16  ;;  %16372 = vst [vmem:[#allocation31_spill] sm:$0xff] %v14519_v34  ;;  %v16373_v42 = vrot.slane %v14145_v22, 5  ;;  %v11838_v53 = vld [vmem:[#allocation8 + $0x160] sm:$0xff]  }
 0x3d5   : > { %v6576_v5 = vor.u32 %v6575_v10, %v6572_v54  ;;  %v6586_v3 = vor.u32 %v6585_v18, %v14497_v6  ;;  %v6534_v54 = vsel %vm13772_vm11, %v14486_v7, %v14434_v55  ;;  %v6544_v10 = vsel %vm13772_vm11, %v14491_v19, %v14483_v28  ;;  %v14535_v18 = vld [vmem:[#allocation2 + $0x108] sm:$0x1] }
 0x3d6   : > { %11455 = vmatpush3.bf16.msra.mxu0 %v11847_v2  ;;  %v7079_v15 = vrot.slane %v16373_v42, 4  ;;  %v11830_v2 = vld [vmem:[#allocation2 + $0x40] sm:$0xff]   ;;  %v6596_v52 = vrot.slane %v6594_v23, 4  ;;  %v6599_v57 = vrot.slane %v6597_v36, 5  ;;  %v14525_v49 = vrot.slane %v6603_v46, 5  ;;  %16374 = vst [vmem:[#allocation26_spill] sm:$0xff] %v14535_v18 }
 0x3d7   : > { %11321 = vmatmul.mubr.bf16.vlgmr.msra.gmra.mxu1 %v11827_v61  ;;  %v6607_v61 = vshrl.u32 %v14506_v62, 16  ;;  %11456 = vmatprep.subr.bf16.mxu0 %v11851_v4  ;;  %v6618_v62 = vshrl.u32 %v6296_v41, 16  ;;  %v6627_v23 = vshll.u32 %v14519_v34, 16  ;;  %v11856_v36 = vld [vmem:[#allocation8 + $0x188] sm:$0xff]   ;;  %v14538_v46 = vrot.slane %v6562_v13, 4  ;;  %v11857_v13 = vld [vmem:[#allocation8 + $0x180] sm:$0xff]  }
 0x3d8   : > { %11401 = vmatpush3.bf16.msra.mxu1 %v14266_v35  ;;  %11324 = vmatprep.mubr.bf16.mxu1 %v11829_v40  ;;  %v6613_v35 = vshll.u32 %v14514_v14, 16  ;;  %v11832_v40 = vld [vmem:[#allocation2 + $0x50] sm:$0xff]   ;;  %v14543_v7 = vrot.slane %v6576_v5, 4 }
 0x3d9   : > { %11402 = vmatprep.subr.bf16.mxu1 %v11831_v44  ;;  %11377 = vmatmul.mubr.bf16.gmra.mxu0 %v9944_v31  ;;  %v6609_v12 = vrot.slane %v6607_v61, 4  ;;  %v6621_v31 = vshll.u32 %v6296_v41, 16  ;;  %v6600_v61 = vor.u32 %v6599_v57, %v6596_v52  ;;  %v6620_v19 = vrot.slane %v6618_v62, 4  ;;  %v11842_v52 = vld [vmem:[#allocation8 + $0x158] sm:$0xff]  }
 0x3da   : > { %11380 = vmatprep.mubr.bf16.mxu0 %v9945_v63  ;;  %11457 = vmatpush3.bf16.msra.mxu0 %v11851_v4  ;;  %v14540_v63 = vrot.slane %v6589_v58, 5  ;;  %v6631_v4 = vshrl.u32 %v14519_v34, 16  ;;  %v14546_v41 = vrot.slane %v6586_v3, 4  ;;  %v14548_v42 = vrot.slane %v6613_v35, 5  ;;  %v6299_v35 = vld [vmem:[#allocation2 + $0x110] sm:$0xf] }
 0x3db   : > { %v6610_v55 = vor.u32 %v6609_v12, %v14525_v49  ;;  %11458 = vmatprep.subr.bf16.mxu0 %v11852_v16  ;;  %v6623_v28 = vrot.slane %v6621_v31, 5  ;;  %v7080_v58 = vrot.slane %v14168_v38, 5  ;;  %v9947_v12 = vcombine.low %v6510_v11, %v6520_v39  ;;  %v14558_v31 = vld [vmem:[#allocation2 + $0x114] sm:$0xf]  ;;  %v11833_v38 = vld [vmem:[#allocation2 + $0x60] sm:$0xff]  }
 0x3dc   : > { %11403 = vmatpush3.bf16.msra.mxu1 %v11831_v44  ;;  %v6637_v44 = vshll.u32 %v14535_v18, 16  ;;  %v14552_v57 = vrot.slane %v6600_v61, 4  ;;  %v14554_v5 = vrot.slane %v6627_v23, 5  ;;  %v6633_v3 = vrot.slane %v6631_v4, 4  ;;  %16375 = vst [vmem:[#allocation20_spill] sm:$0xff] %v14558_v31 }
 0x3dd   : > { %11404 = vmatprep.subr.bf16.mxu1 %v11834_v21  ;;  %v14556_v62 = vrot.slane %v6610_v55, 4  ;;  %v14562_v34 = vsel %vm14004_vm14, %v7079_v15, %v7080_v58  ;;  %v9948_v11 = vcombine.low %v6534_v54, %v6544_v10  ;;  %v6624_v39 = vor.u32 %v6623_v28, %v6620_v19  ;;  %v14565_v23 = vld [vmem:[#allocation2 + $0x118] sm:$0x1]  ;;  %v14572_v58 = vld [vmem:[#allocation2 + $0x124] sm:$0xf]  ;;  %v11846_v54 = vld [vmem:[#allocation8 + $0x150] sm:$0xff]  }
 0x3de   : > { %11459 = vmatpush3.bf16.msra.mxu0 %v11852_v16  ;;  %16376 = vst [vmem:[#allocation19_spill] sm:$0xff] %v14565_v23  ;;  %v6642_v16 = vshrl.u32 %v6299_v35, 16  ;;  %v14568_v61 = vrot.slane %v6637_v44, 5  ;;  %v6645_v55 = vshll.u32 %v6299_v35, 16  ;;  %v6651_v15 = vshll.u32 %v14558_v31, 16 }
 0x3df   : > { %11325 = vmatmul.mubr.bf16.gmra.mxu1 %v11830_v2  ;;  %11460 = vmatprep.subr.bf16.mxu0 %v11856_v36  ;;  %v6655_v4 = vshrl.u32 %v14558_v31, 16  ;;  %v6558_v10 = vsel %vm13772_vm11, %v14495_v43, %v14488_v60  ;;  %v14582_v28 = vld [vmem:[#allocation2 + $0x128] sm:$0x1]  ;;  %v6634_v35 = vor.u32 %v6633_v3, %v14554_v5  ;;  %v14587_v31 = vld [vmem:[#allocation8 + $0x238] sm:$0xff]   ;;  %v6661_v60 = vshll.u32 %v14565_v23, 16 }
 0x3e0   : > { %11328 = vmatprep.mubr.bf16.mxu1 %v11832_v40  ;;  %11405 = vmatpush3.bf16.msra.mxu1 %v11834_v21  ;;  %v6302_v21 = vld [vmem:[#allocation2 + $0x120] sm:$0xf]  ;;  %v11836_v40 = vld [vmem:[#allocation2 + $0x70] sm:$0xff]   ;;  %v6644_v19 = vrot.slane %v6642_v16, 4  ;;  %v14585_v2 = vrot.slane %v6651_v15, 5  ;;  %v6679_v3 = vshrl.u32 %v14572_v58, 16 }
 0x3e1   : > { %11406 = vmatprep.subr.bf16.mxu1 %v11838_v53  ;;  %11381 = vmatmul.mubr.bf16.gmra.mxu0 %v14500_v9  ;;  %v6568_v9 = vsel %vm13772_vm11, %v14538_v46, %v14493_v25  ;;  %v6666_v44 = vshrl.u32 %v6302_v21, 16  ;;  %v6657_v18 = vrot.slane %v6655_v4, 4  ;;  %v6669_v25 = vshll.u32 %v6302_v21, 16  ;;  %v11850_v15 = vld [vmem:[#allocation8 + $0x148] sm:$0xff]  }
 0x3e2   : > { %11384 = vmatprep.mubr.bf16.mxu0 %v9947_v12  ;;  %11461 = vmatpush3.bf16.msra.mxu0 %v11856_v36  ;;  %v6647_v12 = vrot.slane %v6645_v55, 5  ;;  %v6675_v46 = vshll.u32 %v14572_v58, 16  ;;  %v9949_v16 = vcombine.low %v6558_v10, %v6568_v9  ;;  %v14595_v36 = vrot.slane %v6624_v39, 4  ;;  %v7011_v55 = vld [vmem:[#allocation2 + $0x10] sm:$0xe]  ;;  %v11837_v39 = vld [vmem:[#allocation2 + $0x80] sm:$0xff]  }
 0x3e3   : > { %11462 = vmatprep.subr.bf16.mxu0 %v11857_v13  ;;  %v6668_v43 = vrot.slane %v6666_v44, 4  ;;  %v6658_v23 = vor.u32 %v6657_v18, %v14585_v2  ;;  %v6671_v44 = vrot.slane %v6669_v25, 5  ;;  %v6635_v10 = vrot.slane %v6634_v35, 4 }
 0x3e4   : > { %11407 = vmatpush3.bf16.msra.mxu1 %v11838_v53  ;;  %v6582_v53 = vsel %vm13772_vm11, %v14543_v7, %v14497_v6  ;;  %v6648_v4 = vor.u32 %v6647_v12, %v6644_v19  ;;  %v14599_v21 = vrot.slane %v6675_v46, 5  ;;  %v6681_v9 = vrot.slane %v6679_v3, 4  ;;  %v14608_v12 = vld [vmem:[#allocation2 + $0x20] sm:$0xe] }
 0x3e5   : > { %11408 = vmatprep.subr.bf16.mxu1 %v11842_v52  ;;  %v6685_v6 = vshll.u32 %v14582_v28, 16  ;;  %v9963_v7 = vrot.slane %v7011_v55, 9  ;;  %v14606_v19 = vrot.slane %v6661_v60, 5  ;;  %v6672_v18 = vor.u32 %v6671_v44, %v6668_v43  ;;  %v7014_v3 = vld [vmem:[#allocation2 + $0x40] sm:$0xe] }
 0x3e6   : > { %11463 = vmatpush3.bf16.msra.mxu0 %v11857_v13  ;;  %v16377_v13 = vld [vmem:[#allocation29_spill] sm:$0xff]  ;;  %v6606_v35 = vsel %vm13772_vm11, %v14552_v57, %v14525_v49  ;;  %v16378_v60 = vrot.slane %v14145_v22, 5  ;;  %v14627_v25 = vrot.slane %v6648_v4, 4  ;;  %v14629_v46 = vrot.slane %v6658_v23, 4 }
 0x3e7   : > { %11329 = vmatmul.mubr.bf16.gmra.mxu1 %v11833_v38  ;;  %v6592_v38 = vsel %vm13772_vm11, %v14546_v41, %v14540_v63  ;;  %11544 = vmatprep.subr.bf16.mxu0 %v14587_v31  ;;  %v6616_v63 = vsel %vm13772_vm11, %v14556_v62, %v14548_v42  ;;  %v6682_v41 = vor.u32 %v6681_v9, %v14599_v21  ;;  %v7185_v49 = vrot.slane %v14582_v28, 5  ;;  %v14637_v62 = vld [vmem:[#allocation2 + $0x30] sm:$0xe] }
 0x3e8   : > { %11332 = vmatprep.mubr.bf16.mxu1 %v11836_v40  ;;  %11409 = vmatpush3.bf16.msra.mxu1 %v11842_v52  ;;  %v7084_v40 = vrot.slane %v16377_v13, 5  ;;  %v11840_v52 = vld [vmem:[#allocation2 + $0xb0] sm:$0xff]   ;;  %v14625_v43 = vsel %vm14004_vm14, %v9963_v7, %v16378_v60  ;;  %v14634_v42 = vrot.slane %v6685_v6, 5  ;;  %v9964_v22 = vrot.slane %v14608_v12, 9  ;;  %v14657_v60 = vld [vmem:[#allocation8 + $0x1f8] sm:$0xff]  }
 0x3e9   : > { %11410 = vmatprep.subr.bf16.mxu1 %v11846_v54  ;;  %11385 = vmatmul.mubr.bf16.gmra.mxu0 %v9948_v11  ;;  %v11855_v11 = vld [vmem:[#allocation8 + $0x140] sm:$0xff]   ;;  %v9979_v57 = vcombine.low %v14625_v43, %v14562_v34  ;;  %v14641_v55 = vrot.slane %v6682_v41, 4  ;;  %v9966_v4 = vrot.slane %v7014_v3, 9  ;;  %v9950_v44 = vcombine.low %v6582_v53, %v6592_v38 }
 0x3ea   : > { %11388 = vmatprep.mubr.bf16.mxu0 %v9949_v16  ;;  %v14639_v16 = vrot.slane %v6672_v18, 4  ;;  %v14645_v23 = vrot.slane %v7084_v40, 4  ;;  %v9951_v9 = vcombine.low %v6606_v35, %v6616_v63  ;;  %v7101_v6 = vrot.slane %v14238_v33, 5  ;;  %v7016_v35 = vld [vmem:[#allocation2 + $0x60] sm:$0xe] }
 0x3eb   : > { %v6630_v7 = vsel %vm13772_vm11, %v14595_v36, %v14554_v5  ;;  %v6640_v18 = vsel %vm13772_vm11, %v6635_v10, %v14568_v61  ;;  %v7087_v41 = vrot.slane %v14192_v51, 5  ;;  %v9965_v53 = vrot.slane %v14637_v62, 9  ;;  %v11841_v36 = vld [vmem:[#allocation2 + $0xc0] sm:$0xff]   ;;  %v11861_v62 = vld [vmem:[#allocation8 + $0x1f0] sm:$0xff]  }
 0x3ec   : > { %11411 = vmatpush3.bf16.msra.mxu1 %v11846_v54  ;;  %v7098_v54 = vrot.slane %v14214_v48, 5  ;;  %v7105_v5 = vrot.slane %v14264_v56, 5  ;;  %v7091_v61 = vrot.slane %v14201_v17, 5  ;;  %v7108_v38 = vrot.slane %v14281_v32, 5  ;;  %v14870_v51 = vld [vmem:[#allocation2 + $0x24] sm:$0xf] }
 0x3ed   : > { %11412 = vmatprep.subr.bf16.mxu1 %v11850_v15  ;;  %v7112_v63 = vrot.slane %v14292_v29, 5  ;;  %v7115_v29 = vrot.slane %v14313_v37, 5  ;;  %v7085_v28 = vsel %vm14004_vm14, %v9964_v22, %v7084_v40  ;;  %v7954_v17 = vshll.u32 %v14870_v51, 16  ;;  %v14913_v37 = vld [vmem:[#allocation2 + $0x38] sm:$0x1] }
 0x3ee   : > { %v14662_v48 = vsel %vm14004_vm14, %v9966_v4, %v7098_v54  ;;  %v7100_v33 = vrot.slane %v7098_v54, 4  ;;  %v7107_v4 = vrot.slane %v7105_v5, 4  ;;  %v9968_v54 = vrot.slane %v7016_v35, 9 }
 0x3ef   : > { %11333 = vmatmul.mubr.bf16.gmra.mxu1 %v11837_v39  ;;  %v7015_v39 = vld [vmem:[#allocation2 + $0x50] sm:$0xe]  ;;  %v7114_v32 = vrot.slane %v7112_v63, 4  ;;  %v7092_v34 = vsel %vm14004_vm14, %v9965_v53, %v7091_v61  ;;  %v7958_v22 = vshrl.u32 %v14870_v51, 16 }
 0x3f0   : > { %11336 = vmatprep.mubr.bf16.mxu1 %v11840_v52  ;;  %11413 = vmatpush3.bf16.msra.mxu1 %v11850_v15  ;;  %v9967_v10 = vrot.slane %v7015_v39, 9  ;;  %v11844_v52 = vld [vmem:[#allocation2 + $0xd0] sm:$0xff]   ;;  %v9952_v15 = vcombine.low %v6630_v7, %v6640_v18  ;;  %v14670_v3 = vsel %vm14004_vm14, %v7100_v33, %v7101_v6  ;;  %v14689_v6 = vsel %vm14004_vm14, %v7107_v4, %v7108_v38  ;;  %v7018_v33 = vld [vmem:[#allocation2 + $0x80] sm:$0xe] }
 0x3f1   : > { %11414 = vmatprep.subr.bf16.mxu1 %v11855_v11  ;;  %11389 = vmatmul.mubr.bf16.gmra.mxu0 %v9950_v44  ;;  %v9982_v56 = vcombine.low %v14662_v48, %v14670_v3  ;;  %v6654_v44 = vsel %vm13772_vm11, %v14627_v25, %v14585_v2  ;;  %v14693_v7 = vsel %vm14004_vm14, %v9968_v54, %v7112_v63  ;;  %v7017_v25 = vld [vmem:[#allocation2 + $0x70] sm:$0xe]  ;;  %v9970_v63 = vrot.slane %v7018_v33, 9  ;;  %v11845_v54 = vld [vmem:[#allocation2 + $0xe0] sm:$0xff]  }
 0x3f2   : > { %11392 = vmatprep.mubr.bf16.mxu0 %v9951_v9  ;;  %v14676_v39 = vsel %vm14004_vm14, %v9967_v10, %v7105_v5  ;;  %v6664_v9 = vsel %vm13772_vm11, %v14629_v46, %v14606_v19  ;;  %v14700_v2 = vsel %vm14004_vm14, %v7114_v32, %v7115_v29  ;;  %v7119_v19 = vrot.slane %v14334_v47, 5  ;;  %v7019_v29 = vld [vmem:[#allocation2 + $0xb0] sm:$0xe]  ;;  %v11859_v33 = vld [vmem:[#allocation2 + $0x20] sm:$0xff]  }
 0x3f3   : > { %v9969_v18 = vrot.slane %v7017_v25, 9  ;;  %v7126_v5 = vrot.slane %v14341_v27, 5  ;;  %v7129_v10 = vrot.slane %v14364_v0, 5  ;;  %v9953_v38 = vcombine.low %v6654_v44, %v6664_v9  ;;  %v7020_v25 = vld [vmem:[#allocation2 + $0xc0] sm:$0xe] }
 0x3f4   : > { %11415 = vmatpush3.bf16.msra.mxu1 %v11855_v11  ;;  %v7122_v11 = vrot.slane %v14350_v45, 5  ;;  %v7121_v35 = vrot.slane %v7119_v19, 4  ;;  %v7133_v45 = vrot.slane %v14386_v20, 5  ;;  %v6678_v27 = vsel %vm13772_vm11, %v14639_v16, %v14599_v21  ;;  %v7026_v32 = vld [vmem:[#allocation2 + $0x120] sm:$0xe] }
 0x3f5   : > { %11496 = vmatprep.subr.bf16.mxu1 %v14657_v60  ;;  %v14710_v4 = vsel %vm14004_vm14, %v9969_v18, %v7119_v19  ;;  %v7128_v47 = vrot.slane %v7126_v5, 4  ;;  %v7136_v21 = vrot.slane %v14400_v26, 5  ;;  %v6688_v16 = vsel %vm13772_vm11, %v14641_v55, %v14634_v42 }
 0x3f6   : > { %v14719_v0 = vsel %vm14004_vm14, %v7121_v35, %v7122_v11  ;;  %v7135_v44 = vrot.slane %v7133_v45, 4  ;;  %v9971_v9 = vrot.slane %v7019_v29, 9  ;;  %v7140_v19 = vrot.slane %v14397_v50, 5  ;;  %v16380_v29 = vld [vmem:[#allocation30_spill] sm:$0xff] }
 0x3f7   : > { %11337 = vmatmul.mubr.bf16.gmra.mxu1 %v11841_v36  ;;  %v14723_v36 = vsel %vm14004_vm14, %v9970_v63, %v7126_v5  ;;  %v14729_v20 = vsel %vm14004_vm14, %v7128_v47, %v7129_v10  ;;  %v9972_v18 = vrot.slane %v7020_v25, 9  ;;  %v7147_v26 = vrot.slane %v14440_v1, 5  ;;  %v7021_v63 = vld [vmem:[#allocation2 + $0xd0] sm:$0xe] }
 0x3f8   : > { %11340 = vmatprep.mubr.bf16.mxu1 %v11844_v52  ;;  %v11848_v52 = vld [vmem:[#allocation2 + $0xf0] sm:$0xff]   ;;  %v14741_v11 = vsel %vm14004_vm14, %v7135_v44, %v7136_v21  ;;  %v14746_v5 = vsel %vm14004_vm14, %v9971_v9, %v7133_v45  ;;  %v7142_v42 = vrot.slane %v7140_v19, 4  ;;  %v7150_v55 = vrot.slane %v14452_v59, 5  ;;  %v7022_v45 = vld [vmem:[#allocation2 + $0xe0] sm:$0xe] }
 0x3f9   : > { %11393 = vmatmul.mubr.bf16.gmra.mxu0 %v9952_v15  ;;  %v9954_v10 = vcombine.low %v6678_v27, %v6688_v16  ;;  %v14753_v50 = vsel %vm14004_vm14, %v9972_v18, %v7140_v19  ;;  %v16379_v35 = vrot.slane %v14431_v24, 5  ;;  %v7149_v47 = vrot.slane %v7147_v26, 4  ;;  %v11849_v16 = vld [vmem:[#allocation2 + $0x100] sm:$0xff]   ;;  %v16381_v9 = vld [vmem:[#allocation33_spill] sm:$0xff] }
 0x3fa   : > { %11396 = vmatprep.mubr.bf16.mxu0 %v9953_v38  ;;  %v7154_v59 = vrot.slane %v16380_v29, 5  ;;  %v9973_v44 = vrot.slane %v7021_v63, 9  ;;  %v9974_v21 = vrot.slane %v7022_v45, 9  ;;  %v7161_v25 = vrot.slane %v16381_v9, 5  ;;  %v11853_v19 = vld [vmem:[#allocation2 + $0x110] sm:$0xff]   ;;  %v11862_v9 = vld [vmem:[#allocation2 + $0x40] sm:$0xff]  }
 0x3fb   : > { %v14759_v1 = vsel %vm14004_vm14, %v7142_v42, %v16379_v35  ;;  %v16382_v35 = vld [vmem:[#allocation32_spill] sm:$0xff]  ;;  %v7164_v45 = vrot.slane %v14514_v14, 5  ;;  %v14794_v27 = vld [vmem:[#allocation8 + $0x230] sm:$0xff]   ;;  %v16387_v29 = vld [vmem:[#allocation19_spill] sm:$0xff] }
 0x3fc   : > { %v7156_v24 = vrot.slane %v7154_v59, 4  ;;  %v14771_v18 = vsel %vm14004_vm14, %v9973_v44, %v7147_v26  ;;  %v11860_v26 = vld [vmem:[#allocation2 + $0x30] sm:$0xff]   ;;  %v7024_v44 = vld [vmem:[#allocation2 + $0x100] sm:$0xe]  ;;  %16386 = vst [vmem:[#allocation23_spill] sm:$0xff] %v14794_v27 }
 0x3fd   : > { %v9976_v42 = vrot.slane %v7024_v44, 9 }
 0x3ff   : > { %11341 = vmatmul.mubr.bf16.gmra.mxu1 %v11845_v54  ;;  %v14766_v54 = vsel %vm14004_vm14, %v7149_v47, %v7150_v55  ;;  %v16383_v55 = vrot.slane %v16382_v35, 5  ;;  %v7023_v47 = vld [vmem:[#allocation2 + $0xf0] sm:$0xe] }
 0x400   : > { %11344 = vmatprep.mubr.bf16.mxu1 %v11848_v52  ;;  %v14775_v52 = vsel %vm14004_vm14, %v9974_v21, %v7154_v59  ;;  %v9975_v59 = vrot.slane %v7023_v47, 9  ;;  %v7178_v47 = vrot.slane %v16387_v29, 5  ;;  %v14905_v29 = vld [vmem:[#allocation2 + $0x44] sm:$0xf] }
 0x401   : > { %11397 = vmatmul.mubr.bf16.gmra.mxu0 %v9954_v10  ;;  %v14783_v63 = vsel %vm14004_vm14, %v7156_v24, %v16383_v55  ;;  %v7163_v10 = vrot.slane %v7161_v25, 4  ;;  %v16385_v24 = vld [vmem:[#allocation20_spill] sm:$0xff] }
 0x402   : > { %11464 = vmatprep.mubr.bf16.mxu0 %v11859_v33  ;;  %v16384_v33 = vld [vmem:[#allocation31_spill] sm:$0xff]  ;;  %v7175_v55 = vrot.slane %v16385_v24, 5  ;;  %v14798_v14 = vsel %vm14004_vm14, %v9975_v59, %v7161_v25  ;;  %v7025_v25 = vld [vmem:[#allocation2 + $0x110] sm:$0xe] }
 0x403   : > { %v7168_v21 = vrot.slane %v16384_v33, 5  ;;  %v14791_v35 = vsel %vm14004_vm14, %v7163_v10, %v7164_v45  ;;  %v16388_v45 = vld [vmem:[#allocation26_spill] sm:$0xff]  ;;  %v11854_v59 = vld [vmem:[#allocation2 + $0x120] sm:$0xff]   ;;  %v7182_v33 = vrot.slane %v14572_v58, 5 }
 0x404   : > { %v16389_v44 = vrot.slane %v16388_v45, 5  ;;  %v7177_v15 = vrot.slane %v7175_v55, 4  ;;  %v9978_v45 = vrot.slane %v7026_v32, 9 }
 0x405   : > { %v7170_v38 = vrot.slane %v7168_v21, 4  ;;  %v14805_v10 = vsel %vm14004_vm14, %v9976_v42, %v7168_v21  ;;  %v11892_v42 = vld [vmem:[#allocation2 + $0x38] sm:$0x1]  ;;  %v7184_v58 = vrot.slane %v7182_v33, 4 }
 0x406   : > { %v7094_v21 = vrot.slane %v11892_v42, 5 }
 0x407   : > { %11345 = vmatmul.mubr.bf16.gmra.mxu1 %v11849_v16  ;;  %v14811_v24 = vsel %vm14004_vm14, %v7170_v38, %v16389_v44  ;;  %v9977_v16 = vrot.slane %v7025_v25, 9  ;;  %v7093_v38 = vrot.slane %v7091_v61, 4  ;;  %v14827_v25 = vsel %vm14004_vm14, %v7177_v15, %v7178_v47  ;;  %v11866_v47 = vld [vmem:[#allocation2 + $0x60] sm:$0xff]  }
 0x408   : > { %11348 = vmatprep.mubr.bf16.mxu1 %v11853_v19  ;;  %v14816_v19 = vld [vmem:[#allocation8 + $0x228] sm:$0xff]   ;;  %v11870_v61 = vld [vmem:[#allocation2 + $0x80] sm:$0xff]  }
 0x409   : > { %11465 = vmatmul.mubr.bf16.vlgmr.msra.gmra.mxu0 %v11860_v26  ;;  %16390 = vst [vmem:[#allocation22_spill] sm:$0xff] %v14816_v19  ;;  %v14823_v44 = vsel %vm14004_vm14, %v9977_v16, %v7175_v55  ;;  %v14834_v26 = vsel %vm14004_vm14, %v9978_v45, %v7182_v33  ;;  %v11863_v55 = vld [vmem:[#allocation2 + $0x50] sm:$0xff]   ;;  %v14860_v33 = vld [vmem:[#allocation8 + $0x220] sm:$0xff]   ;;  %v7095_v12 = vsel %vm14004_vm14, %v7093_v38, %v7094_v21  ;;  %v14884_v38 = vld [vmem:[#allocation2 + $0x28] sm:$0x1] }
 0x40a   : > { %11468 = vmatprep.mubr.bf16.mxu0 %v11862_v9  ;;  %11545 = vmatpush3.bf16.msra.mxu0 %v14587_v31  ;;  %v14840_v9 = vsel %vm14004_vm14, %v7184_v58, %v7185_v49  ;;  %v7088_v49 = vsel %vm14004_vm14, %v14645_v23, %v7087_v41  ;;  %16391 = vst [vmem:[#allocation18_spill] sm:$0xff] %v14860_v33  ;;  %v14876_v23 = vld [vmem:[#allocation8 + $0x218] sm:$0xff]   ;;  %v11867_v41 = vld [vmem:[#allocation2 + $0x70] sm:$0xff]   ;;  %v14886_v58 = vrot.slane %v7954_v17, 5 }
 0x40b   : > { %11546 = vmatprep.subr.bf16.mxu0 %v14794_v27  ;;  %v9980_v13 = vcombine.low %v7085_v28, %v7088_v49  ;;  %16392 = vst [vmem:[#allocation15_spill] sm:$0xff] %v14876_v23  ;;  %v14881_v16 = vld [vmem:[#allocation8 + $0x210] sm:$0xff]   ;;  %v11864_v49 = vld [vmem:[#allocation8 + $0x1e8] sm:$0xff]  }
 0x40c   : > { %16394 = vst [vmem:[#allocation17_spill] sm:$0xff] %v14881_v16  ;;  %v7899_v45 = vld [vmem:[#allocation2 + $0x30] sm:$0xf] }
 0x40e   : > { %11547 = vmatpush3.bf16.msra.mxu0 %v14794_v27 }
 0x40f   : > { %11349 = vmatmul.mubr.bf16.gmra.mxu1 %v11854_v59  ;;  %11548 = vmatprep.subr.bf16.mxu0 %v14816_v19  ;;  %v7896_v59 = vld [vmem:[#allocation2 + $0x20] sm:$0xf] }
 0x410   : > { %11416 = vmatprep.mubr.bf16.mxu1 %v9979_v57  ;;  %v7945_v40 = vshrl.u32 %v7896_v59, 16  ;;  %v7948_v43 = vshll.u32 %v7896_v59, 16  ;;  %v9981_v57 = vcombine.low %v7092_v34, %v7095_v12  ;;  %v7969_v59 = vshrl.u32 %v7899_v45, 16 }
 0x411   : > { %11469 = vmatmul.mubr.bf16.gmra.mxu0 %v11863_v55  ;;  %v7960_v55 = vrot.slane %v7958_v22, 4  ;;  %v7972_v34 = vshll.u32 %v7899_v45, 16  ;;  %v7902_v45 = vld [vmem:[#allocation2 + $0x40] sm:$0xf] }
 0x412   : > { %11472 = vmatprep.mubr.bf16.mxu0 %v11866_v47  ;;  %11549 = vmatpush3.bf16.msra.mxu0 %v14816_v19  ;;  %v7947_v42 = vrot.slane %v7945_v40, 4  ;;  %v7950_v21 = vrot.slane %v7948_v43, 5  ;;  %v14888_v47 = vld [vmem:[#allocation2 + $0x34] sm:$0xf]  ;;  %v11868_v43 = vld [vmem:[#allocation8 + $0x1e0] sm:$0xff]   ;;  %v7971_v15 = vrot.slane %v7969_v59, 4  ;;  %v16400_v59 = vcombine.low %v14676_v39, %v14689_v6 }
 0x413   : > { %11550 = vmatprep.subr.bf16.mxu0 %v14860_v33  ;;  %v7978_v40 = vshll.u32 %v14888_v47, 16  ;;  %v7982_v17 = vshrl.u32 %v14888_v47, 16  ;;  %v7974_v32 = vrot.slane %v7972_v34, 5  ;;  %v7993_v48 = vshrl.u32 %v7902_v45, 16  ;;  %v7905_v6 = vld [vmem:[#allocation2 + $0x50] sm:$0xf] }
 0x414   : > { %v7996_v3 = vshll.u32 %v7902_v45, 16  ;;  %v7988_v39 = vshll.u32 %v14913_v37, 16  ;;  %v8020_v19 = vshll.u32 %v7905_v6, 16 }
 0x416   : > { %11551 = vmatpush3.bf16.msra.mxu0 %v14860_v33  ;;  %v8716_v33 = vrot.slane %v14870_v51, 5  ;;  %v8006_v51 = vshrl.u32 %v14905_v29, 16 }
 0x417   : > { %v14878_v53 = vpop.f32.mrf.mxu1  ;;  %11417 = vmatmul.mubr.bf16.vlgmr.msra.gmra.mxu1 %v9980_v13  ;;  %11552 = vmatprep.subr.bf16.mxu0 %v14876_v23  ;;  %v7964_v13 = vshll.u32 %v14884_v38, 16 }
 0x418   : > { %16393 = vst [vmem:[#allocation21_spill] sm:$0xff] %v14878_v53  ;;  %11497 = vmatpush3.bf16.msra.mxu1 %v14657_v60  ;;  %11420 = vmatprep.mubr.bf16.mxu1 %v9981_v57  ;;  %v7951_v60 = vor.u32 %v7950_v21, %v7947_v42  ;;  %v7961_v57 = vor.u32 %v7960_v55, %v14886_v58  ;;  %v11874_v42 = vld [vmem:[#allocation2 + $0xc0] sm:$0xff]   ;;  %v8718_v45 = vrot.slane %v8716_v33, 4 }
 0x419   : > { %v14890_v28 = vpop.f32.mrf.mxu1  ;;  %11498 = vmatprep.subr.bf16.mxu1 %v11861_v62  ;;  %11473 = vmatmul.mubr.bf16.gmra.mxu0 %v11867_v41  ;;  %v11871_v41 = vld [vmem:[#allocation2 + $0x90] sm:$0xff]   ;;  %v11889_v21 = vld [vmem:[#allocation8 + $0x200] sm:$0xff]   ;;  %v7966_v46 = vrot.slane %v7964_v13, 5  ;;  %v8002_v13 = vshll.u32 %v14905_v29, 16 }
 0x41a   : > { %16395 = vst [vmem:[#allocation24_spill] sm:$0xff] %v14890_v28  ;;  %11476 = vmatprep.mubr.bf16.mxu0 %v11870_v61  ;;  %11553 = vmatpush3.bf16.msra.mxu0 %v14876_v23  ;;  %v14903_v61 = vld [vmem:[#allocation8 + $0x208] sm:$0xff]   ;;  %v7952_v55 = vrot.slane %v7951_v60, 4  ;;  %v14915_v23 = vrot.slane %v7978_v40, 5  ;;  %v7962_v34 = vrot.slane %v7961_v57, 4  ;;  %v11872_v60 = vld [vmem:[#allocation8 + $0x1d8] sm:$0xff]   ;;  %v7975_v40 = vor.u32 %v7974_v32, %v7971_v15 }
 0x41b   : > { %v14893_v12 = vpop.f32.mrf.mxu1  ;;  %11554 = vmatprep.subr.bf16.mxu0 %v14881_v16  ;;  %16398 = vst [vmem:[#allocation27_spill] sm:$0xff] %v14903_v61  ;;  %v11879_v28 = vld [vmem:[#allocation2 + $0xf0] sm:$0xff]  }
 0x41c   : > { %16396 = vst [vmem:[#allocation16_spill] sm:$0xff] %v14893_v12  ;;  %11499 = vmatpush3.bf16.msra.mxu1 %v11861_v62  ;;  %v7957_v57 = vsel %vm13772_vm11, %v7952_v55, %v14886_v58  ;;  %v7967_v32 = vsel %vm13772_vm11, %v7962_v34, %v7966_v46  ;;  %v11875_v58 = vld [vmem:[#allocation2 + $0xd0] sm:$0xff]   ;;  %v14941_v55 = vrot.slane %v8002_v13, 5  ;;  %v14945_v12 = vrot.slane %v7988_v39, 5  ;;  %v14947_v46 = vld [vmem:[#allocation2 + $0x48] sm:$0x1] }
 0x41d   : > { %v14901_v22 = vpop.f32.mrf.mxu1  ;;  %11500 = vmatprep.subr.bf16.mxu1 %v11864_v49  ;;  %v11878_v13 = vld [vmem:[#allocation2 + $0xe0] sm:$0xff]  }
 0x41e   : > { %16397 = vst [vmem:[#allocation25_spill] sm:$0xff] %v14901_v22  ;;  %11555 = vmatpush3.bf16.msra.mxu0 %v14881_v16  ;;  %v8650_v22 = vld [vmem:[#allocation2 + $0x20] sm:$0xe]  ;;  %v14934_v16 = vld [vmem:[#allocation2 + $0x54] sm:$0xf] }
 0x41f   : > { %v14907_v62 = vpop.f32.mrf.mxu1  ;;  %11421 = vmatmul.mubr.bf16.gmra.mxu1 %v9982_v56  ;;  %11556 = vmatprep.subr.bf16.mxu0 %v14903_v61  ;;  %v8030_v34 = vshrl.u32 %v14934_v16, 16  ;;  %v8737_v27 = vrot.slane %v14934_v16, 5 }
 0x420   : > { %16399 = vst [vmem:[#allocation28_spill] sm:$0xff] %v14907_v62  ;;  %11424 = vmatprep.mubr.bf16.mxu1 %v16400_v59  ;;  %11501 = vmatpush3.bf16.msra.mxu1 %v11864_v49  ;;  %v7984_v62 = vrot.slane %v7982_v17, 4  ;;  %v10051_v17 = vrot.slane %v8650_v22, 9  ;;  %v8719_v59 = vrot.slane %v14884_v38, 5  ;;  %v11876_v22 = vld [vmem:[#allocation8 + $0x1d0] sm:$0xff]   ;;  %v8008_v38 = vrot.slane %v8006_v51, 4 }
 0x421   : > { %v14921_v56 = vpop.f32.mrf.mxu1  ;;  %11502 = vmatprep.subr.bf16.mxu1 %v11868_v43  ;;  %11477 = vmatmul.mubr.bf16.gmra.mxu0 %v11871_v41  ;;  %v8651_v41 = vld [vmem:[#allocation2 + $0x30] sm:$0xe]  ;;  %v14956_v51 = vcombine.low %v7957_v57, %v7967_v32  ;;  %v14973_v57 = vld [vmem:[#allocation2 + $0x58] sm:$0x1]  ;;  %v14979_v32 = vld [vmem:[#allocation2 + $0x64] sm:$0xf] }
 0x422   : > { %16401 = vst [vmem:[#allocation29_spill] sm:$0xff] %v14921_v56  ;;  %11480 = vmatprep.mubr.bf16.mxu0 %v11874_v42  ;;  %11557 = vmatpush3.bf16.msra.mxu0 %v14903_v61  ;;  %v7985_v15 = vor.u32 %v7984_v62, %v14915_v23  ;;  %v7995_v42 = vrot.slane %v7993_v48, 4  ;;  %v7998_v61 = vrot.slane %v7996_v3, 5  ;;  %v8017_v56 = vshrl.u32 %v7905_v6, 16 }
 0x423   : > { %v14927_v49 = vpop.f32.mrf.mxu1  ;;  %11558 = vmatprep.subr.bf16.mxu0 %v11889_v21  ;;  %v8026_v62 = vshll.u32 %v14934_v16, 16  ;;  %v16405_v3 = vcombine.low %v14693_v7, %v14700_v2  ;;  %16406 = vst [vmem:[#allocation31_spill] sm:$0xff] %v14956_v51  ;;  %v10052_v39 = vrot.slane %v8651_v41, 9  ;;  %v8723_v6 = vrot.slane %v14888_v47, 5  ;;  %v11880_v47 = vld [vmem:[#allocation8 + $0x1c8] sm:$0xff]   ;;  %v11882_v51 = vld [vmem:[#allocation2 + $0x100] sm:$0xff]  }
 0x424   : > { %16402 = vst [vmem:[#allocation30_spill] sm:$0xff] %v14927_v49  ;;  %11503 = vmatpush3.bf16.msra.mxu1 %v11868_v43  ;;  %v14943_v43 = vrot.slane %v7975_v40, 4  ;;  %v14960_v40 = vsel %vm14004_vm14, %v10051_v17, %v8716_v33  ;;  %v14970_v7 = vsel %vm14004_vm14, %v8718_v45, %v8719_v59  ;;  %v8726_v2 = vrot.slane %v14913_v37, 5  ;;  %v7908_v33 = vld [vmem:[#allocation2 + $0x60] sm:$0xf] }
 0x425   : > { %v14939_v49 = vpop.f32.mrf.mxu1  ;;  %11504 = vmatprep.subr.bf16.mxu1 %v11872_v60  ;;  %v8032_v45 = vrot.slane %v8030_v34, 4  ;;  %v8652_v59 = vld [vmem:[#allocation2 + $0x40] sm:$0xe]  ;;  %v8054_v34 = vshrl.u32 %v14979_v32, 16 }
 0x426   : > { %16403 = vst [vmem:[#allocation33_spill] sm:$0xff] %v14939_v49  ;;  %11559 = vmatpush3.bf16.msra.mxu0 %v11889_v21  ;;  %v16407_v49 = vcombine.low %v14710_v4, %v14719_v0  ;;  %v7999_v21 = vor.u32 %v7998_v61, %v7995_v42  ;;  %v8009_v4 = vor.u32 %v8008_v38, %v14941_v55  ;;  %v8012_v0 = vshll.u32 %v14947_v46, 16 }
 0x427   : > { %v14951_v48 = vpop.f32.mrf.mxu1  ;;  %11425 = vmatmul.mubr.bf16.gmra.mxu1 %v16405_v3  ;;  %v14985_v61 = vrot.slane %v8026_v62, 5  ;;  %v8041_v42 = vshrl.u32 %v7908_v33, 16  ;;  %v8036_v3 = vshll.u32 %v14973_v57, 16  ;;  %v8050_v62 = vshll.u32 %v14979_v32, 16 }
 0x428   : > { %16404 = vst [vmem:[#allocation32_spill] sm:$0xff] %v14951_v48  ;;  %11428 = vmatprep.mubr.bf16.mxu1 %v16407_v49  ;;  %11505 = vmatpush3.bf16.msra.mxu1 %v11872_v60  ;;  %v14966_v48 = vrot.slane %v7985_v15, 4  ;;  %v8019_v60 = vrot.slane %v8017_v56, 4  ;;  %v8022_v49 = vrot.slane %v8020_v19, 5  ;;  %v8730_v15 = vrot.slane %v14905_v29, 5  ;;  %v11885_v29 = vld [vmem:[#allocation8 + $0x1c0] sm:$0xff]  }
 0x429   : > { %v14975_v17 = vpop.f32.mrf.mxu1  ;;  %11506 = vmatprep.subr.bf16.mxu1 %v11876_v22  ;;  %11481 = vmatmul.mubr.bf16.gmra.mxu0 %v11875_v58  ;;  %v14992_v19 = vsel %vm14004_vm14, %v10052_v39, %v8723_v6  ;;  %v8725_v56 = vrot.slane %v8723_v6, 4  ;;  %v8044_v58 = vshll.u32 %v7908_v33, 16  ;;  %v8000_v38 = vrot.slane %v7999_v21, 4  ;;  %v8653_v21 = vld [vmem:[#allocation2 + $0x50] sm:$0xe] }
 0x42a   : > { %16408 = vst [vmem:[#allocation20_spill] sm:$0xff] %v14975_v17  ;;  %11484 = vmatprep.mubr.bf16.mxu0 %v11878_v13  ;;  %v8010_v13 = vrot.slane %v8009_v4, 4  ;;  %v8023_v17 = vor.u32 %v8022_v49, %v8019_v60  ;;  %v10053_v39 = vrot.slane %v8652_v59, 9  ;;  %v8033_v6 = vor.u32 %v8032_v45, %v14985_v61 }
 0x42b   : > { %v14988_v41 = vpop.f32.mrf.mxu1  ;;  %v8732_v33 = vrot.slane %v8730_v15, 4  ;;  %v7991_v4 = vsel %vm13772_vm11, %v14966_v48, %v14945_v12  ;;  %v8043_v60 = vrot.slane %v8041_v42, 4  ;;  %v8046_v16 = vrot.slane %v8044_v58, 5  ;;  %v7911_v48 = vld [vmem:[#allocation2 + $0x70] sm:$0xf] }
 0x42c   : > { %16409 = vst [vmem:[#allocation19_spill] sm:$0xff] %v14988_v41  ;;  %11507 = vmatpush3.bf16.msra.mxu1 %v11876_v22  ;;  %v8014_v41 = vrot.slane %v8012_v0, 5  ;;  %v8733_v22 = vrot.slane %v14947_v46, 5  ;;  %v15013_v0 = vsel %vm14004_vm14, %v8725_v56, %v8726_v2  ;;  %v15015_v46 = vld [vmem:[#allocation2 + $0x68] sm:$0x1]  ;;  %v16412_v49 = vcombine.low %v14746_v5, %v14741_v11 }
 0x42d   : > { %v14997_v37 = vpop.f32.mrf.mxu1  ;;  %11508 = vmatprep.subr.bf16.mxu1 %v11880_v47  ;;  %v8056_v12 = vrot.slane %v8054_v34, 4  ;;  %v8024_v59 = vrot.slane %v8023_v17, 4  ;;  %v15031_v11 = vsel %vm14004_vm14, %v10053_v39, %v8730_v15  ;;  %v10054_v5 = vrot.slane %v8653_v21, 9 }
 0x42e   : > { %16410 = vst [vmem:[#allocation26_spill] sm:$0xff] %v14997_v37  ;;  %v16411_v37 = vcombine.low %v14723_v36, %v14729_v20  ;;  %v8005_v36 = vsel %vm13772_vm11, %v8000_v38, %v14941_v55  ;;  %v8038_v20 = vrot.slane %v8036_v3, 5  ;;  %v8015_v45 = vsel %vm13772_vm11, %v8010_v13, %v8014_v41 }
 0x42f   : > { %v15002_v53 = vpop.f32.mrf.mxu1  ;;  %v8034_v55 = vrot.slane %v8033_v6, 4  ;;  %v15037_v56 = vsel %vm14004_vm14, %v8732_v33, %v8733_v22  ;;  %v8739_v42 = vrot.slane %v8737_v27, 4  ;;  %v8740_v58 = vrot.slane %v14973_v57, 5  ;;  %v11883_v57 = vld [vmem:[#allocation2 + $0x110] sm:$0xff]   ;;  %v11886_v6 = vld [vmem:[#allocation2 + $0x120] sm:$0xff]  }
 0x430   : > { %11429 = vmatmul.mubr.bf16.gmra.mxu1 %v16411_v37  ;;  %v15023_v37 = vrot.slane %v8050_v62, 5  ;;  %v8047_v17 = vor.u32 %v8046_v16, %v8043_v60  ;;  %v8060_v41 = vshll.u32 %v15015_v46, 16  ;;  %v8065_v15 = vshrl.u32 %v7911_v48, 16 }
 0x431   : > { %11432 = vmatprep.mubr.bf16.mxu1 %v16412_v49  ;;  %11509 = vmatpush3.bf16.msra.mxu1 %v11880_v47  ;;  %v15025_v2 = vpop.f32.mrf.mxu1  ;;  %v15033_v47 = vld [vmem:[#allocation2 + $0x74] sm:$0xf]  ;;  %v8068_v3 = vshll.u32 %v7911_v48, 16  ;;  %v15060_v22 = vcombine.low %v8005_v36, %v8015_v45  ;;  %v8029_v21 = vsel %vm13772_vm11, %v8024_v59, %v14985_v61  ;;  %v8039_v60 = vsel %vm13772_vm11, %v8034_v55, %v8038_v20  ;;  %v15079_v49 = vld [vmem:[#allocation2 + $0x84] sm:$0xf] }
 0x432   : > { %11510 = vmatprep.subr.bf16.mxu1 %v11885_v29  ;;  %11485 = vmatmul.mubr.bf16.gmra.mxu0 %v11879_v28  ;;  %v8057_v62 = vor.u32 %v8056_v12, %v15023_v37  ;;  %v8074_v34 = vshll.u32 %v15033_v47, 16  ;;  %v8078_v13 = vshrl.u32 %v15033_v47, 16  ;;  %v16414_v36 = vcombine.low %v14753_v50, %v14759_v1  ;;  %v8654_v45 = vld [vmem:[#allocation2 + $0x60] sm:$0xe] }
 0x433   : > { %v15040_v38 = vpop.f32.mrf.mxu1  ;;  %11488 = vmatprep.mubr.bf16.mxu0 %v11882_v51  ;;  %v16413_v51 = vsel %vm13772_vm11, %v14943_v43, %v14915_v23  ;;  %v15071_v23 = vsel %vm14004_vm14, %v10054_v5, %v8737_v27  ;;  %v15077_v43 = vld [vmem:[#allocation2 + $0x78] sm:$0x1]  ;;  %v8048_v20 = vrot.slane %v8047_v17, 4  ;;  %v8062_v12 = vrot.slane %v8060_v41, 5 }
 0x434   : > { %v15055_v33 = vcombine.low %v16413_v51, %v7991_v4  ;;  %v7914_v4 = vld [vmem:[#allocation2 + $0x80] sm:$0xf]  ;;  %v8067_v48 = vrot.slane %v8065_v15, 4  ;;  %v8070_v27 = vrot.slane %v8068_v3, 5  ;;  %v16415_v59 = vcombine.low %v14771_v18, %v14766_v54  ;;  %v8655_v51 = vld [vmem:[#allocation2 + $0x70] sm:$0xe] }
 0x435   : > { %11511 = vmatpush3.bf16.msra.mxu1 %v11885_v29  ;;  %v15048_v39 = vpop.f32.mrf.mxu1  ;;  %v8058_v5 = vrot.slane %v8057_v62, 4  ;;  %v15089_v55 = vrot.slane %v8074_v34, 5  ;;  %v8089_v50 = vshrl.u32 %v7914_v4, 16  ;;  %v8092_v1 = vshll.u32 %v7914_v4, 16  ;;  %v11887_v54 = vld [vmem:[#allocation2 + $0x130] sm:$0xff]  }
 0x436   : > { %11592 = vmatprep.subr.bf16.mxu1 %v14587_v31  ;;  %v15075_v31 = vsel %vm14004_vm14, %v8739_v42, %v8740_v58  ;;  %v8080_v42 = vrot.slane %v8078_v13, 4  ;;  %v8744_v58 = vrot.slane %v14979_v32, 5  ;;  %v8098_v17 = vshll.u32 %v15079_v49, 16 }
 0x437   : > { %v15081_v61 = vpop.f32.mrf.mxu1  ;;  %v8102_v41 = vshrl.u32 %v15079_v49, 16  ;;  %v15096_v15 = vcombine.low %v8029_v21, %v8039_v60  ;;  %v8084_v18 = vshll.u32 %v15077_v43, 16  ;;  %v10055_v3 = vrot.slane %v8654_v45, 9  ;;  %v15107_v21 = vld [vmem:[#allocation2 + $0x94] sm:$0xf] }
 0x438   : > { %11433 = vmatmul.mubr.bf16.gmra.mxu1 %v16414_v36  ;;  %v8053_v32 = vsel %vm13772_vm11, %v8048_v20, %v15023_v37  ;;  %v8071_v34 = vor.u32 %v8070_v27, %v8067_v48  ;;  %v8747_v13 = vrot.slane %v15015_v46, 5  ;;  %v10056_v4 = vrot.slane %v8655_v51, 9  ;;  %v15117_v48 = vld [vmem:[#allocation2 + $0x88] sm:$0x1] }
 0x439   : > { %11436 = vmatprep.mubr.bf16.mxu1 %v16415_v59  ;;  %v15092_v16 = vpop.f32.mrf.mxu1  ;;  %v8063_v60 = vsel %vm13772_vm11, %v8058_v5, %v8062_v12  ;;  %v8081_v36 = vor.u32 %v8080_v42, %v15089_v55  ;;  %v8746_v45 = vrot.slane %v8744_v58, 4  ;;  %v8751_v59 = vrot.slane %v15033_v47, 5 }
 0x43a   : > { %11489 = vmatmul.mubr.bf16.gmra.mxu0 %v11883_v57  ;;  %v7917_v57 = vld [vmem:[#allocation2 + $0x90] sm:$0xf]  ;;  %v8091_v29 = vrot.slane %v8089_v50, 4  ;;  %v8094_v37 = vrot.slane %v8092_v1, 5  ;;  %v15115_v20 = vrot.slane %v8098_v17, 5  ;;  %v8104_v46 = vrot.slane %v8102_v41, 4 }
 0x43b   : > { %v15101_v62 = vpop.f32.mrf.mxu1  ;;  %11492 = vmatprep.mubr.bf16.mxu0 %v11886_v6  ;;  %v8113_v27 = vshrl.u32 %v7917_v57, 16  ;;  %v8116_v51 = vshll.u32 %v7917_v57, 16  ;;  %v8122_v28 = vshll.u32 %v15107_v21, 16  ;;  %v8126_v12 = vshrl.u32 %v15107_v21, 16 }
 0x43c   : > { %v16417_v47 = vcombine.low %v14775_v52, %v14783_v63  ;;  %v15126_v42 = vrot.slane %v8071_v34, 4  ;;  %v15128_v50 = vrot.slane %v8084_v18, 5  ;;  %v15132_v1 = vsel %vm14004_vm14, %v10055_v3, %v8744_v58  ;;  %v15150_v58 = vld [vmem:[#allocation2 + $0x98] sm:$0x1]  ;;  %v7920_v18 = vld [vmem:[#allocation2 + $0xc0] sm:$0xf] }
 0x43d   : > { %v15113_v6 = vpop.f32.mrf.mxu1  ;;  %v8754_v17 = vrot.slane %v15077_v43, 5  ;;  %v16418_v41 = vcombine.low %v14798_v14, %v14791_v35  ;;  %v15138_v57 = vcombine.low %v8053_v32, %v8063_v60  ;;  %v15144_v52 = vsel %vm14004_vm14, %v8746_v45, %v8747_v13  ;;  %v15156_v34 = vld [vmem:[#allocation2 + $0xc4] sm:$0xf] }
 0x43e   : > { %v15148_v63 = vsel %vm14004_vm14, %v10056_v4, %v8751_v59  ;;  %v8753_v3 = vrot.slane %v8751_v59, 4  ;;  %v8095_v35 = vor.u32 %v8094_v37, %v8091_v29  ;;  %v8105_v14 = vor.u32 %v8104_v46, %v15115_v20  ;;  %v8656_v37 = vld [vmem:[#allocation2 + $0x80] sm:$0xe] }
 0x43f   : > { %v15121_v5 = vpop.f32.mrf.mxu1  ;;  %v8108_v32 = vshll.u32 %v15117_v48, 16  ;;  %v8115_v13 = vrot.slane %v8113_v27, 4  ;;  %v8118_v60 = vrot.slane %v8116_v51, 5  ;;  %v8128_v4 = vrot.slane %v8126_v12, 4 }
 0x440   : > { %16416 = vst [vmem:[#allocation34_spill] sm:$0xff] %v15121_v5  ;;  %11437 = vmatmul.mubr.bf16.gmra.mxu1 %v16417_v47  ;;  %v15140_v5 = vrot.slane %v8081_v36, 4  ;;  %v15158_v36 = vrot.slane %v8122_v28, 5  ;;  %v16421_v47 = vcombine.low %v14960_v40, %v14970_v7  ;;  %v8077_v29 = vsel %vm13772_vm11, %v15126_v42, %v15089_v55 }
 0x441   : > { %11440 = vmatprep.mubr.bf16.mxu1 %v16418_v41  ;;  %v15152_v43 = vpop.f32.mrf.mxu1  ;;  %v8132_v59 = vshll.u32 %v15150_v58, 16  ;;  %v8140_v46 = vshll.u32 %v7920_v18, 16  ;;  %v8146_v40 = vshll.u32 %v15156_v34, 16  ;;  %v8150_v7 = vshrl.u32 %v15156_v34, 16 }
 0x442   : > { %16419 = vst [vmem:[#allocation35_spill] sm:$0xff] %v15152_v43  ;;  %11493 = vmatmul.mubr.bf16.gmra.mxu0 %v11887_v54  ;;  %v8137_v54 = vshrl.u32 %v7920_v18, 16  ;;  %v8087_v28 = vsel %vm13772_vm11, %v15140_v5, %v15128_v50  ;;  %v8096_v55 = vrot.slane %v8095_v35, 4  ;;  %v8106_v12 = vrot.slane %v8105_v14, 4  ;;  %v7923_v18 = vld [vmem:[#allocation2 + $0xd0] sm:$0xf] }
 0x443   : > { %v15160_v45 = vpop.f32.mrf.mxu1  ;;  %11560 = vmatprep.mubr.bf16.mxu0 %v16421_v47  ;;  %v8110_v42 = vrot.slane %v8108_v32, 5  ;;  %v8758_v41 = vrot.slane %v15079_v49, 5  ;;  %v15183_v47 = vsel %vm14004_vm14, %v8753_v3, %v8754_v17  ;;  %v8119_v5 = vor.u32 %v8118_v60, %v8115_v13  ;;  %v15194_v14 = vld [vmem:[#allocation2 + $0xc8] sm:$0x1] }
 0x444   : > { %16420 = vst [vmem:[#allocation36_spill] sm:$0xff] %v15160_v45  ;;  %v8129_v50 = vor.u32 %v8128_v4, %v15158_v36  ;;  %v10057_v27 = vrot.slane %v8656_v37, 9  ;;  %v8657_v45 = vld [vmem:[#allocation2 + $0x90] sm:$0xe]  ;;  %v15191_v35 = vrot.slane %v8132_v59, 5  ;;  %v8765_v49 = vrot.slane %v15107_v21, 5 }
 0x445   : > { %v15178_v51 = vpop.f32.mrf.mxu1  ;;  %v8139_v32 = vrot.slane %v8137_v54, 4  ;;  %v8142_v17 = vrot.slane %v8140_v46, 5  ;;  %v16424_v3 = vcombine.low %v14823_v44, %v14827_v25  ;;  %v15199_v13 = vrot.slane %v8146_v40, 5  ;;  %v15201_v4 = vld [vmem:[#allocation2 + $0xd4] sm:$0xf] }
 0x446   : > { %16422 = vst [vmem:[#allocation37_spill] sm:$0xff] %v15178_v51  ;;  %v16423_v51 = vcombine.low %v14805_v10, %v14811_v24  ;;  %v8152_v60 = vrot.slane %v8150_v7, 4  ;;  %v8161_v37 = vshrl.u32 %v7923_v18, 16  ;;  %v8164_v10 = vshll.u32 %v7923_v18, 16  ;;  %v15211_v25 = vpop.f32.mrf.mxu0 }
 0x447   : > { %v15186_v43 = vpop.f32.mrf.mxu1  ;;  %v8101_v21 = vsel %vm13772_vm11, %v8096_v55, %v15115_v20  ;;  %v8111_v59 = vsel %vm13772_vm11, %v8106_v12, %v8110_v42  ;;  %v8760_v54 = vrot.slane %v8758_v41, 4  ;;  %v8761_v44 = vrot.slane %v15117_v48, 5 }
 0x448   : > { %11441 = vmatmul.mubr.bf16.gmra.mxu1 %v16423_v51  ;;  %v16425_v46 = vcombine.low %v14992_v19, %v15013_v0  ;;  %v8120_v40 = vrot.slane %v8119_v5, 4  ;;  %v8130_v7 = vrot.slane %v8129_v50, 4  ;;  %v10058_v51 = vrot.slane %v8657_v45, 9  ;;  %v15225_v19 = vpop.f32.mrf.mxu0 }
 0x449   : > { %11444 = vmatprep.mubr.bf16.mxu1 %v16424_v3  ;;  %v15203_v24 = vpop.f32.mrf.mxu1  ;;  %v8768_v18 = vrot.slane %v15150_v58, 5  ;;  %v16427_v20 = vcombine.low %v15031_v11, %v15037_v56  ;;  %v8767_v55 = vrot.slane %v8765_v49, 4  ;;  %v8156_v48 = vshll.u32 %v15194_v14, 16 }
 0x44a   : > { %11561 = vmatmul.mubr.bf16.vlgmr.msra.gmra.mxu0 %v16425_v46  ;;  %v8170_v12 = vshll.u32 %v15201_v4, 16  ;;  %v8174_v42 = vshrl.u32 %v15201_v4, 16  ;;  %v8143_v0 = vor.u32 %v8142_v17, %v8139_v32  ;;  %v8153_v45 = vor.u32 %v8152_v60, %v15199_v13  ;;  %v15242_v32 = vpop.f32.mrf.mxu0  ;;  %v8658_v60 = vld [vmem:[#allocation2 + $0xc0] sm:$0xe] }
 0x44b   : > { %v15217_v3 = vpop.f32.mrf.mxu1  ;;  %11564 = vmatprep.mubr.bf16.mxu0 %v16427_v20  ;;  %v8163_v5 = vrot.slane %v8161_v37, 4  ;;  %v8166_v58 = vrot.slane %v8164_v10, 5  ;;  %v15230_v46 = vcombine.low %v8077_v29, %v8087_v28  ;;  %v15234_v56 = vcombine.low %v8101_v21, %v8111_v59 }
 0x44c   : > { %16426 = vst [vmem:[#allocation38_spill] sm:$0xff] %v15217_v3  ;;  %v15238_v20 = vsel %vm14004_vm14, %v10057_v27, %v8758_v41  ;;  %v15240_v3 = vld [vmem:[#allocation2 + $0xd8] sm:$0x1]  ;;  %v8125_v17 = vsel %vm13772_vm11, %v8120_v40, %v15158_v36  ;;  %v15249_v29 = vsel %vm14004_vm14, %v8760_v54, %v8761_v44  ;;  %v15253_v28 = vsel %vm14004_vm14, %v10058_v51, %v8765_v49  ;;  %v7926_v41 = vld [vmem:[#allocation2 + $0xe0] sm:$0xf]  ;;  %v15273_v44 = vpop.f32.mrf.mxu0 }
 0x44d   : > { %v15228_v50 = vpop.f32.mrf.mxu1  ;;  %v8772_v27 = vrot.slane %v15156_v34, 5  ;;  %v16429_v10 = vcombine.low %v14834_v26, %v14840_v9  ;;  %v8135_v36 = vsel %vm13772_vm11, %v8130_v7, %v15191_v35  ;;  %v15266_v21 = vsel %vm14004_vm14, %v8767_v55, %v8768_v18  ;;  %v15270_v54 = vld [vmem:[#allocation2 + $0xe4] sm:$0xf] }
 0x44e   : > { %v15268_v49 = vrot.slane %v8170_v12, 5  ;;  %v8176_v59 = vrot.slane %v8174_v42, 4  ;;  %v16430_v34 = vld [vmem:[#allocation31_spill] sm:$0xff]  ;;  %v8144_v40 = vrot.slane %v8143_v0, 4  ;;  %v8154_v26 = vrot.slane %v8153_v45, 4  ;;  %v15278_v12 = vpop.f32.mrf.mxu0 }
 0x44f   : > { %v15256_v37 = vpop.f32.mrf.mxu1  ;;  %v8158_v9 = vrot.slane %v8156_v48, 5  ;;  %v8167_v51 = vor.u32 %v8166_v58, %v8163_v5  ;;  %v8180_v35 = vshll.u32 %v15240_v3, 16  ;;  %v10059_v7 = vrot.slane %v8658_v60, 9  ;;  %v8659_v0 = vld [vmem:[#allocation2 + $0xd0] sm:$0xe] }
 0x450   : > { %16428 = vst [vmem:[#allocation39_spill] sm:$0xff] %v15256_v37  ;;  %11445 = vmatmul.mubr.bf16.gmra.mxu1 %v16429_v10  ;;  %v8185_v18 = vshrl.u32 %v7926_v41, 16  ;;  %v8188_v55 = vshll.u32 %v7926_v41, 16  ;;  %v16432_v42 = vcombine.low %v15071_v23, %v15075_v31  ;;  %v8775_v11 = vrot.slane %v15194_v14, 5  ;;  %v15298_v41 = vpop.f32.mrf.mxu0 }
 0x451   : > { %11512 = vmatprep.mubr.bf16.mxu1 %v16430_v34  ;;  %v15275_v10 = vpop.f32.mrf.mxu1  ;;  %v8774_v34 = vrot.slane %v8772_v27, 4  ;;  %v8194_v48 = vshll.u32 %v15270_v54, 16  ;;  %v8198_v45 = vshrl.u32 %v15270_v54, 16  ;;  %v16434_v58 = vcombine.low %v15132_v1, %v15144_v52 }
 0x452   : > { %16431 = vst [vmem:[#allocation31_spill] sm:$0xff] %v15275_v10  ;;  %11565 = vmatmul.mubr.bf16.gmra.mxu0 %v16432_v42  ;;  %v15291_v60 = vcombine.low %v8125_v17, %v8135_v36  ;;  %v10073_v23 = vcombine.low %v15238_v20, %v15249_v29  ;;  %v8177_v14 = vor.u32 %v8176_v59, %v15268_v49  ;;  %v15305_v52 = vrot.slane %v8167_v51, 4  ;;  %v7929_v36 = vld [vmem:[#allocation2 + $0xf0] sm:$0xf]  ;;  %v11893_v10 = vld [vmem:[#allocation8 + $0x238] sm:$0xff]  }
 0x453   : > { %v15286_v5 = vpop.f32.mrf.mxu1  ;;  %11568 = vmatprep.mubr.bf16.mxu0 %v16434_v58  ;;  %v8149_v42 = vsel %vm13772_vm11, %v8144_v40, %v15199_v13  ;;  %v8159_v1 = vsel %vm13772_vm11, %v8154_v26, %v8158_v9  ;;  %v8779_v17 = vrot.slane %v15201_v4, 5  ;;  %v15310_v29 = vrot.slane %v8180_v35, 5  ;;  %v15324_v9 = vld [vmem:[#allocation2 + $0xf4] sm:$0xf] }
 0x454   : > { %16433 = vst [vmem:[#allocation40_spill] sm:$0xff] %v15286_v5  ;;  %v10060_v58 = vrot.slane %v8659_v0, 9  ;;  %v8187_v59 = vrot.slane %v8185_v18, 4  ;;  %v8190_v31 = vrot.slane %v8188_v55, 5  ;;  %v15312_v5 = vpop.f32.mrf.mxu0  ;;  %v15316_v13 = vsel %vm14004_vm14, %v10059_v7, %v8772_v27  ;;  %v15329_v55 = vld [vmem:[#allocation2 + $0xe8] sm:$0x1] }
 0x455   : > { %v15308_v20 = vpop.f32.mrf.mxu1  ;;  %v15320_v40 = vsel %vm14004_vm14, %v8774_v34, %v8775_v11  ;;  %v15322_v26 = vrot.slane %v8194_v48, 5  ;;  %v8200_v4 = vrot.slane %v8198_v45, 4  ;;  %v15327_v35 = vcombine.low %v8149_v42, %v8159_v1  ;;  %v16436_v7 = vld [vmem:[#allocation21_spill] sm:$0xff] }
 0x456   : > { %16435 = vst [vmem:[#allocation41_spill] sm:$0xff] %v15308_v20  ;;  %v8178_v18 = vrot.slane %v8177_v14, 4  ;;  %v8209_v0 = vshrl.u32 %v7929_v36, 16  ;;  %v8212_v27 = vshll.u32 %v7929_v36, 16  ;;  %v15333_v11 = vpop.f32.mrf.mxu0  ;;  %v8781_v34 = vrot.slane %v8779_v17, 4  ;;  %v16437_v14 = vld [vmem:[#allocation23_spill] sm:$0xff] }
 0x457   : > { %v11226_v51 = vpop.f32.mrf.mxu1  ;;  %v8782_v48 = vrot.slane %v15240_v3, 5  ;;  %v8191_v1 = vor.u32 %v8190_v31, %v8187_v59  ;;  %v16438_v36 = vld [vmem:[#allocation24_spill] sm:$0xff]  ;;  %v16440_v3 = vcombine.low %v15148_v63, %v15183_v47  ;;  %v8204_v42 = vshll.u32 %v15329_v55, 16  ;;  %v15356_v31 = vld [vmem:[#allocation2 + $0xf8] sm:$0x1] }
 0x458   : > { %11513 = vmatmul.mubr.bf16.vlgmr.msra.gmra.mxu1 %v15055_v33  ;;  %v5267_v20 = vadd.f32 %v11226_v51, %v16436_v7  ;;  %v8173_v33 = vsel %vm13772_vm11, %v15305_v52, %v15268_v49  ;;  %v15349_v49 = vpop.f32.mrf.mxu0  ;;  %v8201_v52 = vor.u32 %v8200_v4, %v15322_v26  ;;  %v16441_v63 = vld [vmem:[#allocation16_spill] sm:$0xff] }
 0x459   : > { %11600 = vmatpush3.bf16.msra.mxu1 %v11893_v10  ;;  %11516 = vmatprep.mubr.bf16.mxu1 %v15060_v22  ;;  %v5258_v45 = vpop.f32.mrf.mxu1  ;;  %v8218_v10 = vshll.u32 %v15324_v9, 16  ;;  %v8222_v22 = vshrl.u32 %v15324_v9, 16 }
 0x45a   : > { %11593 = vmatprep.subr.bf16.mxu1 %v16437_v14  ;;  %v5259_v51 = vadd.f32 %v5258_v45, %v16438_v36  ;;  %v15347_v7 = vadd.f32 %v15211_v25, %v5267_v20  ;;  %11569 = vmatmul.mubr.bf16.gmra.mxu0 %v16440_v3  ;;  %v8183_v45 = vsel %vm13772_vm11, %v8178_v18, %v15310_v29  ;;  %v8211_v20 = vrot.slane %v8209_v0, 4  ;;  %v15370_v3 = vpop.f32.mrf.mxu0  ;;  %v8660_v29 = vld [vmem:[#allocation2 + $0xe0] sm:$0xe] }
 0x45b   : > { %v11227_v59 = vpop.f32.mrf.mxu1  ;;  %11572 = vmatprep.mubr.bf16.mxu0 %v10073_v23  ;;  %v15363_v25 = vsel %vm14004_vm14, %v10060_v58, %v8779_v17  ;;  %v8214_v36 = vrot.slane %v8212_v27, 5  ;;  %v15374_v23 = vsel %vm14004_vm14, %v8781_v34, %v8782_v48  ;;  %v8786_v18 = vrot.slane %v15270_v54, 5  ;;  %v16443_v58 = vld [vmem:[#allocation22_spill] sm:$0xff] }
 0x45c   : > { %16439 = vst [vmem:[#allocation21_spill] sm:$0xff] %v15347_v7  ;;  %v5270_v47 = vadd.f32 %v11227_v59, %v16441_v63  ;;  %v15367_v4 = vadd.f32 %v15225_v19, %v5259_v51  ;;  %v8192_v0 = vrot.slane %v8191_v1, 4  ;;  %v15378_v27 = vrot.slane %v8218_v10, 5  ;;  %v16444_v51 = vld [vmem:[#allocation25_spill] sm:$0xff] }
 0x45d   : > { %11601 = vmatpush3.bf16.msra.mxu1 %v16437_v14  ;;  %v5261_v17 = vpop.f32.mrf.mxu1  ;;  %v8224_v59 = vrot.slane %v8222_v22, 4  ;;  %v8228_v19 = vshll.u32 %v15356_v31, 16  ;;  %v8202_v34 = vrot.slane %v8201_v52, 4  ;;  %v8206_v48 = vrot.slane %v8204_v42, 5  ;;  %v15387_v7 = vld [vmem:[#allocation2 + $0xf0] sm:$0xe] }
 0x45e   : > { %16442 = vst [vmem:[#allocation23_spill] sm:$0xff] %v15367_v4  ;;  %11594 = vmatprep.subr.bf16.mxu1 %v16443_v58  ;;  %v5262_v14 = vadd.f32 %v5261_v17, %v16444_v51  ;;  %v15383_v63 = vadd.f32 %v15242_v32, %v5270_v47  ;;  %v15385_v4 = vpop.f32.mrf.mxu0  ;;  %v15390_v1 = vcombine.low %v8173_v33, %v8183_v45  ;;  %v10061_v37 = vrot.slane %v8660_v29, 9  ;;  %v16445_v17 = vld [vmem:[#allocation28_spill] sm:$0xff]  ;;  %v7932_v33 = vld [vmem:[#allocation2 + $0x100] sm:$0xf]  ;;  %v16446_v47 = vld [vmem:[#allocation18_spill] sm:$0xff] }
 0x45f   : > { %v11230_v54 = vpop.f32.mrf.mxu1  ;;  %v8215_v22 = vor.u32 %v8214_v36, %v8211_v20  ;;  %v8788_v52 = vrot.slane %v8786_v18, 4  ;;  %v8197_v20 = vsel %vm13772_vm11, %v8192_v0, %v15322_v26  ;;  %v15408_v36 = vrot.slane %v8228_v19, 5  ;;  %v16447_v29 = vld [vmem:[#allocation29_spill] sm:$0xff] }
 0x460   : > { %11517 = vmatmul.mubr.bf16.gmra.mxu1 %v15096_v15  ;;  %v5283_v51 = vadd.f32 %v11230_v54, %v16445_v17  ;;  %v15396_v32 = vadd.f32 %v15273_v44, %v5262_v14  ;;  %v15400_v42 = vpop.f32.mrf.mxu0  ;;  %v8789_v15 = vrot.slane %v15329_v55, 5  ;;  %v8225_v44 = vor.u32 %v8224_v59, %v15378_v27  ;;  %v15423_v59 = vld [vmem:[#allocation2 + $0x104] sm:$0xf] }
 0x461   : > { %11520 = vmatprep.mubr.bf16.mxu1 %v15138_v57  ;;  %11602 = vmatpush3.bf16.msra.mxu1 %v16443_v58  ;;  %v5274_v45 = vpop.f32.mrf.mxu1  ;;  %v10062_v57 = vrot.slane %v15387_v7, 9  ;;  %v16448_v54 = vcombine.low %v15253_v28, %v15266_v21  ;;  %v8207_v26 = vsel %vm13772_vm11, %v8202_v34, %v8206_v48  ;;  %v8793_v0 = vrot.slane %v15324_v9, 5  ;;  %v16450_v21 = vld [vmem:[#allocation30_spill] sm:$0xff] }
 0x462   : > { %11595 = vmatprep.subr.bf16.mxu1 %v16446_v47  ;;  %v5275_v58 = vadd.f32 %v5274_v45, %v16447_v29  ;;  %v15413_v14 = vadd.f32 %v15278_v12, %v5283_v51  ;;  %v15415_v55 = vpop.f32.mrf.mxu0  ;;  %v16449_v7 = vcombine.low %v15316_v13, %v15320_v40  ;;  %v15428_v12 = vrot.slane %v8215_v22, 4  ;;  %v8662_v40 = vld [vmem:[#allocation2 + $0x100] sm:$0xe] }
 0x463   : > { %11573 = vmatmul.mubr.bf16.gmra.mxu0 %v16448_v54  ;;  %v11231_v19 = vpop.f32.mrf.mxu1  ;;  %v8787_v17 = vsel %vm14004_vm14, %v10061_v37, %v8786_v18  ;;  %v8233_v51 = vshrl.u32 %v7932_v33, 16  ;;  %v8236_v28 = vshll.u32 %v7932_v33, 16  ;;  %v8790_v13 = vsel %vm14004_vm14, %v8788_v52, %v8789_v15  ;;  %v16452_v29 = vld [vmem:[#allocation15_spill] sm:$0xff] }
 0x464   : > { %11576 = vmatprep.mubr.bf16.mxu0 %v16449_v7  ;;  %v5286_v45 = vadd.f32 %v11231_v19, %v16450_v21  ;;  %v15434_v34 = vadd.f32 %v15298_v41, %v5275_v58  ;;  %v15437_v9 = vpop.f32.mrf.mxu0  ;;  %v8800_v48 = vrot.slane %v15423_v59, 5  ;;  %v15443_v37 = vcombine.low %v8197_v20, %v8207_v26  ;;  %v7934_v7 = vld [vmem:[#allocation2 + $0x108] sm:$0x1] }
 0x465   : > { %11603 = vmatpush3.bf16.msra.mxu1 %v16446_v47  ;;  %v5277_v22 = vpop.f32.mrf.mxu1  ;;  %v8796_v18 = vrot.slane %v15356_v31, 5  ;;  %v8242_v41 = vshll.u32 %v15423_v59, 16  ;;  %v8246_v33 = vshrl.u32 %v15423_v59, 16  ;;  %v16453_v47 = vld [vmem:[#allocation33_spill] sm:$0xff]  ;;  %v15454_v15 = vrot.slane %v8225_v44, 4 }
 0x466   : > { %16451 = vst [vmem:[#allocation24_spill] sm:$0xff] %v15434_v34  ;;  %11596 = vmatprep.subr.bf16.mxu1 %v16452_v29  ;;  %v5278_v58 = vadd.f32 %v5277_v22, %v16453_v47  ;;  %v15450_v54 = vadd.f32 %v15312_v5, %v5286_v45  ;;  %v15452_v52 = vpop.f32.mrf.mxu0  ;;  %v8795_v19 = vrot.slane %v8793_v0, 4  ;;  %v10077_v20 = vcombine.low %v8787_v17, %v8790_v13  ;;  %v16454_v34 = vld [vmem:[#allocation32_spill] sm:$0xff]  ;;  %v15465_v44 = vld [vmem:[#allocation2 + $0x110] sm:$0xf] }
 0x467   : > { %v11234_v21 = vpop.f32.mrf.mxu1  ;;  %v8235_v31 = vrot.slane %v8233_v51, 4  ;;  %v8238_v26 = vrot.slane %v8236_v28, 5  ;;  %v10063_v10 = vrot.slane %v8662_v40, 9  ;;  %v8802_v45 = vrot.slane %v8800_v48, 4  ;;  %v16455_v17 = vld [vmem:[#allocation17_spill] sm:$0xff] }
 0x468   : > { %11521 = vmatmul.mubr.bf16.gmra.mxu1 %v15230_v46  ;;  %v5299_v59 = vadd.f32 %v11234_v21, %v16454_v34  ;;  %v15459_v22 = vadd.f32 %v15333_v11, %v5278_v58  ;;  %v15462_v5 = vpop.f32.mrf.mxu0  ;;  %v8803_v47 = vrot.slane %v7934_v7, 5  ;;  %v15470_v51 = vsel %vm14004_vm14, %v10062_v57, %v8793_v0  ;;  %v16459_v21 = vld [vmem:[#allocation19_spill] sm:$0xff] }
 0x469   : > { %11524 = vmatprep.mubr.bf16.mxu1 %v15234_v56  ;;  %11604 = vmatpush3.bf16.msra.mxu1 %v16452_v29  ;;  %v5290_v46 = vpop.f32.mrf.mxu1  ;;  %v15472_v28 = vrot.slane %v8242_v41, 5  ;;  %v8248_v11 = vrot.slane %v8246_v33, 4  ;;  %v8252_v34 = vshll.u32 %v7934_v7, 16  ;;  %v16456_v56 = vld [vmem:[#allocation20_spill] sm:$0xff]  ;;  %v16458_v58 = vcombine.low %v15363_v25, %v15374_v23  ;;  %v7936_v41 = vld [vmem:[#allocation2 + $0x114] sm:$0xf] }
 0x46a   : > { %11597 = vmatprep.subr.bf16.mxu1 %v16455_v17  ;;  %v5291_v13 = vadd.f32 %v5290_v46, %v16456_v56  ;;  %v15476_v40 = vadd.f32 %v15349_v49, %v5299_v59  ;;  %v15478_v29 = vpop.f32.mrf.mxu0  ;;  %v8797_v0 = vsel %vm14004_vm14, %v8795_v19, %v8796_v18  ;;  %v8239_v7 = vor.u32 %v8238_v26, %v8235_v31  ;;  %v11894_v18 = vld [vmem:[#allocation8 + $0x210] sm:$0xff]  }
 0x46b   : > { %11577 = vmatmul.mubr.bf16.gmra.mxu0 %v16458_v58  ;;  %v11235_v33 = vpop.f32.mrf.mxu1  ;;  %v8257_v25 = vshrl.u32 %v15465_v44, 16  ;;  %v8807_v23 = vrot.slane %v7936_v41, 5  ;;  %v8801_v19 = vsel %vm14004_vm14, %v10063_v10, %v8800_v48  ;;  %v8804_v56 = vsel %vm14004_vm14, %v8802_v45, %v8803_v47 }
 0x46c   : > { %16457 = vst [vmem:[#allocation16_spill] sm:$0xff] %v15476_v40  ;;  %11580 = vmatprep.mubr.bf16.mxu0 %v10077_v20  ;;  %v5302_v59 = vadd.f32 %v11235_v33, %v16459_v21  ;;  %v15496_v46 = vadd.f32 %v15370_v3, %v5291_v13  ;;  %v15498_v17 = vpop.f32.mrf.mxu0  ;;  %v8663_v20 = vld [vmem:[#allocation2 + $0x110] sm:$0xe]  ;;  %v10078_v26 = vcombine.low %v15470_v51, %v8797_v0  ;;  %v15506_v33 = vrot.slane %v8252_v34, 5  ;;  %v15508_v3 = vld [vmem:[#allocation2 + $0x118] sm:$0x1] }
 0x46d   : > { %11605 = vmatpush3.bf16.msra.mxu1 %v11894_v18  ;;  %v5293_v31 = vpop.f32.mrf.mxu1  ;;  %v8249_v58 = vor.u32 %v8248_v11, %v15472_v28  ;;  %v8260_v13 = vshll.u32 %v15465_v44, 16  ;;  %v16461_v21 = vld [vmem:[#allocation27_spill] sm:$0xff]  ;;  %v16462_v18 = vld [vmem:[#allocation26_spill] sm:$0xff]  ;;  %v8266_v45 = vshll.u32 %v7936_v41, 16  ;;  %v8270_v47 = vshrl.u32 %v7936_v41, 16 }
 0x46e   : > { %16460 = vst [vmem:[#allocation22_spill] sm:$0xff] %v15496_v46  ;;  %11598 = vmatprep.subr.bf16.mxu1 %v16461_v21  ;;  %v5294_v57 = vadd.f32 %v5293_v31, %v16462_v18  ;;  %v15514_v10 = vadd.f32 %v15385_v4, %v5302_v59  ;;  %v15516_v48 = vpop.f32.mrf.mxu0  ;;  %v7938_v51 = vld [vmem:[#allocation2 + $0x120] sm:$0xf]  ;;  %v15518_v0 = vld [vmem:[#allocation2 + $0x124] sm:$0xf]  ;;  %v10079_v34 = vcombine.low %v8801_v19, %v8804_v56  ;;  %v10064_v49 = vrot.slane %v8663_v20, 9 }
 0x46f   : > { %v11238_v11 = vpop.f32.mrf.mxu1  ;;  %v8809_v44 = vrot.slane %v8807_v23, 4  ;;  %v8810_v21 = vrot.slane %v15508_v3, 5  ;;  %v8240_v41 = vrot.slane %v8239_v7, 4  ;;  %v15529_v18 = vrot.slane %v8257_v25, 4 }
 0x470   : > { %16463 = vst [vmem:[#allocation25_spill] sm:$0xff] %v15514_v10  ;;  %11525 = vmatmul.mubr.bf16.gmra.mxu1 %v15291_v60  ;;  %v5315_v31 = vadd.f32 %v11238_v11, %v15002_v53  ;;  %v15524_v4 = vadd.f32 %v15400_v42, %v5294_v57  ;;  %v15527_v59 = vpop.f32.mrf.mxu0  ;;  %v11895_v10 = vld [vmem:[#allocation8 + $0x208] sm:$0xff]   ;;  %v8281_v19 = vshrl.u32 %v7938_v51, 16  ;;  %v8284_v56 = vshll.u32 %v7938_v51, 16  ;;  %v11896_v53 = vld [vmem:[#allocation8 + $0x200] sm:$0xff]  }
 0x471   : > { %11528 = vmatprep.mubr.bf16.mxu1 %v15327_v35  ;;  %11606 = vmatpush3.bf16.msra.mxu1 %v11895_v10  ;;  %v5306_v60 = vpop.f32.mrf.mxu1  ;;  %v8290_v20 = vshll.u32 %v15518_v0, 16  ;;  %v8294_v46 = vshrl.u32 %v15518_v0, 16  ;;  %v8250_v7 = vrot.slane %v8249_v58, 4  ;;  %v8262_v25 = vrot.slane %v8260_v13, 5  ;;  %v7941_v13 = vld [vmem:[#allocation2 + $0x130] sm:$0xf] }
 0x472   : > { %16464 = vst [vmem:[#allocation28_spill] sm:$0xff] %v15524_v4  ;;  %11599 = vmatprep.subr.bf16.mxu1 %v11896_v53  ;;  %v5307_v42 = vadd.f32 %v5306_v60, %v15025_v2  ;;  %v15535_v35 = vadd.f32 %v15415_v55, %v5315_v31  ;;  %v15537_v57 = vpop.f32.mrf.mxu0  ;;  %v15539_v11 = vrot.slane %v8266_v45, 5  ;;  %v8272_v51 = vrot.slane %v8270_v47, 4 }
 0x473   : > { %11581 = vmatmul.mubr.bf16.gmra.mxu0 %v10078_v26  ;;  %v11239_v10 = vpop.f32.mrf.mxu1  ;;  %v8808_v4 = vsel %vm14004_vm14, %v10064_v49, %v8807_v23  ;;  %v8811_v40 = vsel %vm14004_vm14, %v8809_v44, %v8810_v21  ;;  %v8245_v26 = vsel %vm13772_vm11, %v8240_v41, %v15472_v28  ;;  %v8276_v58 = vshll.u32 %v15508_v3, 16  ;;  %v15568_v41 = vld [vmem:[#allocation2 + $0x128] sm:$0x1] }
 0x474   : > { %11584 = vmatprep.mubr.bf16.mxu0 %v10079_v34  ;;  %v5318_v2 = vadd.f32 %v11239_v10, %v15040_v38  ;;  %v15547_v55 = vadd.f32 %v15437_v9, %v5307_v42  ;;  %v15549_v31 = vpop.f32.mrf.mxu0  ;;  %v8283_v49 = vrot.slane %v8281_v19, 4  ;;  %v8286_v23 = vrot.slane %v8284_v56, 5  ;;  %v15557_v38 = vld [vmem:[#allocation2 + $0x134] sm:$0xf] }
 0x475   : > { %11607 = vmatpush3.bf16.msra.mxu1 %v11896_v53  ;;  %v5309_v45 = vpop.f32.mrf.mxu1  ;;  %v15555_v47 = vrot.slane %v8290_v20, 5  ;;  %v8296_v34 = vrot.slane %v8294_v46, 4  ;;  %v8255_v28 = vsel %vm13772_vm11, %v8250_v7, %v15506_v33  ;;  %v10080_v3 = vcombine.low %v8808_v4, %v8811_v40 }
 0x476   : > { %v5310_v9 = vadd.f32 %v5309_v45, %v15048_v39  ;;  %v15561_v44 = vadd.f32 %v15452_v52, %v5318_v2  ;;  %v15563_v21 = vpop.f32.mrf.mxu0  ;;  %v8263_v46 = vor.u32 %v8262_v25, %v15529_v18  ;;  %v8273_v19 = vor.u32 %v8272_v51, %v15539_v11 }
 0x477   : > { %v11242_v60 = vpop.f32.mrf.mxu1  ;;  %v8305_v39 = vshrl.u32 %v7941_v13, 16  ;;  %v8308_v56 = vshll.u32 %v7941_v13, 16  ;;  %v8314_v40 = vshll.u32 %v15557_v38, 16  ;;  %v8318_v4 = vshrl.u32 %v15557_v38, 16 }
 0x478   : > { %11529 = vmatmul.mubr.bf16.gmra.mxu1 %v15390_v1  ;;  %v5331_v52 = vadd.f32 %v11242_v60, %v15081_v61  ;;  %v15575_v20 = vadd.f32 %v15462_v5, %v5310_v9  ;;  %v15578_v33 = vpop.f32.mrf.mxu0  ;;  %v16465_v18 = vsel %vm13772_vm11, %v15454_v15, %v15408_v36  ;;  %v16466_v61 = vsel %vm13772_vm11, %v15428_v12, %v15378_v27 }
 0x479   : > { %11532 = vmatprep.mubr.bf16.mxu1 %v15443_v37  ;;  %v5322_v1 = vpop.f32.mrf.mxu1  ;;  %v10038_v5 = vcombine.low %v16466_v61, %v16465_v18  ;;  %v8287_v53 = vor.u32 %v8286_v23, %v8283_v49  ;;  %v8297_v37 = vor.u32 %v8296_v34, %v15555_v47  ;;  %v8300_v42 = vshll.u32 %v15568_v41, 16 }
 0x47a   : > { %v5323_v7 = vadd.f32 %v5322_v1, %v15092_v16  ;;  %v15596_v25 = vadd.f32 %v15478_v29, %v5331_v52  ;;  %v10039_v10 = vcombine.low %v8245_v26, %v8255_v28  ;;  %v8278_v51 = vrot.slane %v8276_v58, 5  ;;  %v15598_v2 = vpop.f32.mrf.mxu0  ;;  %v15606_v16 = vld [vmem:[#allocation2 + $0x138] sm:$0x1] }
 0x47b   : > { %11585 = vmatmul.mubr.bf16.gmra.mxu0 %v10080_v3  ;;  %v11243_v36 = vpop.f32.mrf.mxu1  ;;  %v8264_v15 = vrot.slane %v8263_v46, 4  ;;  %v8274_v13 = vrot.slane %v8273_v19, 4  ;;  %v8307_v27 = vrot.slane %v8305_v39, 4  ;;  %v8310_v12 = vrot.slane %v8308_v56, 5  ;;  %v16467_v56 = vld [vmem:[#allocation34_spill] sm:$0xff] }
 0x47c   : > { %v5334_v45 = vadd.f32 %v11243_v36, %v15101_v62  ;;  %v15602_v49 = vadd.f32 %v15498_v17, %v5323_v7  ;;  %v15604_v23 = vpop.f32.mrf.mxu0  ;;  %v8316_v29 = vrot.slane %v8314_v40, 5  ;;  %v8320_v26 = vrot.slane %v8318_v4, 4 }
 0x47d   : > { %v5325_v58 = vpop.f32.mrf.mxu1  ;;  %v8288_v34 = vrot.slane %v8287_v53, 4  ;;  %v8298_v9 = vrot.slane %v8297_v37, 4  ;;  %v8302_v28 = vrot.slane %v8300_v42, 5  ;;  %v8269_v17 = vsel %vm13772_vm11, %v8264_v15, %v15539_v11  ;;  %v8664_v42 = vld [vmem:[#allocation2 + $0x120] sm:$0xe]  ;;  %v16469_v15 = vld [vmem:[#allocation36_spill] sm:$0xff] }
 0x47e   : > { %v5326_v3 = vadd.f32 %v5325_v58, %v15113_v6  ;;  %v15610_v60 = vadd.f32 %v15516_v48, %v5334_v45  ;;  %v15612_v46 = vpop.f32.mrf.mxu0  ;;  %v8311_v19 = vor.u32 %v8310_v12, %v8307_v27  ;;  %v8324_v39 = vshll.u32 %v15606_v16, 16 }
 0x47f   : > { %v11246_v62 = vpop.f32.mrf.mxu1  ;;  %v8279_v6 = vsel %vm13772_vm11, %v8274_v13, %v8278_v51  ;;  %v8321_v4 = vor.u32 %v8320_v26, %v8316_v29  ;;  %v8293_v18 = vsel %vm13772_vm11, %v8288_v34, %v15555_v47  ;;  %v8303_v11 = vsel %vm13772_vm11, %v8298_v9, %v8302_v28  ;;  %v16470_v34 = vld [vmem:[#allocation37_spill] sm:$0xff] }
 0x480   : > { %11533 = vmatmul.mubr.bf16.gmra.mxu1 %v10038_v5  ;;  %v5347_v52 = vadd.f32 %v11246_v62, %v16467_v56  ;;  %v15620_v40 = vadd.f32 %v15527_v59, %v5326_v3  ;;  %v5810_v48 = vpop.f32.mrf.mxu0  ;;  %v8814_v61 = vrot.slane %v15518_v0, 5  ;;  %v16468_v5 = vld [vmem:[#allocation35_spill] sm:$0xff]  ;;  %v8312_v51 = vrot.slane %v8311_v19, 4 }
 0x481   : > { %11536 = vmatprep.mubr.bf16.mxu1 %v10039_v10  ;;  %v5338_v1 = vpop.f32.mrf.mxu1  ;;  %v10040_v10 = vcombine.low %v8269_v17, %v8279_v6  ;;  %v8326_v36 = vrot.slane %v8324_v39, 5  ;;  %v10041_v27 = vcombine.low %v8293_v18, %v8303_v11  ;;  %v8322_v12 = vrot.slane %v8321_v4, 4  ;;  %v8665_v6 = vld [vmem:[#allocation2 + $0x130] sm:$0xe]  ;;  %v16471_v11 = vld [vmem:[#allocation38_spill] sm:$0xff] }
 0x482   : > { %v5339_v53 = vadd.f32 %v5338_v1, %v16468_v5  ;;  %v15632_v59 = vadd.f32 %v15537_v57, %v5347_v52  ;;  %v11302_v37 = vpop.f32.mrf.mxu0  ;;  %v10065_v26 = vrot.slane %v8664_v42, 9  ;;  %v8816_v58 = vrot.slane %v8814_v61, 4 }
 0x483   : > { %v11247_v7 = vpop.f32.mrf.mxu1  ;;  %v8817_v57 = vrot.slane %v15568_v41, 5  ;;  %v8821_v17 = vrot.slane %v15557_v38, 5  ;;  %v8317_v39 = vsel %vm13772_vm11, %v8312_v51, %v8316_v29  ;;  %v8327_v41 = vsel %vm13772_vm11, %v8322_v12, %v8326_v36 }
 0x484   : > { %v5350_v13 = vadd.f32 %v11247_v7, %v16469_v15  ;;  %v15636_v47 = vadd.f32 %v15549_v31, %v5339_v53  ;;  %v5823_v45 = vpop.f32.mrf.mxu0  ;;  %v8815_v52 = vsel %vm14004_vm14, %v10065_v26, %v8814_v61  ;;  %v10042_v29 = vcombine.low %v8317_v39, %v8327_v41  ;;  %v16472_v15 = vld [vmem:[#allocation39_spill] sm:$0xff]  ;;  %v16475_v41 = vld [vmem:[#allocation41_spill] sm:$0xff] }
 0x485   : > { %v5341_v0 = vpop.f32.mrf.mxu1  ;;  %v8818_v38 = vsel %vm14004_vm14, %v8816_v58, %v8817_v57  ;;  %v8823_v18 = vrot.slane %v8821_v17, 4  ;;  %v8824_v30 = vrot.slane %v15606_v16, 5  ;;  %v10066_v42 = vrot.slane %v8665_v6, 9 }
 0x486   : > { %v5342_v9 = vadd.f32 %v5341_v0, %v16470_v34  ;;  %v15641_v28 = vadd.f32 %v15563_v21, %v5350_v13  ;;  %v11303_v3 = vpop.f32.mrf.mxu0  ;;  %v10081_v61 = vcombine.low %v8815_v52, %v8818_v38 }
 0x487   : > { %v11250_v62 = vpop.f32.mrf.mxu1 }
 0x488   : > { %11537 = vmatmul.mubr.bf16.gmra.mxu1 %v10040_v10  ;;  %v5363_v31 = vadd.f32 %v11250_v62, %v15186_v43  ;;  %v15646_v19 = vadd.f32 %v15578_v33, %v5342_v9  ;;  %v5826_v56 = vpop.f32.mrf.mxu0  ;;  %v16474_v9 = vld [vmem:[#allocation40_spill] sm:$0xff] }
 0x489   : > { %11540 = vmatprep.mubr.bf16.mxu1 %v10041_v27  ;;  %v5354_v21 = vpop.f32.mrf.mxu1  ;;  %v8825_v27 = vsel %vm14004_vm14, %v8823_v18, %v8824_v30 }
 0x48a   : > { %v5355_v43 = vadd.f32 %v5354_v21, %v15203_v24  ;;  %v15658_v33 = vadd.f32 %v15598_v2, %v5363_v31  ;;  %v11370_v4 = vpop.f32.mrf.mxu0 }
 0x48b   : > { %v11251_v1 = vpop.f32.mrf.mxu1 }
 0x48c   : > { %v5366_v5 = vadd.f32 %v11251_v1, %v16471_v11  ;;  %v15663_v53 = vadd.f32 %v15604_v23, %v5355_v43  ;;  %v6852_v7 = vpop.f32.mrf.mxu0  ;;  %v8822_v23 = vsel %vm14004_vm14, %v10066_v42, %v8821_v17 }
 0x48d   : > { %v5357_v10 = vpop.f32.mrf.mxu1  ;;  %v10082_v34 = vcombine.low %v8822_v23, %v8825_v27  ;;  %v16478_v27 = vld [vmem:[#allocation24_spill] sm:$0xff] }
 0x48e   : > { %v5358_v24 = vadd.f32 %v5357_v10, %v15228_v50  ;;  %v15667_v2 = vadd.f32 %v15612_v46, %v5366_v5  ;;  %v11371_v51 = vpop.f32.mrf.mxu0  ;;  %v16473_v50 = vld [vmem:[#allocation31_spill] sm:$0xff] }
 0x48f   : > { %v11254_v36 = vpop.f32.mrf.mxu1 }
 0x490   : > { %11541 = vmatmul.mubr.bf16.gmra.mxu1 %v10042_v29  ;;  %v5379_v13 = vadd.f32 %v11254_v36, %v16472_v15  ;;  %v15670_v16 = vadd.f32 %v5810_v48, %v5358_v24  ;;  %v6855_v12 = vpop.f32.mrf.mxu0  ;;  %v16477_v29 = vld [vmem:[#allocation23_spill] sm:$0xff] }
 0x491   : > { %11588 = vmatprep.mubr.bf16.mxu1 %v10081_v61  ;;  %v5370_v0 = vpop.f32.mrf.mxu1 }
 0x492   : > { %v5371_v26 = vadd.f32 %v5370_v0, %v16473_v50  ;;  %v15677_v46 = vadd.f32 %v11302_v37, %v5379_v13  ;;  %v11374_v58 = vpop.f32.mrf.mxu0  ;;  %v16476_v37 = vld [vmem:[#allocation21_spill] sm:$0xff] }
 0x493   : > { %v11255_v57 = vpop.f32.mrf.mxu1 }
 0x494   : > { %v5382_v62 = vadd.f32 %v11255_v57, %v16474_v9  ;;  %v15680_v48 = vadd.f32 %v5823_v45, %v5371_v26  ;;  %v6868_v31 = vpop.f32.mrf.mxu0 }
 0x495   : > { %v5373_v39 = vpop.f32.mrf.mxu1 }
 0x496   : > { %v5374_v17 = vadd.f32 %v5373_v39, %v16475_v41  ;;  %v15683_v21 = vadd.f32 %v11303_v3, %v5382_v62  ;;  %v11375_v8 = vpop.f32.mrf.mxu0  ;;  %v16479_v62 = vld [vmem:[#allocation16_spill] sm:$0xff] }
 0x497   : > { %v11322_v52 = vpop.f32.mrf.mxu1 }
 0x498   : > { %11589 = vmatmul.mubr.bf16.vlgmr.msra.gmra.mxu1 %v10082_v34  ;;  %v15685_v38 = vadd.f32 %v5826_v56, %v5374_v17  ;;  %v6227_v6 = vadd.f32 %v11322_v52, %v16476_v37  ;;  %v6871_v43 = vpop.f32.mrf.mxu0  ;;  %v16480_v52 = vld [vmem:[#allocation22_spill] sm:$0xff] }
 0x499   : > { %v6098_v1 = vpop.f32.mrf.mxu1 }
 0x49a   : > { %v6225_v18 = vadd.f32 %v6098_v1, %v16477_v29  ;;  %v15689_v30 = vadd.f32 %v11370_v4, %v6227_v6  ;;  %v11378_v45 = vpop.f32.mrf.mxu0  ;;  %v16481_v1 = vld [vmem:[#allocation25_spill] sm:$0xff] }
 0x49b   : > { %v11323_v11 = vpop.f32.mrf.mxu1 }
 0x49c   : > { %v6228_v5 = vadd.f32 %v11323_v11, %v15383_v63  ;;  %v15692_v61 = vadd.f32 %v6852_v7, %v6225_v18  ;;  %v6884_v3 = vpop.f32.mrf.mxu0  ;;  %v16482_v11 = vld [vmem:[#allocation28_spill] sm:$0xff] }
 0x49d   : > { %v6101_v42 = vpop.f32.mrf.mxu1 }
 0x49e   : > { %v6226_v10 = vadd.f32 %v6101_v42, %v15396_v32  ;;  %v15695_v56 = vadd.f32 %v11371_v51, %v6228_v5  ;;  %v11379_v24 = vpop.f32.mrf.mxu0 }
 0x49f   : > { %v11326_v36 = vpop.f32.mrf.mxu1 }
 0x4a0   : > { %v6231_v15 = vadd.f32 %v11326_v36, %v15413_v14  ;;  %v15698_v13 = vadd.f32 %v6855_v12, %v6226_v10  ;;  %v6887_v4 = vpop.f32.mrf.mxu0 }
 0x4a1   : > { %v6114_v23 = vpop.f32.mrf.mxu1 }
 0x4a2   : > { %v6229_v0 = vadd.f32 %v6114_v23, %v16478_v27  ;;  %v15701_v50 = vadd.f32 %v11374_v58, %v6231_v15  ;;  %v11382_v63 = vpop.f32.mrf.mxu0 }
 0x4a3   : > { %v11327_v7 = vpop.f32.mrf.mxu1 }
 0x4a4   : > { %v6232_v26 = vadd.f32 %v11327_v7, %v15450_v54  ;;  %v15704_v57 = vadd.f32 %v6868_v31, %v6229_v0  ;;  %v6900_v32 = vpop.f32.mrf.mxu0 }
 0x4a5   : > { %v6117_v51 = vpop.f32.mrf.mxu1 }
 0x4a6   : > { %v6230_v34 = vadd.f32 %v6117_v51, %v15459_v22  ;;  %v15707_v9 = vadd.f32 %v11375_v8, %v6232_v26  ;;  %v11383_v14 = vpop.f32.mrf.mxu0 }
 0x4a7   : > { %v11330_v12 = vpop.f32.mrf.mxu1 }
 0x4a8   : > { %v6235_v39 = vadd.f32 %v11330_v12, %v16479_v62  ;;  %v15710_v41 = vadd.f32 %v6871_v43, %v6230_v34  ;;  %v6903_v58 = vpop.f32.mrf.mxu0 }
 0x4a9   : > { %v6130_v17 = vpop.f32.mrf.mxu1 }
 0x4aa   : > { %v6233_v37 = vadd.f32 %v6130_v17, %v16480_v52  ;;  %v15713_v6 = vadd.f32 %v11378_v45, %v6235_v39  ;;  %v11386_v54 = vpop.f32.mrf.mxu0 }
 0x4ab   : > { %v11331_v31 = vpop.f32.mrf.mxu1 }
 0x4ac   : > { %v6236_v29 = vadd.f32 %v11331_v31, %v16481_v1  ;;  %v15716_v18 = vadd.f32 %v6884_v3, %v6233_v37  ;;  %v6916_v22 = vpop.f32.mrf.mxu0 }
 0x4ad   : > { %v6133_v8 = vpop.f32.mrf.mxu1 }
 0x4ae   : > { %v6234_v5 = vadd.f32 %v6133_v8, %v16482_v11  ;;  %v15719_v42 = vadd.f32 %v11379_v24, %v6236_v29  ;;  %v11387_v43 = vpop.f32.mrf.mxu0 }
 0x4af   : > { %v11334_v10 = vpop.f32.mrf.mxu1 }
 0x4b0   : > { %v6239_v36 = vadd.f32 %v11334_v10, %v15535_v35  ;;  %v15722_v15 = vadd.f32 %v6887_v4, %v6234_v5  ;;  %v6919_v45 = vpop.f32.mrf.mxu0 }
 0x4b1   : > { %v6146_v23 = vpop.f32.mrf.mxu1 }
 0x4b2   : > { %v6237_v27 = vadd.f32 %v6146_v23, %v15547_v55  ;;  %v15725_v0 = vadd.f32 %v11382_v63, %v6239_v36  ;;  %v11390_v3 = vpop.f32.mrf.mxu0 }
 0x4b3   : > { %v11335_v7 = vpop.f32.mrf.mxu1 }
 0x4b4   : > { %v6240_v26 = vadd.f32 %v11335_v7, %v15561_v44  ;;  %v15728_v51 = vadd.f32 %v6900_v32, %v6237_v27  ;;  %v6932_v24 = vpop.f32.mrf.mxu0 }
 0x4b5   : > { %v6149_v34 = vpop.f32.mrf.mxu1 }
 0x4b6   : > { %v6238_v12 = vadd.f32 %v6149_v34, %v15575_v20  ;;  %v15731_v62 = vadd.f32 %v11383_v14, %v6240_v26  ;;  %v11391_v35 = vpop.f32.mrf.mxu0 }
 0x4b7   : > { %v11338_v4 = vpop.f32.mrf.mxu1 }
 0x4b8   : > { %v6243_v39 = vadd.f32 %v11338_v4, %v15596_v25  ;;  %v15734_v17 = vadd.f32 %v6903_v58, %v6238_v12  ;;  %v6935_v55 = vpop.f32.mrf.mxu0 }
 0x4b9   : > { %v6162_v63 = vpop.f32.mrf.mxu1 }
 0x4ba   : > { %v6241_v52 = vadd.f32 %v6162_v63, %v15602_v49  ;;  %v15737_v37 = vadd.f32 %v11386_v54, %v6243_v39  ;;  %v11394_v44 = vpop.f32.mrf.mxu0 }
 0x4bb   : > { %v11339_v32 = vpop.f32.mrf.mxu1 }
 0x4bc   : > { %v6244_v31 = vadd.f32 %v11339_v32, %v15610_v60  ;;  %v15740_v1 = vadd.f32 %v6916_v22, %v6241_v52  ;;  %v6948_v20 = vpop.f32.mrf.mxu0 }
 0x4bd   : > { %v6165_v14 = vpop.f32.mrf.mxu1 }
 0x4be   : > { %v6242_v29 = vadd.f32 %v6165_v14, %v15620_v40  ;;  %v15743_v8 = vadd.f32 %v11387_v43, %v6244_v31  ;;  %v11395_v25 = vpop.f32.mrf.mxu0 }
 0x4bf   : > { %v11342_v58 = vpop.f32.mrf.mxu1 }
 0x4c0   : > { %v6247_v11 = vadd.f32 %v11342_v58, %v15632_v59  ;;  %v15746_v5 = vadd.f32 %v6919_v45, %v6242_v29  ;;  %v6951_v49 = vpop.f32.mrf.mxu0 }
 0x4c1   : > { %v6178_v54 = vpop.f32.mrf.mxu1 }
 0x4c2   : > { %v6245_v10 = vadd.f32 %v6178_v54, %v15636_v47  ;;  %v15749_v36 = vadd.f32 %v11390_v3, %v6247_v11  ;;  %v11398_v60 = vpop.f32.mrf.mxu0 }
 0x4c3   : > { %v11343_v22 = vpop.f32.mrf.mxu1 }
 0x4c4   : > { %v6248_v23 = vadd.f32 %v11343_v22, %v15641_v28  ;;  %v15752_v27 = vadd.f32 %v6932_v24, %v6245_v10  ;;  %v6964_v40 = vpop.f32.mrf.mxu0 }
 0x4c5   : > { %v6181_v43 = vpop.f32.mrf.mxu1 }
 0x4c6   : > { %v6246_v7 = vadd.f32 %v6181_v43, %v15646_v19  ;;  %v15755_v26 = vadd.f32 %v11391_v35, %v6248_v23  ;;  %v11399_v59 = vpop.f32.mrf.mxu0 }
 0x4c7   : > { %v11346_v45 = vpop.f32.mrf.mxu1 }
 0x4c8   : > { %v6251_v34 = vadd.f32 %v11346_v45, %v15658_v33  ;;  %v15758_v12 = vadd.f32 %v6935_v55, %v6246_v7  ;;  %v6967_v47 = vpop.f32.mrf.mxu0 }
 0x4c9   : > { %v6194_v3 = vpop.f32.mrf.mxu1 }
 0x4ca   : > { %v6249_v4 = vadd.f32 %v6194_v3, %v15663_v53  ;;  %v15761_v39 = vadd.f32 %v11394_v44, %v6251_v34  ;;  %v11466_v28 = vpop.f32.mrf.mxu0 }
 0x4cb   : > { %v11347_v24 = vpop.f32.mrf.mxu1 }
 0x4cc   : > { %v6252_v63 = vadd.f32 %v11347_v24, %v15667_v2  ;;  %v15764_v52 = vadd.f32 %v6948_v20, %v6249_v4  ;;  %v7737_v19 = vpop.f32.mrf.mxu0 }
 0x4cd   : > { %v6197_v35 = vpop.f32.mrf.mxu1 }
 0x4ce   : > { %v6250_v32 = vadd.f32 %v6197_v35, %v15670_v16  ;;  %v15767_v31 = vadd.f32 %v11395_v25, %v6252_v63  ;;  %v11467_v33 = vpop.f32.mrf.mxu0 }
 0x4cf   : > { %v11350_v55 = vpop.f32.mrf.mxu1 }
 0x4d0   : > { %v6255_v14 = vadd.f32 %v11350_v55, %v15677_v46  ;;  %v15770_v29 = vadd.f32 %v6951_v49, %v6250_v32  ;;  %v7740_v53 = vpop.f32.mrf.mxu0 }
 0x4d1   : > { %v6210_v44 = vpop.f32.mrf.mxu1 }
 0x4d2   : > { %v6253_v58 = vadd.f32 %v6210_v44, %v15680_v48  ;;  %v15773_v11 = vadd.f32 %v11398_v60, %v6255_v14  ;;  %v11470_v2 = vpop.f32.mrf.mxu0 }
 0x4d3   : > { %v11351_v20 = vpop.f32.mrf.mxu1 }
 0x4d4   : > { %v6256_v54 = vadd.f32 %v11351_v20, %v15683_v21  ;;  %v15776_v10 = vadd.f32 %v6964_v40, %v6253_v58  ;;  %v7753_v16 = vpop.f32.mrf.mxu0 }
 0x4d5   : > { %v6213_v25 = vpop.f32.mrf.mxu1 }
 0x4d6   : > { %v6254_v22 = vadd.f32 %v6213_v25, %v15685_v38  ;;  %v15779_v23 = vadd.f32 %v11399_v59, %v6256_v54  ;;  %v11471_v46 = vpop.f32.mrf.mxu0 }
 0x4d7   : > { %v11418_v49 = vpop.f32.mrf.mxu1 }
 0x4d8   : > { %v15781_v43 = vadd.f32 %v6967_v47, %v6254_v22  ;;  %v7479_v48 = vadd.f32 %v11418_v49, %v15689_v30  ;;  %v7756_v60 = vpop.f32.mrf.mxu0 }
 0x4d9   : > { %v7350_v7 = vpop.f32.mrf.mxu1 }
 0x4da   : > { %v7477_v45 = vadd.f32 %v7350_v7, %v15692_v61  ;;  %v15785_v34 = vadd.f32 %v11466_v28, %v7479_v48  ;;  %v11474_v21 = vpop.f32.mrf.mxu0 }
 0x4db   : > { %v11419_v40 = vpop.f32.mrf.mxu1 }
 0x4dc   : > { %v7480_v3 = vadd.f32 %v11419_v40, %v15695_v56  ;;  %v15788_v4 = vadd.f32 %v7737_v19, %v7477_v45  ;;  %v7769_v38 = vpop.f32.mrf.mxu0 }
 0x4dd   : > { %v7353_v59 = vpop.f32.mrf.mxu1 }
 0x4de   : > { %v7478_v24 = vadd.f32 %v7353_v59, %v15698_v13  ;;  %v15791_v47 = vadd.f32 %v11467_v33, %v7480_v3  ;;  %v11475_v63 = vpop.f32.mrf.mxu0 }
 0x4df   : > { %v11422_v30 = vpop.f32.mrf.mxu1 }
 0x4e0   : > { %v7483_v35 = vadd.f32 %v11422_v30, %v15701_v50  ;;  %v15794_v32 = vadd.f32 %v7740_v53, %v7478_v24  ;;  %v7772_v61 = vpop.f32.mrf.mxu0 }
 0x4e1   : > { %v7366_v28 = vpop.f32.mrf.mxu1 }
 0x4e2   : > { %v7481_v55 = vadd.f32 %v7366_v28, %v15704_v57  ;;  %v15797_v14 = vadd.f32 %v11470_v2, %v7483_v35  ;;  %v11478_v56 = vpop.f32.mrf.mxu0 }
 0x4e3   : > { %v11423_v19 = vpop.f32.mrf.mxu1 }
 0x4e4   : > { %v7484_v44 = vadd.f32 %v11423_v19, %v15707_v9  ;;  %v15800_v58 = vadd.f32 %v7753_v16, %v7481_v55  ;;  %v7785_v13 = vpop.f32.mrf.mxu0 }
 0x4e5   : > { %v7369_v33 = vpop.f32.mrf.mxu1 }
 0x4e6   : > { %v7482_v20 = vadd.f32 %v7369_v33, %v15710_v41  ;;  %v15803_v54 = vadd.f32 %v11471_v46, %v7484_v44  ;;  %v11479_v50 = vpop.f32.mrf.mxu0 }
 0x4e7   : > { %v11426_v53 = vpop.f32.mrf.mxu1 }
 0x4e8   : > { %v7487_v25 = vadd.f32 %v11426_v53, %v15713_v6  ;;  %v15806_v22 = vadd.f32 %v7756_v60, %v7482_v20  ;;  %v7788_v57 = vpop.f32.mrf.mxu0 }
 0x4e9   : > { %v7382_v2 = vpop.f32.mrf.mxu1 }
 0x4ea   : > { %v7485_v49 = vadd.f32 %v7382_v2, %v15716_v18  ;;  %v15809_v48 = vadd.f32 %v11474_v21, %v7487_v25  ;;  %v15811_v9 = vpop.f32.mrf.mxu0 }
 0x4eb   : > { %v11427_v16 = vpop.f32.mrf.mxu1 }
 0x4ec   : > { %16483 = vst [vmem:[#allocation18_spill] sm:$0xff] %v15809_v48  ;;  %v7488_v7 = vadd.f32 %v11427_v16, %v15719_v42  ;;  %v15814_v41 = vadd.f32 %v7769_v38, %v7485_v49  ;;  %v15816_v46 = vpop.f32.mrf.mxu0 }
 0x4ed   : > { %v7385_v45 = vpop.f32.mrf.mxu1 }
 0x4ee   : > { %16484 = vst [vmem:[#allocation29_spill] sm:$0xff] %v15814_v41  ;;  %v7486_v6 = vadd.f32 %v7385_v45, %v15722_v15  ;;  %v15819_v60 = vadd.f32 %v11475_v63, %v7488_v7  ;;  %v15821_v40 = vpop.f32.mrf.mxu0 }
 0x4f0   : > { %16485 = vst [vmem:[#allocation30_spill] sm:$0xff] %v15819_v60  ;;  %v11430_v3 = vpop.f32.mrf.mxu1  ;;  %v15824_v21 = vadd.f32 %v7772_v61, %v7486_v6  ;;  %v15826_v59 = vpop.f32.mrf.mxu0 }
 0x4f1   : > { %v7491_v18 = vadd.f32 %v11430_v3, %v15725_v0 }
 0x4f2   : > { %16486 = vst [vmem:[#allocation15_spill] sm:$0xff] %v15824_v21  ;;  %v7398_v24 = vpop.f32.mrf.mxu1  ;;  %v15831_v30 = vpop.f32.mrf.mxu0 }
 0x4f3   : > { %v7489_v42 = vadd.f32 %v7398_v24, %v15728_v51  ;;  %v15829_v38 = vadd.f32 %v11478_v56, %v7491_v18 }
 0x4f4   : > { %v11431_v35 = vpop.f32.mrf.mxu1  ;;  %v15836_v28 = vpop.f32.mrf.mxu0 }
 0x4f5   : > { %16487 = vst [vmem:[#allocation33_spill] sm:$0xff] %v15829_v38  ;;  %v7492_v15 = vadd.f32 %v11431_v35, %v15731_v62  ;;  %v15834_v63 = vadd.f32 %v7785_v13, %v7489_v42 }
 0x4f6   : > { %v7401_v55 = vpop.f32.mrf.mxu1  ;;  %v15841_v19 = vpop.f32.mrf.mxu0 }
 0x4f7   : > { %16488 = vst [vmem:[#allocation32_spill] sm:$0xff] %v15834_v63  ;;  %v7490_v0 = vadd.f32 %v7401_v55, %v15734_v17  ;;  %v15839_v61 = vadd.f32 %v11479_v50, %v7492_v15 }
 0x4f8   : > { %v15843_v44 = vpop.f32.mrf.mxu1  ;;  %v15847_v56 = vpop.f32.mrf.mxu0 }
 0x4f9   : > { %16489 = vst [vmem:[#allocation17_spill] sm:$0xff] %v15839_v61  ;;  %v15845_v51 = vadd.f32 %v7788_v57, %v7490_v0 }
 0x4fa   : > { %v7414_v33 = vpop.f32.mrf.mxu1  ;;  %v15849_v20 = vpop.f32.mrf.mxu0 }
 0x4fb   : > { %16490 = vst [vmem:[#allocation20_spill] sm:$0xff] %v15845_v51 }
 0x4fc   : > { %v11435_v62 = vpop.f32.mrf.mxu1  ;;  %v15851_v13 = vpop.f32.mrf.mxu0 }
 0x4fd   : > { %16491 = vst [vmem:[#allocation19_spill] sm:$0xff] %v15851_v13 }
 0x4fe   : > { %v7417_v53 = vpop.f32.mrf.mxu1  ;;  %v15853_v25 = vpop.f32.mrf.mxu0 }
 0x4ff   : > { %16492 = vst [vmem:[#allocation27_spill] sm:$0xff] %v15853_v25 }
 0x500   : > { %v11438_v17 = vpop.f32.mrf.mxu1  ;;  %v15855_v50 = vpop.f32.mrf.mxu0 }
 0x501   : > { %16493 = vst [vmem:[#allocation26_spill] sm:$0xff] %v15855_v50 }
 0x502   : > { %v7430_v2 = vpop.f32.mrf.mxu1  ;;  %v11494_v49 = vpop.f32.mrf.mxu0 }
 0x504   : > { %v11439_v16 = vpop.f32.mrf.mxu1  ;;  %v7849_v7 = vpop.f32.mrf.mxu0 }
 0x506   : > { %v15857_v57 = vpop.f32.mrf.mxu1  ;;  %v11495_v45 = vpop.f32.mrf.mxu0 }
 0x508   : > { %v15859_v6 = vpop.f32.mrf.mxu1  ;;  %v7852_v3 = vpop.f32.mrf.mxu0 }
 0x50a   : > { %v15861_v18 = vpop.f32.mrf.mxu1  ;;  %v15863_v24 = vpop.f32.mrf.mxu0 }
 0x50c   : > { %v15865_v42 = vpop.f32.mrf.mxu1  ;;  %v15867_v35 = vpop.f32.mrf.mxu0 }
 0x50d   : > { %16494 = vst [vmem:[#allocation34_spill] sm:$0xff] %v15867_v35 }
 0x50e   : > { %v15869_v15 = vpop.f32.mrf.mxu1  ;;  %v15871_v55 = vpop.f32.mrf.mxu0 }
 0x50f   : > { %16495 = vst [vmem:[#allocation35_spill] sm:$0xff] %v15871_v55 }
 0x510   : > { %v11446_v0 = vpop.f32.mrf.mxu1  ;;  %v15874_v61 = vpop.f32.mrf.mxu0 }
 0x511   : > { %v7507_v51 = vadd.f32 %v11446_v0, %v15773_v11  ;;  %16496 = vst [vmem:[#allocation36_spill] sm:$0xff] %v15874_v61 }
 0x512   : > { %v7462_v63 = vpop.f32.mrf.mxu1  ;;  %v15879_v60 = vpop.f32.mrf.mxu0 }
 0x513   : > { %v7505_v38 = vadd.f32 %v7462_v63, %v15776_v10  ;;  %v15877_v21 = vadd.f32 %v11494_v49, %v7507_v51  ;;  %16498 = vst [vmem:[#allocation38_spill] sm:$0xff] %v15879_v60  ;;  %v7497_v60 = vadd.f32 %v7430_v2, %v15752_v27  ;;  %v7503_v27 = vadd.f32 %v15859_v6, %v15761_v39 }
 0x514   : > { %v11447_v50 = vpop.f32.mrf.mxu1  ;;  %v15884_v41 = vpop.f32.mrf.mxu0  ;;  %v7501_v39 = vadd.f32 %v15861_v18, %v15764_v52 }
 0x515   : > { %16497 = vst [vmem:[#allocation37_spill] sm:$0xff] %v15877_v21  ;;  %v7508_v25 = vadd.f32 %v11447_v50, %v15779_v23  ;;  %v15882_v13 = vadd.f32 %v7849_v7, %v7505_v38  ;;  %16500 = vst [vmem:[#allocation31_spill] sm:$0xff] %v15884_v41  ;;  %v15974_v52 = vadd.f32 %v15849_v20, %v7503_v27  ;;  %v16518_v20 = vld [vmem:[#allocation29_spill] sm:$0xff] }
 0x516   : > { %v7465_v48 = vpop.f32.mrf.mxu1  ;;  %v15889_v0 = vpop.f32.mrf.mxu0 }
 0x517   : > { %16499 = vst [vmem:[#allocation39_spill] sm:$0xff] %v15882_v13  ;;  %v7506_v55 = vadd.f32 %v7465_v48, %v15781_v43  ;;  %v15887_v11 = vadd.f32 %v11495_v45, %v7508_v25  ;;  %16502 = vst [vmem:[#allocation41_spill] sm:$0xff] %v15889_v0  ;;  %v7496_v0 = vadd.f32 %v11435_v62, %v15743_v8 }
 0x518   : > { %v11514_v61 = vpop.f32.mrf.mxu1  ;;  %v15893_v63 = vpop.f32.mrf.mxu0  ;;  %v16521_v18 = vld [vmem:[#allocation36_spill] sm:$0xff] }
 0x519   : > { %16501 = vst [vmem:[#allocation40_spill] sm:$0xff] %v15887_v11  ;;  %v15891_v10 = vadd.f32 %v7852_v3, %v7506_v55  ;;  %16504 = vst [vmem:[#allocation23_spill] sm:$0xff] %v15893_v63  ;;  %v7883_v8 = vadd.f32 %v15821_v40, %v7496_v0 }
 0x51a   : > { %v8491_v51 = vpop.f32.mrf.mxu1  ;;  %v15895_v49 = vpop.f32.mrf.mxu0 }
 0x51b   : > { %16503 = vst [vmem:[#allocation21_spill] sm:$0xff] %v15891_v10  ;;  %16505 = vst [vmem:[#allocation24_spill] sm:$0xff] %v15895_v49  ;;  %v8618_v40 = vadd.f32 %v8491_v51, %v15788_v4 }
 0x51c   : > { %v11515_v23 = vpop.f32.mrf.mxu1  ;;  %v15897_v38 = vpop.f32.mrf.mxu0 }
 0x51d   : > { %16506 = vst [vmem:[#allocation16_spill] sm:$0xff] %v15897_v38 }
 0x51e   : > { %v8494_v50 = vpop.f32.mrf.mxu1  ;;  %v15899_v7 = vpop.f32.mrf.mxu0 }
 0x51f   : > { %16507 = vst [vmem:[#allocation22_spill] sm:$0xff] %v15899_v7 }
 0x520   : > { %v11518_v13 = vpop.f32.mrf.mxu1  ;;  %v15901_v43 = vpop.f32.mrf.mxu0 }
 0x521   : > { %16508 = vst [vmem:[#allocation25_spill] sm:$0xff] %v15901_v43  ;;  %v7495_v43 = vadd.f32 %v15843_v44, %v15737_v37 }
 0x522   : > { %v8507_v48 = vpop.f32.mrf.mxu1 }
 0x523   : > { %v15903_v25 = vpop.f32.mrf.mxu0  ;;  %v7882_v37 = vadd.f32 %v15811_v9, %v7495_v43  ;;  %v16526_v43 = vld [vmem:[#allocation26_spill] sm:$0xff] }
 0x524   : > { %16509 = vst [vmem:[#allocation28_spill] sm:$0xff] %v15903_v25  ;;  %v11519_v45 = vpop.f32.mrf.mxu1  ;;  %v7493_v25 = vadd.f32 %v7414_v33, %v15740_v1 }
 0x525   : > { %v15905_v3 = vpop.f32.mrf.mxu0  ;;  %v8625_v4 = vadd.f32 %v11519_v45, %v15803_v54  ;;  %v16515_v54 = vld [vmem:[#allocation34_spill] sm:$0xff] }
 0x526   : > { %16510 = vst [vmem:[#allocation42_spill] sm:$0xff] %v15905_v3  ;;  %v8510_v55 = vpop.f32.mrf.mxu1  ;;  %v7880_v1 = vadd.f32 %v15816_v46, %v7493_v25  ;;  %v15950_v46 = vadd.f32 %v15836_v28, %v7497_v60  ;;  %v8624_v60 = vadd.f32 %v11518_v13, %v15797_v14  ;;  %v16517_v13 = vld [vmem:[#allocation18_spill] sm:$0xff] }
 0x527   : > { %v15907_v10 = vpop.f32.mrf.mxu0 }
 0x528   : > { %16511 = vst [vmem:[#allocation43_spill] sm:$0xff] %v15907_v10  ;;  %v11522_v11 = vpop.f32.mrf.mxu1  ;;  %v7494_v10 = vadd.f32 %v7417_v53, %v15746_v5 }
 0x529   : > { %v15909_v21 = vpop.f32.mrf.mxu0  ;;  %v8628_v53 = vadd.f32 %v11522_v11, %v16517_v13  ;;  %v16525_v11 = vld [vmem:[#allocation23_spill] sm:$0xff] }
 0x52a   : > { %16512 = vst [vmem:[#allocation44_spill] sm:$0xff] %v15909_v21  ;;  %v8523_v49 = vpop.f32.mrf.mxu1  ;;  %v7499_v21 = vadd.f32 %v11438_v17, %v15749_v36  ;;  %v15937_v5 = vadd.f32 %v15826_v59, %v7494_v10  ;;  %v7498_v36 = vadd.f32 %v15857_v57, %v15758_v12  ;;  %v8621_v59 = vadd.f32 %v11515_v23, %v15791_v47  ;;  %v16520_v57 = vld [vmem:[#allocation27_spill] sm:$0xff]  ;;  %v16524_v23 = vld [vmem:[#allocation41_spill] sm:$0xff] }
 0x52b   : > { %v11578_v38 = vpop.f32.mrf.mxu0  ;;  %v8623_v47 = vadd.f32 %v8510_v55, %v15806_v22  ;;  %v9116_v22 = vadd.f32 %v16515_v54, %v8618_v40  ;;  %v8626_v17 = vadd.f32 %v8523_v49, %v16518_v20  ;;  %v16523_v10 = vld [vmem:[#allocation31_spill] sm:$0xff] }
 0x52c   : > { %v15911_v63 = vpop.f32.mrf.mxu1  ;;  %v15947_v9 = vadd.f32 %v15831_v30, %v7499_v21  ;;  %v8619_v21 = vadd.f32 %v8494_v50, %v15794_v32  ;;  %v8622_v30 = vadd.f32 %v8507_v48, %v15800_v58  ;;  %v15984_v58 = vld [vmem:[%s16213_s4] ss:$0 sm:$0xff]  ;;  %v9123_v50 = vadd.f32 %v16524_v23, %v8625_v4 }
 0x52d   : > { %16513 = vst [vmem:[#allocation45_spill] sm:$0xff] %v15911_v63  ;;  %v15913_v7 = vpop.f32.mrf.mxu0 }
 0x52e   : > { %16514 = vst [vmem:[#allocation46_spill] sm:$0xff] %v15913_v7  ;;  %v15919_v3 = vpop.f32.mrf.mxu1  ;;  %v7500_v7 = vadd.f32 %v11439_v16, %v15755_v26  ;;  %v8620_v26 = vadd.f32 %v11514_v61, %v15785_v34  ;;  %v7504_v34 = vadd.f32 %v15865_v42, %v15767_v31  ;;  %v15971_v61 = vadd.f32 %v15847_v56, %v7498_v36  ;;  %v16519_v16 = vld [vmem:[#allocation19_spill] sm:$0xff] }
 0x52f   : > { %v15922_v41 = vpop.f32.mrf.mxu0  ;;  %v7502_v31 = vadd.f32 %v15869_v15, %v15770_v29  ;;  %v15991_v29 = vadd.f32 %v16519_v16, %v7501_v39  ;;  %v16522_v15 = vld [vmem:[#allocation38_spill] sm:$0xff]  ;;  %v9120_v51 = vadd.f32 %v16523_v10, %v8622_v30 }
 0x530   : > { %v15926_v63 = vpop.f32.mrf.mxu1  ;;  %v15957_v12 = vadd.f32 %v15841_v19, %v7500_v7  ;;  %v9118_v32 = vadd.f32 %v15863_v24, %v8620_v26  ;;  %v16516_v19 = vld [vmem:[#allocation35_spill] sm:$0xff]  ;;  %v15994_v6 = vadd.f32 %v16520_v57, %v7504_v34  ;;  %v9117_v24 = vadd.f32 %v16521_v18, %v8619_v21  ;;  %v16527_v26 = vld [vmem:[#allocation24_spill] sm:$0xff]  ;;  %v16530_v16 = vld [vmem:[#allocation30_spill] sm:$0xff] }
 0x531   : > { %v15929_v35 = vpop.f32.mrf.mxu0  ;;  %v9119_v56 = vadd.f32 %v16516_v19, %v8621_v59  ;;  %v9122_v0 = vadd.f32 %v16522_v15, %v8624_v60  ;;  %v9121_v7 = vadd.f32 %v16525_v11, %v8623_v47  ;;  %v16002_v48 = vadd.f32 %v16526_v43, %v7502_v31  ;;  %v16528_v59 = vld [vmem:[#allocation16_spill] sm:$0xff]  ;;  %v16532_v11 = vld [vmem:[#allocation15_spill] sm:$0xff] }
 0x532   : > { %v15934_v44 = vpop.f32.mrf.mxu1  ;;  %v9157_v25 = vadd.f32 %v15984_v58, %v9118_v32  ;;  %v9126_v40 = vadd.f32 %v16527_v26, %v8628_v53  ;;  %v9124_v39 = vadd.f32 %v16528_v59, %v8626_v17  ;;  %v10110_v34 = vld [vmem:[%s12199_s7 + $0x1e1] sm:$0xff]  ;;  %v9156_v60 = vadd.f32 %v15984_v58, %v9117_v24 }
 0x533   : > { %v15944_v33 = vpop.f32.mrf.mxu0  ;;  %v9158_v27 = vadd.f32 %v15984_v58, %v9119_v56  ;;  %v16016_v47 = vadd.f32 %v15984_v58, %v9122_v0  ;;  %v16019_v31 = vadd.f32 %v15984_v58, %v9120_v51  ;;  %v16022_v32 = vadd.f32 %v15984_v58, %v9123_v50  ;;  %v10108_v19 = vld [vmem:[%s12199_s7 + $0x1c1] sm:$0xff]  ;;  %v10111_v50 = vld [vmem:[%s12199_s7 + $0x1e9] sm:$0xff] }
 0x534   : > { %v15954_v62 = vpop.f32.mrf.mxu1  ;;  %v16025_v54 = vadd.f32 %v15984_v58, %v9121_v7  ;;  %v16531_v57 = vld [vmem:[#allocation45_spill] sm:$0xff]  ;;  %v16039_v24 = vadd.f32 %v15984_v58, %v9124_v39  ;;  %v8627_v7 = vadd.f32 %v15919_v3, %v16532_v11 }
 0x535   : > { %v15979_v14 = vpop.f32.mrf.mxu0  ;;  %v8629_v18 = vadd.f32 %v16531_v57, %v16530_v16  ;;  %v10115_v11 = vld [vmem:[%s12199_s7 + $0x229] sm:$0xff] }
 0x536   : > { %v15968_v28 = vpop.f32.mrf.mxu1 }
 0x537   : > { %v16005_v36 = vpop.f32.mrf.mxu0 }
 0x538   : > { %v11530_v2 = vpop.f32.mrf.mxu1 }
 0x539   : > { %v8636_v42 = vadd.f32 %v11530_v2, %v7882_v37  ;;  %v9155_v37 = vadd.f32 %v15984_v58, %v9116_v22  ;;  %v10094_v22 = vld [vmem:[%s12199_s7 + $0x61] sm:$0xff]  ;;  %v16031_v17 = vpop.f32.mrf.mxu0  ;;  %v16034_v2 = vadd.f32 %v15984_v58, %v9126_v40  ;;  %v10109_v40 = vld [vmem:[%s12199_s7 + $0x1c9] sm:$0xff] }
 0x53a   : > { %v8555_v49 = vpop.f32.mrf.mxu1 }
 0x53b   : > { %v8634_v45 = vadd.f32 %v8555_v49, %v7880_v1  ;;  %v9134_v55 = vadd.f32 %v11578_v38, %v8636_v42  ;;  %v16529_v38 = vld [vmem:[#allocation46_spill] sm:$0xff]  ;;  %v10092_v42 = vld [vmem:[%s12199_s7 + $0x41] sm:$0xff]  ;;  %v16053_v39 = vpop.f32.mrf.mxu0 }
 0x53c   : > { %v11531_v21 = vpop.f32.mrf.mxu1 }
 0x53d   : > { %v9173_v30 = vadd.f32 %v15984_v58, %v9134_v55  ;;  %v8637_v1 = vadd.f32 %v11531_v21, %v7883_v8  ;;  %v9132_v4 = vadd.f32 %v16529_v38, %v8634_v45  ;;  %v9085_v57 = vpop.f32.mrf.mxu0 }
 0x53e   : > { %v8558_v56 = vpop.f32.mrf.mxu1 }
 0x53f   : > { %v9221_v8 = vmul.f32 %v9173_v30, %v9157_v25  ;;  %v9285_v13 = vadd.f32 %v10110_v34, %v9173_v30  ;;  %v9171_v53 = vadd.f32 %v15984_v58, %v9132_v4  ;;  %v8635_v20 = vadd.f32 %v8558_v56, %v15937_v5  ;;  %v16533_v30 = vld [vmem:[#allocation22_spill] sm:$0xff]  ;;  %v10093_v4 = vld [vmem:[%s12199_s7 + $0x49] sm:$0xff] }
 0x540   : > { %v9135_v15 = vadd.f32 %v15922_v41, %v8637_v1  ;;  %v11534_v0 = vpop.f32.mrf.mxu1  ;;  %v16058_v1 = vadd.f32 %v16533_v30, %v8629_v18  ;;  %v16534_v18 = vld [vmem:[#allocation25_spill] sm:$0xff] }
 0x541   : > { %v9237_v10 = vadd.f32 %v10094_v22, %v9221_v8  ;;  %v9301_v5 = vmax.f32 %v9285_v13, 0.0  ;;  %v9219_v51 = vmul.f32 %v9171_v53, %v9155_v37  ;;  %v9283_v23 = vadd.f32 %v10108_v19, %v9171_v53  ;;  %v10095_v37 = vld [vmem:[%s12199_s7 + $0x69] sm:$0xff]  ;;  %v10112_v13 = vld [vmem:[%s12199_s7 + $0x201] sm:$0xff] }
 0x542   : > { %v9174_v49 = vadd.f32 %v15984_v58, %v9135_v15  ;;  %v8640_v43 = vadd.f32 %v11534_v0, %v15947_v9  ;;  %v9133_v25 = vadd.f32 %v15929_v35, %v8635_v20  ;;  %v8571_v45 = vpop.f32.mrf.mxu1 }
 0x543   : > { %v9253_v41 = vmax.f32 %v9237_v10, 0.0  ;;  %10126 = vst [vmem:[%s13748_s12 + $0x90] sm:$0xff] %v9301_v5  ;;  %v9235_v55 = vadd.f32 %v10092_v42, %v9219_v51  ;;  %v9299_v26 = vmax.f32 %v9283_v23, 0.0  ;;  %v8638_v59 = vadd.f32 %v8571_v45, %v15950_v46  ;;  %v10098_v10 = vld [vmem:[%s12199_s7 + $0xa1] sm:$0xff] }
 0x544   : > { %v9222_v3 = vmul.f32 %v9174_v49, %v9158_v27  ;;  %v9286_v34 = vadd.f32 %v10111_v50, %v9174_v49  ;;  %v9172_v35 = vadd.f32 %v15984_v58, %v9133_v25  ;;  %v9138_v9 = vadd.f32 %v15944_v33, %v8640_v43  ;;  %v11535_v21 = vpop.f32.mrf.mxu1  ;;  %v10114_v33 = vld [vmem:[%s12199_s7 + $0x221] sm:$0xff] }
 0x545   : > { %9269 = vst [vmem:[%s13748_s12 + $0x10] sm:$0xff] %v9253_v41  ;;  %v9251_v38 = vmax.f32 %v9235_v55, 0.0  ;;  %10124 = vst [vmem:[%s13748_s12 + $0x80] sm:$0xff] %v9299_v26  ;;  %v8641_v46 = vadd.f32 %v11535_v21, %v15957_v12  ;;  %v9136_v27 = vadd.f32 %v15979_v14, %v8638_v59  ;;  %v10096_v5 = vld [vmem:[%s12199_s7 + $0x81] sm:$0xff]  ;;  %v10099_v26 = vld [vmem:[%s12199_s7 + $0xa9] sm:$0xff] }
 0x546   : > { %v9238_v22 = vadd.f32 %v10095_v37, %v9222_v3  ;;  %v9302_v19 = vmax.f32 %v9286_v34, 0.0  ;;  %v9220_v56 = vmul.f32 %v9172_v35, %v9156_v60  ;;  %v9284_v8 = vadd.f32 %v10109_v40, %v9172_v35  ;;  %v8574_v53 = vpop.f32.mrf.mxu1  ;;  %v10113_v37 = vld [vmem:[%s12199_s7 + $0x209] sm:$0xff]  ;;  %v11587_v40 = vpop.f32.mrf.mxu0 }
 0x547   : > { %9267 = vst [vmem:[%s13748_s12] sm:$0xff] %v9251_v38  ;;  %v9177_v20 = vadd.f32 %v15984_v58, %v9138_v9  ;;  %v9175_v16 = vadd.f32 %v15984_v58, %v9136_v27  ;;  %v8639_v12 = vadd.f32 %v8574_v53, %v15971_v61  ;;  %v9139_v14 = vadd.f32 %v16005_v36, %v8641_v46  ;;  %v10097_v21 = vld [vmem:[%s12199_s7 + $0x89] sm:$0xff] }
 0x548   : > { %v16073_v60 = vadd.f32 %v16534_v18, %v8627_v7  ;;  %v9254_v42 = vmax.f32 %v9238_v22, 0.0  ;;  %10127 = vst [vmem:[%s13748_s12 + $0x98] sm:$0xff] %v9302_v19  ;;  %v9236_v15 = vadd.f32 %v10093_v4, %v9220_v56  ;;  %v9300_v0 = vmax.f32 %v9284_v8, 0.0  ;;  %v11538_v51 = vpop.f32.mrf.mxu1 }
 0x549   : > { %v9225_v23 = vmul.f32 %v9177_v20, %v16016_v47  ;;  %v9289_v50 = vadd.f32 %v10114_v33, %v9177_v20  ;;  %v9223_v61 = vmul.f32 %v9175_v16, %v16019_v31  ;;  %v9287_v36 = vadd.f32 %v10112_v13, %v9175_v16  ;;  %v10102_v20 = vld [vmem:[%s12199_s7 + $0xe1] sm:$0xff] }
 0x54a   : > { %9270 = vst [vmem:[%s13748_s12 + $0x18] sm:$0xff] %v9254_v42  ;;  %v9252_v7 = vmax.f32 %v9236_v15, 0.0  ;;  %10125 = vst [vmem:[%s13748_s12 + $0x88] sm:$0xff] %v9300_v0  ;;  %v9178_v49 = vadd.f32 %v15984_v58, %v9139_v14  ;;  %v8644_v43 = vadd.f32 %v11538_v51, %v15974_v52  ;;  %v9137_v25 = vadd.f32 %v16031_v17, %v8639_v12  ;;  %v8587_v45 = vpop.f32.mrf.mxu1  ;;  %v10116_v16 = vld [vmem:[%s12199_s7 + $0x241] sm:$0xff]  ;;  %v10119_v42 = vld [vmem:[%s12199_s7 + $0x269] sm:$0xff] }
 0x54b   : > { %v9241_v47 = vadd.f32 %v10098_v10, %v9225_v23  ;;  %v9305_v41 = vmax.f32 %v9289_v50, 0.0  ;;  %v9239_v55 = vadd.f32 %v10096_v5, %v9223_v61  ;;  %v9303_v31 = vmax.f32 %v9287_v36, 0.0  ;;  %v10100_v5 = vld [vmem:[%s12199_s7 + $0xc1] sm:$0xff] }
 0x54c   : > { %9268 = vst [vmem:[%s13748_s12 + $0x8] sm:$0xff] %v9252_v7  ;;  %v9226_v59 = vmul.f32 %v9178_v49, %v16022_v32  ;;  %v9290_v3 = vadd.f32 %v10115_v11, %v9178_v49  ;;  %v9176_v52 = vadd.f32 %v15984_v58, %v9137_v25  ;;  %v8642_v17 = vadd.f32 %v8587_v45, %v15991_v29  ;;  %v11539_v34 = vpop.f32.mrf.mxu1  ;;  %v10118_v29 = vld [vmem:[%s12199_s7 + $0x261] sm:$0xff]  ;;  %v10103_v11 = vld [vmem:[%s12199_s7 + $0xe9] sm:$0xff] }
 0x54d   : > { %v9257_v35 = vmax.f32 %v9241_v47, 0.0  ;;  %10130 = vst [vmem:[%s13748_s12 + $0xb0] sm:$0xff] %v9305_v41  ;;  %v9255_v9 = vmax.f32 %v9239_v55, 0.0  ;;  %10128 = vst [vmem:[%s13748_s12 + $0xa0] sm:$0xff] %v9303_v31  ;;  %v9142_v30 = vadd.f32 %v16053_v39, %v8644_v43  ;;  %v8645_v38 = vadd.f32 %v11539_v34, %v15994_v6  ;;  %v9088_v6 = vpop.f32.mrf.mxu0  ;;  %v10117_v7 = vld [vmem:[%s12199_s7 + $0x249] sm:$0xff] }
 0x54e   : > { %v9242_v32 = vadd.f32 %v10099_v26, %v9226_v59  ;;  %v9306_v4 = vmax.f32 %v9290_v3, 0.0  ;;  %v9224_v46 = vmul.f32 %v9176_v52, %v16025_v54  ;;  %v9288_v27 = vadd.f32 %v10113_v37, %v9176_v52  ;;  %v8590_v22 = vpop.f32.mrf.mxu1  ;;  %v16536_v49 = vld [vmem:[#allocation32_spill] sm:$0xff]  ;;  %v16538_v52 = vld [vmem:[#allocation17_spill] sm:$0xff] }
 0x54f   : > { %9273 = vst [vmem:[%s13748_s12 + $0x30] sm:$0xff] %v9257_v35  ;;  %9271 = vst [vmem:[%s13748_s12 + $0x20] sm:$0xff] %v9255_v9  ;;  %v9181_v19 = vadd.f32 %v15984_v58, %v9142_v30  ;;  %v9140_v56 = vadd.f32 %v9085_v57, %v8642_v17  ;;  %v8643_v39 = vadd.f32 %v8590_v22, %v16002_v48  ;;  %v16537_v59 = vld [vmem:[#allocation28_spill] sm:$0xff]  ;;  %v16539_v35 = vld [vmem:[#allocation37_spill] sm:$0xff] }
 0x550   : > { %v9143_v8 = vadd.f32 %v11587_v40, %v8645_v38  ;;  %v9166_v33 = vadd.f32 %v15984_v58, %v16058_v1  ;;  %v9258_v54 = vmax.f32 %v9242_v32, 0.0  ;;  %10131 = vst [vmem:[%s13748_s12 + $0xb8] sm:$0xff] %v9306_v4  ;;  %v9240_v13 = vadd.f32 %v10097_v21, %v9224_v46  ;;  %v11542_v12 = vpop.f32.mrf.mxu1  ;;  %v16535_v1 = vld [vmem:[#allocation33_spill] sm:$0xff]  ;;  %v16540_v21 = vld [vmem:[#allocation42_spill] sm:$0xff]  ;;  %v16542_v22 = vld [vmem:[#allocation20_spill] sm:$0xff] }
 0x551   : > { %v9304_v53 = vmax.f32 %v9288_v27, 0.0  ;;  %v9229_v14 = vmul.f32 %v9181_v19, %v16034_v2  ;;  %v9293_v57 = vadd.f32 %v10118_v29, %v9181_v19  ;;  %v9179_v48 = vadd.f32 %v15984_v58, %v9140_v56  ;;  %v16541_v27 = vld [vmem:[#allocation39_spill] sm:$0xff] }
 0x552   : > { %v9182_v18 = vadd.f32 %v15984_v58, %v9143_v8  ;;  %v8632_v15 = vadd.f32 %v15926_v63, %v16535_v1  ;;  %v9164_v0 = vadd.f32 %v15984_v58, %v16073_v60  ;;  %9274 = vst [vmem:[%s13748_s12 + $0x38] sm:$0xff] %v9258_v54  ;;  %v9256_v10 = vmax.f32 %v9240_v13, 0.0  ;;  %v8603_v51 = vpop.f32.mrf.mxu1 }
 0x553   : > { %10129 = vst [vmem:[%s13748_s12 + $0xa8] sm:$0xff] %v9304_v53  ;;  %v9141_v2 = vadd.f32 %v9088_v6, %v8643_v39  ;;  %v9245_v23 = vadd.f32 %v10102_v20, %v9229_v14  ;;  %v9309_v50 = vmax.f32 %v9293_v57, 0.0  ;;  %v9227_v61 = vmul.f32 %v9179_v48, %v16039_v24  ;;  %v10101_v24 = vld [vmem:[%s12199_s7 + $0xc9] sm:$0xff]  ;;  %v10122_v39 = vld [vmem:[%s12199_s7 + $0x2a1] sm:$0xff] }
 0x554   : > { %v9291_v36 = vadd.f32 %v10116_v16, %v9179_v48  ;;  %v8630_v63 = vadd.f32 %v15934_v44, %v16536_v49  ;;  %9272 = vst [vmem:[%s13748_s12 + $0x28] sm:$0xff] %v9256_v10  ;;  %v9230_v60 = vmul.f32 %v9182_v18, %v9166_v33  ;;  %v9294_v43 = vadd.f32 %v10119_v42, %v9182_v18  ;;  %v11543_v45 = vpop.f32.mrf.mxu1  ;;  %v16543_v33 = vld [vmem:[#allocation40_spill] sm:$0xff]  ;;  %v16544_v16 = vld [vmem:[#allocation43_spill] sm:$0xff]  ;;  %v16546_v10 = vld [vmem:[#allocation21_spill] sm:$0xff] }
 0x555   : > { %v9180_v25 = vadd.f32 %v15984_v58, %v9141_v2  ;;  %v9261_v47 = vmax.f32 %v9245_v23, 0.0  ;;  %10134 = vst [vmem:[%s13748_s12 + $0xd0] sm:$0xff] %v9309_v50  ;;  %v9243_v41 = vadd.f32 %v10100_v5, %v9227_v61  ;;  %v9130_v3 = vadd.f32 %v16537_v59, %v8632_v15  ;;  %v10120_v14 = vld [vmem:[%s12199_s7 + $0x281] sm:$0xff] }
 0x556   : > { %v9307_v55 = vmax.f32 %v9291_v36, 0.0  ;;  %v9246_v31 = vadd.f32 %v10103_v11, %v9230_v60  ;;  %v9310_v26 = vmax.f32 %v9294_v43, 0.0  ;;  %v8606_v44 = vpop.f32.mrf.mxu1  ;;  %v8633_v17 = vadd.f32 %v15954_v62, %v16538_v52  ;;  %v16545_v15 = vld [vmem:[#allocation44_spill] sm:$0xff] }
 0x557   : > { %v9228_v37 = vmul.f32 %v9180_v25, %v9164_v0  ;;  %v9292_v40 = vadd.f32 %v10117_v7, %v9180_v25  ;;  %9277 = vst [vmem:[%s13748_s12 + $0x50] sm:$0xff] %v9261_v47  ;;  %v9259_v34 = vmax.f32 %v9243_v41, 0.0  ;;  %v8648_v9 = vadd.f32 %v11542_v12, %v16539_v35  ;;  %v10104_v2 = vld [vmem:[%s12199_s7 + $0x101] sm:$0xff]  ;;  %v10123_v11 = vld [vmem:[%s12199_s7 + $0x2a9] sm:$0xff] }
 0x558   : > { %10132 = vst [vmem:[%s13748_s12 + $0xc0] sm:$0xff] %v9307_v55  ;;  %v9128_v30 = vadd.f32 %v16540_v21, %v8630_v63  ;;  %v9262_v38 = vmax.f32 %v9246_v31, 0.0  ;;  %10135 = vst [vmem:[%s13748_s12 + $0xd8] sm:$0xff] %v9310_v26  ;;  %v11590_v46 = vpop.f32.mrf.mxu1  ;;  %v8646_v29 = vadd.f32 %v8603_v51, %v16541_v27  ;;  %v8631_v19 = vadd.f32 %v15968_v28, %v16542_v22  ;;  %v10106_v28 = vld [vmem:[%s12199_s7 + $0x121] sm:$0xff]  ;;  %v10121_v47 = vld [vmem:[%s12199_s7 + $0x289] sm:$0xff] }
 0x559   : > { %v9244_v32 = vadd.f32 %v10101_v24, %v9228_v37  ;;  %v9308_v4 = vmax.f32 %v9292_v40, 0.0  ;;  %9275 = vst [vmem:[%s13748_s12 + $0x40] sm:$0xff] %v9259_v34  ;;  %v9146_v62 = vadd.f32 %v11590_v46, %v8648_v9  ;;  %v9169_v6 = vadd.f32 %v15984_v58, %v9130_v3  ;;  %v10105_v37 = vld [vmem:[%s12199_s7 + $0x109] sm:$0xff] }
 0x55a   : > { %9278 = vst [vmem:[%s13748_s12 + $0x58] sm:$0xff] %v9262_v38  ;;  %v9101_v8 = vpop.f32.mrf.mxu1  ;;  %v8649_v54 = vadd.f32 %v11543_v45, %v16543_v33  ;;  %v9167_v20 = vadd.f32 %v15984_v58, %v9128_v30  ;;  %v9131_v12 = vadd.f32 %v16544_v16, %v8633_v17  ;;  %v9129_v0 = vadd.f32 %v16545_v15, %v8631_v19  ;;  %v10107_v45 = vld [vmem:[%s12199_s7 + $0x129] sm:$0xff] }
 0x55b   : > { %v9260_v56 = vmax.f32 %v9244_v32, 0.0  ;;  %10133 = vst [vmem:[%s13748_s12 + $0xc8] sm:$0xff] %v9308_v4  ;;  %v9185_v13 = vadd.f32 %v15984_v58, %v9146_v62  ;;  %v9144_v53 = vadd.f32 %v9101_v8, %v8646_v29  ;;  %v8647_v5 = vadd.f32 %v8606_v44, %v16546_v10 }
 0x55c   : > { %v11591_v57 = vpop.f32.mrf.mxu1  ;;  %v9170_v7 = vadd.f32 %v15984_v58, %v9131_v12  ;;  %v9168_v41 = vadd.f32 %v15984_v58, %v9129_v0 }
 0x55d   : > { %9276 = vst [vmem:[%s13748_s12 + $0x48] sm:$0xff] %v9260_v56  ;;  %v9233_v48 = vmul.f32 %v9185_v13, %v9169_v6  ;;  %v9297_v18 = vadd.f32 %v10122_v39, %v9185_v13  ;;  %v9183_v42 = vadd.f32 %v15984_v58, %v9144_v53  ;;  %v9147_v1 = vadd.f32 %v11591_v57, %v8649_v54 }
 0x55e   : > { %v9104_v51 = vpop.f32.mrf.mxu1 }
 0x55f   : > { %v9249_v23 = vadd.f32 %v10106_v28, %v9233_v48  ;;  %v9313_v50 = vmax.f32 %v9297_v18, 0.0  ;;  %v9231_v61 = vmul.f32 %v9183_v42, %v9167_v20  ;;  %v9295_v36 = vadd.f32 %v10120_v14, %v9183_v42 }
 0x560   : > { %v9186_v49 = vadd.f32 %v15984_v58, %v9147_v1  ;;  %v9145_v63 = vadd.f32 %v9104_v51, %v8647_v5 }
 0x561   : > { %v9265_v60 = vmax.f32 %v9249_v23, 0.0  ;;  %10138 = vst [vmem:[%s13748_s12 + $0xf0] sm:$0xff] %v9313_v50  ;;  %v9247_v43 = vadd.f32 %v10104_v2, %v9231_v61  ;;  %v9311_v25 = vmax.f32 %v9295_v36, 0.0 }
 0x562   : > { %v9234_v55 = vmul.f32 %v9186_v49, %v9170_v7  ;;  %v9298_v24 = vadd.f32 %v10123_v11, %v9186_v49  ;;  %v9184_v31 = vadd.f32 %v15984_v58, %v9145_v63 }
 0x563   : > { %9281 = vst [vmem:[%s13748_s12 + $0x70] sm:$0xff] %v9265_v60  ;;  %v9263_v26 = vmax.f32 %v9247_v43, 0.0  ;;  %10136 = vst [vmem:[%s13748_s12 + $0xe0] sm:$0xff] %v9311_v25 }
 0x564   : > { %v9250_v40 = vadd.f32 %v10107_v45, %v9234_v55  ;;  %v9314_v44 = vmax.f32 %v9298_v24, 0.0  ;;  %v9232_v59 = vmul.f32 %v9184_v31, %v9168_v41  ;;  %v9296_v3 = vadd.f32 %v10121_v47, %v9184_v31 }
 0x565   : > { %9279 = vst [vmem:[%s13748_s12 + $0x60] sm:$0xff] %v9263_v26 }
 0x566   : > { %v9266_v52 = vmax.f32 %v9250_v40, 0.0  ;;  %10139 = vst [vmem:[%s13748_s12 + $0xf8] sm:$0xff] %v9314_v44  ;;  %v9248_v17 = vadd.f32 %v10105_v37, %v9232_v59  ;;  %v9312_v34 = vmax.f32 %v9296_v3, 0.0 }
 0x568   : > { %9282 = vst [vmem:[%s13748_s12 + $0x78] sm:$0xff] %v9266_v52  ;;  %v9264_v35 = vmax.f32 %v9248_v17, 0.0  ;;  %10137 = vst [vmem:[%s13748_s12 + $0xe8] sm:$0xff] %v9312_v34 }
 0x56a   : > { %9280 = vst [vmem:[%s13748_s12 + $0x68] sm:$0xff] %v9264_v35 }
 0x56b   : > { %s10187_s10 = sshll.u32 %s12088_s22, 11  ;;  %s9357_s13 = sshll.u32 %s13748_s12, 4  ;;  %s9358_s13 = int_to_ptr.vmem [resolvable:$true] %s9357_s13 }
 0x56c   : > { %s9346_s30 = scalar_lea.hbm %s16214_s5, %s10187_s10  ;;  %s12030_s7 = smov 2048  }
 0x56d   : > { %p16547_p1 = scmp.ne.s32.totalorder %s16265_s23, 0  ;;  %s12031_s16 = smov 4096  }
 0x56e   : > { %s12032_s26 = smov 16   ;;  %s12033_s24 = smov 128  }
 0x56f   : > { %11621 = sst [smem:[#allocation11]] (%p16547_p1), %s12030_s7  ;;  %s12034_s22 = smov 8  }
 0x570   : > { %11622 = sst [smem:[#allocation11 + $0x1]] (%p16547_p1), %s12031_s16  ;;  %s12035_s6 = smov 131072  }
 0x571   : > { %11623 = sst [smem:[#allocation11 + $0x2]] (%p16547_p1), %s12032_s26  ;;  %s12036_s9 = smov 0  }
 0x572   : > { %11624 = sst [smem:[#allocation11 + $0x3]] (%p16547_p1), %s12033_s24 }
 0x573   : > { %11625 = sst [smem:[#allocation11 + $0x4]] (%p16547_p1), %s12033_s24 }
 0x574   : > { %11626 = sst [smem:[#allocation11 + $0x5]] (%p16547_p1), %s12034_s22 }
 0x575   : > { %11627 = dma.general (%p16547_p1), %s9358_s13, 4096, %s9346_s30, %s9333_s8, %s12035_s6, [#allocation11], %s12036_s9, 0  }
 0x576 PF: > { %s9385_s11 = sand.u32 1, %s12007_s18   ;;  %p16548_p2 = scmp.ne.s32.totalorder %s16261_s25, 0 }
 0x577   : > { %p16549_p6 = scmp.ge.s32.totalorder %s12019_s21, 2  ;;  %s9386_s12 = scalar_lea.sflag [#allocation5], %s9385_s11 }
 0x579   : > { %p11641_p13 = pnand %p16549_p6, %p16548_p2 }
 0x57b   : > { %p11642_p7 = pneg %p11641_p13 }
 0x57d   : > { %12002 = dma.done.wait (%p11642_p7), %s9386_s12, 4096  }
 0x57e   : > { %12004 = vsyncadd (%p11642_p7), %s9386_s12, 4294963200  ;;  %p19_p10 = scmp.ge.s32.totalorder %s12140_s15, 4   ;;  %s16550_s18 = smov %s12011_s19 }
 0x57f   : > { %s16551_s19 = smov %s12015_s20  ;;  %s16552_s20 = smov %s12156_s27 }
 0x580   : > { %s16553_s21 = smov %s12140_s15  ;;  %21 = sbr.rel (!%p19_p10) target bundleno = 6 (0x6), region = 129 }
 0x585   :  { %9391 = vsyncpa [#allocation4], 1 }
 0x586   :  { %9393 = vsyncpa [#allocation4 + $0x1], 1 }
 0x587   :  { %9394 = vsyncpa [#allocation7], 1 }
 0x588   :  { %9395 = vsyncpa [#allocation5], 1 }
 0x589   :  { %9397 = vsyncpa [#allocation5 + $0x1], 1 }

</bundles_post_ra>
